<compile_context>
chip_gen: v7x
topology: tpu7x:2x2x1
jax: 0.10.0
libtpu: 0.0.40
codegen_flags: <defaults>
</compile_context>

<pallas_src>
import functools

import jax
import jax.numpy as jnp
from jax import lax
from jax.experimental import pallas as pl
from jax.experimental.pallas import tpu as pltpu

LANE = 128  # TPU lane width


def _round_up(x, m):
    return ((x + m - 1) // m) * m


def _sepconv_kernel(xin_ref, w1f_ref, g1_ref, b1_ref, wdw2_ref, wpw2_ref,
                    g2_ref, b2_ref, o_ref,
                    xr_ref, y1_ref, xp2_ref, dwacc_ref, y2_ref,
                    *, kh, kw, stride, pad, ml, n, ho1, wo1, ho2, wo2, eps):
    """Whole SepConv forward in one invocation (grid=(1,))."""
    rows1 = n * ho1 * wo1
    rows2 = n * ho2 * wo2
    cin_p = xin_ref.shape[-1]

    # ---- unit 1: ReLU hoisted -- applied exactly once into a VMEM buffer ----
    xr_ref[...] = jnp.maximum(xin_ref[...], 0.0)

    # ---- unit 1: depthwise(k,stride) + 1x1 folded into per-tap MXU matmuls,
    #      accumulated in VMEM scratch (no 64-vreg register accumulator) ----
    for t in range(kh * kw):
        i, j = divmod(t, kw)
        if stride == 1:
            tap = xr_ref[:, i:i + ho1, j:j + wo1, :]
        else:
            # TODO(synk): stride>1 tap path (strided sublane reads) is not
            # exercised by the test below and is left unoptimized.
            tap = xr_ref[:, pl.ds(i, ho1, stride), pl.ds(j, wo1, stride), :]
        contrib = jnp.dot(tap.reshape(rows1, cin_p), w1f_ref[t],
                          preferred_element_type=jnp.float32)
        if t == 0:
            y1_ref[...] = contrib
        else:
            y1_ref[...] += contrib

    # ---- BN1 (training-mode batch stats, two-pass variance) fused with the
    #      next ReLU, written straight into unit-2's zero-padded halo buffer
    #      (W interior at a sublane-aligned offset -> unmasked store) ----
    inv1 = 1.0 / rows1
    mean1 = jnp.sum(y1_ref[...], axis=0, keepdims=True) * inv1
    c1 = y1_ref[...] - mean1
    var1 = jnp.sum(c1 * c1, axis=0, keepdims=True) * inv1
    scale1 = g1_ref[...] * lax.rsqrt(var1 + eps)
    shift1 = b1_ref[...] - mean1 * scale1
    xp2_ref[...] = jnp.zeros_like(xp2_ref)
    x2 = jnp.maximum(y1_ref[...] * scale1 + shift1, 0.0)
    xp2_ref[:, pad:pad + ho1, ml:ml + wo1, :] = x2.reshape(n, ho1, wo1, LANE)

    # ---- unit 2: depthwise(k,1) taps on the VPU, accumulated in VMEM ----
    for t in range(kh * kw):
        i, j = divmod(t, kw)
        w0 = ml - pad + j
        contrib = xp2_ref[:, i:i + ho2, w0:w0 + wo2, :] * wdw2_ref[t]
        if t == 0:
            dwacc_ref[...] = contrib
        else:
            dwacc_ref[...] += contrib

    # ---- unit 2: 1x1 conv on the MXU + BN2 -> lane-dense final store ----
    y2_ref[...] = jnp.dot(dwacc_ref[...].reshape(rows2, LANE), wpw2_ref[...],
                          preferred_element_type=jnp.float32)
    inv2 = 1.0 / rows2
    mean2 = jnp.sum(y2_ref[...], axis=0, keepdims=True) * inv2
    c2 = y2_ref[...] - mean2
    var2 = jnp.sum(c2 * c2, axis=0, keepdims=True) * inv2
    scale2 = g2_ref[...] * lax.rsqrt(var2 + eps)
    shift2 = b2_ref[...] - mean2 * scale2
    o_ref[...] = (y2_ref[...] * scale2 + shift2).reshape(n, ho2, wo2, LANE)


def sep_conv(x_nchw, params, *, stride, padding, eps=1e-5):
    """Forward of SepConv:
    ReLU -> DWConv(k,s,p) -> 1x1 -> BN -> ReLU -> DWConv(k,1,p) -> 1x1 -> BN."""
    w_dw1, w_pw1, g1, b1, w_dw2, w_pw2, g2, b2 = params
    n, c_in, h, w = x_nchw.shape
    c_mid = w_pw1.shape[0]   # = C_in
    c_out = w_pw2.shape[0]
    kh, kw = int(w_dw1.shape[2]), int(w_dw1.shape[3])

    ho1 = (h + 2 * padding - kh) // stride + 1
    wo1 = (w + 2 * padding - kw) // stride + 1
    ho2 = ho1 + 2 * padding - kh + 1
    wo2 = wo1 + 2 * padding - kw + 1
    assert c_mid <= LANE and c_out <= LANE

    # Small sublane-friendly channel pad (4 -> 8), NOT the 32x pad to 128:
    # the 128-lane expansion happens implicitly via the folded per-tap matmul.
    cin_p = _round_up(max(c_in, 8), 8)

    # NCHW -> NHWC, tiny channel pad + spatial halo pad for unit 1 (one XLA op).
    x = jnp.transpose(x_nchw, (0, 2, 3, 1)).astype(jnp.float32)
    x = jnp.pad(x, ((0, 0), (padding, padding), (padding, padding),
                    (0, cin_p - c_in)))
    hp1, wp1 = h + 2 * padding, w + 2 * padding

    # Fold unit-1 depthwise & pointwise: per tap t, W1[t][c, m] = dw1[c,t]*pw1[m,c].
    dw1 = w_dw1.reshape(c_in, kh * kw).astype(jnp.float32)          # [c, t]
    pw1 = w_pw1.reshape(c_mid, c_in).astype(jnp.float32)            # [m, c]
    w1f = jnp.zeros((kh * kw, cin_p, LANE), jnp.float32)
    w1f = w1f.at[:, :c_in, :c_mid].set(dw1.T[:, :, None] * pw1.T[None, :, :])

    # Unit-2 weights, lane-padded once at trace time.
    dw2 = w_dw2.reshape(c_mid, kh * kw).astype(jnp.float32)
    wdw2 = jnp.zeros((kh * kw, LANE), jnp.float32).at[:, :c_mid].set(dw2.T)
    wpw2 = jnp.zeros((LANE, LANE), jnp.float32).at[:c_mid, :c_out].set(
        w_pw2.reshape(c_out, c_mid).T.astype(jnp.float32))

    g1p = jnp.zeros((1, LANE), jnp.float32).at[0, :c_mid].set(g1.astype(jnp.float32))
    b1p = jnp.zeros((1, LANE), jnp.float32).at[0, :c_mid].set(b1.astype(jnp.float32))
    g2p = jnp.zeros((1, LANE), jnp.float32).at[0, :c_out].set(g2.astype(jnp.float32))
    b2p = jnp.zeros((1, LANE), jnp.float32).at[0, :c_out].set(b2.astype(jnp.float32))

    # Unit-2 halo buffer geometry: interior W starts at a sublane-aligned offset
    # so the in-kernel halo store is an aligned, unmasked store.
    ml = _round_up(padding, 8) if padding > 0 else 0
    hp2 = ho1 + 2 * padding
    wp2 = ml + wo1 + padding

    rows1 = n * ho1 * wo1
    rows2 = n * ho2 * wo2

    kern = functools.partial(
        _sepconv_kernel, kh=kh, kw=kw, stride=stride, pad=padding, ml=ml,
        n=n, ho1=ho1, wo1=wo1, ho2=ho2, wo2=wo2, eps=float(eps))

    out_p = pl.pallas_call(
        kern,
        out_shape=jax.ShapeDtypeStruct((n, ho2, wo2, LANE), jnp.float32),
        grid_spec=pltpu.PrefetchScalarGridSpec(
            num_scalar_prefetch=0,
            grid=(1,),
            in_specs=[
                pl.BlockSpec((n, hp1, wp1, cin_p), lambda i: (0, 0, 0, 0)),
                pl.BlockSpec((kh * kw, cin_p, LANE), lambda i: (0, 0, 0)),
                pl.BlockSpec((1, LANE), lambda i: (0, 0)),
                pl.BlockSpec((1, LANE), lambda i: (0, 0)),
                pl.BlockSpec((kh * kw, LANE), lambda i: (0, 0)),
                pl.BlockSpec((LANE, LANE), lambda i: (0, 0)),
                pl.BlockSpec((1, LANE), lambda i: (0, 0)),
                pl.BlockSpec((1, LANE), lambda i: (0, 0)),
            ],
            out_specs=pl.BlockSpec((n, ho2, wo2, LANE), lambda i: (0, 0, 0, 0)),
            scratch_shapes=[
                pltpu.VMEM((n, hp1, wp1, cin_p), jnp.float32),   # ReLU'd padded input
                pltpu.VMEM((rows1, LANE), jnp.float32),          # unit-1 pre-BN output
                pltpu.VMEM((n, hp2, wp2, LANE), jnp.float32),    # unit-2 halo buffer
                pltpu.VMEM((n, ho2, wo2, LANE), jnp.float32),    # unit-2 depthwise acc
                pltpu.VMEM((rows2, LANE), jnp.float32),          # unit-2 pre-BN output
            ],
        ),
        compiler_params=pltpu.CompilerParams(
            dimension_semantics=("arbitrary",)),
    )(x, w1f, g1p, b1p, wdw2, wpw2, g2p, b2p)

    out = out_p[:, :, :, :c_out]                  # strip channel padding
    return jnp.transpose(out, (0, 3, 1, 2))       # back to NCHW


def _reference(x, w_dw1, w_pw1, g1, b1, w_dw2, w_pw2, g2, b2,
               *, stride, padding, eps=1e-5):
    """Pure-JAX reference matching PyTorch SepConv (train-mode BatchNorm)."""
    C_in = x.shape[1]

    def bn(y, g, b):
        mean = y.mean(axis=(0, 2, 3), keepdims=True)
        var = y.var(axis=(0, 2, 3), keepdims=True)
        yhat = (y - mean) * lax.rsqrt(var + eps)
        return yhat * g.reshape(1, -1, 1, 1) + b.reshape(1, -1, 1, 1)

    def dwconv(h, w, s):
        return lax.conv_general_dilated(
            h, w, (s, s), [(padding, padding)] * 2,
            dimension_numbers=("NCHW", "OIHW", "NCHW"),
            feature_group_count=C_in)

    def pwconv(h, w):
        return lax.conv_general_dilated(
            h, w, (1, 1), [(0, 0), (0, 0)],
            dimension_numbers=("NCHW", "OIHW", "NCHW"))

    h = jax.nn.relu(x)
    h = bn(pwconv(dwconv(h, w_dw1, stride), w_pw1), g1, b1)
    h = jax.nn.relu(h)
    h = bn(pwconv(dwconv(h, w_dw2, 1), w_pw2), g2, b2)
    return h


if __name__ == "__main__":
    # module config: SepConv(C_in=4, C_out=8, kernel_size=3, stride=1, padding=1)
    N, C_in, C_out, H, W = 2, 4, 8, 16, 16
    ksize, stride, padding = 3, 1, 1

    key = jax.random.PRNGKey(0)
    ks = jax.random.split(key, 9)
    x = jax.random.normal(ks[0], (N, C_in, H, W), dtype=jnp.float32)
    w_dw1 = jax.random.normal(ks[1], (C_in, 1, ksize, ksize), jnp.float32) * 0.3
    w_pw1 = jax.random.normal(ks[2], (C_in, C_in, 1, 1), jnp.float32) * 0.3
    w_dw2 = jax.random.normal(ks[3], (C_in, 1, ksize, ksize), jnp.float32) * 0.3
    w_pw2 = jax.random.normal(ks[4], (C_out, C_in, 1, 1), jnp.float32) * 0.3
    g1 = 1.0 + 0.1 * jax.random.normal(ks[5], (C_in,), jnp.float32)
    b1 = 0.1 * jax.random.normal(ks[6], (C_in,), jnp.float32)
    g2 = 1.0 + 0.1 * jax.random.normal(ks[7], (C_out,), jnp.float32)
    b2 = 0.1 * jax.random.normal(ks[8], (C_out,), jnp.float32)

    params = (w_dw1, w_pw1, g1, b1, w_dw2, w_pw2, g2, b2)

    fwd = jax.jit(functools.partial(sep_conv, stride=stride, padding=padding))
    out = jax.block_until_ready(fwd(x, params))

    ref = _reference(x, *params, stride=stride, padding=padding)
    assert out.shape == ref.shape == (N, C_out, H, W)
    assert jnp.allclose(out, ref, rtol=1e-3, atol=1e-3), (
        "mismatch vs reference: max abs err = %g"
        % float(jnp.max(jnp.abs(out - ref))))
    print("KERNEL_OK")
</pallas_src>

<mosaic_0001>
module attributes {stable_mosaic.version = 11 : i64} {
  func.func @_sepconv_kernel(%arg0: i32, %arg1: memref<2x18x18x8xf32, #tpu.memory_space<vmem>>, %arg2: memref<9x8x128xf32, #tpu.memory_space<vmem>>, %arg3: memref<1x128xf32, #tpu.memory_space<vmem>>, %arg4: memref<1x128xf32, #tpu.memory_space<vmem>>, %arg5: memref<9x128xf32, #tpu.memory_space<vmem>>, %arg6: memref<128x128xf32, #tpu.memory_space<vmem>>, %arg7: memref<1x128xf32, #tpu.memory_space<vmem>>, %arg8: memref<1x128xf32, #tpu.memory_space<vmem>>, %arg9: memref<2x16x16x128xf32, #tpu.memory_space<vmem>>, %arg10: memref<2x18x18x8xf32, #tpu.memory_space<vmem>>, %arg11: memref<512x128xf32, #tpu.memory_space<vmem>>, %arg12: memref<2x18x25x128xf32, #tpu.memory_space<vmem>>, %arg13: memref<2x16x16x128xf32, #tpu.memory_space<vmem>>, %arg14: memref<512x128xf32, #tpu.memory_space<vmem>>) attributes {dimension_semantics = [#tpu.dimension_semantics<arbitrary>], iteration_bounds = array<i64: 1>, scalar_prefetch = 0 : i64, scratch_operands = 5 : i64, tpu.core_type = #tpu.core_type<tc>, window_params = [{pipeline_mode = #tpu.pipeline_mode<synchronous>, transform_indices = @transform_0, window_bounds = array<i64: 2, 18, 18, 8>}, {pipeline_mode = #tpu.pipeline_mode<synchronous>, transform_indices = @transform_1, window_bounds = array<i64: 9, 8, 128>}, {pipeline_mode = #tpu.pipeline_mode<synchronous>, transform_indices = @transform_2, window_bounds = array<i64: 1, 128>}, {pipeline_mode = #tpu.pipeline_mode<synchronous>, transform_indices = @transform_3, window_bounds = array<i64: 1, 128>}, {pipeline_mode = #tpu.pipeline_mode<synchronous>, transform_indices = @transform_4, window_bounds = array<i64: 9, 128>}, {pipeline_mode = #tpu.pipeline_mode<synchronous>, transform_indices = @transform_5, window_bounds = array<i64: 128, 128>}, {pipeline_mode = #tpu.pipeline_mode<synchronous>, transform_indices = @transform_6, window_bounds = array<i64: 1, 128>}, {pipeline_mode = #tpu.pipeline_mode<synchronous>, transform_indices = @transform_7, window_bounds = array<i64: 1, 128>}, {pipeline_mode = #tpu.pipeline_mode<synchronous>, transform_indices = @transform_8, window_bounds = array<i64: 2, 16, 16, 128>}]} {
    %c0 = arith.constant 0 : index
    %c0_0 = arith.constant 0 : index
    %c0_1 = arith.constant 0 : index
    %c0_2 = arith.constant 0 : index
    %0 = vector.load %arg1[%c0, %c0_0, %c0_1, %c0_2] : memref<2x18x18x8xf32, #tpu.memory_space<vmem>>, vector<2x18x18x8xf32>
    %cst = arith.constant 0.000000e+00 : f32
    %1 = vector.broadcast %cst : f32 to vector<2x18x18x8xf32>
    %2 = arith.maximumf %0, %1 : vector<2x18x18x8xf32>
    %c0_3 = arith.constant 0 : index
    %c0_4 = arith.constant 0 : index
    %c0_5 = arith.constant 0 : index
    %c0_6 = arith.constant 0 : index
    %3 = vector.load %arg10[%c0_3, %c0_4, %c0_5, %c0_6] : memref<2x18x18x8xf32, #tpu.memory_space<vmem>>, vector<2x18x18x8xf32>
    tpu.vector_store %arg10[%c0_3, %c0_4, %c0_5, %c0_6], %2 {strides = array<i32>} : memref<2x18x18x8xf32, #tpu.memory_space<vmem>>, vector<2x18x18x8xf32>,
    %c0_7 = arith.constant 0 : index
    %c0_8 = arith.constant 0 : index
    %c0_9 = arith.constant 0 : index
    %c0_10 = arith.constant 0 : index
    %4 = vector.load %arg10[%c0_7, %c0_8, %c0_9, %c0_10] : memref<2x18x18x8xf32, #tpu.memory_space<vmem>>, vector<2x16x16x8xf32>
    %5 = vector.shape_cast %4 : vector<2x16x16x8xf32> to vector<512x8xf32>
    %c0_11 = arith.constant 0 : index
    %c0_12 = arith.constant 0 : index
    %c0_13 = arith.constant 0 : index
    %6 = vector.load %arg2[%c0_11, %c0_12, %c0_13] : memref<9x8x128xf32, #tpu.memory_space<vmem>>, vector<1x8x128xf32>
    %7 = vector.shape_cast %6 : vector<1x8x128xf32> to vector<8x128xf32>
    %cst_14 = arith.constant dense<0.000000e+00> : vector<512x128xf32>
    %8 = tpu.matmul %5, %7, %cst_14 {dimension_numbers = #tpu.dot_dimension_numbers<[1], [0], [0], [1], [0, 0, 1, 1], [], []>} : vector<512x8xf32>, vector<8x128xf32>, vector<512x128xf32> -> vector<512x128xf32>
    %c0_15 = arith.constant 0 : index
    %c0_16 = arith.constant 0 : index
    %9 = vector.load %arg11[%c0_15, %c0_16] : memref<512x128xf32, #tpu.memory_space<vmem>>, vector<512x128xf32>
    tpu.vector_store %arg11[%c0_15, %c0_16], %8 {strides = array<i32>} : memref<512x128xf32, #tpu.memory_space<vmem>>, vector<512x128xf32>,
    %c0_17 = arith.constant 0 : index
    %c0_18 = arith.constant 0 : index
    %c1 = arith.constant 1 : index
    %c0_19 = arith.constant 0 : index
    %10 = vector.load %arg10[%c0_17, %c0_18, %c1, %c0_19] : memref<2x18x18x8xf32, #tpu.memory_space<vmem>>, vector<2x16x16x8xf32>
    %11 = vector.shape_cast %10 : vector<2x16x16x8xf32> to vector<512x8xf32>
    %c1_20 = arith.constant 1 : index
    %c0_21 = arith.constant 0 : index
    %c0_22 = arith.constant 0 : index
    %12 = vector.load %arg2[%c1_20, %c0_21, %c0_22] : memref<9x8x128xf32, #tpu.memory_space<vmem>>, vector<1x8x128xf32>
    %13 = vector.shape_cast %12 : vector<1x8x128xf32> to vector<8x128xf32>
    %cst_23 = arith.constant dense<0.000000e+00> : vector<512x128xf32>
    %14 = tpu.matmul %11, %13, %cst_23 {dimension_numbers = #tpu.dot_dimension_numbers<[1], [0], [0], [1], [0, 0, 1, 1], [], []>} : vector<512x8xf32>, vector<8x128xf32>, vector<512x128xf32> -> vector<512x128xf32>
    %c0_24 = arith.constant 0 : index
    %c0_25 = arith.constant 0 : index
    %15 = vector.load %arg11[%c0_24, %c0_25] : memref<512x128xf32, #tpu.memory_space<vmem>>, vector<512x128xf32>
    %16 = arith.addf %15, %14 : vector<512x128xf32>
    %c0_26 = arith.constant 0 : index
    %c0_27 = arith.constant 0 : index
    %17 = vector.load %arg11[%c0_26, %c0_27] : memref<512x128xf32, #tpu.memory_space<vmem>>, vector<512x128xf32>
    tpu.vector_store %arg11[%c0_26, %c0_27], %16 {strides = array<i32>} : memref<512x128xf32, #tpu.memory_space<vmem>>, vector<512x128xf32>,
    %c0_28 = arith.constant 0 : index
    %c0_29 = arith.constant 0 : index
    %c2 = arith.constant 2 : index
    %c0_30 = arith.constant 0 : index
    %18 = vector.load %arg10[%c0_28, %c0_29, %c2, %c0_30] : memref<2x18x18x8xf32, #tpu.memory_space<vmem>>, vector<2x16x16x8xf32>
    %19 = vector.shape_cast %18 : vector<2x16x16x8xf32> to vector<512x8xf32>
    %c2_31 = arith.constant 2 : index
    %c0_32 = arith.constant 0 : index
    %c0_33 = arith.constant 0 : index
    %20 = vector.load %arg2[%c2_31, %c0_32, %c0_33] : memref<9x8x128xf32, #tpu.memory_space<vmem>>, vector<1x8x128xf32>
    %21 = vector.shape_cast %20 : vector<1x8x128xf32> to vector<8x128xf32>
    %cst_34 = arith.constant dense<0.000000e+00> : vector<512x128xf32>
    %22 = tpu.matmul %19, %21, %cst_34 {dimension_numbers = #tpu.dot_dimension_numbers<[1], [0], [0], [1], [0, 0, 1, 1], [], []>} : vector<512x8xf32>, vector<8x128xf32>, vector<512x128xf32> -> vector<512x128xf32>
    %c0_35 = arith.constant 0 : index
    %c0_36 = arith.constant 0 : index
    %23 = vector.load %arg11[%c0_35, %c0_36] : memref<512x128xf32, #tpu.memory_space<vmem>>, vector<512x128xf32>
    %24 = arith.addf %23, %22 : vector<512x128xf32>
    %c0_37 = arith.constant 0 : index
    %c0_38 = arith.constant 0 : index
    %25 = vector.load %arg11[%c0_37, %c0_38] : memref<512x128xf32, #tpu.memory_space<vmem>>, vector<512x128xf32>
    tpu.vector_store %arg11[%c0_37, %c0_38], %24 {strides = array<i32>} : memref<512x128xf32, #tpu.memory_space<vmem>>, vector<512x128xf32>,
    %c0_39 = arith.constant 0 : index
    %c1_40 = arith.constant 1 : index
    %c0_41 = arith.constant 0 : index
    %c0_42 = arith.constant 0 : index
    %26 = vector.load %arg10[%c0_39, %c1_40, %c0_41, %c0_42] : memref<2x18x18x8xf32, #tpu.memory_space<vmem>>, vector<2x16x16x8xf32>
    %27 = vector.shape_cast %26 : vector<2x16x16x8xf32> to vector<512x8xf32>
    %c3 = arith.constant 3 : index
    %c0_43 = arith.constant 0 : index
    %c0_44 = arith.constant 0 : index
    %28 = vector.load %arg2[%c3, %c0_43, %c0_44] : memref<9x8x128xf32, #tpu.memory_space<vmem>>, vector<1x8x128xf32>
    %29 = vector.shape_cast %28 : vector<1x8x128xf32> to vector<8x128xf32>
    %cst_45 = arith.constant dense<0.000000e+00> : vector<512x128xf32>
    %30 = tpu.matmul %27, %29, %cst_45 {dimension_numbers = #tpu.dot_dimension_numbers<[1], [0], [0], [1], [0, 0, 1, 1], [], []>} : vector<512x8xf32>, vector<8x128xf32>, vector<512x128xf32> -> vector<512x128xf32>
    %c0_46 = arith.constant 0 : index
    %c0_47 = arith.constant 0 : index
    %31 = vector.load %arg11[%c0_46, %c0_47] : memref<512x128xf32, #tpu.memory_space<vmem>>, vector<512x128xf32>
    %32 = arith.addf %31, %30 : vector<512x128xf32>
    %c0_48 = arith.constant 0 : index
    %c0_49 = arith.constant 0 : index
    %33 = vector.load %arg11[%c0_48, %c0_49] : memref<512x128xf32, #tpu.memory_space<vmem>>, vector<512x128xf32>
    tpu.vector_store %arg11[%c0_48, %c0_49], %32 {strides = array<i32>} : memref<512x128xf32, #tpu.memory_space<vmem>>, vector<512x128xf32>,
    %c0_50 = arith.constant 0 : index
    %c1_51 = arith.constant 1 : index
    %c1_52 = arith.constant 1 : index
    %c0_53 = arith.constant 0 : index
    %34 = vector.load %arg10[%c0_50, %c1_51, %c1_52, %c0_53] : memref<2x18x18x8xf32, #tpu.memory_space<vmem>>, vector<2x16x16x8xf32>
    %35 = vector.shape_cast %34 : vector<2x16x16x8xf32> to vector<512x8xf32>
    %c4 = arith.constant 4 : index
    %c0_54 = arith.constant 0 : index
    %c0_55 = arith.constant 0 : index
    %36 = vector.load %arg2[%c4, %c0_54, %c0_55] : memref<9x8x128xf32, #tpu.memory_space<vmem>>, vector<1x8x128xf32>
    %37 = vector.shape_cast %36 : vector<1x8x128xf32> to vector<8x128xf32>
    %cst_56 = arith.constant dense<0.000000e+00> : vector<512x128xf32>
    %38 = tpu.matmul %35, %37, %cst_56 {dimension_numbers = #tpu.dot_dimension_numbers<[1], [0], [0], [1], [0, 0, 1, 1], [], []>} : vector<512x8xf32>, vector<8x128xf32>, vector<512x128xf32> -> vector<512x128xf32>
    %c0_57 = arith.constant 0 : index
    %c0_58 = arith.constant 0 : index
    %39 = vector.load %arg11[%c0_57, %c0_58] : memref<512x128xf32, #tpu.memory_space<vmem>>, vector<512x128xf32>
    %40 = arith.addf %39, %38 : vector<512x128xf32>
    %c0_59 = arith.constant 0 : index
    %c0_60 = arith.constant 0 : index
    %41 = vector.load %arg11[%c0_59, %c0_60] : memref<512x128xf32, #tpu.memory_space<vmem>>, vector<512x128xf32>
    tpu.vector_store %arg11[%c0_59, %c0_60], %40 {strides = array<i32>} : memref<512x128xf32, #tpu.memory_space<vmem>>, vector<512x128xf32>,
    %c0_61 = arith.constant 0 : index
    %c1_62 = arith.constant 1 : index
    %c2_63 = arith.constant 2 : index
    %c0_64 = arith.constant 0 : index
    %42 = vector.load %arg10[%c0_61, %c1_62, %c2_63, %c0_64] : memref<2x18x18x8xf32, #tpu.memory_space<vmem>>, vector<2x16x16x8xf32>
    %43 = vector.shape_cast %42 : vector<2x16x16x8xf32> to vector<512x8xf32>
    %c5 = arith.constant 5 : index
    %c0_65 = arith.constant 0 : index
    %c0_66 = arith.constant 0 : index
    %44 = vector.load %arg2[%c5, %c0_65, %c0_66] : memref<9x8x128xf32, #tpu.memory_space<vmem>>, vector<1x8x128xf32>
    %45 = vector.shape_cast %44 : vector<1x8x128xf32> to vector<8x128xf32>
    %cst_67 = arith.constant dense<0.000000e+00> : vector<512x128xf32>
    %46 = tpu.matmul %43, %45, %cst_67 {dimension_numbers = #tpu.dot_dimension_numbers<[1], [0], [0], [1], [0, 0, 1, 1], [], []>} : vector<512x8xf32>, vector<8x128xf32>, vector<512x128xf32> -> vector<512x128xf32>
    %c0_68 = arith.constant 0 : index
    %c0_69 = arith.constant 0 : index
    %47 = vector.load %arg11[%c0_68, %c0_69] : memref<512x128xf32, #tpu.memory_space<vmem>>, vector<512x128xf32>
    %48 = arith.addf %47, %46 : vector<512x128xf32>
    %c0_70 = arith.constant 0 : index
    %c0_71 = arith.constant 0 : index
    %49 = vector.load %arg11[%c0_70, %c0_71] : memref<512x128xf32, #tpu.memory_space<vmem>>, vector<512x128xf32>
    tpu.vector_store %arg11[%c0_70, %c0_71], %48 {strides = array<i32>} : memref<512x128xf32, #tpu.memory_space<vmem>>, vector<512x128xf32>,
    %c0_72 = arith.constant 0 : index
    %c2_73 = arith.constant 2 : index
    %c0_74 = arith.constant 0 : index
    %c0_75 = arith.constant 0 : index
    %50 = vector.load %arg10[%c0_72, %c2_73, %c0_74, %c0_75] : memref<2x18x18x8xf32, #tpu.memory_space<vmem>>, vector<2x16x16x8xf32>
    %51 = vector.shape_cast %50 : vector<2x16x16x8xf32> to vector<512x8xf32>
    %c6 = arith.constant 6 : index
    %c0_76 = arith.constant 0 : index
    %c0_77 = arith.constant 0 : index
    %52 = vector.load %arg2[%c6, %c0_76, %c0_77] : memref<9x8x128xf32, #tpu.memory_space<vmem>>, vector<1x8x128xf32>
    %53 = vector.shape_cast %52 : vector<1x8x128xf32> to vector<8x128xf32>
    %cst_78 = arith.constant dense<0.000000e+00> : vector<512x128xf32>
    %54 = tpu.matmul %51, %53, %cst_78 {dimension_numbers = #tpu.dot_dimension_numbers<[1], [0], [0], [1], [0, 0, 1, 1], [], []>} : vector<512x8xf32>, vector<8x128xf32>, vector<512x128xf32> -> vector<512x128xf32>
    %c0_79 = arith.constant 0 : index
    %c0_80 = arith.constant 0 : index
    %55 = vector.load %arg11[%c0_79, %c0_80] : memref<512x128xf32, #tpu.memory_space<vmem>>, vector<512x128xf32>
    %56 = arith.addf %55, %54 : vector<512x128xf32>
    %c0_81 = arith.constant 0 : index
    %c0_82 = arith.constant 0 : index
    %57 = vector.load %arg11[%c0_81, %c0_82] : memref<512x128xf32, #tpu.memory_space<vmem>>, vector<512x128xf32>
    tpu.vector_store %arg11[%c0_81, %c0_82], %56 {strides = array<i32>} : memref<512x128xf32, #tpu.memory_space<vmem>>, vector<512x128xf32>,
    %c0_83 = arith.constant 0 : index
    %c2_84 = arith.constant 2 : index
    %c1_85 = arith.constant 1 : index
    %c0_86 = arith.constant 0 : index
    %58 = vector.load %arg10[%c0_83, %c2_84, %c1_85, %c0_86] : memref<2x18x18x8xf32, #tpu.memory_space<vmem>>, vector<2x16x16x8xf32>
    %59 = vector.shape_cast %58 : vector<2x16x16x8xf32> to vector<512x8xf32>
    %c7 = arith.constant 7 : index
    %c0_87 = arith.constant 0 : index
    %c0_88 = arith.constant 0 : index
    %60 = vector.load %arg2[%c7, %c0_87, %c0_88] : memref<9x8x128xf32, #tpu.memory_space<vmem>>, vector<1x8x128xf32>
    %61 = vector.shape_cast %60 : vector<1x8x128xf32> to vector<8x128xf32>
    %cst_89 = arith.constant dense<0.000000e+00> : vector<512x128xf32>
    %62 = tpu.matmul %59, %61, %cst_89 {dimension_numbers = #tpu.dot_dimension_numbers<[1], [0], [0], [1], [0, 0, 1, 1], [], []>} : vector<512x8xf32>, vector<8x128xf32>, vector<512x128xf32> -> vector<512x128xf32>
    %c0_90 = arith.constant 0 : index
    %c0_91 = arith.constant 0 : index
    %63 = vector.load %arg11[%c0_90, %c0_91] : memref<512x128xf32, #tpu.memory_space<vmem>>, vector<512x128xf32>
    %64 = arith.addf %63, %62 : vector<512x128xf32>
    %c0_92 = arith.constant 0 : index
    %c0_93 = arith.constant 0 : index
    %65 = vector.load %arg11[%c0_92, %c0_93] : memref<512x128xf32, #tpu.memory_space<vmem>>, vector<512x128xf32>
    tpu.vector_store %arg11[%c0_92, %c0_93], %64 {strides = array<i32>} : memref<512x128xf32, #tpu.memory_space<vmem>>, vector<512x128xf32>,
    %c0_94 = arith.constant 0 : index
    %c2_95 = arith.constant 2 : index
    %c2_96 = arith.constant 2 : index
    %c0_97 = arith.constant 0 : index
    %66 = vector.load %arg10[%c0_94, %c2_95, %c2_96, %c0_97] : memref<2x18x18x8xf32, #tpu.memory_space<vmem>>, vector<2x16x16x8xf32>
    %67 = vector.shape_cast %66 : vector<2x16x16x8xf32> to vector<512x8xf32>
    %c8 = arith.constant 8 : index
    %c0_98 = arith.constant 0 : index
    %c0_99 = arith.constant 0 : index
    %68 = vector.load %arg2[%c8, %c0_98, %c0_99] : memref<9x8x128xf32, #tpu.memory_space<vmem>>, vector<1x8x128xf32>
    %69 = vector.shape_cast %68 : vector<1x8x128xf32> to vector<8x128xf32>
    %cst_100 = arith.constant dense<0.000000e+00> : vector<512x128xf32>
    %70 = tpu.matmul %67, %69, %cst_100 {dimension_numbers = #tpu.dot_dimension_numbers<[1], [0], [0], [1], [0, 0, 1, 1], [], []>} : vector<512x8xf32>, vector<8x128xf32>, vector<512x128xf32> -> vector<512x128xf32>
    %c0_101 = arith.constant 0 : index
    %c0_102 = arith.constant 0 : index
    %71 = vector.load %arg11[%c0_101, %c0_102] : memref<512x128xf32, #tpu.memory_space<vmem>>, vector<512x128xf32>
    %72 = arith.addf %71, %70 : vector<512x128xf32>
    %c0_103 = arith.constant 0 : index
    %c0_104 = arith.constant 0 : index
    %73 = vector.load %arg11[%c0_103, %c0_104] : memref<512x128xf32, #tpu.memory_space<vmem>>, vector<512x128xf32>
    tpu.vector_store %arg11[%c0_103, %c0_104], %72 {strides = array<i32>} : memref<512x128xf32, #tpu.memory_space<vmem>>, vector<512x128xf32>,
    %c0_105 = arith.constant 0 : index
    %c0_106 = arith.constant 0 : index
    %74 = vector.load %arg11[%c0_105, %c0_106] : memref<512x128xf32, #tpu.memory_space<vmem>>, vector<512x128xf32>
    %cst_107 = arith.constant dense<0.000000e+00> : vector<128xf32>
    %75 = vector.multi_reduction <add>, %74, %cst_107 [0] : vector<512x128xf32> to vector<128xf32>
    %76 = vector.shape_cast %75 : vector<128xf32> to vector<1x128xf32>
    %cst_108 = arith.constant 0.001953125 : f32
    %77 = vector.broadcast %cst_108 : f32 to vector<1x128xf32>
    %78 = arith.mulf %76, %77 : vector<1x128xf32>
    %c0_109 = arith.constant 0 : index
    %c0_110 = arith.constant 0 : index
    %79 = vector.load %arg11[%c0_109, %c0_110] : memref<512x128xf32, #tpu.memory_space<vmem>>, vector<512x128xf32>
    %80 = vector.broadcast %78 : vector<1x128xf32> to vector<512x128xf32>
    %81 = arith.subf %79, %80 : vector<512x128xf32>
    %82 = arith.mulf %81, %81 : vector<512x128xf32>
    %cst_111 = arith.constant dense<0.000000e+00> : vector<128xf32>
    %83 = vector.multi_reduction <add>, %82, %cst_111 [0] : vector<512x128xf32> to vector<128xf32>
    %84 = vector.shape_cast %83 : vector<128xf32> to vector<1x128xf32>
    %cst_112 = arith.constant 0.001953125 : f32
    %85 = vector.broadcast %cst_112 : f32 to vector<1x128xf32>
    %86 = arith.mulf %84, %85 : vector<1x128xf32>
    %c0_113 = arith.constant 0 : index
    %c0_114 = arith.constant 0 : index
    %87 = vector.load %arg3[%c0_113, %c0_114] : memref<1x128xf32, #tpu.memory_space<vmem>>, vector<1x128xf32>
    %cst_115 = arith.constant 9.99999974E-6 : f32
    %88 = vector.broadcast %cst_115 : f32 to vector<1x128xf32>
    %89 = arith.addf %86, %88 : vector<1x128xf32>
    %90 = math.rsqrt %89 : vector<1x128xf32>
    %91 = arith.mulf %87, %90 : vector<1x128xf32>
    %c0_116 = arith.constant 0 : index
    %c0_117 = arith.constant 0 : index
    %92 = vector.load %arg4[%c0_116, %c0_117] : memref<1x128xf32, #tpu.memory_space<vmem>>, vector<1x128xf32>
    %93 = arith.mulf %78, %91 : vector<1x128xf32>
    %94 = arith.subf %92, %93 : vector<1x128xf32>
    %cst_118 = arith.constant 0.000000e+00 : f32
    %95 = vector.broadcast %cst_118 : f32 to vector<2x18x25x128xf32>
    %c0_119 = arith.constant 0 : index
    %c0_120 = arith.constant 0 : index
    %c0_121 = arith.constant 0 : index
    %c0_122 = arith.constant 0 : index
    %96 = vector.load %arg12[%c0_119, %c0_120, %c0_121, %c0_122] : memref<2x18x25x128xf32, #tpu.memory_space<vmem>>, vector<2x18x25x128xf32>
    tpu.vector_store %arg12[%c0_119, %c0_120, %c0_121, %c0_122], %95 {strides = array<i32>} : memref<2x18x25x128xf32, #tpu.memory_space<vmem>>, vector<2x18x25x128xf32>,
    %c0_123 = arith.constant 0 : index
    %c0_124 = arith.constant 0 : index
    %97 = vector.load %arg11[%c0_123, %c0_124] : memref<512x128xf32, #tpu.memory_space<vmem>>, vector<512x128xf32>
    %98 = vector.broadcast %91 : vector<1x128xf32> to vector<512x128xf32>
    %99 = arith.mulf %97, %98 : vector<512x128xf32>
    %100 = vector.broadcast %94 : vector<1x128xf32> to vector<512x128xf32>
    %101 = arith.addf %99, %100 : vector<512x128xf32>
    %cst_125 = arith.constant 0.000000e+00 : f32
    %102 = vector.broadcast %cst_125 : f32 to vector<512x128xf32>
    %103 = arith.maximumf %101, %102 : vector<512x128xf32>
    %104 = vector.shape_cast %103 : vector<512x128xf32> to vector<2x16x16x128xf32>
    %c0_126 = arith.constant 0 : index
    %c1_127 = arith.constant 1 : index
    %c8_128 = arith.constant 8 : index
    %c0_129 = arith.constant 0 : index
    %105 = vector.load %arg12[%c0_126, %c1_127, %c8_128, %c0_129] : memref<2x18x25x128xf32, #tpu.memory_space<vmem>>, vector<2x16x16x128xf32>
    tpu.vector_store %arg12[%c0_126, %c1_127, %c8_128, %c0_129], %104 {strides = array<i32>} : memref<2x18x25x128xf32, #tpu.memory_space<vmem>>, vector<2x16x16x128xf32>,
    %c0_130 = arith.constant 0 : index
    %c0_131 = arith.constant 0 : index
    %c7_132 = arith.constant 7 : index
    %c0_133 = arith.constant 0 : index
    %106 = vector.load %arg12[%c0_130, %c0_131, %c7_132, %c0_133] : memref<2x18x25x128xf32, #tpu.memory_space<vmem>>, vector<2x16x16x128xf32>
    %c0_134 = arith.constant 0 : index
    %c0_135 = arith.constant 0 : index
    %107 = vector.load %arg5[%c0_134, %c0_135] : memref<9x128xf32, #tpu.memory_space<vmem>>, vector<1x128xf32>
    %108 = vector.shape_cast %107 : vector<1x128xf32> to vector<128xf32>
    %109 = vector.shape_cast %108 : vector<128xf32> to vector<1x1x1x128xf32>
    %110 = vector.broadcast %109 : vector<1x1x1x128xf32> to vector<2x16x16x128xf32>
    %111 = arith.mulf %106, %110 : vector<2x16x16x128xf32>
    %c0_136 = arith.constant 0 : index
    %c0_137 = arith.constant 0 : index
    %c0_138 = arith.constant 0 : index
    %c0_139 = arith.constant 0 : index
    %112 = vector.load %arg13[%c0_136, %c0_137, %c0_138, %c0_139] : memref<2x16x16x128xf32, #tpu.memory_space<vmem>>, vector<2x16x16x128xf32>
    tpu.vector_store %arg13[%c0_136, %c0_137, %c0_138, %c0_139], %111 {strides = array<i32>} : memref<2x16x16x128xf32, #tpu.memory_space<vmem>>, vector<2x16x16x128xf32>,
    %c0_140 = arith.constant 0 : index
    %c0_141 = arith.constant 0 : index
    %c8_142 = arith.constant 8 : index
    %c0_143 = arith.constant 0 : index
    %113 = vector.load %arg12[%c0_140, %c0_141, %c8_142, %c0_143] : memref<2x18x25x128xf32, #tpu.memory_space<vmem>>, vector<2x16x16x128xf32>
    %c1_144 = arith.constant 1 : index
    %c0_145 = arith.constant 0 : index
    %114 = vector.load %arg5[%c1_144, %c0_145] : memref<9x128xf32, #tpu.memory_space<vmem>>, vector<1x128xf32>
    %115 = vector.shape_cast %114 : vector<1x128xf32> to vector<128xf32>
    %116 = vector.shape_cast %115 : vector<128xf32> to vector<1x1x1x128xf32>
    %117 = vector.broadcast %116 : vector<1x1x1x128xf32> to vector<2x16x16x128xf32>
    %118 = arith.mulf %113, %117 : vector<2x16x16x128xf32>
    %c0_146 = arith.constant 0 : index
    %c0_147 = arith.constant 0 : index
    %c0_148 = arith.constant 0 : index
    %c0_149 = arith.constant 0 : index
    %119 = vector.load %arg13[%c0_146, %c0_147, %c0_148, %c0_149] : memref<2x16x16x128xf32, #tpu.memory_space<vmem>>, vector<2x16x16x128xf32>
    %120 = arith.addf %119, %118 : vector<2x16x16x128xf32>
    %c0_150 = arith.constant 0 : index
    %c0_151 = arith.constant 0 : index
    %c0_152 = arith.constant 0 : index
    %c0_153 = arith.constant 0 : index
    %121 = vector.load %arg13[%c0_150, %c0_151, %c0_152, %c0_153] : memref<2x16x16x128xf32, #tpu.memory_space<vmem>>, vector<2x16x16x128xf32>
    tpu.vector_store %arg13[%c0_150, %c0_151, %c0_152, %c0_153], %120 {strides = array<i32>} : memref<2x16x16x128xf32, #tpu.memory_space<vmem>>, vector<2x16x16x128xf32>,
    %c0_154 = arith.constant 0 : index
    %c0_155 = arith.constant 0 : index
    %c9 = arith.constant 9 : index
    %c0_156 = arith.constant 0 : index
    %122 = vector.load %arg12[%c0_154, %c0_155, %c9, %c0_156] : memref<2x18x25x128xf32, #tpu.memory_space<vmem>>, vector<2x16x16x128xf32>
    %c2_157 = arith.constant 2 : index
    %c0_158 = arith.constant 0 : index
    %123 = vector.load %arg5[%c2_157, %c0_158] : memref<9x128xf32, #tpu.memory_space<vmem>>, vector<1x128xf32>
    %124 = vector.shape_cast %123 : vector<1x128xf32> to vector<128xf32>
    %125 = vector.shape_cast %124 : vector<128xf32> to vector<1x1x1x128xf32>
    %126 = vector.broadcast %125 : vector<1x1x1x128xf32> to vector<2x16x16x128xf32>
    %127 = arith.mulf %122, %126 : vector<2x16x16x128xf32>
    %c0_159 = arith.constant 0 : index
    %c0_160 = arith.constant 0 : index
    %c0_161 = arith.constant 0 : index
    %c0_162 = arith.constant 0 : index
    %128 = vector.load %arg13[%c0_159, %c0_160, %c0_161, %c0_162] : memref<2x16x16x128xf32, #tpu.memory_space<vmem>>, vector<2x16x16x128xf32>
    %129 = arith.addf %128, %127 : vector<2x16x16x128xf32>
    %c0_163 = arith.constant 0 : index
    %c0_164 = arith.constant 0 : index
    %c0_165 = arith.constant 0 : index
    %c0_166 = arith.constant 0 : index
    %130 = vector.load %arg13[%c0_163, %c0_164, %c0_165, %c0_166] : memref<2x16x16x128xf32, #tpu.memory_space<vmem>>, vector<2x16x16x128xf32>
    tpu.vector_store %arg13[%c0_163, %c0_164, %c0_165, %c0_166], %129 {strides = array<i32>} : memref<2x16x16x128xf32, #tpu.memory_space<vmem>>, vector<2x16x16x128xf32>,
    %c0_167 = arith.constant 0 : index
    %c1_168 = arith.constant 1 : index
    %c7_169 = arith.constant 7 : index
    %c0_170 = arith.constant 0 : index
    %131 = vector.load %arg12[%c0_167, %c1_168, %c7_169, %c0_170] : memref<2x18x25x128xf32, #tpu.memory_space<vmem>>, vector<2x16x16x128xf32>
    %c3_171 = arith.constant 3 : index
    %c0_172 = arith.constant 0 : index
    %132 = vector.load %arg5[%c3_171, %c0_172] : memref<9x128xf32, #tpu.memory_space<vmem>>, vector<1x128xf32>
    %133 = vector.shape_cast %132 : vector<1x128xf32> to vector<128xf32>
    %134 = vector.shape_cast %133 : vector<128xf32> to vector<1x1x1x128xf32>
    %135 = vector.broadcast %134 : vector<1x1x1x128xf32> to vector<2x16x16x128xf32>
    %136 = arith.mulf %131, %135 : vector<2x16x16x128xf32>
    %c0_173 = arith.constant 0 : index
    %c0_174 = arith.constant 0 : index
    %c0_175 = arith.constant 0 : index
    %c0_176 = arith.constant 0 : index
    %137 = vector.load %arg13[%c0_173, %c0_174, %c0_175, %c0_176] : memref<2x16x16x128xf32, #tpu.memory_space<vmem>>, vector<2x16x16x128xf32>
    %138 = arith.addf %137, %136 : vector<2x16x16x128xf32>
    %c0_177 = arith.constant 0 : index
    %c0_178 = arith.constant 0 : index
    %c0_179 = arith.constant 0 : index
    %c0_180 = arith.constant 0 : index
    %139 = vector.load %arg13[%c0_177, %c0_178, %c0_179, %c0_180] : memref<2x16x16x128xf32, #tpu.memory_space<vmem>>, vector<2x16x16x128xf32>
    tpu.vector_store %arg13[%c0_177, %c0_178, %c0_179, %c0_180], %138 {strides = array<i32>} : memref<2x16x16x128xf32, #tpu.memory_space<vmem>>, vector<2x16x16x128xf32>,
    %c0_181 = arith.constant 0 : index
    %c1_182 = arith.constant 1 : index
    %c8_183 = arith.constant 8 : index
    %c0_184 = arith.constant 0 : index
    %140 = vector.load %arg12[%c0_181, %c1_182, %c8_183, %c0_184] : memref<2x18x25x128xf32, #tpu.memory_space<vmem>>, vector<2x16x16x128xf32>
    %c4_185 = arith.constant 4 : index
    %c0_186 = arith.constant 0 : index
    %141 = vector.load %arg5[%c4_185, %c0_186] : memref<9x128xf32, #tpu.memory_space<vmem>>, vector<1x128xf32>
    %142 = vector.shape_cast %141 : vector<1x128xf32> to vector<128xf32>
    %143 = vector.shape_cast %142 : vector<128xf32> to vector<1x1x1x128xf32>
    %144 = vector.broadcast %143 : vector<1x1x1x128xf32> to vector<2x16x16x128xf32>
    %145 = arith.mulf %140, %144 : vector<2x16x16x128xf32>
    %c0_187 = arith.constant 0 : index
    %c0_188 = arith.constant 0 : index
    %c0_189 = arith.constant 0 : index
    %c0_190 = arith.constant 0 : index
    %146 = vector.load %arg13[%c0_187, %c0_188, %c0_189, %c0_190] : memref<2x16x16x128xf32, #tpu.memory_space<vmem>>, vector<2x16x16x128xf32>
    %147 = arith.addf %146, %145 : vector<2x16x16x128xf32>
    %c0_191 = arith.constant 0 : index
    %c0_192 = arith.constant 0 : index
    %c0_193 = arith.constant 0 : index
    %c0_194 = arith.constant 0 : index
    %148 = vector.load %arg13[%c0_191, %c0_192, %c0_193, %c0_194] : memref<2x16x16x128xf32, #tpu.memory_space<vmem>>, vector<2x16x16x128xf32>
    tpu.vector_store %arg13[%c0_191, %c0_192, %c0_193, %c0_194], %147 {strides = array<i32>} : memref<2x16x16x128xf32, #tpu.memory_space<vmem>>, vector<2x16x16x128xf32>,
    %c0_195 = arith.constant 0 : index
    %c1_196 = arith.constant 1 : index
    %c9_197 = arith.constant 9 : index
    %c0_198 = arith.constant 0 : index
    %149 = vector.load %arg12[%c0_195, %c1_196, %c9_197, %c0_198] : memref<2x18x25x128xf32, #tpu.memory_space<vmem>>, vector<2x16x16x128xf32>
    %c5_199 = arith.constant 5 : index
    %c0_200 = arith.constant 0 : index
    %150 = vector.load %arg5[%c5_199, %c0_200] : memref<9x128xf32, #tpu.memory_space<vmem>>, vector<1x128xf32>
    %151 = vector.shape_cast %150 : vector<1x128xf32> to vector<128xf32>
    %152 = vector.shape_cast %151 : vector<128xf32> to vector<1x1x1x128xf32>
    %153 = vector.broadcast %152 : vector<1x1x1x128xf32> to vector<2x16x16x128xf32>
    %154 = arith.mulf %149, %153 : vector<2x16x16x128xf32>
    %c0_201 = arith.constant 0 : index
    %c0_202 = arith.constant 0 : index
    %c0_203 = arith.constant 0 : index
    %c0_204 = arith.constant 0 : index
    %155 = vector.load %arg13[%c0_201, %c0_202, %c0_203, %c0_204] : memref<2x16x16x128xf32, #tpu.memory_space<vmem>>, vector<2x16x16x128xf32>
    %156 = arith.addf %155, %154 : vector<2x16x16x128xf32>
    %c0_205 = arith.constant 0 : index
    %c0_206 = arith.constant 0 : index
    %c0_207 = arith.constant 0 : index
    %c0_208 = arith.constant 0 : index
    %157 = vector.load %arg13[%c0_205, %c0_206, %c0_207, %c0_208] : memref<2x16x16x128xf32, #tpu.memory_space<vmem>>, vector<2x16x16x128xf32>
    tpu.vector_store %arg13[%c0_205, %c0_206, %c0_207, %c0_208], %156 {strides = array<i32>} : memref<2x16x16x128xf32, #tpu.memory_space<vmem>>, vector<2x16x16x128xf32>,
    %c0_209 = arith.constant 0 : index
    %c2_210 = arith.constant 2 : index
    %c7_211 = arith.constant 7 : index
    %c0_212 = arith.constant 0 : index
    %158 = vector.load %arg12[%c0_209, %c2_210, %c7_211, %c0_212] : memref<2x18x25x128xf32, #tpu.memory_space<vmem>>, vector<2x16x16x128xf32>
    %c6_213 = arith.constant 6 : index
    %c0_214 = arith.constant 0 : index
    %159 = vector.load %arg5[%c6_213, %c0_214] : memref<9x128xf32, #tpu.memory_space<vmem>>, vector<1x128xf32>
    %160 = vector.shape_cast %159 : vector<1x128xf32> to vector<128xf32>
    %161 = vector.shape_cast %160 : vector<128xf32> to vector<1x1x1x128xf32>
    %162 = vector.broadcast %161 : vector<1x1x1x128xf32> to vector<2x16x16x128xf32>
    %163 = arith.mulf %158, %162 : vector<2x16x16x128xf32>
    %c0_215 = arith.constant 0 : index
    %c0_216 = arith.constant 0 : index
    %c0_217 = arith.constant 0 : index
    %c0_218 = arith.constant 0 : index
    %164 = vector.load %arg13[%c0_215, %c0_216, %c0_217, %c0_218] : memref<2x16x16x128xf32, #tpu.memory_space<vmem>>, vector<2x16x16x128xf32>
    %165 = arith.addf %164, %163 : vector<2x16x16x128xf32>
    %c0_219 = arith.constant 0 : index
    %c0_220 = arith.constant 0 : index
    %c0_221 = arith.constant 0 : index
    %c0_222 = arith.constant 0 : index
    %166 = vector.load %arg13[%c0_219, %c0_220, %c0_221, %c0_222] : memref<2x16x16x128xf32, #tpu.memory_space<vmem>>, vector<2x16x16x128xf32>
    tpu.vector_store %arg13[%c0_219, %c0_220, %c0_221, %c0_222], %165 {strides = array<i32>} : memref<2x16x16x128xf32, #tpu.memory_space<vmem>>, vector<2x16x16x128xf32>,
    %c0_223 = arith.constant 0 : index
    %c2_224 = arith.constant 2 : index
    %c8_225 = arith.constant 8 : index
    %c0_226 = arith.constant 0 : index
    %167 = vector.load %arg12[%c0_223, %c2_224, %c8_225, %c0_226] : memref<2x18x25x128xf32, #tpu.memory_space<vmem>>, vector<2x16x16x128xf32>
    %c7_227 = arith.constant 7 : index
    %c0_228 = arith.constant 0 : index
    %168 = vector.load %arg5[%c7_227, %c0_228] : memref<9x128xf32, #tpu.memory_space<vmem>>, vector<1x128xf32>
    %169 = vector.shape_cast %168 : vector<1x128xf32> to vector<128xf32>
    %170 = vector.shape_cast %169 : vector<128xf32> to vector<1x1x1x128xf32>
    %171 = vector.broadcast %170 : vector<1x1x1x128xf32> to vector<2x16x16x128xf32>
    %172 = arith.mulf %167, %171 : vector<2x16x16x128xf32>
    %c0_229 = arith.constant 0 : index
    %c0_230 = arith.constant 0 : index
    %c0_231 = arith.constant 0 : index
    %c0_232 = arith.constant 0 : index
    %173 = vector.load %arg13[%c0_229, %c0_230, %c0_231, %c0_232] : memref<2x16x16x128xf32, #tpu.memory_space<vmem>>, vector<2x16x16x128xf32>
    %174 = arith.addf %173, %172 : vector<2x16x16x128xf32>
    %c0_233 = arith.constant 0 : index
    %c0_234 = arith.constant 0 : index
    %c0_235 = arith.constant 0 : index
    %c0_236 = arith.constant 0 : index
    %175 = vector.load %arg13[%c0_233, %c0_234, %c0_235, %c0_236] : memref<2x16x16x128xf32, #tpu.memory_space<vmem>>, vector<2x16x16x128xf32>
    tpu.vector_store %arg13[%c0_233, %c0_234, %c0_235, %c0_236], %174 {strides = array<i32>} : memref<2x16x16x128xf32, #tpu.memory_space<vmem>>, vector<2x16x16x128xf32>,
    %c0_237 = arith.constant 0 : index
    %c2_238 = arith.constant 2 : index
    %c9_239 = arith.constant 9 : index
    %c0_240 = arith.constant 0 : index
    %176 = vector.load %arg12[%c0_237, %c2_238, %c9_239, %c0_240] : memref<2x18x25x128xf32, #tpu.memory_space<vmem>>, vector<2x16x16x128xf32>
    %c8_241 = arith.constant 8 : index
    %c0_242 = arith.constant 0 : index
    %177 = vector.load %arg5[%c8_241, %c0_242] : memref<9x128xf32, #tpu.memory_space<vmem>>, vector<1x128xf32>
    %178 = vector.shape_cast %177 : vector<1x128xf32> to vector<128xf32>
    %179 = vector.shape_cast %178 : vector<128xf32> to vector<1x1x1x128xf32>
    %180 = vector.broadcast %179 : vector<1x1x1x128xf32> to vector<2x16x16x128xf32>
    %181 = arith.mulf %176, %180 : vector<2x16x16x128xf32>
    %c0_243 = arith.constant 0 : index
    %c0_244 = arith.constant 0 : index
    %c0_245 = arith.constant 0 : index
    %c0_246 = arith.constant 0 : index
    %182 = vector.load %arg13[%c0_243, %c0_244, %c0_245, %c0_246] : memref<2x16x16x128xf32, #tpu.memory_space<vmem>>, vector<2x16x16x128xf32>
    %183 = arith.addf %182, %181 : vector<2x16x16x128xf32>
    %c0_247 = arith.constant 0 : index
    %c0_248 = arith.constant 0 : index
    %c0_249 = arith.constant 0 : index
    %c0_250 = arith.constant 0 : index
    %184 = vector.load %arg13[%c0_247, %c0_248, %c0_249, %c0_250] : memref<2x16x16x128xf32, #tpu.memory_space<vmem>>, vector<2x16x16x128xf32>
    tpu.vector_store %arg13[%c0_247, %c0_248, %c0_249, %c0_250], %183 {strides = array<i32>} : memref<2x16x16x128xf32, #tpu.memory_space<vmem>>, vector<2x16x16x128xf32>,
    %c0_251 = arith.constant 0 : index
    %c0_252 = arith.constant 0 : index
    %c0_253 = arith.constant 0 : index
    %c0_254 = arith.constant 0 : index
    %185 = vector.load %arg13[%c0_251, %c0_252, %c0_253, %c0_254] : memref<2x16x16x128xf32, #tpu.memory_space<vmem>>, vector<2x16x16x128xf32>
    %186 = vector.shape_cast %185 : vector<2x16x16x128xf32> to vector<512x128xf32>
    %c0_255 = arith.constant 0 : index
    %c0_256 = arith.constant 0 : index
    %187 = vector.load %arg6[%c0_255, %c0_256] : memref<128x128xf32, #tpu.memory_space<vmem>>, vector<128x128xf32>
    %cst_257 = arith.constant dense<0.000000e+00> : vector<512x128xf32>
    %188 = tpu.matmul %186, %187, %cst_257 {dimension_numbers = #tpu.dot_dimension_numbers<[1], [0], [0], [1], [0, 0, 1, 1], [], []>} : vector<512x128xf32>, vector<128x128xf32>, vector<512x128xf32> -> vector<512x128xf32>
    %c0_258 = arith.constant 0 : index
    %c0_259 = arith.constant 0 : index
    %189 = vector.load %arg14[%c0_258, %c0_259] : memref<512x128xf32, #tpu.memory_space<vmem>>, vector<512x128xf32>
    tpu.vector_store %arg14[%c0_258, %c0_259], %188 {strides = array<i32>} : memref<512x128xf32, #tpu.memory_space<vmem>>, vector<512x128xf32>,
    %c0_260 = arith.constant 0 : index
    %c0_261 = arith.constant 0 : index
    %190 = vector.load %arg14[%c0_260, %c0_261] : memref<512x128xf32, #tpu.memory_space<vmem>>, vector<512x128xf32>
    %cst_262 = arith.constant dense<0.000000e+00> : vector<128xf32>
    %191 = vector.multi_reduction <add>, %190, %cst_262 [0] : vector<512x128xf32> to vector<128xf32>
    %192 = vector.shape_cast %191 : vector<128xf32> to vector<1x128xf32>
    %cst_263 = arith.constant 0.001953125 : f32
    %193 = vector.broadcast %cst_263 : f32 to vector<1x128xf32>
    %194 = arith.mulf %192, %193 : vector<1x128xf32>
    %c0_264 = arith.constant 0 : index
    %c0_265 = arith.constant 0 : index
    %195 = vector.load %arg14[%c0_264, %c0_265] : memref<512x128xf32, #tpu.memory_space<vmem>>, vector<512x128xf32>
    %196 = vector.broadcast %194 : vector<1x128xf32> to vector<512x128xf32>
    %197 = arith.subf %195, %196 : vector<512x128xf32>
    %198 = arith.mulf %197, %197 : vector<512x128xf32>
    %cst_266 = arith.constant dense<0.000000e+00> : vector<128xf32>
    %199 = vector.multi_reduction <add>, %198, %cst_266 [0] : vector<512x128xf32> to vector<128xf32>
    %200 = vector.shape_cast %199 : vector<128xf32> to vector<1x128xf32>
    %cst_267 = arith.constant 0.001953125 : f32
    %201 = vector.broadcast %cst_267 : f32 to vector<1x128xf32>
    %202 = arith.mulf %200, %201 : vector<1x128xf32>
    %c0_268 = arith.constant 0 : index
    %c0_269 = arith.constant 0 : index
    %203 = vector.load %arg7[%c0_268, %c0_269] : memref<1x128xf32, #tpu.memory_space<vmem>>, vector<1x128xf32>
    %cst_270 = arith.constant 9.99999974E-6 : f32
    %204 = vector.broadcast %cst_270 : f32 to vector<1x128xf32>
    %205 = arith.addf %202, %204 : vector<1x128xf32>
    %206 = math.rsqrt %205 : vector<1x128xf32>
    %207 = arith.mulf %203, %206 : vector<1x128xf32>
    %c0_271 = arith.constant 0 : index
    %c0_272 = arith.constant 0 : index
    %208 = vector.load %arg8[%c0_271, %c0_272] : memref<1x128xf32, #tpu.memory_space<vmem>>, vector<1x128xf32>
    %209 = arith.mulf %194, %207 : vector<1x128xf32>
    %210 = arith.subf %208, %209 : vector<1x128xf32>
    %c0_273 = arith.constant 0 : index
    %c0_274 = arith.constant 0 : index
    %211 = vector.load %arg14[%c0_273, %c0_274] : memref<512x128xf32, #tpu.memory_space<vmem>>, vector<512x128xf32>
    %212 = vector.broadcast %207 : vector<1x128xf32> to vector<512x128xf32>
    %213 = arith.mulf %211, %212 : vector<512x128xf32>
    %214 = vector.broadcast %210 : vector<1x128xf32> to vector<512x128xf32>
    %215 = arith.addf %213, %214 : vector<512x128xf32>
    %216 = vector.shape_cast %215 : vector<512x128xf32> to vector<2x16x16x128xf32>
    %c0_275 = arith.constant 0 : index
    %c0_276 = arith.constant 0 : index
    %c0_277 = arith.constant 0 : index
    %c0_278 = arith.constant 0 : index
    %217 = vector.load %arg9[%c0_275, %c0_276, %c0_277, %c0_278] : memref<2x16x16x128xf32, #tpu.memory_space<vmem>>, vector<2x16x16x128xf32>
    tpu.vector_store %arg9[%c0_275, %c0_276, %c0_277, %c0_278], %216 {strides = array<i32>} : memref<2x16x16x128xf32, #tpu.memory_space<vmem>>, vector<2x16x16x128xf32>,
    return
  }
  func.func @transform_0(%arg0: i32) -> (i32, i32, i32, i32) {
    %c0_i32 = arith.constant 0 : i32
    %c0_i32_0 = arith.constant 0 : i32
    %c0_i32_1 = arith.constant 0 : i32
    %c0_i32_2 = arith.constant 0 : i32
    %c0_i32_3 = arith.constant 0 : i32
    return %c0_i32, %c0_i32_0, %c0_i32_1, %c0_i32_2 : i32, i32, i32, i32
  }
  func.func @transform_1(%arg0: i32) -> (i32, i32, i32) {
    %c0_i32 = arith.constant 0 : i32
    %c0_i32_0 = arith.constant 0 : i32
    %c0_i32_1 = arith.constant 0 : i32
    %c0_i32_2 = arith.constant 0 : i32
    return %c0_i32, %c0_i32_0, %c0_i32_1 : i32, i32, i32
  }
  func.func @transform_2(%arg0: i32) -> (i32, i32) {
    %c0_i32 = arith.constant 0 : i32
    %c0_i32_0 = arith.constant 0 : i32
    %c0_i32_1 = arith.constant 0 : i32
    return %c0_i32, %c0_i32_0 : i32, i32
  }
  func.func @transform_3(%arg0: i32) -> (i32, i32) {
    %c0_i32 = arith.constant 0 : i32
    %c0_i32_0 = arith.constant 0 : i32
    %c0_i32_1 = arith.constant 0 : i32
    return %c0_i32, %c0_i32_0 : i32, i32
  }
  func.func @transform_4(%arg0: i32) -> (i32, i32) {
    %c0_i32 = arith.constant 0 : i32
    %c0_i32_0 = arith.constant 0 : i32
    %c0_i32_1 = arith.constant 0 : i32
    return %c0_i32, %c0_i32_0 : i32, i32
  }
  func.func @transform_5(%arg0: i32) -> (i32, i32) {
    %c0_i32 = arith.constant 0 : i32
    %c0_i32_0 = arith.constant 0 : i32
    %c0_i32_1 = arith.constant 0 : i32
    return %c0_i32, %c0_i32_0 : i32, i32
  }
  func.func @transform_6(%arg0: i32) -> (i32, i32) {
    %c0_i32 = arith.constant 0 : i32
    %c0_i32_0 = arith.constant 0 : i32
    %c0_i32_1 = arith.constant 0 : i32
    return %c0_i32, %c0_i32_0 : i32, i32
  }
  func.func @transform_7(%arg0: i32) -> (i32, i32) {
    %c0_i32 = arith.constant 0 : i32
    %c0_i32_0 = arith.constant 0 : i32
    %c0_i32_1 = arith.constant 0 : i32
    return %c0_i32, %c0_i32_0 : i32, i32
  }
  func.func @transform_8(%arg0: i32) -> (i32, i32, i32, i32) {
    %c0_i32 = arith.constant 0 : i32
    %c0_i32_0 = arith.constant 0 : i32
    %c0_i32_1 = arith.constant 0 : i32
    %c0_i32_2 = arith.constant 0 : i32
    %c0_i32_3 = arith.constant 0 : i32
    return %c0_i32, %c0_i32_0, %c0_i32_1, %c0_i32_2 : i32, i32, i32, i32
  }
}

</mosaic_0001>

<bundles_post_ra>
// kernel: sep_conv.1
= control target key start
LH: loop header
LB: loop body
LE: loop exit
PB: predicated region body
PF: predicated region fallthrough
CT: control target
= control target key end

     0   :  { %vm245_vm0 = vcmask 64512   ;;  %vm248_vm1 = vcmask 58368   ;;  %s20132_s1 = inlined_call_operand.vmem [shape: f32[9,8,128], index: 1, kind: input, shape index: {}]   ;;  %s20133_s0 = inlined_call_operand.vmem [shape: f32[2,18,18,8], index: 0, kind: input, shape index: {}]   ;;  %s20134_s5 = inlined_call_operand.vmem [shape: f32[128,128], index: 5, kind: input, shape index: {}]   ;;  %s20135_s4 = inlined_call_operand.vmem [shape: f32[9,128], index: 4, kind: input, shape index: {}]   ;;  %s20136_s2 = inlined_call_operand.vmem [shape: f32[1,128], index: 2, kind: input, shape index: {}]   ;;  %s20137_s3 = inlined_call_operand.vmem [shape: f32[1,128], index: 3, kind: input, shape index: {}]   ;;  %s20138_s6 = inlined_call_operand.vmem [shape: f32[1,128], index: 6, kind: input, shape index: {}]   ;;  %s20139_s7 = inlined_call_operand.vmem [shape: f32[1,128], index: 7, kind: input, shape index: {}]   ;;  %s20140_s8 = inlined_call_operand.vmem [shape: f32[2,16,16,128], index: 8, kind: output, shape index: {}]  }
   0x1   :  { %v12692_v0 = vld [vmem:[%s20132_s1 + $0x20] sm:$0xff]  ;;  %v32_v4 = vld [vmem:[%s20133_s0 + $0x18] sm:$0xff]  ;;  %v15338_v6 = vld [vmem:[%s20132_s1 + $0x28] sm:$0xff] }
   0x2   :  { %v419_v1 = vld [vmem:[%s20132_s1] sm:$0xff]  ;;  %14083 = vmatprep.subr.mxu0 %v12692_v0  ;;  %v140_v7 = vmax.f32 %v32_v4, 0.0  ;;  %v30_v9 = vld [vmem:[%s20133_s0 + $0x8] sm:$0xff]  ;;  %v35_v11 = vld [vmem:[%s20133_s0 + $0x30] sm:$0xff] }
   0x3   :  { %v29_v2 = vld [vmem:[%s20133_s0] sm:$0xff]  ;;  %13691 = vmatprep.subr.mxu1 %v419_v1  ;;  %14084 = vmatpush3.msra.mxu0 %v12692_v0  ;;  %v34_v10 = vld [vmem:[%s20133_s0 + $0x28] sm:$0x3]  ;;  %v138_v12 = vmax.f32 %v30_v9, 0.0  ;;  %v36_v14 = vld [vmem:[%s20133_s0 + $0x38] sm:$0xff]  ;;  %v143_v15 = vmax.f32 %v35_v11, 0.0 }
   0x4   :  { %v137_v3 = vmax.f32 %v29_v2, 0.0  ;;  %v33_v5 = vld [vmem:[%s20133_s0 + $0x20] sm:$0xff]  ;;  %13692 = vmatpush3.msra.mxu1 %v419_v1  ;;  %14181 = vmatprep.subr.mxu0 %v15338_v6  ;;  %v142_v13 = vmax.f32 %v34_v10, 0.0  ;;  %250 = vst.msk [vmem:[#allocation2 + $0x18] sm:$0xff] %vm245_vm0, %v140_v7  ;;  %v144_v17 = vmax.f32 %v36_v14, 0.0  ;;  %v38_v19 = vld [vmem:[%s20133_s0 + $0x48] sm:$0xff] }
   0x5   :  { %v141_v8 = vmax.f32 %v33_v5, 0.0  ;;  %v37_v16 = vld [vmem:[%s20133_s0 + $0x40] sm:$0x3]  ;;  %v39_v20 = vld [vmem:[%s20133_s0 + $0x50] sm:$0xff]  ;;  %v40_v21 = vld [vmem:[%s20133_s0 + $0x58] sm:$0x3] }
   0x6   :  { %246 = vst.msk [vmem:[#allocation2] sm:$0xff] %vm245_vm0, %v137_v3  ;;  %v145_v18 = vmax.f32 %v37_v16, 0.0  ;;  %247 = vst.msk [vmem:[#allocation2 + $0x8] sm:$0xff] %vm245_vm0, %v138_v12  ;;  %v146_v22 = vmax.f32 %v38_v19, 0.0  ;;  %v147_v23 = vmax.f32 %v39_v20, 0.0  ;;  %v148_v24 = vmax.f32 %v40_v21, 0.0 }
   0x7   :  { %251 = vst.msk [vmem:[#allocation2 + $0x20] sm:$0xff] %vm245_vm0, %v141_v8  ;;  %253 = vst.msk [vmem:[#allocation2 + $0x30] sm:$0xff] %vm245_vm0, %v143_v15  ;;  %v41_v25 = vld [vmem:[%s20133_s0 + $0x60] sm:$0xff]  ;;  %v42_v26 = vld [vmem:[%s20133_s0 + $0x68] sm:$0xff] }
   0x8   :  { %252 = vst.msk [vmem:[#allocation2 + $0x28] sm:$0x3] %vm248_vm1, %v142_v13  ;;  %v44_v27 = vld [vmem:[%s20133_s0 + $0x78] sm:$0xff]  ;;  %255 = vst.msk [vmem:[#allocation2 + $0x40] sm:$0x3] %vm248_vm1, %v145_v18  ;;  %v149_v28 = vmax.f32 %v41_v25, 0.0 }
   0x9   :  { %254 = vst.msk [vmem:[#allocation2 + $0x38] sm:$0xff] %vm245_vm0, %v144_v17  ;;  %v150_v29 = vmax.f32 %v42_v26, 0.0  ;;  %v43_v30 = vld [vmem:[%s20133_s0 + $0x70] sm:$0x3]  ;;  %v45_v31 = vld [vmem:[%s20133_s0 + $0x80] sm:$0xff]  ;;  %v152_v32 = vmax.f32 %v44_v27, 0.0 }
   0xa   :  { %256 = vst.msk [vmem:[#allocation2 + $0x48] sm:$0xff] %vm245_vm0, %v146_v22  ;;  %257 = vst.msk [vmem:[#allocation2 + $0x50] sm:$0xff] %vm245_vm0, %v147_v23  ;;  %v151_v33 = vmax.f32 %v43_v30, 0.0  ;;  %v153_v34 = vmax.f32 %v45_v31, 0.0  ;;  %v46_v35 = vld [vmem:[%s20133_s0 + $0x88] sm:$0x3] }
   0xb   :  { %258 = vst.msk [vmem:[#allocation2 + $0x58] sm:$0x3] %vm248_vm1, %v148_v24  ;;  %v47_v36 = vld [vmem:[%s20133_s0 + $0x90] sm:$0xff]  ;;  %v48_v37 = vld [vmem:[%s20133_s0 + $0x98] sm:$0xff]  ;;  %v154_v38 = vmax.f32 %v46_v35, 0.0  ;;  %v50_v42 = vld [vmem:[%s20133_s0 + $0xa8] sm:$0xff] }
   0xc   :  { %259 = vst.msk [vmem:[#allocation2 + $0x60] sm:$0xff] %vm245_vm0, %v149_v28  ;;  %260 = vst.msk [vmem:[#allocation2 + $0x68] sm:$0xff] %vm245_vm0, %v150_v29  ;;  %v155_v39 = vmax.f32 %v47_v36, 0.0  ;;  %v156_v40 = vmax.f32 %v48_v37, 0.0  ;;  %v49_v41 = vld [vmem:[%s20133_s0 + $0xa0] sm:$0x3] }
   0xd   :  { %262 = vst.msk [vmem:[#allocation2 + $0x78] sm:$0xff] %vm245_vm0, %v152_v32  ;;  %263 = vst.msk [vmem:[#allocation2 + $0x80] sm:$0xff] %vm245_vm0, %v153_v34  ;;  %v157_v43 = vmax.f32 %v49_v41, 0.0  ;;  %v51_v44 = vld [vmem:[%s20133_s0 + $0xb0] sm:$0xff]  ;;  %v158_v45 = vmax.f32 %v50_v42, 0.0  ;;  %v53_v47 = vld [vmem:[%s20133_s0 + $0xc0] sm:$0xff] }
   0xe   :  { %261 = vst.msk [vmem:[#allocation2 + $0x70] sm:$0x3] %vm248_vm1, %v151_v33  ;;  %v52_v46 = vld [vmem:[%s20133_s0 + $0xb8] sm:$0x3]  ;;  %v355_v48 = vld [vmem:[#allocation2] sm:$0xff]  ;;  %v159_v49 = vmax.f32 %v51_v44, 0.0 }
   0xf   :  { %264 = vst.msk [vmem:[#allocation2 + $0x88] sm:$0x3] %vm248_vm1, %v154_v38  ;;  %v160_v50 = vmax.f32 %v52_v46, 0.0  ;;  %v54_v51 = vld [vmem:[%s20133_s0 + $0xc8] sm:$0xff]  ;;  %v161_v52 = vmax.f32 %v53_v47, 0.0  ;;  %v56_v53 = vld [vmem:[%s20133_s0 + $0xd8] sm:$0xff]  ;;  %13693 = vmatprep.mubr.msk.f32.mxu1 %vm245_vm0, %v355_v48 }
  0x10   :  { %265 = vst.msk [vmem:[#allocation2 + $0x90] sm:$0xff] %vm245_vm0, %v155_v39  ;;  %266 = vst.msk [vmem:[#allocation2 + $0x98] sm:$0xff] %vm245_vm0, %v156_v40  ;;  %v3567_v54 = vld [vmem:[#allocation2 + $0x19] sm:$0xff]  ;;  %v162_v56 = vmax.f32 %v54_v51, 0.0  ;;  %v164_v57 = vmax.f32 %v56_v53, 0.0  ;;  %v356_v58 = vld [vmem:[#allocation2 + $0x8] sm:$0xff] }
  0x11   :  { %v357_v55 = vld [vmem:[#allocation2 + $0x18] sm:$0xff]  ;;  %267 = vst.msk [vmem:[#allocation2 + $0xa0] sm:$0x3] %vm248_vm1, %v157_v43  ;;  %14085 = vmatprep.mubr.msk.f32.mxu0 %vm245_vm0, %v3567_v54  ;;  %v3568_v59 = vld [vmem:[#allocation2 + $0x21] sm:$0xff]  ;;  %270 = vst.msk [vmem:[#allocation2 + $0xb8] sm:$0x3] %vm248_vm1, %v160_v50  ;;  %13694 = vmatmul.mubr.msk.f32.vlgmr.msra.gmra.mrb[0].mxu1 %vm245_vm0, %v356_v58 }
  0x12   :  { %268 = vst.msk [vmem:[#allocation2 + $0xa8] sm:$0xff] %vm245_vm0, %v158_v45  ;;  %269 = vst.msk [vmem:[#allocation2 + $0xb0] sm:$0xff] %vm245_vm0, %v159_v49  ;;  %14086 = vmatmul.mubr.msk.f32.vlgmr.msra.gmra.mrb[0].mxu0 %vm245_vm0, %v3568_v59  ;;  %v3569_v60 = vld [vmem:[#allocation2 + $0x31] sm:$0xff]  ;;  %13696 = vmatprep.mubr.msk.f32.mxu1 %vm245_vm0, %v357_v55  ;;  %v358_v61 = vld [vmem:[#allocation2 + $0x20] sm:$0xff] }
  0x13   :  { %271 = vst.msk [vmem:[#allocation2 + $0xc0] sm:$0xff] %vm245_vm0, %v161_v52  ;;  %272 = vst.msk [vmem:[#allocation2 + $0xc8] sm:$0xff] %vm245_vm0, %v162_v56  ;;  %14182 = vmatpush3.msra.mxu0 %v15338_v6  ;;  %v3570_v62 = vld [vmem:[#allocation2 + $0x39] sm:$0xff]  ;;  %14088 = vmatprep.mubr.msk.f32.mxu0 %vm245_vm0, %v3569_v60  ;;  %v359_v63 = vld [vmem:[#allocation2 + $0x30] sm:$0xff] }
  0x14   :  { %274 = vst.msk [vmem:[#allocation2 + $0xd8] sm:$0xff] %vm245_vm0, %v164_v57  ;;  %v3571_v0 = vld [vmem:[#allocation2 + $0x49] sm:$0xff]  ;;  %v360_v1 = vld [vmem:[#allocation2 + $0x38] sm:$0xff]  ;;  %v3573_v4 = vld [vmem:[#allocation2 + $0x61] sm:$0xff] }
  0x15   :  { %13697 = vmatmul.mubr.msk.f32.gmra.mrb[2].mxu1 %vm245_vm0, %v358_v61  ;;  %v3572_v2 = vld [vmem:[#allocation2 + $0x51] sm:$0xff]  ;;  %v361_v3 = vld [vmem:[#allocation2 + $0x48] sm:$0xff]  ;;  %v363_v6 = vld [vmem:[#allocation2 + $0x60] sm:$0xff] }
  0x16   :  { %14089 = vmatmul.mubr.msk.f32.gmra.mrb[2].mxu0 %vm245_vm0, %v3570_v62  ;;  %13699 = vmatprep.mubr.msk.f32.mxu1 %vm245_vm0, %v359_v63  ;;  %v362_v5 = vld [vmem:[#allocation2 + $0x50] sm:$0xff]  ;;  %v57_v8 = vld [vmem:[%s20133_s0 + $0xe0] sm:$0xff]  ;;  %v58_v13 = vld [vmem:[%s20133_s0 + $0xe8] sm:$0x3] }
  0x17   :  { %14091 = vmatprep.mubr.msk.f32.mxu0 %vm245_vm0, %v3571_v0  ;;  %v55_v7 = vld [vmem:[%s20133_s0 + $0xd0] sm:$0x3]  ;;  %v3575_v10 = vld [vmem:[#allocation2 + $0x79] sm:$0xff]  ;;  %v165_v12 = vmax.f32 %v57_v8, 0.0  ;;  %v166_v14 = vmax.f32 %v58_v13, 0.0  ;;  %v364_v18 = vld [vmem:[#allocation2 + $0x68] sm:$0xff] }
  0x18   :  { %v3574_v9 = vld [vmem:[#allocation2 + $0x69] sm:$0xff]  ;;  %v163_v11 = vmax.f32 %v55_v7, 0.0  ;;  %v60_v16 = vld [vmem:[%s20133_s0 + $0xf8] sm:$0xff]  ;;  %v61_v17 = vld [vmem:[%s20133_s0 + $0x100] sm:$0x3] }
  0x19   :  { %13700 = vmatmul.mubr.msk.f32.gmra.mrb[4].mxu1 %vm245_vm0, %v360_v1  ;;  %v59_v15 = vld [vmem:[%s20133_s0 + $0xf0] sm:$0xff]  ;;  %v3576_v19 = vld [vmem:[#allocation2 + $0x81] sm:$0xff]  ;;  %275 = vst.msk [vmem:[#allocation2 + $0xe0] sm:$0xff] %vm245_vm0, %v165_v12  ;;  %v168_v21 = vmax.f32 %v60_v16, 0.0  ;;  %v169_v22 = vmax.f32 %v61_v17, 0.0  ;;  %v365_v26 = vld [vmem:[#allocation2 + $0x78] sm:$0xff] }
  0x1a   :  { %14092 = vmatmul.mubr.msk.f32.gmra.mrb[4].mxu0 %vm245_vm0, %v3572_v2  ;;  %13702 = vmatprep.mubr.msk.f32.mxu1 %vm245_vm0, %v361_v3  ;;  %273 = vst.msk [vmem:[#allocation2 + $0xd0] sm:$0x3] %vm248_vm1, %v163_v11  ;;  %v167_v20 = vmax.f32 %v59_v15, 0.0  ;;  %v62_v23 = vld [vmem:[%s20133_s0 + $0x108] sm:$0xff]  ;;  %v63_v24 = vld [vmem:[%s20133_s0 + $0x110] sm:$0xff]  ;;  %v65_v25 = vld [vmem:[%s20133_s0 + $0x120] sm:$0xff] }
  0x1b   :  { %14094 = vmatprep.mubr.msk.f32.mxu0 %vm245_vm0, %v3573_v4  ;;  %v3577_v27 = vld [vmem:[#allocation2 + $0x91] sm:$0xff]  ;;  %276 = vst.msk [vmem:[#allocation2 + $0xe8] sm:$0x3] %vm248_vm1, %v166_v14  ;;  %v170_v28 = vmax.f32 %v62_v23, 0.0  ;;  %v171_v29 = vmax.f32 %v63_v24, 0.0  ;;  %v66_v31 = vld [vmem:[%s20133_s0 + $0x128] sm:$0xff] }
  0x1c   :  { %v64_v30 = vld [vmem:[%s20133_s0 + $0x118] sm:$0x3]  ;;  %v173_v32 = vmax.f32 %v65_v25, 0.0  ;;  %277 = vst.msk [vmem:[#allocation2 + $0xf0] sm:$0xff] %vm245_vm0, %v167_v20  ;;  %278 = vst.msk [vmem:[#allocation2 + $0xf8] sm:$0xff] %vm245_vm0, %v168_v21  ;;  %v174_v34 = vmax.f32 %v66_v31, 0.0 }
  0x1d   :  { %13703 = vmatmul.mubr.msk.f32.gmra.mrb[6].mxu1 %vm245_vm0, %v362_v5  ;;  %279 = vst.msk [vmem:[#allocation2 + $0x100] sm:$0x3] %vm248_vm1, %v169_v22  ;;  %v172_v33 = vmax.f32 %v64_v30, 0.0  ;;  %v67_v35 = vld [vmem:[%s20133_s0 + $0x130] sm:$0x3]  ;;  %v68_v36 = vld [vmem:[%s20133_s0 + $0x138] sm:$0xff] }
  0x1e   :  { %14095 = vmatmul.mubr.msk.f32.gmra.mrb[6].mxu0 %vm245_vm0, %v3574_v9  ;;  %13705 = vmatprep.mubr.msk.f32.mxu1 %vm245_vm0, %v363_v6  ;;  %v69_v37 = vld [vmem:[%s20133_s0 + $0x140] sm:$0xff]  ;;  %280 = vst.msk [vmem:[#allocation2 + $0x108] sm:$0xff] %vm245_vm0, %v170_v28  ;;  %281 = vst.msk [vmem:[#allocation2 + $0x110] sm:$0xff] %vm245_vm0, %v171_v29  ;;  %v175_v38 = vmax.f32 %v67_v35, 0.0  ;;  %v176_v39 = vmax.f32 %v68_v36, 0.0  ;;  %v71_v42 = vld [vmem:[%s20133_s0 + $0x150] sm:$0xff] }
  0x1f   :  { %14097 = vmatprep.mubr.msk.f32.mxu0 %vm245_vm0, %v3575_v10  ;;  %283 = vst.msk [vmem:[#allocation2 + $0x120] sm:$0xff] %vm245_vm0, %v173_v32  ;;  %v177_v40 = vmax.f32 %v69_v37, 0.0  ;;  %v70_v41 = vld [vmem:[%s20133_s0 + $0x148] sm:$0x3]  ;;  %v366_v43 = vld [vmem:[#allocation2 + $0x80] sm:$0xff]  ;;  %284 = vst.msk [vmem:[#allocation2 + $0x128] sm:$0xff] %vm245_vm0, %v174_v34 }
  0x20   :  { %v15512_v44 = vld [vmem:[#allocation2 + $0x99] sm:$0xff]  ;;  %282 = vst.msk [vmem:[#allocation2 + $0x118] sm:$0x3] %vm248_vm1, %v172_v33  ;;  %v178_v45 = vmax.f32 %v70_v41, 0.0  ;;  %v179_v47 = vmax.f32 %v71_v42, 0.0  ;;  %v74_v49 = vld [vmem:[%s20133_s0 + $0x168] sm:$0xff] }
  0x21   :  { %v72_v46 = vld [vmem:[%s20133_s0 + $0x158] sm:$0xff]  ;;  %v73_v48 = vld [vmem:[%s20133_s0 + $0x160] sm:$0x3]  ;;  %13706 = vmatmul.mubr.msk.f32.gmra.mrb[8].mxu1 %vm245_vm0, %v364_v18  ;;  %285 = vst.msk [vmem:[#allocation2 + $0x130] sm:$0x3] %vm248_vm1, %v175_v38  ;;  %v75_v52 = vld [vmem:[%s20133_s0 + $0x170] sm:$0xff] }
  0x22   :  { %14098 = vmatmul.mubr.msk.f32.gmra.mrb[8].mxu0 %vm245_vm0, %v3576_v19  ;;  %286 = vst.msk [vmem:[#allocation2 + $0x138] sm:$0xff] %vm245_vm0, %v176_v39  ;;  %287 = vst.msk [vmem:[#allocation2 + $0x140] sm:$0xff] %vm245_vm0, %v177_v40  ;;  %v180_v50 = vmax.f32 %v72_v46, 0.0  ;;  %v181_v51 = vmax.f32 %v73_v48, 0.0  ;;  %v182_v53 = vmax.f32 %v74_v49, 0.0  ;;  %13708 = vmatprep.mubr.msk.f32.mxu1 %vm245_vm0, %v365_v26  ;;  %v183_v55 = vmax.f32 %v75_v52, 0.0 }
  0x23   :  { %v76_v54 = vld [vmem:[%s20133_s0 + $0x178] sm:$0x3]  ;;  %14100 = vmatprep.mubr.msk.f32.mxu0 %vm245_vm0, %v3577_v27  ;;  %288 = vst.msk [vmem:[#allocation2 + $0x148] sm:$0x3] %vm248_vm1, %v178_v45  ;;  %v77_v57 = vld [vmem:[%s20133_s0 + $0x180] sm:$0xff]  ;;  %v78_v58 = vld [vmem:[%s20133_s0 + $0x188] sm:$0xff] }
  0x24   :  { %289 = vst.msk [vmem:[#allocation2 + $0x150] sm:$0xff] %vm245_vm0, %v179_v47  ;;  %v184_v56 = vmax.f32 %v76_v54, 0.0  ;;  %v79_v59 = vld [vmem:[%s20133_s0 + $0x190] sm:$0x3]  ;;  %290 = vst.msk [vmem:[#allocation2 + $0x158] sm:$0xff] %vm245_vm0, %v180_v50  ;;  %v185_v62 = vmax.f32 %v77_v57, 0.0 }
  0x25   :  { %v367_v60 = vld [vmem:[#allocation2 + $0x90] sm:$0xff]  ;;  %291 = vst.msk [vmem:[#allocation2 + $0x160] sm:$0x3] %vm248_vm1, %v181_v51  ;;  %v186_v63 = vmax.f32 %v78_v58, 0.0  ;;  %v187_v0 = vmax.f32 %v79_v59, 0.0  ;;  %v86_v2 = vld [vmem:[%s20133_s0 + $0x1c8] sm:$0xff]  ;;  %13709 = vmatmul.mubr.msk.f32.gmra.mrb[10].mxu1 %vm245_vm0, %v366_v43 }
  0x26   :  { %v15549_v61 = vld [vmem:[#allocation2 + $0xa9] sm:$0xff]  ;;  %292 = vst.msk [vmem:[#allocation2 + $0x168] sm:$0xff] %vm245_vm0, %v182_v53  ;;  %293 = vst.msk [vmem:[#allocation2 + $0x170] sm:$0xff] %vm245_vm0, %v183_v55  ;;  %14101 = vmatmul.mubr.msk.f32.gmra.mrb[10].mxu0 %vm245_vm0, %v15512_v44  ;;  %v194_v4 = vmax.f32 %v86_v2, 0.0  ;;  %13711 = vmatprep.mubr.msk.f32.mxu1 %vm245_vm0, %v367_v60  ;;  %v368_v5 = vld [vmem:[#allocation2 + $0x98] sm:$0xff] }
  0x27   :  { %294 = vst.msk [vmem:[#allocation2 + $0x178] sm:$0x3] %vm248_vm1, %v184_v56  ;;  %v83_v1 = vld [vmem:[%s20133_s0 + $0x1b0] sm:$0xff]  ;;  %297 = vst.msk [vmem:[#allocation2 + $0x190] sm:$0x3] %vm248_vm1, %v187_v0  ;;  %14103 = vmatprep.mubr.msk.f32.mxu0 %vm245_vm0, %v15549_v61  ;;  %v369_v7 = vld [vmem:[#allocation2 + $0xa8] sm:$0xff] }
  0x28   :  { %295 = vst.msk [vmem:[#allocation2 + $0x180] sm:$0xff] %vm245_vm0, %v185_v62  ;;  %296 = vst.msk [vmem:[#allocation2 + $0x188] sm:$0xff] %vm245_vm0, %v186_v63  ;;  %v191_v3 = vmax.f32 %v83_v1, 0.0  ;;  %v15571_v6 = vld [vmem:[#allocation2 + $0xb1] sm:$0xff]  ;;  %v15573_v8 = vld [vmem:[#allocation2 + $0xc1] sm:$0xff] }
  0x29   :  { %304 = vst.msk [vmem:[#allocation2 + $0x1c8] sm:$0xff] %vm245_vm0, %v194_v4  ;;  %13712 = vmatmul.mubr.msk.f32.gmra.mrb[12].mxu1 %vm245_vm0, %v368_v5  ;;  %v370_v9 = vld [vmem:[#allocation2 + $0xb0] sm:$0xff]  ;;  %v371_v11 = vld [vmem:[#allocation2 + $0xc0] sm:$0xff]  ;;  %v372_v13 = vld [vmem:[#allocation2 + $0xc8] sm:$0xff] }
  0x2a   :  { %301 = vst.msk [vmem:[#allocation2 + $0x1b0] sm:$0xff] %vm245_vm0, %v191_v3  ;;  %14104 = vmatmul.mubr.msk.f32.gmra.mrb[12].mxu0 %vm245_vm0, %v15571_v6  ;;  %13714 = vmatprep.mubr.msk.f32.mxu1 %vm245_vm0, %v369_v7  ;;  %v15583_v10 = vld [vmem:[#allocation2 + $0xc9] sm:$0xff]  ;;  %v15585_v12 = vld [vmem:[#allocation2 + $0xd9] sm:$0xff]  ;;  %v15596_v16 = vld [vmem:[#allocation2 + $0xe1] sm:$0xff] }
  0x2b   :  { %14106 = vmatprep.mubr.msk.f32.mxu0 %vm245_vm0, %v15573_v8  ;;  %v373_v14 = vld [vmem:[#allocation2 + $0xd8] sm:$0xff]  ;;  %v87_v15 = vld [vmem:[%s20133_s0 + $0x1d0] sm:$0xff]  ;;  %v89_v23 = vld [vmem:[%s20133_s0 + $0x1e0] sm:$0xff] }
  0x2c   :  { %v195_v17 = vmax.f32 %v87_v15, 0.0  ;;  %v84_v18 = vld [vmem:[%s20133_s0 + $0x1b8] sm:$0xff]  ;;  %v90_v24 = vld [vmem:[%s20133_s0 + $0x1e8] sm:$0xff]  ;;  %v374_v25 = vld [vmem:[#allocation2 + $0xe0] sm:$0xff]  ;;  %v197_v27 = vmax.f32 %v89_v23, 0.0 }
  0x2d   :  { %13715 = vmatmul.mubr.msk.f32.gmra.mrb[14].mxu1 %vm245_vm0, %v370_v9  ;;  %v88_v19 = vld [vmem:[%s20133_s0 + $0x1d8] sm:$0x3]  ;;  %v192_v21 = vmax.f32 %v84_v18, 0.0  ;;  %v198_v28 = vmax.f32 %v90_v24, 0.0  ;;  %v91_v29 = vld [vmem:[%s20133_s0 + $0x1f0] sm:$0x3] }
  0x2e   :  { %14107 = vmatmul.mubr.msk.f32.gmra.mrb[14].mxu0 %vm245_vm0, %v15583_v10  ;;  %13717 = vmatprep.mubr.msk.f32.mxu1 %vm245_vm0, %v371_v11  ;;  %v15604_v20 = vld [vmem:[#allocation2 + $0xf1] sm:$0xff]  ;;  %v196_v22 = vmax.f32 %v88_v19, 0.0  ;;  %v15612_v26 = vld [vmem:[#allocation2 + $0xf9] sm:$0xff]  ;;  %305 = vst.msk [vmem:[#allocation2 + $0x1d0] sm:$0xff] %vm245_vm0, %v195_v17  ;;  %v15627_v33 = vld [vmem:[#allocation2 + $0x109] sm:$0xff]  ;;  %v199_v34 = vmax.f32 %v91_v29, 0.0 }
  0x2f   :  { %14109 = vmatprep.mubr.msk.f32.mxu0 %vm245_vm0, %v15585_v12  ;;  %v92_v30 = vld [vmem:[%s20133_s0 + $0x1f8] sm:$0xff]  ;;  %v93_v31 = vld [vmem:[%s20133_s0 + $0x200] sm:$0xff]  ;;  %v375_v32 = vld [vmem:[#allocation2 + $0xf0] sm:$0xff]  ;;  %302 = vst.msk [vmem:[#allocation2 + $0x1b8] sm:$0xff] %vm245_vm0, %v192_v21 }
  0x30   :  { %306 = vst.msk [vmem:[#allocation2 + $0x1d8] sm:$0x3] %vm248_vm1, %v196_v22  ;;  %v200_v35 = vmax.f32 %v92_v30, 0.0  ;;  %v201_v36 = vmax.f32 %v93_v31, 0.0  ;;  %v94_v37 = vld [vmem:[%s20133_s0 + $0x208] sm:$0x3] }
  0x31   :  { %13718 = vmatmul.mubr.msk.f32.gmra.mrb[16].mxu1 %vm245_vm0, %v372_v13  ;;  %v95_v38 = vld [vmem:[%s20133_s0 + $0x210] sm:$0xff]  ;;  %307 = vst.msk [vmem:[#allocation2 + $0x1e0] sm:$0xff] %vm245_vm0, %v197_v27  ;;  %308 = vst.msk [vmem:[#allocation2 + $0x1e8] sm:$0xff] %vm245_vm0, %v198_v28  ;;  %v202_v39 = vmax.f32 %v94_v37, 0.0  ;;  %v96_v40 = vld [vmem:[%s20133_s0 + $0x218] sm:$0xff] }
  0x32   :  { %14110 = vmatmul.mubr.msk.f32.gmra.mrb[16].mxu0 %vm245_vm0, %v15596_v16  ;;  %13720 = vmatprep.mubr.msk.f32.mxu1 %vm245_vm0, %v373_v14  ;;  %v203_v41 = vmax.f32 %v95_v38, 0.0  ;;  %v97_v42 = vld [vmem:[%s20133_s0 + $0x220] sm:$0x3]  ;;  %v98_v43 = vld [vmem:[%s20133_s0 + $0x228] sm:$0xff]  ;;  %309 = vst.msk [vmem:[#allocation2 + $0x1f0] sm:$0x3] %vm248_vm1, %v199_v34 }
  0x33   :  { %14112 = vmatprep.mubr.msk.f32.mxu0 %vm245_vm0, %v15604_v20  ;;  %310 = vst.msk [vmem:[#allocation2 + $0x1f8] sm:$0xff] %vm245_vm0, %v200_v35  ;;  %311 = vst.msk [vmem:[#allocation2 + $0x200] sm:$0xff] %vm245_vm0, %v201_v36  ;;  %v204_v45 = vmax.f32 %v96_v40, 0.0  ;;  %v205_v46 = vmax.f32 %v97_v42, 0.0  ;;  %v99_v47 = vld [vmem:[%s20133_s0 + $0x230] sm:$0xff]  ;;  %v206_v48 = vmax.f32 %v98_v43, 0.0 }
  0x34   :  { %v100_v49 = vld [vmem:[%s20133_s0 + $0x238] sm:$0x3]  ;;  %312 = vst.msk [vmem:[#allocation2 + $0x208] sm:$0x3] %vm248_vm1, %v202_v39  ;;  %v207_v52 = vmax.f32 %v99_v47, 0.0  ;;  %v101_v54 = vld [vmem:[%s20133_s0 + $0x240] sm:$0xff] }
  0x35   :  { %v376_v50 = vld [vmem:[#allocation2 + $0xf8] sm:$0xff]  ;;  %313 = vst.msk [vmem:[#allocation2 + $0x210] sm:$0xff] %vm245_vm0, %v203_v41  ;;  %v208_v53 = vmax.f32 %v100_v49, 0.0  ;;  %v102_v55 = vld [vmem:[%s20133_s0 + $0x248] sm:$0xff]  ;;  %v103_v56 = vld [vmem:[%s20133_s0 + $0x250] sm:$0x3]  ;;  %13721 = vmatmul.mubr.msk.f32.gmra.mrb[18].mxu1 %vm245_vm0, %v374_v25 }
  0x36   :  { %v15660_v51 = vld [vmem:[#allocation2 + $0x111] sm:$0xff]  ;;  %14113 = vmatmul.mubr.msk.f32.gmra.mrb[18].mxu0 %vm245_vm0, %v15612_v26  ;;  %314 = vst.msk [vmem:[#allocation2 + $0x218] sm:$0xff] %vm245_vm0, %v204_v45  ;;  %316 = vst.msk [vmem:[#allocation2 + $0x228] sm:$0xff] %vm245_vm0, %v206_v48  ;;  %v209_v57 = vmax.f32 %v101_v54, 0.0  ;;  %v210_v58 = vmax.f32 %v102_v55, 0.0  ;;  %v211_v59 = vmax.f32 %v103_v56, 0.0  ;;  %13723 = vmatprep.mubr.msk.f32.mxu1 %vm245_vm0, %v375_v32 }
  0x37   :  { %315 = vst.msk [vmem:[#allocation2 + $0x220] sm:$0x3] %vm248_vm1, %v205_v46  ;;  %v104_v60 = vld [vmem:[%s20133_s0 + $0x258] sm:$0xff]  ;;  %v105_v62 = vld [vmem:[%s20133_s0 + $0x260] sm:$0xff]  ;;  %v107_v63 = vld [vmem:[%s20133_s0 + $0x270] sm:$0xff]  ;;  %14115 = vmatprep.mubr.msk.f32.mxu0 %vm245_vm0, %v15627_v33 }
  0x38   :  { %317 = vst.msk [vmem:[#allocation2 + $0x230] sm:$0xff] %vm245_vm0, %v207_v52  ;;  %v212_v0 = vmax.f32 %v104_v60, 0.0  ;;  %v213_v1 = vmax.f32 %v105_v62, 0.0  ;;  %v106_v2 = vld [vmem:[%s20133_s0 + $0x268] sm:$0x3]  ;;  %v108_v3 = vld [vmem:[%s20133_s0 + $0x278] sm:$0xff] }
  0x39   :  { %318 = vst.msk [vmem:[#allocation2 + $0x238] sm:$0x3] %vm248_vm1, %v208_v53  ;;  %v215_v4 = vmax.f32 %v107_v63, 0.0  ;;  %v377_v5 = vld [vmem:[#allocation2 + $0x108] sm:$0xff]  ;;  %321 = vst.msk [vmem:[#allocation2 + $0x250] sm:$0x3] %vm248_vm1, %v211_v59  ;;  %13724 = vmatmul.mubr.msk.f32.gmra.mrb[20].mxu1 %vm245_vm0, %v376_v50 }
  0x3a   :  { %v15699_v7 = vld [vmem:[#allocation2 + $0x121] sm:$0xff]  ;;  %319 = vst.msk [vmem:[#allocation2 + $0x240] sm:$0xff] %vm245_vm0, %v209_v57  ;;  %320 = vst.msk [vmem:[#allocation2 + $0x248] sm:$0xff] %vm245_vm0, %v210_v58  ;;  %v214_v9 = vmax.f32 %v106_v2, 0.0  ;;  %v216_v11 = vmax.f32 %v108_v3, 0.0  ;;  %14116 = vmatmul.mubr.msk.f32.gmra.mrb[20].mxu0 %vm245_vm0, %v15660_v51  ;;  %13726 = vmatprep.mubr.msk.f32.mxu1 %vm245_vm0, %v377_v5  ;;  %v378_v18 = vld [vmem:[#allocation2 + $0x110] sm:$0xff] }
  0x3b   :  { %v109_v13 = vld [vmem:[%s20133_s0 + $0x280] sm:$0x3]  ;;  %322 = vst.msk [vmem:[#allocation2 + $0x258] sm:$0xff] %vm245_vm0, %v212_v0  ;;  %323 = vst.msk [vmem:[#allocation2 + $0x260] sm:$0xff] %vm245_vm0, %v213_v1  ;;  %v110_v15 = vld [vmem:[%s20133_s0 + $0x288] sm:$0xff]  ;;  %14118 = vmatprep.mubr.msk.f32.mxu0 %vm245_vm0, %v15699_v7 }
  0x3c   :  { %325 = vst.msk [vmem:[#allocation2 + $0x270] sm:$0xff] %vm245_vm0, %v215_v4  ;;  %v217_v14 = vmax.f32 %v109_v13, 0.0  ;;  %326 = vst.msk [vmem:[#allocation2 + $0x278] sm:$0xff] %vm245_vm0, %v216_v11  ;;  %v218_v17 = vmax.f32 %v110_v15, 0.0  ;;  %v15721_v19 = vld [vmem:[#allocation2 + $0x129] sm:$0xff]  ;;  %v379_v21 = vld [vmem:[#allocation2 + $0x120] sm:$0xff] }
  0x3d   :  { %324 = vst.msk [vmem:[#allocation2 + $0x268] sm:$0x3] %vm248_vm1, %v214_v9  ;;  %v15724_v22 = vld [vmem:[#allocation2 + $0x139] sm:$0xff]  ;;  %13727 = vmatmul.mubr.msk.f32.gmra.mrb[22].mxu1 %vm245_vm0, %v378_v18  ;;  %v380_v23 = vld [vmem:[#allocation2 + $0x128] sm:$0xff]  ;;  %v15735_v27 = vld [vmem:[#allocation2 + $0x151] sm:$0xff] }
  0x3e   :  { %327 = vst.msk [vmem:[#allocation2 + $0x280] sm:$0x3] %vm248_vm1, %v217_v14  ;;  %14119 = vmatmul.mubr.msk.f32.gmra.mrb[22].mxu0 %vm245_vm0, %v15721_v19  ;;  %13729 = vmatprep.mubr.msk.f32.mxu1 %vm245_vm0, %v379_v21  ;;  %v15733_v24 = vld [vmem:[#allocation2 + $0x141] sm:$0xff]  ;;  %v381_v25 = vld [vmem:[#allocation2 + $0x138] sm:$0xff]  ;;  %v383_v30 = vld [vmem:[#allocation2 + $0x150] sm:$0xff] }
  0x3f   :  { %328 = vst.msk [vmem:[#allocation2 + $0x288] sm:$0xff] %vm245_vm0, %v218_v17  ;;  %14121 = vmatprep.mubr.msk.f32.mxu0 %vm245_vm0, %v15724_v22  ;;  %v382_v28 = vld [vmem:[#allocation2 + $0x140] sm:$0xff]  ;;  %v111_v31 = vld [vmem:[%s20133_s0 + $0x290] sm:$0xff]  ;;  %v112_v32 = vld [vmem:[%s20133_s0 + $0x298] sm:$0x3] }
  0x40   :  { %v15740_v29 = vld [vmem:[#allocation2 + $0x159] sm:$0xff]  ;;  %v15751_v34 = vld [vmem:[#allocation2 + $0x169] sm:$0xff]  ;;  %v219_v35 = vmax.f32 %v111_v31, 0.0  ;;  %v220_v36 = vmax.f32 %v112_v32, 0.0  ;;  %v15759_v40 = vld [vmem:[#allocation2 + $0x171] sm:$0xff] }
  0x41   :  { %13730 = vmatmul.mubr.msk.f32.gmra.mrb[24].mxu1 %vm245_vm0, %v380_v23  ;;  %v113_v37 = vld [vmem:[%s20133_s0 + $0x2a0] sm:$0xff]  ;;  %v114_v38 = vld [vmem:[%s20133_s0 + $0x2a8] sm:$0xff]  ;;  %v384_v39 = vld [vmem:[#allocation2 + $0x158] sm:$0xff] }
  0x42   :  { %14122 = vmatmul.mubr.msk.f32.gmra.mrb[24].mxu0 %vm245_vm0, %v15733_v24  ;;  %13732 = vmatprep.mubr.msk.f32.mxu1 %vm245_vm0, %v381_v25  ;;  %v221_v41 = vmax.f32 %v113_v37, 0.0  ;;  %v222_v42 = vmax.f32 %v114_v38, 0.0  ;;  %v115_v43 = vld [vmem:[%s20133_s0 + $0x2b0] sm:$0x3]  ;;  %v116_v45 = vld [vmem:[%s20133_s0 + $0x2b8] sm:$0xff]  ;;  %v117_v46 = vld [vmem:[%s20133_s0 + $0x2c0] sm:$0xff] }
  0x43   :  { %14124 = vmatprep.mubr.msk.f32.mxu0 %vm245_vm0, %v15735_v27  ;;  %v385_v47 = vld [vmem:[#allocation2 + $0x168] sm:$0xff]  ;;  %329 = vst.msk [vmem:[#allocation2 + $0x290] sm:$0xff] %vm245_vm0, %v219_v35  ;;  %v223_v49 = vmax.f32 %v115_v43, 0.0  ;;  %v224_v50 = vmax.f32 %v116_v45, 0.0  ;;  %v225_v52 = vmax.f32 %v117_v46, 0.0  ;;  %v119_v54 = vld [vmem:[%s20133_s0 + $0x2d0] sm:$0xff] }
  0x44   :  { %v3597_v48 = vld [vmem:[#allocation2 + $0x181] sm:$0xff]  ;;  %330 = vst.msk [vmem:[#allocation2 + $0x298] sm:$0x3] %vm248_vm1, %v220_v36  ;;  %v120_v56 = vld [vmem:[%s20133_s0 + $0x2d8] sm:$0xff]  ;;  %v227_v57 = vmax.f32 %v119_v54, 0.0  ;;  %v123_v63 = vld [vmem:[%s20133_s0 + $0x2f0] sm:$0xff] }
  0x45   :  { %13733 = vmatmul.mubr.msk.f32.gmra.mrb[26].mxu1 %vm245_vm0, %v382_v28  ;;  %v118_v53 = vld [vmem:[%s20133_s0 + $0x2c8] sm:$0x3]  ;;  %331 = vst.msk [vmem:[#allocation2 + $0x2a0] sm:$0xff] %vm245_vm0, %v221_v41  ;;  %332 = vst.msk [vmem:[#allocation2 + $0x2a8] sm:$0xff] %vm245_vm0, %v222_v42  ;;  %v121_v58 = vld [vmem:[%s20133_s0 + $0x2e0] sm:$0x3] }
  0x46   :  { %14125 = vmatmul.mubr.msk.f32.gmra.mrb[26].mxu0 %vm245_vm0, %v15740_v29  ;;  %13735 = vmatprep.mubr.msk.f32.mxu1 %vm245_vm0, %v383_v30  ;;  %v226_v55 = vmax.f32 %v118_v53, 0.0  ;;  %v122_v59 = vld [vmem:[%s20133_s0 + $0x2e8] sm:$0xff]  ;;  %333 = vst.msk [vmem:[#allocation2 + $0x2b0] sm:$0x3] %vm248_vm1, %v223_v49  ;;  %v228_v60 = vmax.f32 %v120_v56, 0.0  ;;  %v229_v62 = vmax.f32 %v121_v58, 0.0 }
  0x47   :  { %14127 = vmatprep.mubr.msk.f32.mxu0 %vm245_vm0, %v15751_v34  ;;  %334 = vst.msk [vmem:[#allocation2 + $0x2b8] sm:$0xff] %vm245_vm0, %v224_v50  ;;  %335 = vst.msk [vmem:[#allocation2 + $0x2c0] sm:$0xff] %vm245_vm0, %v225_v52  ;;  %v230_v0 = vmax.f32 %v122_v59, 0.0  ;;  %v124_v1 = vld [vmem:[%s20133_s0 + $0x2f8] sm:$0x3]  ;;  %v386_v2 = vld [vmem:[#allocation2 + $0x170] sm:$0xff] }
  0x48   :  { %v3598_v3 = vld [vmem:[#allocation2 + $0x189] sm:$0xff]  ;;  %336 = vst.msk [vmem:[#allocation2 + $0x2c8] sm:$0x3] %vm248_vm1, %v226_v55  ;;  %v231_v4 = vmax.f32 %v123_v63, 0.0  ;;  %v232_v5 = vmax.f32 %v124_v1, 0.0  ;;  %v125_v9 = vld [vmem:[%s20133_s0 + $0x300] sm:$0xff] }
  0x49   :  { %337 = vst.msk [vmem:[#allocation2 + $0x2d0] sm:$0xff] %vm245_vm0, %v227_v57  ;;  %v126_v11 = vld [vmem:[%s20133_s0 + $0x308] sm:$0xff]  ;;  %v127_v13 = vld [vmem:[%s20133_s0 + $0x310] sm:$0x3]  ;;  %13736 = vmatmul.mubr.msk.f32.gmra.mrb[28].mxu1 %vm245_vm0, %v384_v39  ;;  %338 = vst.msk [vmem:[#allocation2 + $0x2d8] sm:$0xff] %vm245_vm0, %v228_v60  ;;  %v233_v15 = vmax.f32 %v125_v9, 0.0 }
  0x4a   :  { %14128 = vmatmul.mubr.msk.f32.gmra.mrb[28].mxu0 %vm245_vm0, %v15759_v40  ;;  %v387_v14 = vld [vmem:[#allocation2 + $0x1b0] sm:$0xff]  ;;  %339 = vst.msk [vmem:[#allocation2 + $0x2e0] sm:$0x3] %vm248_vm1, %v229_v62  ;;  %v234_v17 = vmax.f32 %v126_v11, 0.0  ;;  %v235_v18 = vmax.f32 %v127_v13, 0.0  ;;  %v128_v21 = vld [vmem:[%s20133_s0 + $0x318] sm:$0xff]  ;;  %13738 = vmatprep.mubr.msk.f32.mxu1 %vm245_vm0, %v385_v47 }
  0x4b   :  { %340 = vst.msk [vmem:[#allocation2 + $0x2e8] sm:$0xff] %vm245_vm0, %v230_v0  ;;  %v129_v23 = vld [vmem:[%s20133_s0 + $0x320] sm:$0xff]  ;;  %v131_v25 = vld [vmem:[%s20133_s0 + $0x330] sm:$0xff]  ;;  %14130 = vmatprep.mubr.msk.f32.mxu0 %vm245_vm0, %v3597_v48  ;;  %341 = vst.msk [vmem:[#allocation2 + $0x2f0] sm:$0xff] %vm245_vm0, %v231_v4  ;;  %v236_v28 = vmax.f32 %v128_v21, 0.0 }
  0x4c   :  { %342 = vst.msk [vmem:[#allocation2 + $0x2f8] sm:$0x3] %vm248_vm1, %v232_v5  ;;  %v237_v30 = vmax.f32 %v129_v23, 0.0  ;;  %v130_v31 = vld [vmem:[%s20133_s0 + $0x328] sm:$0x3]  ;;  %v132_v32 = vld [vmem:[%s20133_s0 + $0x338] sm:$0xff] }
  0x4d   :  { %v239_v35 = vmax.f32 %v131_v25, 0.0  ;;  %v15840_v36 = vld [vmem:[#allocation2 + $0x1c9] sm:$0xff]  ;;  %343 = vst.msk [vmem:[#allocation2 + $0x300] sm:$0xff] %vm245_vm0, %v233_v15  ;;  %344 = vst.msk [vmem:[#allocation2 + $0x308] sm:$0xff] %vm245_vm0, %v234_v17  ;;  %v238_v37 = vmax.f32 %v130_v31, 0.0  ;;  %v240_v38 = vmax.f32 %v132_v32, 0.0  ;;  %13739 = vmatmul.mubr.msk.f32.gmra.mrb[30].mxu1 %vm245_vm0, %v386_v2 }
  0x4e   :  { %345 = vst.msk [vmem:[#allocation2 + $0x310] sm:$0x3] %vm248_vm1, %v235_v18  ;;  %v133_v39 = vld [vmem:[%s20133_s0 + $0x340] sm:$0x3]  ;;  %v12497_v41 = vld [vmem:[%s20132_s1 + $0x8] sm:$0xff]  ;;  %14131 = vmatmul.mubr.msk.f32.gmra.mrb[30].mxu0 %vm245_vm0, %v3598_v3  ;;  %13741 = vmatprep.mubr.msk.f32.mxu1 %vm245_vm0, %v387_v14  ;;  %v388_v43 = vld [vmem:[#allocation2 + $0x1b8] sm:$0xff] }
  0x4f   :  { %346 = vst.msk [vmem:[#allocation2 + $0x318] sm:$0xff] %vm245_vm0, %v236_v28  ;;  %347 = vst.msk [vmem:[#allocation2 + $0x320] sm:$0xff] %vm245_vm0, %v237_v30  ;;  %v241_v42 = vmax.f32 %v133_v39, 0.0  ;;  %13789 = vmatprep.subr.mxu1 %v12497_v41  ;;  %14133 = vmatprep.mubr.msk.f32.mxu0 %vm245_vm0, %v15840_v36  ;;  %v15861_v45 = vld [vmem:[#allocation2 + $0x1d1] sm:$0xff]  ;;  %v389_v46 = vld [vmem:[#allocation2 + $0x1c8] sm:$0xff] }
  0x50   :  { %349 = vst.msk [vmem:[#allocation2 + $0x330] sm:$0xff] %vm245_vm0, %v239_v35  ;;  %350 = vst.msk [vmem:[#allocation2 + $0x338] sm:$0xff] %vm245_vm0, %v240_v38  ;;  %v15864_v47 = vld [vmem:[#allocation2 + $0x1e1] sm:$0xff]  ;;  %13790 = vmatpush3.msra.mxu1 %v12497_v41  ;;  %v390_v48 = vld [vmem:[#allocation2 + $0x1d0] sm:$0xff] }
  0x51   :  { %348 = vst.msk [vmem:[#allocation2 + $0x328] sm:$0x3] %vm248_vm1, %v238_v37  ;;  %351 = vst.msk [vmem:[#allocation2 + $0x340] sm:$0x3] %vm248_vm1, %v241_v42  ;;  %13742 = vmatmul.mubr.msk.f32.gmra.mrb[32].mxu1 %vm245_vm0, %v388_v43  ;;  %v15872_v49 = vld [vmem:[#allocation2 + $0x1e9] sm:$0xff]  ;;  %v391_v50 = vld [vmem:[#allocation2 + $0x1e0] sm:$0xff] }
  0x52   :  { %14134 = vmatmul.mubr.msk.f32.gmra.mrb[32].mxu0 %vm245_vm0, %v15861_v45  ;;  %13744 = vmatprep.mubr.msk.f32.mxu1 %vm245_vm0, %v389_v46  ;;  %v15874_v52 = vld [vmem:[#allocation2 + $0x1f9] sm:$0xff]  ;;  %v392_v53 = vld [vmem:[#allocation2 + $0x1e8] sm:$0xff]  ;;  %v15887_v55 = vld [vmem:[%s20132_s1 + $0x30] sm:$0xff] }
  0x53   :  { %14136 = vmatprep.mubr.msk.f32.mxu0 %vm245_vm0, %v15864_v47  ;;  %v15882_v54 = vld [vmem:[#allocation2 + $0x201] sm:$0xff]  ;;  %v31_v56 = vld [vmem:[%s20133_s0 + $0x10] sm:$0x3]  ;;  %v393_v57 = vld [vmem:[#allocation2 + $0x1f8] sm:$0xff]  ;;  %14279 = vmatprep.subr.mxu0 %v15887_v55 }
  0x54   :  { %v15892_v58 = vld [vmem:[#allocation2 + $0x211] sm:$0xff]  ;;  %v139_v59 = vmax.f32 %v31_v56, 0.0  ;;  %v394_v60 = vld [vmem:[#allocation2 + $0x200] sm:$0xff]  ;;  %v15904_v0 = vld [vmem:[#allocation2 + $0x229] sm:$0xff] }
  0x55   :  { %13745 = vmatmul.mubr.msk.f32.gmra.mrb[34].mxu1 %vm245_vm0, %v390_v48  ;;  %v15902_v62 = vld [vmem:[#allocation2 + $0x219] sm:$0xff]  ;;  %v395_v63 = vld [vmem:[#allocation2 + $0x210] sm:$0xff]  ;;  %v397_v3 = vld [vmem:[#allocation2 + $0x228] sm:$0xff] }
  0x56   :  { %14137 = vmatmul.mubr.msk.f32.gmra.mrb[34].mxu0 %vm245_vm0, %v15872_v49  ;;  %13747 = vmatprep.mubr.msk.f32.mxu1 %vm245_vm0, %v391_v50  ;;  %249 = vst.msk [vmem:[#allocation2 + $0x10] sm:$0x3] %vm248_vm1, %v139_v59  ;;  %v396_v1 = vld [vmem:[#allocation2 + $0x218] sm:$0xff]  ;;  %v15914_v4 = vld [vmem:[#allocation2 + $0x241] sm:$0xff]  ;;  %v398_v5 = vld [vmem:[#allocation2 + $0x230] sm:$0xff] }
  0x57   :  { %14139 = vmatprep.mubr.msk.f32.mxu0 %vm245_vm0, %v15874_v52  ;;  %v15912_v2 = vld [vmem:[#allocation2 + $0x231] sm:$0xff]  ;;  %v15922_v9 = vld [vmem:[#allocation2 + $0x249] sm:$0xff]  ;;  %v399_v11 = vld [vmem:[#allocation2 + $0x240] sm:$0xff] }
  0x58   :  { %v15924_v13 = vld [vmem:[#allocation2 + $0x259] sm:$0xff]  ;;  %v400_v15 = vld [vmem:[#allocation2 + $0x248] sm:$0xff]  ;;  %v15937_v23 = vld [vmem:[#allocation2 + $0x271] sm:$0xff] }
  0x59   :  { %13748 = vmatmul.mubr.msk.f32.gmra.mrb[36].mxu1 %vm245_vm0, %v392_v53  ;;  %v85_v14 = vld [vmem:[%s20133_s0 + $0x1c0] sm:$0x3]  ;;  %v401_v21 = vld [vmem:[#allocation2 + $0x258] sm:$0xff]  ;;  %v403_v30 = vld [vmem:[#allocation2 + $0x270] sm:$0xff] }
  0x5a   :  { %14140 = vmatmul.mubr.msk.f32.gmra.mrb[36].mxu0 %vm245_vm0, %v15882_v54  ;;  %13750 = vmatprep.mubr.msk.f32.mxu1 %vm245_vm0, %v393_v57  ;;  %v15935_v17 = vld [vmem:[#allocation2 + $0x261] sm:$0xff]  ;;  %v193_v18 = vmax.f32 %v85_v14, 0.0  ;;  %v15946_v28 = vld [vmem:[#allocation2 + $0x279] sm:$0xff]  ;;  %v15948_v31 = vld [vmem:[#allocation2 + $0x289] sm:$0xff] }
  0x5b   :  { %14142 = vmatprep.mubr.msk.f32.mxu0 %vm245_vm0, %v15892_v58  ;;  %v402_v25 = vld [vmem:[#allocation2 + $0x260] sm:$0xff]  ;;  %v404_v32 = vld [vmem:[#allocation2 + $0x278] sm:$0xff]  ;;  %v405_v37 = vld [vmem:[#allocation2 + $0x288] sm:$0xff] }
  0x5c   :  { %303 = vst.msk [vmem:[#allocation2 + $0x1c0] sm:$0x3] %vm248_vm1, %v193_v18  ;;  %v15956_v35 = vld [vmem:[#allocation2 + $0x291] sm:$0xff]  ;;  %v15958_v38 = vld [vmem:[#allocation2 + $0x2a1] sm:$0xff]  ;;  %v15966_v41 = vld [vmem:[#allocation2 + $0x2a9] sm:$0xff] }
  0x5d   :  { %13751 = vmatmul.mubr.msk.f32.gmra.mrb[38].mxu1 %vm245_vm0, %v394_v60  ;;  %v406_v39 = vld [vmem:[#allocation2 + $0x290] sm:$0xff]  ;;  %v407_v42 = vld [vmem:[#allocation2 + $0x2a0] sm:$0xff]  ;;  %v408_v46 = vld [vmem:[#allocation2 + $0x2a8] sm:$0xff] }
  0x5e   :  { %14143 = vmatmul.mubr.msk.f32.gmra.mrb[38].mxu0 %vm245_vm0, %v15902_v62  ;;  %13753 = vmatprep.mubr.msk.f32.mxu1 %vm245_vm0, %v395_v63  ;;  %v15968_v43 = vld [vmem:[#allocation2 + $0x2b9] sm:$0xff]  ;;  %v15976_v48 = vld [vmem:[#allocation2 + $0x2c1] sm:$0xff]  ;;  %v15978_v53 = vld [vmem:[#allocation2 + $0x2d1] sm:$0xff] }
  0x5f   :  { %14145 = vmatprep.mubr.msk.f32.mxu0 %vm245_vm0, %v15904_v0  ;;  %v409_v50 = vld [vmem:[#allocation2 + $0x2b8] sm:$0xff]  ;;  %v410_v56 = vld [vmem:[#allocation2 + $0x2c0] sm:$0xff]  ;;  %v411_v59 = vld [vmem:[#allocation2 + $0x2d0] sm:$0xff] }
  0x60   :  { %v15986_v57 = vld [vmem:[#allocation2 + $0x2d9] sm:$0xff]  ;;  %v15988_v60 = vld [vmem:[#allocation2 + $0x2e9] sm:$0xff] }
  0x61   :  { %13754 = vmatmul.mubr.msk.f32.gmra.mrb[40].mxu1 %vm245_vm0, %v396_v1  ;;  %v412_v63 = vld [vmem:[#allocation2 + $0x2d8] sm:$0xff]  ;;  %v16006_v14 = vld [vmem:[#allocation2 + $0x309] sm:$0xff] }
  0x62   :  { %14146 = vmatmul.mubr.msk.f32.gmra.mrb[40].mxu0 %vm245_vm0, %v15912_v2  ;;  %13756 = vmatprep.mubr.msk.f32.mxu1 %vm245_vm0, %v397_v3  ;;  %v15996_v1 = vld [vmem:[#allocation2 + $0x2f1] sm:$0xff]  ;;  %v413_v3 = vld [vmem:[#allocation2 + $0x2e8] sm:$0xff]  ;;  %v16008_v18 = vld [vmem:[#allocation2 + $0x319] sm:$0xff] }
  0x63   :  { %14148 = vmatprep.mubr.msk.f32.mxu0 %vm245_vm0, %v15914_v4 }
  0x65   :  { %13757 = vmatmul.mubr.msk.f32.gmra.mrb[42].mxu1 %vm245_vm0, %v398_v5  ;;  %v15998_v5 = vld [vmem:[#allocation2 + $0x301] sm:$0xff] }
  0x66   :  { %14149 = vmatmul.mubr.msk.f32.gmra.mrb[42].mxu0 %vm245_vm0, %v15922_v9  ;;  %13759 = vmatprep.mubr.msk.f32.mxu1 %vm245_vm0, %v399_v11  ;;  %v414_v11 = vld [vmem:[#allocation2 + $0x2f0] sm:$0xff] }
  0x67   :  { %14151 = vmatprep.mubr.msk.f32.mxu0 %vm245_vm0, %v15924_v13 }
  0x69   :  { %13760 = vmatmul.mubr.msk.f32.gmra.mrb[44].mxu1 %vm245_vm0, %v400_v15  ;;  %v415_v15 = vld [vmem:[#allocation2 + $0x300] sm:$0xff] }
  0x6a   :  { %14152 = vmatmul.mubr.msk.f32.gmra.mrb[44].mxu0 %vm245_vm0, %v15935_v17  ;;  %13762 = vmatprep.mubr.msk.f32.mxu1 %vm245_vm0, %v401_v21  ;;  %v416_v21 = vld [vmem:[#allocation2 + $0x308] sm:$0xff] }
  0x6b   :  { %14154 = vmatprep.mubr.msk.f32.mxu0 %vm245_vm0, %v15937_v23 }
  0x6d   :  { %13763 = vmatmul.mubr.msk.f32.gmra.mrb[46].mxu1 %vm245_vm0, %v402_v25  ;;  %v16016_v25 = vld [vmem:[#allocation2 + $0x321] sm:$0xff] }
  0x6e   :  { %14155 = vmatmul.mubr.msk.f32.gmra.mrb[46].mxu0 %vm245_vm0, %v15946_v28  ;;  %13765 = vmatprep.mubr.msk.f32.mxu1 %vm245_vm0, %v403_v30  ;;  %v417_v30 = vld [vmem:[#allocation2 + $0x318] sm:$0xff] }
  0x6f   :  { %14157 = vmatprep.mubr.msk.f32.mxu0 %vm245_vm0, %v15948_v31 }
  0x71   :  { %13766 = vmatmul.mubr.msk.f32.gmra.mrb[48].mxu1 %vm245_vm0, %v404_v32  ;;  %v3629_v32 = vld [vmem:[#allocation2 + $0x331] sm:$0xff] }
  0x72   :  { %14158 = vmatmul.mubr.msk.f32.gmra.mrb[48].mxu0 %vm245_vm0, %v15956_v35  ;;  %13768 = vmatprep.mubr.msk.f32.mxu1 %vm245_vm0, %v405_v37  ;;  %v418_v37 = vld [vmem:[#allocation2 + $0x320] sm:$0xff] }
  0x73   :  { %14160 = vmatprep.mubr.msk.f32.mxu0 %vm245_vm0, %v15958_v38 }
  0x75   :  { %13769 = vmatmul.mubr.msk.f32.gmra.mrb[50].mxu1 %vm245_vm0, %v406_v39  ;;  %v3630_v39 = vld [vmem:[#allocation2 + $0x339] sm:$0xff] }
  0x76   :  { %14161 = vmatmul.mubr.msk.f32.gmra.mrb[50].mxu0 %vm245_vm0, %v15966_v41  ;;  %13771 = vmatprep.mubr.msk.f32.mxu1 %vm245_vm0, %v407_v42  ;;  %v1061_v42 = vld [vmem:[#allocation2 + $0x1] sm:$0xff] }
  0x77   :  { %14163 = vmatprep.mubr.msk.f32.mxu0 %vm245_vm0, %v15968_v43 }
  0x79   :  { %13772 = vmatmul.mubr.msk.f32.gmra.mrb[52].mxu1 %vm245_vm0, %v408_v46  ;;  %v16023_v46 = vld [vmem:[#allocation2 + $0x1a] sm:$0xff] }
  0x7a   :  { %14164 = vmatmul.mubr.msk.f32.gmra.mrb[52].mxu0 %vm245_vm0, %v15976_v48  ;;  %13774 = vmatprep.mubr.msk.f32.mxu1 %vm245_vm0, %v409_v50  ;;  %v12562_v50 = vld [vmem:[%s20132_s1 + $0x10] sm:$0xff] }
  0x7b   :  { %14166 = vmatprep.mubr.msk.f32.mxu0 %vm245_vm0, %v15978_v53  ;;  %13887 = vmatprep.subr.mxu1 %v12562_v50 }
  0x7d   :  { %13775 = vmatmul.mubr.msk.f32.gmra.mrb[54].mxu1 %vm245_vm0, %v410_v56  ;;  %v1062_v56 = vld [vmem:[#allocation2 + $0x9] sm:$0xff] }
  0x7e   :  { %14167 = vmatmul.mubr.msk.f32.gmra.mrb[54].mxu0 %vm245_vm0, %v15986_v57  ;;  %13777 = vmatprep.mubr.msk.f32.mxu1 %vm245_vm0, %v411_v59  ;;  %v16033_v59 = vld [vmem:[#allocation2 + $0x22] sm:$0xff] }
  0x7f   :  { %14169 = vmatprep.mubr.msk.f32.mxu0 %vm245_vm0, %v15988_v60 }
  0x81   :  { %13778 = vmatmul.mubr.msk.f32.gmra.mrb[56].mxu1 %vm245_vm0, %v412_v63  ;;  %v1063_v63 = vld [vmem:[#allocation2 + $0x19] sm:$0xff] }
  0x82   :  { %14170 = vmatmul.mubr.msk.f32.gmra.mrb[56].mxu0 %vm245_vm0, %v15996_v1  ;;  %13780 = vmatprep.mubr.msk.f32.mxu1 %vm245_vm0, %v413_v3  ;;  %v16035_v3 = vld [vmem:[#allocation2 + $0x32] sm:$0xff] }
  0x83   :  { %14172 = vmatprep.mubr.msk.f32.mxu0 %vm245_vm0, %v15998_v5 }
  0x85   :  { %13781 = vmatmul.mubr.msk.f32.gmra.mrb[58].mxu1 %vm245_vm0, %v414_v11  ;;  %v16043_v11 = vld [vmem:[%s20132_s1 + $0x38] sm:$0xff] }
  0x86   :  { %14173 = vmatmul.mubr.msk.f32.gmra.mrb[58].mxu0 %vm245_vm0, %v16006_v14  ;;  %13783 = vmatprep.mubr.msk.f32.mxu1 %vm245_vm0, %v415_v15  ;;  %v1064_v15 = vld [vmem:[#allocation2 + $0x21] sm:$0xff] }
  0x87   :  { %14175 = vmatprep.mubr.msk.f32.mxu0 %vm245_vm0, %v16008_v18 }
  0x89   :  { %13784 = vmatmul.mubr.msk.f32.gmra.mrb[60].mxu1 %vm245_vm0, %v416_v21  ;;  %v16047_v21 = vld [vmem:[#allocation2 + $0x3a] sm:$0xff] }
  0x8a   :  { %14176 = vmatmul.mubr.msk.f32.gmra.mrb[60].mxu0 %vm245_vm0, %v16016_v25  ;;  %13786 = vmatprep.mubr.msk.f32.mxu1 %vm245_vm0, %v417_v30  ;;  %v1065_v30 = vld [vmem:[#allocation2 + $0x31] sm:$0xff] }
  0x8b   :  { %14178 = vmatprep.mubr.msk.f32.mxu0 %vm245_vm0, %v3629_v32  ;;  %v16051_v32 = vld [vmem:[#allocation2 + $0x4a] sm:$0xff] }
  0x8d   :  { %13787 = vmatmul.mubr.msk.f32.gmra.mrb[62].mxu1 %vm245_vm0, %v418_v37  ;;  %v16060_v37 = vld [vmem:[#allocation2 + $0x52] sm:$0xff] }
  0x8e   :  { %14179 = vmatmul.mubr.msk.f32.gmra.mrb[62].mxu0 %vm245_vm0, %v3630_v39  ;;  %13791 = vmatprep.mubr.msk.f32.mxu1 %vm245_vm0, %v1061_v42  ;;  %v1067_v39 = vld [vmem:[#allocation2 + $0x49] sm:$0xff] }
  0x8f   :  { %14183 = vmatprep.mubr.msk.f32.mxu0 %vm245_vm0, %v16023_v46  ;;  %v16062_v42 = vld [vmem:[#allocation2 + $0x62] sm:$0xff] }
  0x90   :  { %20240 = vst [vmem:[#allocation7_spill] sm:$0xff] %v16062_v42 }
  0x91   :  { %13792 = vmatmul.mubr.msk.f32.vlgmr.msra.gmra.mrb[0].mxu1 %vm245_vm0, %v1062_v56  ;;  %v16070_v56 = vld [vmem:[#allocation2 + $0x6a] sm:$0xff] }
  0x92   :  { %14184 = vmatmul.mubr.msk.f32.vlgmr.msra.gmra.mrb[0].mxu0 %vm245_vm0, %v16033_v59  ;;  %13794 = vmatprep.mubr.msk.f32.mxu1 %vm245_vm0, %v1063_v63  ;;  %20241 = vst [vmem:[#allocation8_spill] sm:$0xff] %v16070_v56  ;;  %v1069_v63 = vld [vmem:[#allocation2 + $0x61] sm:$0xff] }
  0x93   :  { %14280 = vmatpush3.msra.mxu0 %v15887_v55  ;;  %14186 = vmatprep.mubr.msk.f32.mxu0 %vm245_vm0, %v16035_v3  ;;  %v1066_v55 = vld [vmem:[#allocation2 + $0x39] sm:$0xff] }
  0x94   :  { %13888 = vmatpush3.msra.mxu1 %v12562_v50  ;;  %14377 = vmatprep.subr.mxu0 %v16043_v11  ;;  %v1068_v50 = vld [vmem:[#allocation2 + $0x51] sm:$0xff] }
  0x95   :  { %13795 = vmatmul.mubr.msk.f32.gmra.mrb[2].mxu1 %vm245_vm0, %v1064_v15  ;;  %v16072_v15 = vld [vmem:[#allocation2 + $0x7a] sm:$0xff] }
  0x96   :  { %14187 = vmatmul.mubr.msk.f32.gmra.mrb[2].mxu0 %vm245_vm0, %v16047_v21  ;;  %13797 = vmatprep.mubr.msk.f32.mxu1 %vm245_vm0, %v1065_v30  ;;  %20242 = vst [vmem:[#allocation9_spill] sm:$0xff] %v16072_v15  ;;  %v1070_v30 = vld [vmem:[#allocation2 + $0x69] sm:$0xff] }
  0x97   :  { %14189 = vmatprep.mubr.msk.f32.mxu0 %vm245_vm0, %v16051_v32 }
  0x99   :  { %13798 = vmatmul.mubr.msk.f32.gmra.mrb[4].mxu1 %vm245_vm0, %v1066_v55  ;;  %v16080_v55 = vld [vmem:[#allocation2 + $0x82] sm:$0xff] }
  0x9a   :  { %14190 = vmatmul.mubr.msk.f32.gmra.mrb[4].mxu0 %vm245_vm0, %v16060_v37  ;;  %13800 = vmatprep.mubr.msk.f32.mxu1 %vm245_vm0, %v1067_v39  ;;  %v1071_v39 = vld [vmem:[#allocation2 + $0x79] sm:$0xff] }
  0x9b   :  { %14192 = vmatprep.mubr.msk.f32.mxu0 %vm245_vm0, %v16062_v42  ;;  %v16082_v42 = vld [vmem:[#allocation2 + $0x92] sm:$0xff] }
  0x9d   :  { %13801 = vmatmul.mubr.msk.f32.gmra.mrb[6].mxu1 %vm245_vm0, %v1068_v50  ;;  %v1072_v50 = vld [vmem:[#allocation2 + $0x81] sm:$0xff] }
  0x9e   :  { %14193 = vmatmul.mubr.msk.f32.gmra.mrb[6].mxu0 %vm245_vm0, %v16070_v56  ;;  %13803 = vmatprep.mubr.msk.f32.mxu1 %vm245_vm0, %v1069_v63  ;;  %v16090_v63 = vld [vmem:[#allocation2 + $0x9a] sm:$0xff]  ;;  %v16092_v56 = vld [vmem:[#allocation2 + $0xaa] sm:$0xff] }
  0x9f   :  { %14195 = vmatprep.mubr.msk.f32.mxu0 %vm245_vm0, %v16072_v15  ;;  %v1073_v15 = vld [vmem:[#allocation2 + $0x91] sm:$0xff] }
  0xa1   :  { %13804 = vmatmul.mubr.msk.f32.gmra.mrb[8].mxu1 %vm245_vm0, %v1070_v30  ;;  %v16100_v30 = vld [vmem:[#allocation2 + $0xb2] sm:$0xff] }
  0xa2   :  { %14196 = vmatmul.mubr.msk.f32.gmra.mrb[8].mxu0 %vm245_vm0, %v16080_v55  ;;  %13806 = vmatprep.mubr.msk.f32.mxu1 %vm245_vm0, %v1071_v39  ;;  %v16102_v39 = vld [vmem:[#allocation2 + $0xc2] sm:$0xff] }
  0xa3   :  { %14198 = vmatprep.mubr.msk.f32.mxu0 %vm245_vm0, %v16082_v42 }
  0xa5   :  { %13807 = vmatmul.mubr.msk.f32.gmra.mrb[10].mxu1 %vm245_vm0, %v1072_v50  ;;  %v16114_v50 = vld [vmem:[#allocation2 + $0xda] sm:$0xff] }
  0xa6   :  { %14199 = vmatmul.mubr.msk.f32.gmra.mrb[10].mxu0 %vm245_vm0, %v16090_v63  ;;  %13809 = vmatprep.mubr.msk.f32.mxu1 %vm245_vm0, %v1073_v15  ;;  %v16112_v15 = vld [vmem:[#allocation2 + $0xca] sm:$0xff] }
  0xa7   :  { %14201 = vmatprep.mubr.msk.f32.mxu0 %vm245_vm0, %v16092_v56 }
  0xa9   :  { %13810 = vmatmul.mubr.msk.f32.gmra.mrb[12].mxu1 %vm245_vm0, %v15512_v44  ;;  %v16124_v44 = vld [vmem:[#allocation2 + $0xe2] sm:$0xff] }
  0xaa   :  { %14202 = vmatmul.mubr.msk.f32.gmra.mrb[12].mxu0 %vm245_vm0, %v16100_v30  ;;  %13812 = vmatprep.mubr.msk.f32.mxu1 %vm245_vm0, %v15549_v61  ;;  %v16126_v61 = vld [vmem:[#allocation2 + $0xf2] sm:$0xff] }
  0xab   :  { %14204 = vmatprep.mubr.msk.f32.mxu0 %vm245_vm0, %v16102_v39 }
  0xad   :  { %13813 = vmatmul.mubr.msk.f32.gmra.mrb[14].mxu1 %vm245_vm0, %v15571_v6  ;;  %v16136_v6 = vld [vmem:[#allocation2 + $0xfa] sm:$0xff] }
  0xae   :  { %14205 = vmatmul.mubr.msk.f32.gmra.mrb[14].mxu0 %vm245_vm0, %v16112_v15  ;;  %13815 = vmatprep.mubr.msk.f32.mxu1 %vm245_vm0, %v15573_v8  ;;  %v16138_v8 = vld [vmem:[#allocation2 + $0x10a] sm:$0xff] }
  0xaf   :  { %14207 = vmatprep.mubr.msk.f32.mxu0 %vm245_vm0, %v16114_v50 }
  0xb1   :  { %13816 = vmatmul.mubr.msk.f32.gmra.mrb[16].mxu1 %vm245_vm0, %v15583_v10  ;;  %v16148_v10 = vld [vmem:[#allocation2 + $0x112] sm:$0xff] }
  0xb2   :  { %14208 = vmatmul.mubr.msk.f32.gmra.mrb[16].mxu0 %vm245_vm0, %v16124_v44  ;;  %13818 = vmatprep.mubr.msk.f32.mxu1 %vm245_vm0, %v15585_v12  ;;  %v16150_v12 = vld [vmem:[#allocation2 + $0x122] sm:$0xff] }
  0xb3   :  { %14210 = vmatprep.mubr.msk.f32.mxu0 %vm245_vm0, %v16126_v61 }
  0xb5   :  { %13819 = vmatmul.mubr.msk.f32.gmra.mrb[18].mxu1 %vm245_vm0, %v15596_v16  ;;  %v16160_v16 = vld [vmem:[#allocation2 + $0x12a] sm:$0xff] }
  0xb6   :  { %14211 = vmatmul.mubr.msk.f32.gmra.mrb[18].mxu0 %vm245_vm0, %v16136_v6  ;;  %13821 = vmatprep.mubr.msk.f32.mxu1 %vm245_vm0, %v15604_v20  ;;  %20243 = vst [vmem:[#allocation10_spill] sm:$0xff] %v16160_v16  ;;  %v16162_v20 = vld [vmem:[#allocation2 + $0x13a] sm:$0xff] }
  0xb7   :  { %14213 = vmatprep.mubr.msk.f32.mxu0 %vm245_vm0, %v16138_v8  ;;  %20244 = vst [vmem:[#allocation11_spill] sm:$0xff] %v16162_v20 }
  0xb9   :  { %13822 = vmatmul.mubr.msk.f32.gmra.mrb[20].mxu1 %vm245_vm0, %v15612_v26  ;;  %v16172_v26 = vld [vmem:[#allocation2 + $0x142] sm:$0xff] }
  0xba   :  { %14214 = vmatmul.mubr.msk.f32.gmra.mrb[20].mxu0 %vm245_vm0, %v16148_v10  ;;  %13824 = vmatprep.mubr.msk.f32.mxu1 %vm245_vm0, %v15627_v33  ;;  %20245 = vst [vmem:[#allocation12_spill] sm:$0xff] %v16172_v26  ;;  %v16174_v33 = vld [vmem:[#allocation2 + $0x152] sm:$0xff] }
  0xbb   :  { %14216 = vmatprep.mubr.msk.f32.mxu0 %vm245_vm0, %v16150_v12 }
  0xbd   :  { %13825 = vmatmul.mubr.msk.f32.gmra.mrb[22].mxu1 %vm245_vm0, %v15660_v51  ;;  %v80_v51 = vld [vmem:[%s20133_s0 + $0x198] sm:$0xff] }
  0xbe   :  { %14217 = vmatmul.mubr.msk.f32.gmra.mrb[22].mxu0 %vm245_vm0, %v16160_v16  ;;  %13827 = vmatprep.mubr.msk.f32.mxu1 %vm245_vm0, %v15699_v7  ;;  %v16187_v7 = vld [vmem:[#allocation2 + $0x15a] sm:$0xff]  ;;  %v16192_v16 = vld [vmem:[#allocation2 + $0x16a] sm:$0xff] }
  0xbf   :  { %14219 = vmatprep.mubr.msk.f32.mxu0 %vm245_vm0, %v16162_v20  ;;  %v188_v20 = vmax.f32 %v80_v51, 0.0  ;;  %v4432_v51 = vld [vmem:[#allocation2 + $0x182] sm:$0xff] }
  0xc1   :  { %13828 = vmatmul.mubr.msk.f32.gmra.mrb[24].mxu1 %vm245_vm0, %v15721_v19  ;;  %v81_v19 = vld [vmem:[%s20133_s0 + $0x1a0] sm:$0xff]  ;;  %298 = vst.msk [vmem:[#allocation2 + $0x198] sm:$0xff] %vm245_vm0, %v188_v20  ;;  %v1093_v20 = vld [vmem:[#allocation2 + $0x1b1] sm:$0xff] }
  0xc2   :  { %14220 = vmatmul.mubr.msk.f32.gmra.mrb[24].mxu0 %vm245_vm0, %v16172_v26  ;;  %13830 = vmatprep.mubr.msk.f32.mxu1 %vm245_vm0, %v15724_v22  ;;  %v189_v26 = vmax.f32 %v81_v19, 0.0  ;;  %v16204_v22 = vld [vmem:[#allocation2 + $0x172] sm:$0xff]  ;;  %v16234_v19 = vld [vmem:[#allocation2 + $0x1fa] sm:$0xff] }
  0xc3   :  { %14222 = vmatprep.mubr.msk.f32.mxu0 %vm245_vm0, %v16174_v33 }
  0xc4   :  { %299 = vst.msk [vmem:[#allocation2 + $0x1a0] sm:$0xff] %vm245_vm0, %v189_v26  ;;  %v16221_v26 = vld [vmem:[#allocation2 + $0x1d2] sm:$0xff] }
  0xc5   :  { %13831 = vmatmul.mubr.msk.f32.gmra.mrb[26].mxu1 %vm245_vm0, %v15733_v24  ;;  %v4433_v24 = vld [vmem:[#allocation2 + $0x18a] sm:$0xff] }
  0xc6   :  { %14223 = vmatmul.mubr.msk.f32.gmra.mrb[26].mxu0 %vm245_vm0, %v16187_v7  ;;  %13833 = vmatprep.mubr.msk.f32.mxu1 %vm245_vm0, %v15735_v27  ;;  %v16213_v27 = vld [vmem:[#allocation2 + $0x1ca] sm:$0xff] }
  0xc7   :  { %14225 = vmatprep.mubr.msk.f32.mxu0 %vm245_vm0, %v16192_v16 }
  0xc9   :  { %13834 = vmatmul.mubr.msk.f32.gmra.mrb[28].mxu1 %vm245_vm0, %v15740_v29  ;;  %v1094_v29 = vld [vmem:[#allocation2 + $0x1b9] sm:$0xff] }
  0xca   :  { %14226 = vmatmul.mubr.msk.f32.gmra.mrb[28].mxu0 %vm245_vm0, %v16204_v22  ;;  %13836 = vmatprep.mubr.msk.f32.mxu1 %vm245_vm0, %v15751_v34  ;;  %v16223_v34 = vld [vmem:[#allocation2 + $0x1e2] sm:$0xff] }
  0xcb   :  { %14228 = vmatprep.mubr.msk.f32.mxu0 %vm245_vm0, %v4432_v51  ;;  %v16246_v51 = vld [vmem:[#allocation2 + $0x212] sm:$0xff] }
  0xcd   :  { %13837 = vmatmul.mubr.msk.f32.gmra.mrb[30].mxu1 %vm245_vm0, %v15759_v40  ;;  %v16232_v40 = vld [vmem:[#allocation2 + $0x1ea] sm:$0xff] }
  0xce   :  { %14229 = vmatmul.mubr.msk.f32.gmra.mrb[30].mxu0 %vm245_vm0, %v4433_v24  ;;  %13839 = vmatprep.mubr.msk.f32.mxu1 %vm245_vm0, %v1093_v20  ;;  %v16384_v20 = vld [vmem:[#allocation2 + $0x31a] sm:$0xff] }
  0xcf   :  { %14231 = vmatprep.mubr.msk.f32.mxu0 %vm245_vm0, %v16213_v27 }
  0xd1   :  { %13840 = vmatmul.mubr.msk.f32.gmra.mrb[32].mxu1 %vm245_vm0, %v1094_v29 }
  0xd2   :  { %14232 = vmatmul.mubr.msk.f32.gmra.mrb[32].mxu0 %vm245_vm0, %v16221_v26  ;;  %13842 = vmatprep.mubr.msk.f32.mxu1 %vm245_vm0, %v15840_v36  ;;  %v16244_v36 = vld [vmem:[#allocation2 + $0x202] sm:$0xff] }
  0xd3   :  { %14234 = vmatprep.mubr.msk.f32.mxu0 %vm245_vm0, %v16223_v34 }
  0xd5   :  { %13843 = vmatmul.mubr.msk.f32.gmra.mrb[34].mxu1 %vm245_vm0, %v15861_v45  ;;  %v16256_v45 = vld [vmem:[#allocation2 + $0x21a] sm:$0xff] }
  0xd6   :  { %14235 = vmatmul.mubr.msk.f32.gmra.mrb[34].mxu0 %vm245_vm0, %v16232_v40  ;;  %13845 = vmatprep.mubr.msk.f32.mxu1 %vm245_vm0, %v15864_v47  ;;  %v16258_v47 = vld [vmem:[#allocation2 + $0x22a] sm:$0xff] }
  0xd7   :  { %14237 = vmatprep.mubr.msk.f32.mxu0 %vm245_vm0, %v16234_v19 }
  0xd9   :  { %13846 = vmatmul.mubr.msk.f32.gmra.mrb[36].mxu1 %vm245_vm0, %v15872_v49  ;;  %v16268_v49 = vld [vmem:[#allocation2 + $0x232] sm:$0xff] }
  0xda   :  { %14238 = vmatmul.mubr.msk.f32.gmra.mrb[36].mxu0 %vm245_vm0, %v16244_v36  ;;  %13848 = vmatprep.mubr.msk.f32.mxu1 %vm245_vm0, %v15874_v52  ;;  %v16270_v52 = vld [vmem:[#allocation2 + $0x242] sm:$0xff] }
  0xdb   :  { %14240 = vmatprep.mubr.msk.f32.mxu0 %vm245_vm0, %v16246_v51 }
  0xdd   :  { %13849 = vmatmul.mubr.msk.f32.gmra.mrb[38].mxu1 %vm245_vm0, %v15882_v54  ;;  %v16280_v54 = vld [vmem:[#allocation2 + $0x24a] sm:$0xff] }
  0xde   :  { %14241 = vmatmul.mubr.msk.f32.gmra.mrb[38].mxu0 %vm245_vm0, %v16256_v45  ;;  %13851 = vmatprep.mubr.msk.f32.mxu1 %vm245_vm0, %v15892_v58  ;;  %v16282_v58 = vld [vmem:[#allocation2 + $0x25a] sm:$0xff] }
  0xdf   :  { %14243 = vmatprep.mubr.msk.f32.mxu0 %vm245_vm0, %v16258_v47 }
  0xe1   :  { %13852 = vmatmul.mubr.msk.f32.gmra.mrb[40].mxu1 %vm245_vm0, %v15902_v62  ;;  %v16292_v62 = vld [vmem:[#allocation2 + $0x262] sm:$0xff] }
  0xe2   :  { %14244 = vmatmul.mubr.msk.f32.gmra.mrb[40].mxu0 %vm245_vm0, %v16268_v49  ;;  %13854 = vmatprep.mubr.msk.f32.mxu1 %vm245_vm0, %v15904_v0  ;;  %v16294_v0 = vld [vmem:[#allocation2 + $0x272] sm:$0xff] }
  0xe3   :  { %14246 = vmatprep.mubr.msk.f32.mxu0 %vm245_vm0, %v16270_v52 }
  0xe5   :  { %13855 = vmatmul.mubr.msk.f32.gmra.mrb[42].mxu1 %vm245_vm0, %v15912_v2  ;;  %v16304_v2 = vld [vmem:[#allocation2 + $0x27a] sm:$0xff] }
  0xe6   :  { %14247 = vmatmul.mubr.msk.f32.gmra.mrb[42].mxu0 %vm245_vm0, %v16280_v54  ;;  %13857 = vmatprep.mubr.msk.f32.mxu1 %vm245_vm0, %v15914_v4  ;;  %v16306_v4 = vld [vmem:[#allocation2 + $0x28a] sm:$0xff] }
  0xe7   :  { %14249 = vmatprep.mubr.msk.f32.mxu0 %vm245_vm0, %v16282_v58 }
  0xe9   :  { %13858 = vmatmul.mubr.msk.f32.gmra.mrb[44].mxu1 %vm245_vm0, %v15922_v9  ;;  %v16316_v9 = vld [vmem:[#allocation2 + $0x292] sm:$0xff] }
  0xea   :  { %14250 = vmatmul.mubr.msk.f32.gmra.mrb[44].mxu0 %vm245_vm0, %v16292_v62  ;;  %13860 = vmatprep.mubr.msk.f32.mxu1 %vm245_vm0, %v15924_v13  ;;  %v16318_v13 = vld [vmem:[#allocation2 + $0x2a2] sm:$0xff] }
  0xeb   :  { %14252 = vmatprep.mubr.msk.f32.mxu0 %vm245_vm0, %v16294_v0 }
  0xed   :  { %13861 = vmatmul.mubr.msk.f32.gmra.mrb[46].mxu1 %vm245_vm0, %v15935_v17  ;;  %v16328_v17 = vld [vmem:[#allocation2 + $0x2aa] sm:$0xff] }
  0xee   :  { %14253 = vmatmul.mubr.msk.f32.gmra.mrb[46].mxu0 %vm245_vm0, %v16304_v2  ;;  %13863 = vmatprep.mubr.msk.f32.mxu1 %vm245_vm0, %v15937_v23  ;;  %v16330_v23 = vld [vmem:[#allocation2 + $0x2ba] sm:$0xff] }
  0xef   :  { %14255 = vmatprep.mubr.msk.f32.mxu0 %vm245_vm0, %v16306_v4 }
  0xf1   :  { %13864 = vmatmul.mubr.msk.f32.gmra.mrb[48].mxu1 %vm245_vm0, %v15946_v28  ;;  %v16340_v28 = vld [vmem:[#allocation2 + $0x2c2] sm:$0xff] }
  0xf2   :  { %14256 = vmatmul.mubr.msk.f32.gmra.mrb[48].mxu0 %vm245_vm0, %v16316_v9  ;;  %13866 = vmatprep.mubr.msk.f32.mxu1 %vm245_vm0, %v15948_v31  ;;  %v16342_v31 = vld [vmem:[#allocation2 + $0x2d2] sm:$0xff] }
  0xf3   :  { %14258 = vmatprep.mubr.msk.f32.mxu0 %vm245_vm0, %v16318_v13 }
  0xf5   :  { %13867 = vmatmul.mubr.msk.f32.gmra.mrb[50].mxu1 %vm245_vm0, %v15956_v35  ;;  %v16352_v35 = vld [vmem:[#allocation2 + $0x2da] sm:$0xff] }
  0xf6   :  { %14259 = vmatmul.mubr.msk.f32.gmra.mrb[50].mxu0 %vm245_vm0, %v16328_v17  ;;  %13869 = vmatprep.mubr.msk.f32.mxu1 %vm245_vm0, %v15958_v38  ;;  %v16354_v38 = vld [vmem:[#allocation2 + $0x2ea] sm:$0xff] }
  0xf7   :  { %14261 = vmatprep.mubr.msk.f32.mxu0 %vm245_vm0, %v16330_v23 }
  0xf9   :  { %13870 = vmatmul.mubr.msk.f32.gmra.mrb[52].mxu1 %vm245_vm0, %v15966_v41  ;;  %v16364_v41 = vld [vmem:[#allocation2 + $0x2f2] sm:$0xff] }
  0xfa   :  { %14262 = vmatmul.mubr.msk.f32.gmra.mrb[52].mxu0 %vm245_vm0, %v16340_v28  ;;  %13872 = vmatprep.mubr.msk.f32.mxu1 %vm245_vm0, %v15968_v43  ;;  %v16366_v43 = vld [vmem:[#allocation2 + $0x302] sm:$0xff] }
  0xfb   :  { %14264 = vmatprep.mubr.msk.f32.mxu0 %vm245_vm0, %v16342_v31 }
  0xfd   :  { %13873 = vmatmul.mubr.msk.f32.gmra.mrb[54].mxu1 %vm245_vm0, %v15976_v48  ;;  %v134_v48 = vld [vmem:[%s20133_s0 + $0x348] sm:$0xff] }
  0xfe   :  { %14265 = vmatmul.mubr.msk.f32.gmra.mrb[54].mxu0 %vm245_vm0, %v16352_v35  ;;  %13875 = vmatprep.mubr.msk.f32.mxu1 %vm245_vm0, %v15978_v53  ;;  %v16379_v53 = vld [vmem:[#allocation2 + $0x30a] sm:$0xff]  ;;  %v242_v24 = vmax.f32 %v134_v48, 0.0  ;;  %v4464_v48 = vld [vmem:[#allocation2 + $0x332] sm:$0xff] }
  0xff   :  { %14267 = vmatprep.mubr.msk.f32.mxu0 %vm245_vm0, %v16354_v38 }
 0x100   :  { %352 = vst.msk [vmem:[#allocation2 + $0x348] sm:$0xff] %vm245_vm0, %v242_v24  ;;  %v1896_v24 = vld [vmem:[#allocation2 + $0x2] sm:$0xff] }
 0x101   :  { %13876 = vmatmul.mubr.msk.f32.gmra.mrb[56].mxu1 %vm245_vm0, %v15986_v57  ;;  %v135_v57 = vld [vmem:[%s20133_s0 + $0x350] sm:$0xff] }
 0x102   :  { %14268 = vmatmul.mubr.msk.f32.gmra.mrb[56].mxu0 %vm245_vm0, %v16364_v41  ;;  %13878 = vmatprep.mubr.msk.f32.mxu1 %vm245_vm0, %v15988_v60  ;;  %v243_v29 = vmax.f32 %v135_v57, 0.0  ;;  %v16396_v60 = vld [vmem:[#allocation2 + $0x322] sm:$0xff]  ;;  %v16416_v57 = vld [vmem:[#allocation2 + $0x38] sm:$0xff] }
 0x103   :  { %14270 = vmatprep.mubr.msk.f32.mxu0 %vm245_vm0, %v16366_v43 }
 0x104   :  { %353 = vst.msk [vmem:[#allocation2 + $0x350] sm:$0xff] %vm245_vm0, %v243_v29  ;;  %v16418_v29 = vld [vmem:[#allocation2 + $0x48] sm:$0xff] }
 0x105   :  { %13879 = vmatmul.mubr.msk.f32.gmra.mrb[58].mxu1 %vm245_vm0, %v15996_v1  ;;  %v4465_v1 = vld [vmem:[#allocation2 + $0x33a] sm:$0xff] }
 0x106   :  { %14271 = vmatmul.mubr.msk.f32.gmra.mrb[58].mxu0 %vm245_vm0, %v16379_v53  ;;  %13881 = vmatprep.mubr.msk.f32.mxu1 %vm245_vm0, %v15998_v5  ;;  %v16405_v5 = vld [vmem:[#allocation2 + $0x30] sm:$0xff] }
 0x107   :  { %14273 = vmatprep.mubr.msk.f32.mxu0 %vm245_vm0, %v16384_v20 }
 0x109   :  { %13882 = vmatmul.mubr.msk.f32.gmra.mrb[60].mxu1 %vm245_vm0, %v16006_v14  ;;  %v12627_v14 = vld [vmem:[%s20132_s1 + $0x18] sm:$0xff] }
 0x10a   :  { %14274 = vmatmul.mubr.msk.f32.gmra.mrb[60].mxu0 %vm245_vm0, %v16396_v60  ;;  %13884 = vmatprep.mubr.msk.f32.mxu1 %vm245_vm0, %v16008_v18  ;;  %v1897_v18 = vld [vmem:[#allocation2 + $0xa] sm:$0xff] }
 0x10b   :  { %14276 = vmatprep.mubr.msk.f32.mxu0 %vm245_vm0, %v4464_v48  ;;  %13985 = vmatprep.subr.mxu1 %v12627_v14  ;;  %v16431_v48 = vld [vmem:[#allocation2 + $0x50] sm:$0xff] }
 0x10d   :  { %13885 = vmatmul.mubr.msk.f32.gmra.mrb[62].mxu1 %vm245_vm0, %v16016_v25  ;;  %v16426_v25 = vld [vmem:[%s20132_s1 + $0x40] sm:$0xff] }
 0x10e   :  { %14277 = vmatmul.mubr.msk.f32.gmra.mrb[62].mxu0 %vm245_vm0, %v4465_v1  ;;  %13889 = vmatprep.mubr.msk.f32.mxu1 %vm245_vm0, %v1896_v24  ;;  %v16435_v1 = vld [vmem:[#allocation2 + $0x60] sm:$0xff]  ;;  %v16472_v24 = vld [vmem:[#allocation2 + $0xa8] sm:$0xff] }
 0x10f   :  { %14281 = vmatprep.mubr.msk.f32.mxu0 %vm245_vm0, %v16405_v5 }
 0x111   :  { %13890 = vmatmul.mubr.msk.f32.vlgmr.msra.gmra.mrb[0].mxu1 %vm245_vm0, %v1897_v18  ;;  %v16482_v18 = vld [vmem:[#allocation2 + $0xb0] sm:$0xff] }
 0x112   :  { %14282 = vmatmul.mubr.msk.f32.vlgmr.msra.gmra.mrb[0].mxu0 %vm245_vm0, %v16416_v57  ;;  %13892 = vmatprep.mubr.msk.f32.mxu1 %vm245_vm0, %v16023_v46  ;;  %v16446_v46 = vld [vmem:[#allocation2 + $0x68] sm:$0xff] }
 0x113   :  { %14378 = vmatpush3.msra.mxu0 %v16043_v11  ;;  %14284 = vmatprep.mubr.msk.f32.mxu0 %vm245_vm0, %v16418_v29  ;;  %v16448_v11 = vld [vmem:[#allocation2 + $0x78] sm:$0xff] }
 0x114   :  { %13986 = vmatpush3.msra.mxu1 %v12627_v14  ;;  %14475 = vmatprep.subr.mxu0 %v16426_v25  ;;  %v20247_v14 = vld [vmem:[#allocation8_spill] sm:$0xff] }
 0x115   :  { %13893 = vmatmul.mubr.msk.f32.gmra.mrb[2].mxu1 %vm245_vm0, %v16033_v59  ;;  %v16458_v59 = vld [vmem:[#allocation2 + $0x80] sm:$0xff] }
 0x116   :  { %14285 = vmatmul.mubr.msk.f32.gmra.mrb[2].mxu0 %vm245_vm0, %v16431_v48  ;;  %13895 = vmatprep.mubr.msk.f32.mxu1 %vm245_vm0, %v16035_v3  ;;  %v16460_v3 = vld [vmem:[#allocation2 + $0x90] sm:$0xff] }
 0x117   :  { %14287 = vmatprep.mubr.msk.f32.mxu0 %vm245_vm0, %v16435_v1 }
 0x119   :  { %13896 = vmatmul.mubr.msk.f32.gmra.mrb[4].mxu1 %vm245_vm0, %v16047_v21  ;;  %v20246_v21 = vld [vmem:[#allocation7_spill] sm:$0xff] }
 0x11a   :  { %14288 = vmatmul.mubr.msk.f32.gmra.mrb[4].mxu0 %vm245_vm0, %v16446_v46  ;;  %13898 = vmatprep.mubr.msk.f32.mxu1 %vm245_vm0, %v16051_v32  ;;  %v16470_v32 = vld [vmem:[#allocation2 + $0x98] sm:$0xff] }
 0x11b   :  { %14290 = vmatprep.mubr.msk.f32.mxu0 %vm245_vm0, %v16448_v11 }
 0x11d   :  { %13899 = vmatmul.mubr.msk.f32.gmra.mrb[6].mxu1 %vm245_vm0, %v16060_v37  ;;  %v20248_v37 = vld [vmem:[#allocation9_spill] sm:$0xff] }
 0x11e   :  { %14291 = vmatmul.mubr.msk.f32.gmra.mrb[6].mxu0 %vm245_vm0, %v16458_v59  ;;  %13901 = vmatprep.mubr.msk.f32.mxu1 %vm245_vm0, %v20246_v21  ;;  %v16484_v21 = vld [vmem:[#allocation2 + $0xc0] sm:$0xff] }
 0x11f   :  { %14293 = vmatprep.mubr.msk.f32.mxu0 %vm245_vm0, %v16460_v3 }
 0x121   :  { %13902 = vmatmul.mubr.msk.f32.gmra.mrb[8].mxu1 %vm245_vm0, %v20247_v14  ;;  %v16494_v14 = vld [vmem:[#allocation2 + $0xc8] sm:$0xff] }
 0x122   :  { %14294 = vmatmul.mubr.msk.f32.gmra.mrb[8].mxu0 %vm245_vm0, %v16470_v32  ;;  %13904 = vmatprep.mubr.msk.f32.mxu1 %vm245_vm0, %v20248_v37  ;;  %v16496_v37 = vld [vmem:[#allocation2 + $0xd8] sm:$0xff] }
 0x123   :  { %14296 = vmatprep.mubr.msk.f32.mxu0 %vm245_vm0, %v16472_v24 }
 0x125   :  { %13905 = vmatmul.mubr.msk.f32.gmra.mrb[10].mxu1 %vm245_vm0, %v16080_v55  ;;  %v16508_v55 = vld [vmem:[#allocation2 + $0xf0] sm:$0xff] }
 0x126   :  { %14297 = vmatmul.mubr.msk.f32.gmra.mrb[10].mxu0 %vm245_vm0, %v16482_v18  ;;  %13907 = vmatprep.mubr.msk.f32.mxu1 %vm245_vm0, %v16082_v42  ;;  %v16506_v42 = vld [vmem:[#allocation2 + $0xe0] sm:$0xff] }
 0x127   :  { %14299 = vmatprep.mubr.msk.f32.mxu0 %vm245_vm0, %v16484_v21 }
 0x129   :  { %13908 = vmatmul.mubr.msk.f32.gmra.mrb[12].mxu1 %vm245_vm0, %v16090_v63  ;;  %v16520_v63 = vld [vmem:[#allocation2 + $0x108] sm:$0xff] }
 0x12a   :  { %14300 = vmatmul.mubr.msk.f32.gmra.mrb[12].mxu0 %vm245_vm0, %v16494_v14  ;;  %13910 = vmatprep.mubr.msk.f32.mxu1 %vm245_vm0, %v16092_v56  ;;  %v16518_v56 = vld [vmem:[#allocation2 + $0xf8] sm:$0xff] }
 0x12b   :  { %14302 = vmatprep.mubr.msk.f32.mxu0 %vm245_vm0, %v16496_v37 }
 0x12d   :  { %13911 = vmatmul.mubr.msk.f32.gmra.mrb[14].mxu1 %vm245_vm0, %v16100_v30  ;;  %v16530_v30 = vld [vmem:[#allocation2 + $0x110] sm:$0xff] }
 0x12e   :  { %14303 = vmatmul.mubr.msk.f32.gmra.mrb[14].mxu0 %vm245_vm0, %v16506_v42  ;;  %13913 = vmatprep.mubr.msk.f32.mxu1 %vm245_vm0, %v16102_v39  ;;  %v16532_v39 = vld [vmem:[#allocation2 + $0x120] sm:$0xff] }
 0x12f   :  { %14305 = vmatprep.mubr.msk.f32.mxu0 %vm245_vm0, %v16508_v55  ;;  %20249 = vst [vmem:[#allocation7_spill] sm:$0xff] %v16532_v39 }
 0x131   :  { %13914 = vmatmul.mubr.msk.f32.gmra.mrb[16].mxu1 %vm245_vm0, %v16112_v15  ;;  %v16542_v15 = vld [vmem:[#allocation2 + $0x128] sm:$0xff] }
 0x132   :  { %14306 = vmatmul.mubr.msk.f32.gmra.mrb[16].mxu0 %vm245_vm0, %v16518_v56  ;;  %13916 = vmatprep.mubr.msk.f32.mxu1 %vm245_vm0, %v16114_v50  ;;  %20250 = vst [vmem:[#allocation8_spill] sm:$0xff] %v16542_v15  ;;  %v16544_v50 = vld [vmem:[#allocation2 + $0x138] sm:$0xff] }
 0x133   :  { %14308 = vmatprep.mubr.msk.f32.mxu0 %vm245_vm0, %v16520_v63  ;;  %20251 = vst [vmem:[#allocation9_spill] sm:$0xff] %v16544_v50 }
 0x135   :  { %13917 = vmatmul.mubr.msk.f32.gmra.mrb[18].mxu1 %vm245_vm0, %v16124_v44  ;;  %v16554_v44 = vld [vmem:[#allocation2 + $0x140] sm:$0xff] }
 0x136   :  { %14309 = vmatmul.mubr.msk.f32.gmra.mrb[18].mxu0 %vm245_vm0, %v16530_v30  ;;  %13919 = vmatprep.mubr.msk.f32.mxu1 %vm245_vm0, %v16126_v61  ;;  %20252 = vst [vmem:[#allocation13_spill] sm:$0xff] %v16554_v44  ;;  %v16556_v61 = vld [vmem:[#allocation2 + $0x150] sm:$0xff] }
 0x137   :  { %14311 = vmatprep.mubr.msk.f32.mxu0 %vm245_vm0, %v16532_v39  ;;  %20253 = vst [vmem:[#allocation14_spill] sm:$0xff] %v16556_v61  ;;  %v20256_v39 = vld [vmem:[#allocation12_spill] sm:$0xff] }
 0x139   :  { %13920 = vmatmul.mubr.msk.f32.gmra.mrb[20].mxu1 %vm245_vm0, %v16136_v6  ;;  %v16566_v6 = vld [vmem:[#allocation2 + $0x158] sm:$0xff] }
 0x13a   :  { %14312 = vmatmul.mubr.msk.f32.gmra.mrb[20].mxu0 %vm245_vm0, %v16542_v15  ;;  %13922 = vmatprep.mubr.msk.f32.mxu1 %vm245_vm0, %v16138_v8  ;;  %v16568_v8 = vld [vmem:[#allocation2 + $0x168] sm:$0xff] }
 0x13b   :  { %14314 = vmatprep.mubr.msk.f32.mxu0 %vm245_vm0, %v16544_v50  ;;  %v20254_v50 = vld [vmem:[#allocation10_spill] sm:$0xff] }
 0x13d   :  { %13923 = vmatmul.mubr.msk.f32.gmra.mrb[22].mxu1 %vm245_vm0, %v16148_v10  ;;  %v20255_v10 = vld [vmem:[#allocation11_spill] sm:$0xff] }
 0x13e   :  { %14315 = vmatmul.mubr.msk.f32.gmra.mrb[22].mxu0 %vm245_vm0, %v16554_v44  ;;  %13925 = vmatprep.mubr.msk.f32.mxu1 %vm245_vm0, %v16150_v12  ;;  %v16578_v12 = vld [vmem:[#allocation2 + $0x170] sm:$0xff]  ;;  %v16583_v44 = vld [vmem:[#allocation2 + $0x180] sm:$0xff] }
 0x13f   :  { %14317 = vmatprep.mubr.msk.f32.mxu0 %vm245_vm0, %v16556_v61  ;;  %v82_v61 = vld [vmem:[%s20133_s0 + $0x1a8] sm:$0x3] }
 0x140   :  { %v190_v15 = vmax.f32 %v82_v61, 0.0  ;;  %v16611_v61 = vld [vmem:[#allocation2 + $0x1e8] sm:$0xff] }
 0x141   :  { %13926 = vmatmul.mubr.msk.f32.gmra.mrb[24].mxu1 %vm245_vm0, %v20254_v50  ;;  %v16594_v50 = vld [vmem:[#allocation2 + $0x188] sm:$0xff] }
 0x142   :  { %14318 = vmatmul.mubr.msk.f32.gmra.mrb[24].mxu0 %vm245_vm0, %v16566_v6  ;;  %13928 = vmatprep.mubr.msk.f32.mxu1 %vm245_vm0, %v20255_v10  ;;  %300 = vst.msk [vmem:[#allocation2 + $0x1a8] sm:$0x3] %vm248_vm1, %v190_v15  ;;  %v5268_v10 = vld [vmem:[#allocation2 + $0x198] sm:$0xff] }
 0x143   :  { %14320 = vmatprep.mubr.msk.f32.mxu0 %vm245_vm0, %v16568_v8  ;;  %v1928_v15 = vld [vmem:[#allocation2 + $0x1b2] sm:$0xff] }
 0x145   :  { %13929 = vmatmul.mubr.msk.f32.gmra.mrb[26].mxu1 %vm245_vm0, %v20256_v39  ;;  %v5269_v39 = vld [vmem:[#allocation2 + $0x1a0] sm:$0xff] }
 0x146   :  { %14321 = vmatmul.mubr.msk.f32.gmra.mrb[26].mxu0 %vm245_vm0, %v16578_v12  ;;  %13931 = vmatprep.mubr.msk.f32.mxu1 %vm245_vm0, %v16174_v33  ;;  %v16603_v33 = vld [vmem:[#allocation2 + $0x1e0] sm:$0xff] }
 0x147   :  { %14323 = vmatprep.mubr.msk.f32.mxu0 %vm245_vm0, %v16583_v44 }
 0x149   :  { %13932 = vmatmul.mubr.msk.f32.gmra.mrb[28].mxu1 %vm245_vm0, %v16187_v7  ;;  %v1929_v7 = vld [vmem:[#allocation2 + $0x1ba] sm:$0xff] }
 0x14a   :  { %14324 = vmatmul.mubr.msk.f32.gmra.mrb[28].mxu0 %vm245_vm0, %v16594_v50  ;;  %13934 = vmatprep.mubr.msk.f32.mxu1 %vm245_vm0, %v16192_v16  ;;  %v16613_v16 = vld [vmem:[#allocation2 + $0x1f8] sm:$0xff] }
 0x14b   :  { %14326 = vmatprep.mubr.msk.f32.mxu0 %vm245_vm0, %v5268_v10  ;;  %v16624_v10 = vld [vmem:[#allocation2 + $0x210] sm:$0xff] }
 0x14d   :  { %13935 = vmatmul.mubr.msk.f32.gmra.mrb[30].mxu1 %vm245_vm0, %v16204_v22  ;;  %v16622_v22 = vld [vmem:[#allocation2 + $0x200] sm:$0xff] }
 0x14e   :  { %14327 = vmatmul.mubr.msk.f32.gmra.mrb[30].mxu0 %vm245_vm0, %v5269_v39  ;;  %13937 = vmatprep.mubr.msk.f32.mxu1 %vm245_vm0, %v1928_v15  ;;  %v16636_v39 = vld [vmem:[#allocation2 + $0x228] sm:$0xff]  ;;  %v16771_v15 = vld [vmem:[#allocation2 + $0x330] sm:$0xff] }
 0x14f   :  { %14329 = vmatprep.mubr.msk.f32.mxu0 %vm245_vm0, %v16603_v33 }
 0x151   :  { %13938 = vmatmul.mubr.msk.f32.gmra.mrb[32].mxu1 %vm245_vm0, %v1929_v7 }
 0x152   :  { %14330 = vmatmul.mubr.msk.f32.gmra.mrb[32].mxu0 %vm245_vm0, %v16611_v61  ;;  %13940 = vmatprep.mubr.msk.f32.mxu1 %vm245_vm0, %v16213_v27  ;;  %v16634_v27 = vld [vmem:[#allocation2 + $0x218] sm:$0xff] }
 0x153   :  { %14332 = vmatprep.mubr.msk.f32.mxu0 %vm245_vm0, %v16613_v16 }
 0x155   :  { %13941 = vmatmul.mubr.msk.f32.gmra.mrb[34].mxu1 %vm245_vm0, %v16221_v26  ;;  %v16646_v26 = vld [vmem:[#allocation2 + $0x230] sm:$0xff] }
 0x156   :  { %14333 = vmatmul.mubr.msk.f32.gmra.mrb[34].mxu0 %vm245_vm0, %v16622_v22  ;;  %13943 = vmatprep.mubr.msk.f32.mxu1 %vm245_vm0, %v16223_v34  ;;  %v16648_v34 = vld [vmem:[#allocation2 + $0x240] sm:$0xff] }
 0x157   :  { %14335 = vmatprep.mubr.msk.f32.mxu0 %vm245_vm0, %v16624_v10 }
 0x159   :  { %13944 = vmatmul.mubr.msk.f32.gmra.mrb[36].mxu1 %vm245_vm0, %v16232_v40  ;;  %v16658_v40 = vld [vmem:[#allocation2 + $0x248] sm:$0xff] }
 0x15a   :  { %14336 = vmatmul.mubr.msk.f32.gmra.mrb[36].mxu0 %vm245_vm0, %v16634_v27  ;;  %13946 = vmatprep.mubr.msk.f32.mxu1 %vm245_vm0, %v16234_v19  ;;  %v16660_v19 = vld [vmem:[#allocation2 + $0x258] sm:$0xff] }
 0x15b   :  { %14338 = vmatprep.mubr.msk.f32.mxu0 %vm245_vm0, %v16636_v39 }
 0x15d   :  { %13947 = vmatmul.mubr.msk.f32.gmra.mrb[38].mxu1 %vm245_vm0, %v16244_v36  ;;  %v16670_v36 = vld [vmem:[#allocation2 + $0x260] sm:$0xff] }
 0x15e   :  { %14339 = vmatmul.mubr.msk.f32.gmra.mrb[38].mxu0 %vm245_vm0, %v16646_v26  ;;  %13949 = vmatprep.mubr.msk.f32.mxu1 %vm245_vm0, %v16246_v51  ;;  %v16672_v51 = vld [vmem:[#allocation2 + $0x270] sm:$0xff] }
 0x15f   :  { %14341 = vmatprep.mubr.msk.f32.mxu0 %vm245_vm0, %v16648_v34 }
 0x161   :  { %13950 = vmatmul.mubr.msk.f32.gmra.mrb[40].mxu1 %vm245_vm0, %v16256_v45  ;;  %v16682_v45 = vld [vmem:[#allocation2 + $0x278] sm:$0xff] }
 0x162   :  { %14342 = vmatmul.mubr.msk.f32.gmra.mrb[40].mxu0 %vm245_vm0, %v16658_v40  ;;  %13952 = vmatprep.mubr.msk.f32.mxu1 %vm245_vm0, %v16258_v47  ;;  %v16684_v47 = vld [vmem:[#allocation2 + $0x288] sm:$0xff] }
 0x163   :  { %14344 = vmatprep.mubr.msk.f32.mxu0 %vm245_vm0, %v16660_v19 }
 0x165   :  { %13953 = vmatmul.mubr.msk.f32.gmra.mrb[42].mxu1 %vm245_vm0, %v16268_v49  ;;  %v16694_v49 = vld [vmem:[#allocation2 + $0x290] sm:$0xff] }
 0x166   :  { %14345 = vmatmul.mubr.msk.f32.gmra.mrb[42].mxu0 %vm245_vm0, %v16670_v36  ;;  %13955 = vmatprep.mubr.msk.f32.mxu1 %vm245_vm0, %v16270_v52  ;;  %v16696_v52 = vld [vmem:[#allocation2 + $0x2a0] sm:$0xff] }
 0x167   :  { %14347 = vmatprep.mubr.msk.f32.mxu0 %vm245_vm0, %v16672_v51 }
 0x169   :  { %13956 = vmatmul.mubr.msk.f32.gmra.mrb[44].mxu1 %vm245_vm0, %v16280_v54  ;;  %v16706_v54 = vld [vmem:[#allocation2 + $0x2a8] sm:$0xff] }
 0x16a   :  { %14348 = vmatmul.mubr.msk.f32.gmra.mrb[44].mxu0 %vm245_vm0, %v16682_v45  ;;  %13958 = vmatprep.mubr.msk.f32.mxu1 %vm245_vm0, %v16282_v58  ;;  %v16708_v58 = vld [vmem:[#allocation2 + $0x2b8] sm:$0xff] }
 0x16b   :  { %14350 = vmatprep.mubr.msk.f32.mxu0 %vm245_vm0, %v16684_v47 }
 0x16d   :  { %13959 = vmatmul.mubr.msk.f32.gmra.mrb[46].mxu1 %vm245_vm0, %v16292_v62  ;;  %v16718_v62 = vld [vmem:[#allocation2 + $0x2c0] sm:$0xff] }
 0x16e   :  { %14351 = vmatmul.mubr.msk.f32.gmra.mrb[46].mxu0 %vm245_vm0, %v16694_v49  ;;  %13961 = vmatprep.mubr.msk.f32.mxu1 %vm245_vm0, %v16294_v0  ;;  %v16720_v0 = vld [vmem:[#allocation2 + $0x2d0] sm:$0xff] }
 0x16f   :  { %14353 = vmatprep.mubr.msk.f32.mxu0 %vm245_vm0, %v16696_v52 }
 0x171   :  { %13962 = vmatmul.mubr.msk.f32.gmra.mrb[48].mxu1 %vm245_vm0, %v16304_v2  ;;  %v16730_v2 = vld [vmem:[#allocation2 + $0x2d8] sm:$0xff] }
 0x172   :  { %14354 = vmatmul.mubr.msk.f32.gmra.mrb[48].mxu0 %vm245_vm0, %v16706_v54  ;;  %13964 = vmatprep.mubr.msk.f32.mxu1 %vm245_vm0, %v16306_v4  ;;  %v16732_v4 = vld [vmem:[#allocation2 + $0x2e8] sm:$0xff] }
 0x173   :  { %14356 = vmatprep.mubr.msk.f32.mxu0 %vm245_vm0, %v16708_v58 }
 0x175   :  { %13965 = vmatmul.mubr.msk.f32.gmra.mrb[50].mxu1 %vm245_vm0, %v16316_v9  ;;  %v16742_v9 = vld [vmem:[#allocation2 + $0x2f0] sm:$0xff] }
 0x176   :  { %14357 = vmatmul.mubr.msk.f32.gmra.mrb[50].mxu0 %vm245_vm0, %v16718_v62  ;;  %13967 = vmatprep.mubr.msk.f32.mxu1 %vm245_vm0, %v16318_v13  ;;  %v16744_v13 = vld [vmem:[#allocation2 + $0x300] sm:$0xff] }
 0x177   :  { %14359 = vmatprep.mubr.msk.f32.mxu0 %vm245_vm0, %v16720_v0 }
 0x179   :  { %13968 = vmatmul.mubr.msk.f32.gmra.mrb[52].mxu1 %vm245_vm0, %v16328_v17  ;;  %v16754_v17 = vld [vmem:[#allocation2 + $0x308] sm:$0xff] }
 0x17a   :  { %14360 = vmatmul.mubr.msk.f32.gmra.mrb[52].mxu0 %vm245_vm0, %v16730_v2  ;;  %13970 = vmatprep.mubr.msk.f32.mxu1 %vm245_vm0, %v16330_v23  ;;  %v16756_v23 = vld [vmem:[#allocation2 + $0x318] sm:$0xff] }
 0x17b   :  { %14362 = vmatprep.mubr.msk.f32.mxu0 %vm245_vm0, %v16732_v4 }
 0x17d   :  { %13971 = vmatmul.mubr.msk.f32.gmra.mrb[54].mxu1 %vm245_vm0, %v16340_v28  ;;  %v16766_v28 = vld [vmem:[#allocation2 + $0x320] sm:$0xff] }
 0x17e   :  { %14363 = vmatmul.mubr.msk.f32.gmra.mrb[54].mxu0 %vm245_vm0, %v16742_v9  ;;  %13973 = vmatprep.mubr.msk.f32.mxu1 %vm245_vm0, %v16342_v31  ;;  %v136_v31 = vld [vmem:[%s20133_s0 + $0x358] sm:$0x3] }
 0x17f   :  { %14365 = vmatprep.mubr.msk.f32.mxu0 %vm245_vm0, %v16744_v13  ;;  %v244_v7 = vmax.f32 %v136_v31, 0.0  ;;  %v2732_v31 = vld [vmem:[#allocation2 + $0x18] sm:$0xff] }
 0x181   :  { %13974 = vmatmul.mubr.msk.f32.gmra.mrb[56].mxu1 %vm245_vm0, %v16352_v35  ;;  %354 = vst.msk [vmem:[#allocation2 + $0x358] sm:$0x3] %vm248_vm1, %v244_v7  ;;  %v16782_v35 = vld [vmem:[#allocation2 + $0x338] sm:$0xff] }
 0x182   :  { %14366 = vmatmul.mubr.msk.f32.gmra.mrb[56].mxu0 %vm245_vm0, %v16754_v17  ;;  %13976 = vmatprep.mubr.msk.f32.mxu1 %vm245_vm0, %v16354_v38  ;;  %20257 = vst [vmem:[#allocation10_spill] sm:$0xff] %v16782_v35  ;;  %v5300_v38 = vld [vmem:[#allocation2 + $0x348] sm:$0xff]  ;;  %v6074_v7 = vld [vmem:[#allocation2 + $0x39] sm:$0xff] }
 0x183   :  { %14368 = vmatprep.mubr.msk.f32.mxu0 %vm245_vm0, %v16756_v23 }
 0x185   :  { %13977 = vmatmul.mubr.msk.f32.gmra.mrb[58].mxu1 %vm245_vm0, %v16364_v41  ;;  %v5301_v41 = vld [vmem:[#allocation2 + $0x350] sm:$0xff] }
 0x186   :  { %14369 = vmatmul.mubr.msk.f32.gmra.mrb[58].mxu0 %vm245_vm0, %v16766_v28  ;;  %13979 = vmatprep.mubr.msk.f32.mxu1 %vm245_vm0, %v16366_v43  ;;  %v6073_v43 = vld [vmem:[#allocation2 + $0x31] sm:$0xff] }
 0x187   :  { %14371 = vmatprep.mubr.msk.f32.mxu0 %vm245_vm0, %v16771_v15 }
 0x189   :  { %13980 = vmatmul.mubr.msk.f32.gmra.mrb[60].mxu1 %vm245_vm0, %v16379_v53  ;;  %v2733_v53 = vld [vmem:[#allocation2 + $0x20] sm:$0xff] }
 0x18a   :  { %14372 = vmatmul.mubr.msk.f32.gmra.mrb[60].mxu0 %vm245_vm0, %v16782_v35  ;;  %13982 = vmatprep.mubr.msk.f32.mxu1 %vm245_vm0, %v16384_v20  ;;  %v6075_v35 = vld [vmem:[#allocation2 + $0x49] sm:$0xff]  ;;  %v6076_v20 = vld [vmem:[#allocation2 + $0x51] sm:$0xff] }
 0x18b   :  { %14374 = vmatprep.mubr.msk.f32.mxu0 %vm245_vm0, %v5300_v38  ;;  %v6078_v38 = vld [vmem:[#allocation2 + $0x69] sm:$0xff] }
 0x18d   :  { %13983 = vmatmul.mubr.msk.f32.gmra.mrb[62].mxu1 %vm245_vm0, %v16396_v60  ;;  %v6077_v60 = vld [vmem:[#allocation2 + $0x61] sm:$0xff] }
 0x18e   :  { %14375 = vmatmul.mubr.msk.f32.gmra.mrb[62].mxu0 %vm245_vm0, %v5301_v41  ;;  %13987 = vmatprep.mubr.msk.f32.mxu1 %vm245_vm0, %v2732_v31  ;;  %v6079_v41 = vld [vmem:[#allocation2 + $0x79] sm:$0xff]  ;;  %v6099_v31 = vld [vmem:[#allocation2 + $0x169] sm:$0xff] }
 0x18f   :  { %14379 = vmatprep.mubr.msk.f32.mxu0 %vm245_vm0, %v6073_v43  ;;  %v20261_v43 = vld [vmem:[#allocation13_spill] sm:$0xff] }
 0x191   :  { %13988 = vmatmul.mubr.msk.f32.vlgmr.msra.gmra.mrb[0].mxu1 %vm245_vm0, %v2733_v53  ;;  %v20262_v53 = vld [vmem:[#allocation14_spill] sm:$0xff] }
 0x192   :  { %14380 = vmatmul.mubr.msk.f32.vlgmr.msra.gmra.mrb[0].mxu0 %vm245_vm0, %v6074_v7  ;;  %13990 = vmatprep.mubr.msk.f32.mxu1 %vm245_vm0, %v16405_v5  ;;  %v6080_v5 = vld [vmem:[#allocation2 + $0x81] sm:$0xff]  ;;  %v6100_v7 = vld [vmem:[#allocation2 + $0x171] sm:$0xff] }
 0x193   :  { %14476 = vmatpush3.msra.mxu0 %v16426_v25  ;;  %14382 = vmatprep.mubr.msk.f32.mxu0 %vm245_vm0, %v6075_v35  ;;  %v6083_v25 = vld [vmem:[#allocation2 + $0xa9] sm:$0xff] }
 0x194   :  { %v20259_v35 = vld [vmem:[#allocation8_spill] sm:$0xff] }
 0x195   :  { %13991 = vmatmul.mubr.msk.f32.gmra.mrb[2].mxu1 %vm245_vm0, %v16416_v57  ;;  %v6081_v57 = vld [vmem:[#allocation2 + $0x91] sm:$0xff] }
 0x196   :  { %14383 = vmatmul.mubr.msk.f32.gmra.mrb[2].mxu0 %vm245_vm0, %v6076_v20  ;;  %13993 = vmatprep.mubr.msk.f32.mxu1 %vm245_vm0, %v16418_v29  ;;  %v6082_v29 = vld [vmem:[#allocation2 + $0x99] sm:$0xff]  ;;  %v6101_v20 = vld [vmem:[#allocation2 + $0x181] sm:$0xff] }
 0x197   :  { %14385 = vmatprep.mubr.msk.f32.mxu0 %vm245_vm0, %v6077_v60  ;;  %v6102_v60 = vld [vmem:[#allocation2 + $0x189] sm:$0xff] }
 0x199   :  { %13994 = vmatmul.mubr.msk.f32.gmra.mrb[4].mxu1 %vm245_vm0, %v16431_v48  ;;  %v6084_v48 = vld [vmem:[#allocation2 + $0xb1] sm:$0xff] }
 0x19a   :  { %14386 = vmatmul.mubr.msk.f32.gmra.mrb[4].mxu0 %vm245_vm0, %v6078_v38  ;;  %13996 = vmatprep.mubr.msk.f32.mxu1 %vm245_vm0, %v16435_v1  ;;  %v6085_v1 = vld [vmem:[#allocation2 + $0xc1] sm:$0xff]  ;;  %v6103_v38 = vld [vmem:[#allocation2 + $0x199] sm:$0xff] }
 0x19b   :  { %14388 = vmatprep.mubr.msk.f32.mxu0 %vm245_vm0, %v6079_v41  ;;  %v2764_v41 = vld [vmem:[#allocation2 + $0x1c8] sm:$0xff] }
 0x19d   :  { %13997 = vmatmul.mubr.msk.f32.gmra.mrb[6].mxu1 %vm245_vm0, %v16446_v46  ;;  %v6086_v46 = vld [vmem:[#allocation2 + $0xc9] sm:$0xff] }
 0x19e   :  { %14389 = vmatmul.mubr.msk.f32.gmra.mrb[6].mxu0 %vm245_vm0, %v6080_v5  ;;  %13999 = vmatprep.mubr.msk.f32.mxu1 %vm245_vm0, %v16448_v11  ;;  %v6087_v11 = vld [vmem:[#allocation2 + $0xd9] sm:$0xff]  ;;  %v6105_v5 = vld [vmem:[#allocation2 + $0x1e1] sm:$0xff] }
 0x19f   :  { %14391 = vmatprep.mubr.msk.f32.mxu0 %vm245_vm0, %v6081_v57  ;;  %v6107_v57 = vld [vmem:[#allocation2 + $0x1f9] sm:$0xff] }
 0x1a1   :  { %14000 = vmatmul.mubr.msk.f32.gmra.mrb[8].mxu1 %vm245_vm0, %v16458_v59  ;;  %v6088_v59 = vld [vmem:[#allocation2 + $0xe1] sm:$0xff] }
 0x1a2   :  { %14392 = vmatmul.mubr.msk.f32.gmra.mrb[8].mxu0 %vm245_vm0, %v6082_v29  ;;  %14002 = vmatprep.mubr.msk.f32.mxu1 %vm245_vm0, %v16460_v3  ;;  %v6089_v3 = vld [vmem:[#allocation2 + $0xf1] sm:$0xff]  ;;  %v6110_v29 = vld [vmem:[#allocation2 + $0x219] sm:$0xff] }
 0x1a3   :  { %14394 = vmatprep.mubr.msk.f32.mxu0 %vm245_vm0, %v6083_v25  ;;  %v6111_v25 = vld [vmem:[#allocation2 + $0x229] sm:$0xff] }
 0x1a5   :  { %14003 = vmatmul.mubr.msk.f32.gmra.mrb[10].mxu1 %vm245_vm0, %v16470_v32  ;;  %v6090_v32 = vld [vmem:[#allocation2 + $0xf9] sm:$0xff] }
 0x1a6   :  { %14395 = vmatmul.mubr.msk.f32.gmra.mrb[10].mxu0 %vm245_vm0, %v6084_v48  ;;  %14005 = vmatprep.mubr.msk.f32.mxu1 %vm245_vm0, %v16472_v24  ;;  %v6091_v24 = vld [vmem:[#allocation2 + $0x109] sm:$0xff]  ;;  %v20263_v48 = vld [vmem:[#allocation10_spill] sm:$0xff] }
 0x1a7   :  { %14397 = vmatprep.mubr.msk.f32.mxu0 %vm245_vm0, %v6085_v1  ;;  %v6910_v1 = vld [vmem:[#allocation2 + $0x4a] sm:$0xff] }
 0x1a9   :  { %14006 = vmatmul.mubr.msk.f32.gmra.mrb[12].mxu1 %vm245_vm0, %v16482_v18  ;;  %v6092_v18 = vld [vmem:[#allocation2 + $0x111] sm:$0xff] }
 0x1aa   :  { %14398 = vmatmul.mubr.msk.f32.gmra.mrb[12].mxu0 %vm245_vm0, %v6086_v46  ;;  %14008 = vmatprep.mubr.msk.f32.mxu1 %vm245_vm0, %v16484_v21  ;;  %v6093_v21 = vld [vmem:[#allocation2 + $0x121] sm:$0xff] }
 0x1ab   :  { %14400 = vmatprep.mubr.msk.f32.mxu0 %vm245_vm0, %v6087_v11  ;;  %v6912_v46 = vld [vmem:[#allocation2 + $0x62] sm:$0xff]  ;;  %v6914_v11 = vld [vmem:[#allocation2 + $0x7a] sm:$0xff] }
 0x1ad   :  { %14009 = vmatmul.mubr.msk.f32.gmra.mrb[14].mxu1 %vm245_vm0, %v16494_v14  ;;  %v6094_v14 = vld [vmem:[#allocation2 + $0x129] sm:$0xff] }
 0x1ae   :  { %14401 = vmatmul.mubr.msk.f32.gmra.mrb[14].mxu0 %vm245_vm0, %v6088_v59  ;;  %14011 = vmatprep.mubr.msk.f32.mxu1 %vm245_vm0, %v16496_v37  ;;  %v6095_v37 = vld [vmem:[#allocation2 + $0x139] sm:$0xff]  ;;  %v6915_v59 = vld [vmem:[#allocation2 + $0x82] sm:$0xff] }
 0x1af   :  { %14403 = vmatprep.mubr.msk.f32.mxu0 %vm245_vm0, %v6089_v3  ;;  %v6916_v3 = vld [vmem:[#allocation2 + $0x92] sm:$0xff] }
 0x1b1   :  { %14012 = vmatmul.mubr.msk.f32.gmra.mrb[16].mxu1 %vm245_vm0, %v16506_v42  ;;  %v20258_v42 = vld [vmem:[#allocation7_spill] sm:$0xff] }
 0x1b2   :  { %14404 = vmatmul.mubr.msk.f32.gmra.mrb[16].mxu0 %vm245_vm0, %v6090_v32  ;;  %14014 = vmatprep.mubr.msk.f32.mxu1 %vm245_vm0, %v16508_v55  ;;  %v6096_v55 = vld [vmem:[#allocation2 + $0x141] sm:$0xff] }
 0x1b3   :  { %14406 = vmatprep.mubr.msk.f32.mxu0 %vm245_vm0, %v6091_v24  ;;  %v6917_v32 = vld [vmem:[#allocation2 + $0x9a] sm:$0xff]  ;;  %v6918_v24 = vld [vmem:[#allocation2 + $0xaa] sm:$0xff] }
 0x1b5   :  { %14015 = vmatmul.mubr.msk.f32.gmra.mrb[18].mxu1 %vm245_vm0, %v16518_v56  ;;  %v6097_v56 = vld [vmem:[#allocation2 + $0x151] sm:$0xff] }
 0x1b6   :  { %14407 = vmatmul.mubr.msk.f32.gmra.mrb[18].mxu0 %vm245_vm0, %v6092_v18  ;;  %14017 = vmatprep.mubr.msk.f32.mxu1 %vm245_vm0, %v16520_v63  ;;  %v20260_v63 = vld [vmem:[#allocation9_spill] sm:$0xff] }
 0x1b7   :  { %14409 = vmatprep.mubr.msk.f32.mxu0 %vm245_vm0, %v6093_v21  ;;  %v6919_v18 = vld [vmem:[#allocation2 + $0xb2] sm:$0xff]  ;;  %v6920_v21 = vld [vmem:[#allocation2 + $0xc2] sm:$0xff] }
 0x1b9   :  { %14018 = vmatmul.mubr.msk.f32.gmra.mrb[20].mxu1 %vm245_vm0, %v16530_v30  ;;  %v6098_v30 = vld [vmem:[#allocation2 + $0x159] sm:$0xff] }
 0x1ba   :  { %14410 = vmatmul.mubr.msk.f32.gmra.mrb[20].mxu0 %vm245_vm0, %v6094_v14  ;;  %14020 = vmatprep.mubr.msk.f32.mxu1 %vm245_vm0, %v20258_v42  ;;  %v6921_v14 = vld [vmem:[#allocation2 + $0xca] sm:$0xff]  ;;  %v6923_v42 = vld [vmem:[#allocation2 + $0xe2] sm:$0xff] }
 0x1bb   :  { %14412 = vmatprep.mubr.msk.f32.mxu0 %vm245_vm0, %v6095_v37  ;;  %v6922_v37 = vld [vmem:[#allocation2 + $0xda] sm:$0xff] }
 0x1bd   :  { %14021 = vmatmul.mubr.msk.f32.gmra.mrb[22].mxu1 %vm245_vm0, %v20259_v35  ;;  %v6926_v35 = vld [vmem:[#allocation2 + $0x10a] sm:$0xff] }
 0x1be   :  { %14413 = vmatmul.mubr.msk.f32.gmra.mrb[22].mxu0 %vm245_vm0, %v6096_v55  ;;  %14023 = vmatprep.mubr.msk.f32.mxu1 %vm245_vm0, %v20260_v63  ;;  %v6924_v55 = vld [vmem:[#allocation2 + $0xf2] sm:$0xff] }
 0x1bf   :  { %14415 = vmatprep.mubr.msk.f32.mxu0 %vm245_vm0, %v6097_v56  ;;  %v6925_v56 = vld [vmem:[#allocation2 + $0xfa] sm:$0xff]  ;;  %v6927_v63 = vld [vmem:[#allocation2 + $0x112] sm:$0xff] }
 0x1c1   :  { %14024 = vmatmul.mubr.msk.f32.gmra.mrb[24].mxu1 %vm245_vm0, %v20261_v43  ;;  %v6930_v43 = vld [vmem:[#allocation2 + $0x13a] sm:$0xff] }
 0x1c2   :  { %14416 = vmatmul.mubr.msk.f32.gmra.mrb[24].mxu0 %vm245_vm0, %v6098_v30  ;;  %14026 = vmatprep.mubr.msk.f32.mxu1 %vm245_vm0, %v20262_v53  ;;  %v6928_v30 = vld [vmem:[#allocation2 + $0x122] sm:$0xff] }
 0x1c3   :  { %14418 = vmatprep.mubr.msk.f32.mxu0 %vm245_vm0, %v6099_v31  ;;  %v6929_v31 = vld [vmem:[#allocation2 + $0x12a] sm:$0xff]  ;;  %v6931_v53 = vld [vmem:[#allocation2 + $0x142] sm:$0xff] }
 0x1c5   :  { %14027 = vmatmul.mubr.msk.f32.gmra.mrb[26].mxu1 %vm245_vm0, %v16566_v6  ;;  %v6104_v6 = vld [vmem:[#allocation2 + $0x1a1] sm:$0xff] }
 0x1c6   :  { %14419 = vmatmul.mubr.msk.f32.gmra.mrb[26].mxu0 %vm245_vm0, %v6100_v7  ;;  %14029 = vmatprep.mubr.msk.f32.mxu1 %vm245_vm0, %v16568_v8  ;;  %v2765_v8 = vld [vmem:[#allocation2 + $0x1d0] sm:$0xff] }
 0x1c7   :  { %14421 = vmatprep.mubr.msk.f32.mxu0 %vm245_vm0, %v6101_v20  ;;  %v6932_v7 = vld [vmem:[#allocation2 + $0x152] sm:$0xff]  ;;  %v6933_v20 = vld [vmem:[#allocation2 + $0x15a] sm:$0xff] }
 0x1c9   :  { %14030 = vmatmul.mubr.msk.f32.gmra.mrb[28].mxu1 %vm245_vm0, %v16578_v12  ;;  %v6106_v12 = vld [vmem:[#allocation2 + $0x1e9] sm:$0xff] }
 0x1ca   :  { %14422 = vmatmul.mubr.msk.f32.gmra.mrb[28].mxu0 %vm245_vm0, %v6102_v60  ;;  %14032 = vmatprep.mubr.msk.f32.mxu1 %vm245_vm0, %v16583_v44  ;;  %v6108_v44 = vld [vmem:[#allocation2 + $0x201] sm:$0xff]  ;;  %v6934_v60 = vld [vmem:[#allocation2 + $0x16a] sm:$0xff] }
 0x1cb   :  { %14424 = vmatprep.mubr.msk.f32.mxu0 %vm245_vm0, %v6103_v38  ;;  %v6935_v38 = vld [vmem:[#allocation2 + $0x172] sm:$0xff] }
 0x1cd   :  { %14033 = vmatmul.mubr.msk.f32.gmra.mrb[30].mxu1 %vm245_vm0, %v16594_v50  ;;  %v6109_v50 = vld [vmem:[#allocation2 + $0x211] sm:$0xff] }
 0x1ce   :  { %14425 = vmatmul.mubr.msk.f32.gmra.mrb[30].mxu0 %vm245_vm0, %v6104_v6  ;;  %14035 = vmatprep.mubr.msk.f32.mxu1 %vm245_vm0, %v2764_v41  ;;  %v6936_v6 = vld [vmem:[#allocation2 + $0x182] sm:$0xff]  ;;  %v6937_v41 = vld [vmem:[#allocation2 + $0x18a] sm:$0xff] }
 0x1cf   :  { %14427 = vmatprep.mubr.msk.f32.mxu0 %vm245_vm0, %v6105_v5  ;;  %v6938_v5 = vld [vmem:[#allocation2 + $0x19a] sm:$0xff] }
 0x1d1   :  { %14036 = vmatmul.mubr.msk.f32.gmra.mrb[32].mxu1 %vm245_vm0, %v2765_v8  ;;  %v6939_v8 = vld [vmem:[#allocation2 + $0x1a2] sm:$0xff] }
 0x1d2   :  { %14428 = vmatmul.mubr.msk.f32.gmra.mrb[32].mxu0 %vm245_vm0, %v6106_v12  ;;  %14038 = vmatprep.mubr.msk.f32.mxu1 %vm245_vm0, %v16603_v33  ;;  %v6112_v33 = vld [vmem:[#allocation2 + $0x231] sm:$0xff]  ;;  %v6940_v12 = vld [vmem:[#allocation2 + $0x1e2] sm:$0xff] }
 0x1d3   :  { %14430 = vmatprep.mubr.msk.f32.mxu0 %vm245_vm0, %v6107_v57  ;;  %v6941_v57 = vld [vmem:[#allocation2 + $0x1ea] sm:$0xff] }
 0x1d5   :  { %14039 = vmatmul.mubr.msk.f32.gmra.mrb[34].mxu1 %vm245_vm0, %v16611_v61  ;;  %v6113_v61 = vld [vmem:[#allocation2 + $0x241] sm:$0xff] }
 0x1d6   :  { %14431 = vmatmul.mubr.msk.f32.gmra.mrb[34].mxu0 %vm245_vm0, %v6108_v44  ;;  %14041 = vmatprep.mubr.msk.f32.mxu1 %vm245_vm0, %v16613_v16  ;;  %v6114_v16 = vld [vmem:[#allocation2 + $0x249] sm:$0xff]  ;;  %v6942_v44 = vld [vmem:[#allocation2 + $0x1fa] sm:$0xff] }
 0x1d7   :  { %14433 = vmatprep.mubr.msk.f32.mxu0 %vm245_vm0, %v6109_v50  ;;  %v6943_v50 = vld [vmem:[#allocation2 + $0x202] sm:$0xff] }
 0x1d9   :  { %14042 = vmatmul.mubr.msk.f32.gmra.mrb[36].mxu1 %vm245_vm0, %v16622_v22  ;;  %v6115_v22 = vld [vmem:[#allocation2 + $0x259] sm:$0xff] }
 0x1da   :  { %14434 = vmatmul.mubr.msk.f32.gmra.mrb[36].mxu0 %vm245_vm0, %v6110_v29  ;;  %14044 = vmatprep.mubr.msk.f32.mxu1 %vm245_vm0, %v16624_v10  ;;  %v6116_v10 = vld [vmem:[#allocation2 + $0x261] sm:$0xff]  ;;  %v6944_v29 = vld [vmem:[#allocation2 + $0x212] sm:$0xff] }
 0x1db   :  { %14436 = vmatprep.mubr.msk.f32.mxu0 %vm245_vm0, %v6111_v25  ;;  %v6945_v25 = vld [vmem:[#allocation2 + $0x21a] sm:$0xff] }
 0x1dd   :  { %14045 = vmatmul.mubr.msk.f32.gmra.mrb[38].mxu1 %vm245_vm0, %v16634_v27  ;;  %v6117_v27 = vld [vmem:[#allocation2 + $0x271] sm:$0xff] }
 0x1de   :  { %14437 = vmatmul.mubr.msk.f32.gmra.mrb[38].mxu0 %vm245_vm0, %v6112_v33  ;;  %14047 = vmatprep.mubr.msk.f32.mxu1 %vm245_vm0, %v16636_v39  ;;  %v6118_v39 = vld [vmem:[#allocation2 + $0x279] sm:$0xff]  ;;  %v6946_v33 = vld [vmem:[#allocation2 + $0x22a] sm:$0xff] }
 0x1df   :  { %14439 = vmatprep.mubr.msk.f32.mxu0 %vm245_vm0, %v6113_v61  ;;  %v6947_v61 = vld [vmem:[#allocation2 + $0x232] sm:$0xff] }
 0x1e1   :  { %14048 = vmatmul.mubr.msk.f32.gmra.mrb[40].mxu1 %vm245_vm0, %v16646_v26  ;;  %v6119_v26 = vld [vmem:[#allocation2 + $0x289] sm:$0xff] }
 0x1e2   :  { %14440 = vmatmul.mubr.msk.f32.gmra.mrb[40].mxu0 %vm245_vm0, %v6114_v16  ;;  %14050 = vmatprep.mubr.msk.f32.mxu1 %vm245_vm0, %v16648_v34  ;;  %v6120_v34 = vld [vmem:[#allocation2 + $0x291] sm:$0xff]  ;;  %v6948_v16 = vld [vmem:[#allocation2 + $0x242] sm:$0xff] }
 0x1e3   :  { %14442 = vmatprep.mubr.msk.f32.mxu0 %vm245_vm0, %v6115_v22  ;;  %v6949_v22 = vld [vmem:[#allocation2 + $0x24a] sm:$0xff] }
 0x1e5   :  { %14051 = vmatmul.mubr.msk.f32.gmra.mrb[42].mxu1 %vm245_vm0, %v16658_v40  ;;  %v6121_v40 = vld [vmem:[#allocation2 + $0x2a1] sm:$0xff] }
 0x1e6   :  { %14443 = vmatmul.mubr.msk.f32.gmra.mrb[42].mxu0 %vm245_vm0, %v6116_v10  ;;  %14053 = vmatprep.mubr.msk.f32.mxu1 %vm245_vm0, %v16660_v19  ;;  %v6122_v19 = vld [vmem:[#allocation2 + $0x2a9] sm:$0xff]  ;;  %v6950_v10 = vld [vmem:[#allocation2 + $0x25a] sm:$0xff] }
 0x1e7   :  { %14445 = vmatprep.mubr.msk.f32.mxu0 %vm245_vm0, %v6117_v27  ;;  %v6951_v27 = vld [vmem:[#allocation2 + $0x262] sm:$0xff] }
 0x1e9   :  { %14054 = vmatmul.mubr.msk.f32.gmra.mrb[44].mxu1 %vm245_vm0, %v16670_v36  ;;  %v6123_v36 = vld [vmem:[#allocation2 + $0x2b9] sm:$0xff] }
 0x1ea   :  { %14446 = vmatmul.mubr.msk.f32.gmra.mrb[44].mxu0 %vm245_vm0, %v6118_v39  ;;  %14056 = vmatprep.mubr.msk.f32.mxu1 %vm245_vm0, %v16672_v51  ;;  %v6124_v51 = vld [vmem:[#allocation2 + $0x2c1] sm:$0xff]  ;;  %v6952_v39 = vld [vmem:[#allocation2 + $0x272] sm:$0xff] }
 0x1eb   :  { %14448 = vmatprep.mubr.msk.f32.mxu0 %vm245_vm0, %v6119_v26 }
 0x1ed   :  { %14057 = vmatmul.mubr.msk.f32.gmra.mrb[46].mxu1 %vm245_vm0, %v16682_v45  ;;  %v6125_v45 = vld [vmem:[#allocation2 + $0x2d1] sm:$0xff] }
 0x1ee   :  { %14449 = vmatmul.mubr.msk.f32.gmra.mrb[46].mxu0 %vm245_vm0, %v6120_v34  ;;  %14059 = vmatprep.mubr.msk.f32.mxu1 %vm245_vm0, %v16684_v47  ;;  %v6126_v47 = vld [vmem:[#allocation2 + $0x2d9] sm:$0xff] }
 0x1ef   :  { %14451 = vmatprep.mubr.msk.f32.mxu0 %vm245_vm0, %v6121_v40  ;;  %v17032_v40 = vld [vmem:[#allocation2 + $0x27a] sm:$0xff] }
 0x1f1   :  { %14060 = vmatmul.mubr.msk.f32.gmra.mrb[48].mxu1 %vm245_vm0, %v16694_v49  ;;  %v6127_v49 = vld [vmem:[#allocation2 + $0x2e9] sm:$0xff] }
 0x1f2   :  { %14452 = vmatmul.mubr.msk.f32.gmra.mrb[48].mxu0 %vm245_vm0, %v6122_v19  ;;  %14062 = vmatprep.mubr.msk.f32.mxu1 %vm245_vm0, %v16696_v52  ;;  %v6128_v52 = vld [vmem:[#allocation2 + $0x2f1] sm:$0xff]  ;;  %v15274_v19 = vmov 0.0  }
 0x1f3   :  { %14454 = vmatprep.mubr.msk.f32.mxu0 %vm245_vm0, %v6123_v36  ;;  %8082 = vst [vmem:[#allocation4] sm:$0xff] %v15274_v19  ;;  %8083 = vst [vmem:[#allocation4 + $0x8] sm:$0xff] %v15274_v19  ;;  %v6954_v36 = vld [vmem:[#allocation2 + $0x28a] sm:$0xff] }
 0x1f4   :  { %8084 = vst [vmem:[#allocation4 + $0x10] sm:$0xff] %v15274_v19  ;;  %8085 = vst [vmem:[#allocation4 + $0x18] sm:$0x1] %v15274_v19 }
 0x1f5   :  { %14063 = vmatmul.mubr.msk.f32.gmra.mrb[50].mxu1 %vm245_vm0, %v16706_v54  ;;  %v6129_v54 = vld [vmem:[#allocation2 + $0x301] sm:$0xff]  ;;  %8086 = vst [vmem:[#allocation4 + $0x20] sm:$0xff] %v15274_v19  ;;  %8089 = vst [vmem:[#allocation4 + $0x38] sm:$0x1] %v15274_v19 }
 0x1f6   :  { %14455 = vmatmul.mubr.msk.f32.gmra.mrb[50].mxu0 %vm245_vm0, %v6124_v51  ;;  %14065 = vmatprep.mubr.msk.f32.mxu1 %vm245_vm0, %v16708_v58  ;;  %v6130_v58 = vld [vmem:[#allocation2 + $0x309] sm:$0xff]  ;;  %8090 = vst [vmem:[#allocation4 + $0x40] sm:$0xff] %v15274_v19  ;;  %8093 = vst [vmem:[#allocation4 + $0x58] sm:$0x1] %v15274_v19 }
 0x1f7   :  { %14457 = vmatprep.mubr.msk.f32.mxu0 %vm245_vm0, %v6125_v45  ;;  %8094 = vst [vmem:[#allocation4 + $0x60] sm:$0xff] %v15274_v19  ;;  %8097 = vst [vmem:[#allocation4 + $0x78] sm:$0x1] %v15274_v19 }
 0x1f8   :  { %8098 = vst [vmem:[#allocation4 + $0x80] sm:$0xff] %v15274_v19  ;;  %8101 = vst [vmem:[#allocation4 + $0x98] sm:$0x1] %v15274_v19 }
 0x1f9   :  { %14066 = vmatmul.mubr.msk.f32.gmra.mrb[52].mxu1 %vm245_vm0, %v16718_v62  ;;  %v6131_v62 = vld [vmem:[#allocation2 + $0x319] sm:$0xff]  ;;  %8102 = vst [vmem:[#allocation4 + $0xa0] sm:$0xff] %v15274_v19  ;;  %8105 = vst [vmem:[#allocation4 + $0xb8] sm:$0x1] %v15274_v19 }
 0x1fa   :  { %14458 = vmatmul.mubr.msk.f32.gmra.mrb[52].mxu0 %vm245_vm0, %v6126_v47  ;;  %14068 = vmatprep.mubr.msk.f32.mxu1 %vm245_vm0, %v16720_v0  ;;  %v6132_v0 = vld [vmem:[#allocation2 + $0x321] sm:$0xff]  ;;  %8106 = vst [vmem:[#allocation4 + $0xc0] sm:$0xff] %v15274_v19  ;;  %8109 = vst [vmem:[#allocation4 + $0xd8] sm:$0x1] %v15274_v19  ;;  %v6955_v47 = vld [vmem:[#allocation2 + $0x292] sm:$0xff] }
 0x1fb   :  { %14460 = vmatprep.mubr.msk.f32.mxu0 %vm245_vm0, %v6127_v49  ;;  %8110 = vst [vmem:[#allocation4 + $0xe0] sm:$0xff] %v15274_v19  ;;  %8113 = vst [vmem:[#allocation4 + $0xf8] sm:$0x1] %v15274_v19  ;;  %v6956_v49 = vld [vmem:[#allocation2 + $0x2a2] sm:$0xff] }
 0x1fc   :  { %8114 = vst [vmem:[#allocation4 + $0x100] sm:$0xff] %v15274_v19  ;;  %8117 = vst [vmem:[#allocation4 + $0x118] sm:$0x1] %v15274_v19 }
 0x1fd   :  { %14069 = vmatmul.mubr.msk.f32.gmra.mrb[54].mxu1 %vm245_vm0, %v16730_v2  ;;  %v6133_v2 = vld [vmem:[#allocation2 + $0x331] sm:$0xff]  ;;  %8118 = vst [vmem:[#allocation4 + $0x120] sm:$0xff] %v15274_v19  ;;  %8121 = vst [vmem:[#allocation4 + $0x138] sm:$0x1] %v15274_v19 }
 0x1fe   :  { %14461 = vmatmul.mubr.msk.f32.gmra.mrb[54].mxu0 %vm245_vm0, %v6128_v52  ;;  %14071 = vmatprep.mubr.msk.f32.mxu1 %vm245_vm0, %v16732_v4  ;;  %v6134_v4 = vld [vmem:[#allocation2 + $0x339] sm:$0xff]  ;;  %8122 = vst [vmem:[#allocation4 + $0x140] sm:$0xff] %v15274_v19  ;;  %8125 = vst [vmem:[#allocation4 + $0x158] sm:$0x1] %v15274_v19 }
 0x1ff   :  { %14463 = vmatprep.mubr.msk.f32.mxu0 %vm245_vm0, %v6129_v54  ;;  %8126 = vst [vmem:[#allocation4 + $0x160] sm:$0xff] %v15274_v19  ;;  %8129 = vst [vmem:[#allocation4 + $0x178] sm:$0x1] %v15274_v19 }
 0x200   :  { %8130 = vst [vmem:[#allocation4 + $0x180] sm:$0xff] %v15274_v19  ;;  %8133 = vst [vmem:[#allocation4 + $0x198] sm:$0x1] %v15274_v19 }
 0x201   :  { %14072 = vmatmul.mubr.msk.f32.gmra.mrb[56].mxu1 %vm245_vm0, %v16742_v9  ;;  %v6135_v9 = vld [vmem:[#allocation2 + $0x349] sm:$0xff]  ;;  %8134 = vst [vmem:[#allocation4 + $0x1a0] sm:$0xff] %v15274_v19  ;;  %8137 = vst [vmem:[#allocation4 + $0x1b8] sm:$0x1] %v15274_v19 }
 0x202   :  { %14464 = vmatmul.mubr.msk.f32.gmra.mrb[56].mxu0 %vm245_vm0, %v6130_v58  ;;  %14074 = vmatprep.mubr.msk.f32.mxu1 %vm245_vm0, %v16744_v13  ;;  %v6136_v13 = vld [vmem:[#allocation2 + $0x351] sm:$0xff]  ;;  %8138 = vst [vmem:[#allocation4 + $0x1c0] sm:$0xff] %v15274_v19  ;;  %8141 = vst [vmem:[#allocation4 + $0x1d8] sm:$0x1] %v15274_v19 }
 0x203   :  { %14466 = vmatprep.mubr.msk.f32.mxu0 %vm245_vm0, %v6131_v62  ;;  %8142 = vst [vmem:[#allocation4 + $0x1e0] sm:$0xff] %v15274_v19  ;;  %8145 = vst [vmem:[#allocation4 + $0x1f8] sm:$0x1] %v15274_v19  ;;  %v6957_v58 = vld [vmem:[#allocation2 + $0x2aa] sm:$0xff]  ;;  %v6958_v62 = vld [vmem:[#allocation2 + $0x2ba] sm:$0xff] }
 0x204   :  { %8146 = vst [vmem:[#allocation4 + $0x200] sm:$0xff] %v15274_v19  ;;  %8149 = vst [vmem:[#allocation4 + $0x218] sm:$0x1] %v15274_v19 }
 0x205   :  { %14075 = vmatmul.mubr.msk.f32.gmra.mrb[58].mxu1 %vm245_vm0, %v16754_v17  ;;  %v6908_v17 = vld [vmem:[#allocation2 + $0x32] sm:$0xff]  ;;  %8150 = vst [vmem:[#allocation4 + $0x220] sm:$0xff] %v15274_v19  ;;  %8151 = vst [vmem:[#allocation4 + $0x228] sm:$0xff] %v15274_v19 }
 0x206   :  { %14467 = vmatmul.mubr.msk.f32.gmra.mrb[58].mxu0 %vm245_vm0, %v6132_v0  ;;  %14077 = vmatprep.mubr.msk.f32.mxu1 %vm245_vm0, %v16756_v23  ;;  %v6909_v23 = vld [vmem:[#allocation2 + $0x3a] sm:$0xff]  ;;  %8152 = vst [vmem:[#allocation4 + $0x230] sm:$0xff] %v15274_v19  ;;  %8153 = vst [vmem:[#allocation4 + $0x238] sm:$0x1] %v15274_v19 }
 0x207   :  { %14469 = vmatprep.mubr.msk.f32.mxu0 %vm245_vm0, %v6133_v2  ;;  %8154 = vst [vmem:[#allocation4 + $0x240] sm:$0xff] %v15274_v19  ;;  %8155 = vst [vmem:[#allocation4 + $0x248] sm:$0xff] %v15274_v19 }
 0x208   :  { %8156 = vst [vmem:[#allocation4 + $0x250] sm:$0xff] %v15274_v19  ;;  %8157 = vst [vmem:[#allocation4 + $0x258] sm:$0x1] %v15274_v19 }
 0x209   :  { %14078 = vmatmul.mubr.msk.f32.gmra.mrb[60].mxu1 %vm245_vm0, %v16766_v28  ;;  %v6911_v28 = vld [vmem:[#allocation2 + $0x52] sm:$0xff]  ;;  %8158 = vst [vmem:[#allocation4 + $0x260] sm:$0xff] %v15274_v19  ;;  %8161 = vst [vmem:[#allocation4 + $0x278] sm:$0x1] %v15274_v19 }
 0x20a   :  { %14470 = vmatmul.mubr.msk.f32.gmra.mrb[60].mxu0 %vm245_vm0, %v6134_v4  ;;  %14080 = vmatprep.mubr.msk.f32.mxu1 %vm245_vm0, %v16771_v15  ;;  %v6913_v15 = vld [vmem:[#allocation2 + $0x6a] sm:$0xff]  ;;  %8162 = vst [vmem:[#allocation4 + $0x280] sm:$0xff] %v15274_v19  ;;  %8165 = vst [vmem:[#allocation4 + $0x298] sm:$0x1] %v15274_v19  ;;  %v6959_v4 = vld [vmem:[#allocation2 + $0x2c2] sm:$0xff] }
 0x20b   :  { %14472 = vmatprep.mubr.msk.f32.mxu0 %vm245_vm0, %v6135_v9  ;;  %8166 = vst [vmem:[#allocation4 + $0x2a0] sm:$0xff] %v15274_v19  ;;  %8169 = vst [vmem:[#allocation4 + $0x2b8] sm:$0x1] %v15274_v19  ;;  %v6960_v9 = vld [vmem:[#allocation2 + $0x2d2] sm:$0xff] }
 0x20c   :  { %8170 = vst [vmem:[#allocation4 + $0x2c0] sm:$0xff] %v15274_v19  ;;  %8173 = vst [vmem:[#allocation4 + $0x2d8] sm:$0x1] %v15274_v19 }
 0x20d   :  { %14081 = vmatmul.mubr.msk.f32.gmra.mrb[62].mxu1 %vm245_vm0, %v20263_v48  ;;  %8174 = vst [vmem:[#allocation4 + $0x2e0] sm:$0xff] %v15274_v19  ;;  %8177 = vst [vmem:[#allocation4 + $0x2f8] sm:$0x1] %v15274_v19  ;;  %v6961_v48 = vld [vmem:[#allocation2 + $0x2da] sm:$0xff] }
 0x20e   :  { %14473 = vmatmul.mubr.msk.f32.gmra.mrb[62].mxu0 %vm245_vm0, %v6136_v13  ;;  %8178 = vst [vmem:[#allocation4 + $0x300] sm:$0xff] %v15274_v19  ;;  %8181 = vst [vmem:[#allocation4 + $0x318] sm:$0x1] %v15274_v19 }
 0x20f   :  { %14477 = vmatprep.mubr.msk.f32.mxu0 %vm245_vm0, %v6908_v17  ;;  %8182 = vst [vmem:[#allocation4 + $0x320] sm:$0xff] %v15274_v19  ;;  %8185 = vst [vmem:[#allocation4 + $0x338] sm:$0x1] %v15274_v19 }
 0x210   :  { %8186 = vst [vmem:[#allocation4 + $0x340] sm:$0xff] %v15274_v19  ;;  %8189 = vst [vmem:[#allocation4 + $0x358] sm:$0x1] %v15274_v19 }
 0x211   :  { %8190 = vst [vmem:[#allocation4 + $0x360] sm:$0xff] %v15274_v19  ;;  %8193 = vst [vmem:[#allocation4 + $0x378] sm:$0x1] %v15274_v19 }
 0x212   :  { %14478 = vmatmul.mubr.msk.f32.vlgmr.msra.gmra.mrb[0].mxu0 %vm245_vm0, %v6909_v23  ;;  %8194 = vst [vmem:[#allocation4 + $0x380] sm:$0xff] %v15274_v19  ;;  %8197 = vst [vmem:[#allocation4 + $0x398] sm:$0x1] %v15274_v19  ;;  %v6962_v23 = vld [vmem:[#allocation2 + $0x2ea] sm:$0xff] }
 0x213   :  { %14480 = vmatprep.mubr.msk.f32.mxu0 %vm245_vm0, %v6910_v1  ;;  %8198 = vst [vmem:[#allocation4 + $0x3a0] sm:$0xff] %v15274_v19  ;;  %8201 = vst [vmem:[#allocation4 + $0x3b8] sm:$0x1] %v15274_v19 }
 0x214   :  { %8202 = vst [vmem:[#allocation4 + $0x3c0] sm:$0xff] %v15274_v19  ;;  %8205 = vst [vmem:[#allocation4 + $0x3d8] sm:$0x1] %v15274_v19 }
 0x215   :  { %8206 = vst [vmem:[#allocation4 + $0x3e0] sm:$0xff] %v15274_v19  ;;  %8209 = vst [vmem:[#allocation4 + $0x3f8] sm:$0x1] %v15274_v19 }
 0x216   :  { %14481 = vmatmul.mubr.msk.f32.gmra.mrb[2].mxu0 %vm245_vm0, %v6911_v28  ;;  %8210 = vst [vmem:[#allocation4 + $0x400] sm:$0xff] %v15274_v19  ;;  %8213 = vst [vmem:[#allocation4 + $0x418] sm:$0x1] %v15274_v19 }
 0x217   :  { %14483 = vmatprep.mubr.msk.f32.mxu0 %vm245_vm0, %v6912_v46  ;;  %8214 = vst [vmem:[#allocation4 + $0x420] sm:$0xff] %v15274_v19  ;;  %8217 = vst [vmem:[#allocation4 + $0x438] sm:$0x1] %v15274_v19  ;;  %v6963_v46 = vld [vmem:[#allocation2 + $0x2f2] sm:$0xff] }
 0x218   :  { %8218 = vst [vmem:[#allocation4 + $0x440] sm:$0xff] %v15274_v19  ;;  %8221 = vst [vmem:[#allocation4 + $0x458] sm:$0x1] %v15274_v19 }
 0x219   :  { %8222 = vst [vmem:[#allocation4 + $0x460] sm:$0xff] %v15274_v19  ;;  %8223 = vst [vmem:[#allocation4 + $0x468] sm:$0xff] %v15274_v19 }
 0x21a   :  { %14484 = vmatmul.mubr.msk.f32.gmra.mrb[4].mxu0 %vm245_vm0, %v6913_v15  ;;  %8224 = vst [vmem:[#allocation4 + $0x470] sm:$0xff] %v15274_v19  ;;  %8225 = vst [vmem:[#allocation4 + $0x478] sm:$0x1] %v15274_v19  ;;  %v6964_v15 = vld [vmem:[#allocation2 + $0x302] sm:$0xff] }
 0x21b   :  { %14486 = vmatprep.mubr.msk.f32.mxu0 %vm245_vm0, %v6914_v11 }
 0x21e   :  { %14487 = vmatmul.mubr.msk.f32.gmra.mrb[6].mxu0 %vm245_vm0, %v6915_v59 }
 0x21f   :  { %14489 = vmatprep.mubr.msk.f32.mxu0 %vm245_vm0, %v6916_v3  ;;  %v6965_v3 = vld [vmem:[#allocation2 + $0x30a] sm:$0xff] }
 0x222   :  { %14490 = vmatmul.mubr.msk.f32.gmra.mrb[8].mxu0 %vm245_vm0, %v6917_v32  ;;  %v6966_v32 = vld [vmem:[#allocation2 + $0x31a] sm:$0xff] }
 0x223   :  { %14492 = vmatprep.mubr.msk.f32.mxu0 %vm245_vm0, %v6918_v24 }
 0x226   :  { %14493 = vmatmul.mubr.msk.f32.gmra.mrb[10].mxu0 %vm245_vm0, %v6919_v18 }
 0x227   :  { %14495 = vmatprep.mubr.msk.f32.mxu0 %vm245_vm0, %v6920_v21  ;;  %v6967_v21 = vld [vmem:[#allocation2 + $0x322] sm:$0xff] }
 0x22a   :  { %14496 = vmatmul.mubr.msk.f32.gmra.mrb[12].mxu0 %vm245_vm0, %v6921_v14  ;;  %v6968_v14 = vld [vmem:[#allocation2 + $0x332] sm:$0xff] }
 0x22b   :  { %14498 = vmatprep.mubr.msk.f32.mxu0 %vm245_vm0, %v6922_v37 }
 0x22e   :  { %14499 = vmatmul.mubr.msk.f32.gmra.mrb[14].mxu0 %vm245_vm0, %v6923_v42 }
 0x22f   :  { %14501 = vmatprep.mubr.msk.f32.mxu0 %vm245_vm0, %v6924_v55  ;;  %v6969_v55 = vld [vmem:[#allocation2 + $0x33a] sm:$0xff] }
 0x232   :  { %14502 = vmatmul.mubr.msk.f32.gmra.mrb[16].mxu0 %vm245_vm0, %v6925_v56  ;;  %v6970_v56 = vld [vmem:[#allocation2 + $0x34a] sm:$0xff] }
 0x233   :  { %14504 = vmatprep.mubr.msk.f32.mxu0 %vm245_vm0, %v6926_v35 }
 0x236   :  { %14505 = vmatmul.mubr.msk.f32.gmra.mrb[18].mxu0 %vm245_vm0, %v6927_v63 }
 0x237   :  { %14507 = vmatprep.mubr.msk.f32.mxu0 %vm245_vm0, %v6928_v30  ;;  %v6971_v30 = vld [vmem:[#allocation2 + $0x352] sm:$0xff] }
 0x23a   :  { %14508 = vmatmul.mubr.msk.f32.gmra.mrb[20].mxu0 %vm245_vm0, %v6929_v31 }
 0x23b   :  { %14510 = vmatprep.mubr.msk.f32.mxu0 %vm245_vm0, %v6930_v43 }
 0x23e   :  { %14511 = vmatmul.mubr.msk.f32.gmra.mrb[22].mxu0 %vm245_vm0, %v6931_v53 }
 0x23f   :  { %14513 = vmatprep.mubr.msk.f32.mxu0 %vm245_vm0, %v6932_v7 }
 0x242   :  { %14514 = vmatmul.mubr.msk.f32.gmra.mrb[24].mxu0 %vm245_vm0, %v6933_v20 }
 0x243   :  { %14516 = vmatprep.mubr.msk.f32.mxu0 %vm245_vm0, %v6934_v60 }
 0x246   :  { %14517 = vmatmul.mubr.msk.f32.gmra.mrb[26].mxu0 %vm245_vm0, %v6935_v38 }
 0x247   :  { %14519 = vmatprep.mubr.msk.f32.mxu0 %vm245_vm0, %v6936_v6 }
 0x24a   :  { %14520 = vmatmul.mubr.msk.f32.gmra.mrb[28].mxu0 %vm245_vm0, %v6937_v41 }
 0x24b   :  { %14522 = vmatprep.mubr.msk.f32.mxu0 %vm245_vm0, %v6938_v5 }
 0x24e   :  { %14523 = vmatmul.mubr.msk.f32.gmra.mrb[30].mxu0 %vm245_vm0, %v6939_v8 }
 0x24f   :  { %14525 = vmatprep.mubr.msk.f32.mxu0 %vm245_vm0, %v6940_v12 }
 0x252   :  { %14526 = vmatmul.mubr.msk.f32.gmra.mrb[32].mxu0 %vm245_vm0, %v6941_v57 }
 0x253   :  { %14528 = vmatprep.mubr.msk.f32.mxu0 %vm245_vm0, %v6942_v44 }
 0x256   :  { %14529 = vmatmul.mubr.msk.f32.gmra.mrb[34].mxu0 %vm245_vm0, %v6943_v50 }
 0x257   :  { %14531 = vmatprep.mubr.msk.f32.mxu0 %vm245_vm0, %v6944_v29 }
 0x25a   :  { %14532 = vmatmul.mubr.msk.f32.gmra.mrb[36].mxu0 %vm245_vm0, %v6945_v25 }
 0x25b   :  { %14534 = vmatprep.mubr.msk.f32.mxu0 %vm245_vm0, %v6946_v33 }
 0x25e   :  { %14535 = vmatmul.mubr.msk.f32.gmra.mrb[38].mxu0 %vm245_vm0, %v6947_v61 }
 0x25f   :  { %14537 = vmatprep.mubr.msk.f32.mxu0 %vm245_vm0, %v6948_v16 }
 0x262   :  { %14538 = vmatmul.mubr.msk.f32.gmra.mrb[40].mxu0 %vm245_vm0, %v6949_v22 }
 0x263   :  { %14540 = vmatprep.mubr.msk.f32.mxu0 %vm245_vm0, %v6950_v10 }
 0x264   :  { %v17026_v26 = vpop.f32.mrb[0].mxu1 }
 0x265   :  { %v17028_v34 = vpop.f32.mrb[1].mxu1 }
 0x266   :  { %14541 = vmatmul.mubr.msk.f32.gmra.mrb[42].mxu0 %vm245_vm0, %v6951_v27 }
 0x267   :  { %14543 = vmatprep.mubr.msk.f32.mxu0 %vm245_vm0, %v6952_v39 }
 0x268   :  { %v17114_v51 = vpop.f32.mrb[2].mxu1 }
 0x269   :  { %v17116_v45 = vpop.f32.mrb[3].mxu1 }
 0x26a   :  { %14544 = vmatmul.mubr.msk.f32.gmra.mrb[44].mxu0 %vm245_vm0, %v17032_v40 }
 0x26b   :  { %14546 = vmatprep.mubr.msk.f32.mxu0 %vm245_vm0, %v6954_v36 }
 0x26c   :  { %v17121_v52 = vpop.f32.mrb[4].mxu1 }
 0x26d   :  { %v17123_v54 = vpop.f32.mrb[5].mxu1 }
 0x26e   :  { %14547 = vmatmul.mubr.msk.f32.gmra.mrb[46].mxu0 %vm245_vm0, %v6955_v47 }
 0x26f   :  { %14549 = vmatprep.mubr.msk.f32.mxu0 %vm245_vm0, %v6956_v49 }
 0x270   :  { %v17127_v0 = vpop.f32.mrb[6].mxu1 }
 0x271   :  { %v17129_v2 = vpop.f32.mrb[7].mxu1 }
 0x272   :  { %14550 = vmatmul.mubr.msk.f32.gmra.mrb[48].mxu0 %vm245_vm0, %v6957_v58 }
 0x273   :  { %14552 = vmatprep.mubr.msk.f32.mxu0 %vm245_vm0, %v6958_v62 }
 0x274   :  { %v17133_v13 = vpop.f32.mrb[8].mxu1 }
 0x275   :  { %v17135_v17 = vpop.f32.mrb[9].mxu1 }
 0x276   :  { %14553 = vmatmul.mubr.msk.f32.gmra.mrb[50].mxu0 %vm245_vm0, %v6959_v4 }
 0x277   :  { %14555 = vmatprep.mubr.msk.f32.mxu0 %vm245_vm0, %v6960_v9 }
 0x278   :  { %v17139_v1 = vpop.f32.mrb[10].mxu1 }
 0x279   :  { %v17141_v28 = vpop.f32.mrb[11].mxu1 }
 0x27a   :  { %14556 = vmatmul.mubr.msk.f32.gmra.mrb[52].mxu0 %vm245_vm0, %v6961_v48 }
 0x27b   :  { %14558 = vmatprep.mubr.msk.f32.mxu0 %vm245_vm0, %v6962_v23 }
 0x27c   :  { %v17145_v11 = vpop.f32.mrb[12].mxu1 }
 0x27d   :  { %v17147_v59 = vpop.f32.mrb[13].mxu1 }
 0x27e   :  { %14559 = vmatmul.mubr.msk.f32.gmra.mrb[54].mxu0 %vm245_vm0, %v6963_v46 }
 0x27f   :  { %14561 = vmatprep.mubr.msk.f32.mxu0 %vm245_vm0, %v6964_v15 }
 0x280   :  { %v17151_v24 = vpop.f32.mrb[14].mxu1 }
 0x281   :  { %v17153_v18 = vpop.f32.mrb[15].mxu1 }
 0x282   :  { %14562 = vmatmul.mubr.msk.f32.gmra.mrb[56].mxu0 %vm245_vm0, %v6965_v3 }
 0x283   :  { %14564 = vmatprep.mubr.msk.f32.mxu0 %vm245_vm0, %v6966_v32 }
 0x284   :  { %v17157_v37 = vpop.f32.mrb[16].mxu1 }
 0x285   :  { %v17159_v42 = vpop.f32.mrb[17].mxu1 }
 0x286   :  { %14565 = vmatmul.mubr.msk.f32.gmra.mrb[58].mxu0 %vm245_vm0, %v6967_v21 }
 0x287   :  { %14567 = vmatprep.mubr.msk.f32.mxu0 %vm245_vm0, %v6968_v14 }
 0x288   :  { %v17163_v35 = vpop.f32.mrb[18].mxu1 }
 0x289   :  { %v17165_v63 = vpop.f32.mrb[19].mxu1 }
 0x28a   :  { %14568 = vmatmul.mubr.msk.f32.gmra.mrb[60].mxu0 %vm245_vm0, %v6969_v55 }
 0x28b   :  { %14570 = vmatprep.mubr.msk.f32.mxu0 %vm245_vm0, %v6970_v56 }
 0x28c   :  { %v17169_v31 = vpop.f32.mrb[20].mxu1 }
 0x28d   :  { %v17171_v43 = vpop.f32.mrb[21].mxu1 }
 0x28e   :  { %14571 = vmatmul.mubr.msk.f32.gmra.mrb[62].mxu0 %vm245_vm0, %v6971_v30 }
 0x290   :  { %v17174_v53 = vpop.f32.mrb[22].mxu1 }
 0x291   :  { %v17176_v7 = vpop.f32.mrb[23].mxu1 }
 0x294   :  { %v17178_v20 = vpop.f32.mrb[24].mxu1 }
 0x295   :  { %v17180_v60 = vpop.f32.mrb[25].mxu1 }
 0x298   :  { %v17182_v38 = vpop.f32.mrb[26].mxu1 }
 0x299   :  { %v17184_v6 = vpop.f32.mrb[27].mxu1 }
 0x29c   :  { %v17186_v41 = vpop.f32.mrb[28].mxu1 }
 0x29d   :  { %v17188_v5 = vpop.f32.mrb[29].mxu1 }
 0x2a0   :  { %v17190_v8 = vpop.f32.mrb[30].mxu1 }
 0x2a1   :  { %v17192_v12 = vpop.f32.mrb[31].mxu1 }
 0x2a4   :  { %v17194_v57 = vpop.f32.mrb[32].mxu1 }
 0x2a5   :  { %v17196_v44 = vpop.f32.mrb[33].mxu1 }
 0x2a8   :  { %v17198_v50 = vpop.f32.mrb[34].mxu1 }
 0x2a9   :  { %v17200_v29 = vpop.f32.mrb[35].mxu1 }
 0x2ac   :  { %v17202_v25 = vpop.f32.mrb[36].mxu1 }
 0x2ad   :  { %v17204_v33 = vpop.f32.mrb[37].mxu1 }
 0x2b0   :  { %v17206_v61 = vpop.f32.mrb[38].mxu1 }
 0x2b1   :  { %v17208_v16 = vpop.f32.mrb[39].mxu1 }
 0x2b4   :  { %v17210_v22 = vpop.f32.mrb[40].mxu1 }
 0x2b5   :  { %v17212_v10 = vpop.f32.mrb[41].mxu1 }
 0x2b8   :  { %v17214_v27 = vpop.f32.mrb[42].mxu1 }
 0x2b9   :  { %v17216_v39 = vpop.f32.mrb[43].mxu1 }
 0x2bc   :  { %v17218_v40 = vpop.f32.mrb[44].mxu1 }
 0x2bd   :  { %v17220_v19 = vpop.f32.mrb[45].mxu1 }
 0x2c0   :  { %v17222_v36 = vpop.f32.mrb[46].mxu1 }
 0x2c1   :  { %v17224_v47 = vpop.f32.mrb[47].mxu1 }
 0x2c4   :  { %v17226_v49 = vpop.f32.mrb[48].mxu1 }
 0x2c5   :  { %v17228_v58 = vpop.f32.mrb[49].mxu1 }
 0x2c8   :  { %v17230_v62 = vpop.f32.mrb[50].mxu1 }
 0x2c9   :  { %v17232_v4 = vpop.f32.mrb[51].mxu1 }
 0x2cc   :  { %v17234_v9 = vpop.f32.mrb[52].mxu1 }
 0x2cd   :  { %v17236_v48 = vpop.f32.mrb[53].mxu1 }
 0x2ce   :  { %20264 = vst [vmem:[#allocation11_spill] sm:$0xff] %v17236_v48 }
 0x2d0   :  { %v17238_v23 = vpop.f32.mrb[54].mxu1 }
 0x2d1   :  { %20265 = vst [vmem:[#allocation12_spill] sm:$0xff] %v17238_v23  ;;  %v17240_v46 = vpop.f32.mrb[55].mxu1 }
 0x2d2   :  { %20266 = vst [vmem:[#allocation7_spill] sm:$0xff] %v17240_v46 }
 0x2d4   :  { %v17242_v15 = vpop.f32.mrb[56].mxu1 }
 0x2d5   :  { %20267 = vst [vmem:[#allocation8_spill] sm:$0xff] %v17242_v15  ;;  %v17244_v3 = vpop.f32.mrb[57].mxu1 }
 0x2d6   :  { %20268 = vst [vmem:[#allocation9_spill] sm:$0xff] %v17244_v3 }
 0x2d8   :  { %v17246_v32 = vpop.f32.mrb[58].mxu1 }
 0x2d9   :  { %20269 = vst [vmem:[#allocation13_spill] sm:$0xff] %v17246_v32  ;;  %v17248_v21 = vpop.f32.mrb[59].mxu1 }
 0x2da   :  { %20270 = vst [vmem:[#allocation14_spill] sm:$0xff] %v17248_v21 }
 0x2dc   :  { %v17250_v14 = vpop.f32.mrb[60].mxu1 }
 0x2dd   :  { %20271 = vst [vmem:[#allocation10_spill] sm:$0xff] %v17250_v14  ;;  %v17252_v55 = vpop.f32.mrb[61].mxu1 }
 0x2de   :  { %20272 = vst [vmem:[#allocation15_spill] sm:$0xff] %v17252_v55 }
 0x2e0   :  { %v17254_v56 = vpop.f32.mrb[62].mxu1 }
 0x2e1   :  { %20273 = vst [vmem:[#allocation16_spill] sm:$0xff] %v17254_v56  ;;  %v17256_v30 = vpop.f32.mrb[63].mxu1 }
 0x2e2   :  { %20274 = vst [vmem:[#allocation17_spill] sm:$0xff] %v17256_v30 }
 0x2e5   :  { %v14479_v48 = vpop.f32.mrb[0].mxu0 }
 0x2e6   :  { %v17259_v23 = vadd.f32 %v14479_v48, %v17026_v26  ;;  %v7232_v46 = vpop.f32.mrb[1].mxu0 }
 0x2e7   :  { %v17262_v15 = vadd.f32 %v7232_v46, %v17028_v34 }
 0x2e8   :  { %20275 = vst [vmem:[#allocation18_spill] sm:$0xff] %v17259_v23 }
 0x2e9   :  { %v14482_v3 = vpop.f32.mrb[2].mxu0  ;;  %v7807_v55 = vadd.f32 %v17262_v15, %v17259_v23 }
 0x2ea   :  { %v17265_v32 = vadd.f32 %v14482_v3, %v17114_v51  ;;  %v7242_v21 = vpop.f32.mrb[3].mxu0 }
 0x2eb   :  { %v17270_v56 = vadd.f32 %v7242_v21, %v17116_v45 }
 0x2ec   :  { %20276 = vst [vmem:[#allocation19_spill] sm:$0xff] %v17265_v32 }
 0x2ed   :  { %20277 = vst [vmem:[#allocation20_spill] sm:$0xff] %v17270_v56  ;;  %v7808_v30 = vadd.f32 %v17270_v56, %v7807_v55  ;;  %v14485_v14 = vpop.f32.mrb[4].mxu0 }
 0x2ee   :  { %v17274_v26 = vadd.f32 %v14485_v14, %v17121_v52  ;;  %v7252_v48 = vpop.f32.mrb[5].mxu0 }
 0x2ef   :  { %v7809_v34 = vadd.f32 %v17265_v32, %v7808_v30  ;;  %v17278_v46 = vadd.f32 %v7252_v48, %v17123_v54 }
 0x2f1   :  { %20278 = vst [vmem:[#allocation21_spill] sm:$0xff] %v17278_v46  ;;  %v7810_v51 = vadd.f32 %v17278_v46, %v7809_v34  ;;  %v14488_v3 = vpop.f32.mrb[6].mxu0 }
 0x2f2   :  { %v17282_v23 = vadd.f32 %v14488_v3, %v17127_v0  ;;  %v7262_v45 = vpop.f32.mrb[7].mxu0 }
 0x2f3   :  { %v17285_v21 = vadd.f32 %v7262_v45, %v17129_v2  ;;  %v7811_v55 = vadd.f32 %v17274_v26, %v7810_v51 }
 0x2f5   :  { %v7812_v52 = vadd.f32 %v17285_v21, %v7811_v55  ;;  %v14491_v14 = vpop.f32.mrb[8].mxu0 }
 0x2f6   :  { %v17290_v30 = vadd.f32 %v14491_v14, %v17133_v13  ;;  %v7272_v54 = vpop.f32.mrb[9].mxu0 }
 0x2f7   :  { %v17293_v48 = vadd.f32 %v7272_v54, %v17135_v17  ;;  %v7813_v34 = vadd.f32 %v17282_v23, %v7812_v52 }
 0x2f9   :  { %v7814_v0 = vadd.f32 %v17293_v48, %v7813_v34  ;;  %v14494_v3 = vpop.f32.mrb[10].mxu0 }
 0x2fa   :  { %v17298_v2 = vadd.f32 %v14494_v3, %v17139_v1  ;;  %v7282_v45 = vpop.f32.mrb[11].mxu0 }
 0x2fb   :  { %v17301_v51 = vadd.f32 %v7282_v45, %v17141_v28  ;;  %v7815_v55 = vadd.f32 %v17290_v30, %v7814_v0 }
 0x2fd   :  { %v7816_v13 = vadd.f32 %v17301_v51, %v7815_v55  ;;  %v14497_v14 = vpop.f32.mrb[12].mxu0 }
 0x2fe   :  { %v17306_v17 = vadd.f32 %v14497_v14, %v17145_v11  ;;  %v7292_v54 = vpop.f32.mrb[13].mxu0 }
 0x2ff   :  { %v17309_v52 = vadd.f32 %v7292_v54, %v17147_v59  ;;  %v7817_v34 = vadd.f32 %v17298_v2, %v7816_v13 }
 0x301   :  { %v7818_v1 = vadd.f32 %v17309_v52, %v7817_v34  ;;  %v14500_v3 = vpop.f32.mrb[14].mxu0 }
 0x302   :  { %v17314_v28 = vadd.f32 %v14500_v3, %v17151_v24  ;;  %v7302_v45 = vpop.f32.mrb[15].mxu0 }
 0x303   :  { %v17317_v0 = vadd.f32 %v7302_v45, %v17153_v18  ;;  %v7819_v55 = vadd.f32 %v17306_v17, %v7818_v1 }
 0x305   :  { %v7820_v11 = vadd.f32 %v17317_v0, %v7819_v55  ;;  %v14503_v14 = vpop.f32.mrb[16].mxu0 }
 0x306   :  { %v17322_v59 = vadd.f32 %v14503_v14, %v17157_v37  ;;  %v7312_v54 = vpop.f32.mrb[17].mxu0 }
 0x307   :  { %v17325_v13 = vadd.f32 %v7312_v54, %v17159_v42  ;;  %v7821_v34 = vadd.f32 %v17314_v28, %v7820_v11 }
 0x309   :  { %v7822_v24 = vadd.f32 %v17325_v13, %v7821_v34  ;;  %v14506_v3 = vpop.f32.mrb[18].mxu0 }
 0x30a   :  { %v17330_v18 = vadd.f32 %v14506_v3, %v17163_v35  ;;  %v7322_v45 = vpop.f32.mrb[19].mxu0 }
 0x30b   :  { %v17333_v1 = vadd.f32 %v7322_v45, %v17165_v63  ;;  %v7823_v55 = vadd.f32 %v17322_v59, %v7822_v24 }
 0x30d   :  { %v7824_v37 = vadd.f32 %v17333_v1, %v7823_v55  ;;  %v14509_v14 = vpop.f32.mrb[20].mxu0 }
 0x30e   :  { %v17338_v42 = vadd.f32 %v14509_v14, %v17169_v31  ;;  %v7332_v54 = vpop.f32.mrb[21].mxu0 }
 0x30f   :  { %v17341_v11 = vadd.f32 %v7332_v54, %v17171_v43  ;;  %v7825_v34 = vadd.f32 %v17330_v18, %v7824_v37 }
 0x311   :  { %v7826_v35 = vadd.f32 %v17341_v11, %v7825_v34  ;;  %v14512_v3 = vpop.f32.mrb[22].mxu0 }
 0x312   :  { %v17346_v63 = vadd.f32 %v14512_v3, %v17174_v53  ;;  %v7342_v45 = vpop.f32.mrb[23].mxu0 }
 0x313   :  { %v17349_v24 = vadd.f32 %v7342_v45, %v17176_v7  ;;  %v7827_v55 = vadd.f32 %v17338_v42, %v7826_v35 }
 0x315   :  { %v7828_v31 = vadd.f32 %v17349_v24, %v7827_v55  ;;  %v14515_v14 = vpop.f32.mrb[24].mxu0 }
 0x316   :  { %v17354_v43 = vadd.f32 %v14515_v14, %v17178_v20  ;;  %v7352_v54 = vpop.f32.mrb[25].mxu0 }
 0x317   :  { %v17357_v37 = vadd.f32 %v7352_v54, %v17180_v60  ;;  %v7829_v34 = vadd.f32 %v17346_v63, %v7828_v31 }
 0x319   :  { %v7830_v53 = vadd.f32 %v17357_v37, %v7829_v34  ;;  %v14518_v3 = vpop.f32.mrb[26].mxu0 }
 0x31a   :  { %v17362_v7 = vadd.f32 %v14518_v3, %v17182_v38  ;;  %v7362_v45 = vpop.f32.mrb[27].mxu0 }
 0x31b   :  { %v17365_v35 = vadd.f32 %v7362_v45, %v17184_v6  ;;  %v7831_v55 = vadd.f32 %v17354_v43, %v7830_v53 }
 0x31d   :  { %v7832_v20 = vadd.f32 %v17365_v35, %v7831_v55  ;;  %v14521_v14 = vpop.f32.mrb[28].mxu0 }
 0x31e   :  { %v17370_v60 = vadd.f32 %v14521_v14, %v17186_v41  ;;  %v7372_v54 = vpop.f32.mrb[29].mxu0 }
 0x31f   :  { %v17373_v31 = vadd.f32 %v7372_v54, %v17188_v5  ;;  %v7833_v34 = vadd.f32 %v17362_v7, %v7832_v20 }
 0x321   :  { %v7834_v38 = vadd.f32 %v17373_v31, %v7833_v34  ;;  %v14524_v3 = vpop.f32.mrb[30].mxu0 }
 0x322   :  { %v17378_v6 = vadd.f32 %v14524_v3, %v17190_v8  ;;  %v7382_v45 = vpop.f32.mrb[31].mxu0 }
 0x323   :  { %v17381_v53 = vadd.f32 %v7382_v45, %v17192_v12  ;;  %v7835_v55 = vadd.f32 %v17370_v60, %v7834_v38 }
 0x325   :  { %v7836_v41 = vadd.f32 %v17381_v53, %v7835_v55  ;;  %v14527_v14 = vpop.f32.mrb[32].mxu0 }
 0x326   :  { %v17386_v5 = vadd.f32 %v14527_v14, %v17194_v57  ;;  %v7392_v54 = vpop.f32.mrb[33].mxu0 }
 0x327   :  { %v17389_v20 = vadd.f32 %v7392_v54, %v17196_v44  ;;  %v7837_v34 = vadd.f32 %v17378_v6, %v7836_v41 }
 0x329   :  { %v7838_v8 = vadd.f32 %v17389_v20, %v7837_v34  ;;  %v14530_v3 = vpop.f32.mrb[34].mxu0 }
 0x32a   :  { %v17394_v12 = vadd.f32 %v14530_v3, %v17198_v50  ;;  %v7402_v45 = vpop.f32.mrb[35].mxu0 }
 0x32b   :  { %v17397_v38 = vadd.f32 %v7402_v45, %v17200_v29  ;;  %v7839_v55 = vadd.f32 %v17386_v5, %v7838_v8 }
 0x32d   :  { %v7840_v57 = vadd.f32 %v17397_v38, %v7839_v55  ;;  %v14533_v14 = vpop.f32.mrb[36].mxu0 }
 0x32e   :  { %v17402_v44 = vadd.f32 %v14533_v14, %v17202_v25  ;;  %v7412_v54 = vpop.f32.mrb[37].mxu0 }
 0x32f   :  { %v17405_v41 = vadd.f32 %v7412_v54, %v17204_v33  ;;  %v7841_v34 = vadd.f32 %v17394_v12, %v7840_v57 }
 0x331   :  { %v7842_v50 = vadd.f32 %v17405_v41, %v7841_v34  ;;  %v14536_v3 = vpop.f32.mrb[38].mxu0 }
 0x332   :  { %v17410_v29 = vadd.f32 %v14536_v3, %v17206_v61  ;;  %v7422_v45 = vpop.f32.mrb[39].mxu0 }
 0x333   :  { %v17413_v8 = vadd.f32 %v7422_v45, %v17208_v16  ;;  %v7843_v55 = vadd.f32 %v17402_v44, %v7842_v50 }
 0x335   :  { %v7844_v25 = vadd.f32 %v17413_v8, %v7843_v55  ;;  %v14539_v14 = vpop.f32.mrb[40].mxu0 }
 0x336   :  { %v17418_v33 = vadd.f32 %v14539_v14, %v17210_v22  ;;  %v7432_v54 = vpop.f32.mrb[41].mxu0 }
 0x337   :  { %v17421_v57 = vadd.f32 %v7432_v54, %v17212_v10  ;;  %v7845_v34 = vadd.f32 %v17410_v29, %v7844_v25 }
 0x338   :  { %20279 = vst [vmem:[#allocation22_spill] sm:$0xff] %v17418_v33 }
 0x339   :  { %20280 = vst [vmem:[#allocation23_spill] sm:$0xff] %v17421_v57  ;;  %v7846_v61 = vadd.f32 %v17421_v57, %v7845_v34  ;;  %v14542_v3 = vpop.f32.mrb[42].mxu0 }
 0x33a   :  { %v17426_v16 = vadd.f32 %v14542_v3, %v17214_v27  ;;  %v7442_v45 = vpop.f32.mrb[43].mxu0 }
 0x33b   :  { %v17429_v50 = vadd.f32 %v7442_v45, %v17216_v39  ;;  %v7847_v55 = vadd.f32 %v17418_v33, %v7846_v61 }
 0x33c   :  { %20281 = vst [vmem:[#allocation24_spill] sm:$0xff] %v17426_v16 }
 0x33d   :  { %20282 = vst [vmem:[#allocation25_spill] sm:$0xff] %v17429_v50  ;;  %v7848_v22 = vadd.f32 %v17429_v50, %v7847_v55  ;;  %v14545_v14 = vpop.f32.mrb[44].mxu0 }
 0x33e   :  { %v17434_v10 = vadd.f32 %v14545_v14, %v17218_v40  ;;  %v7452_v54 = vpop.f32.mrb[45].mxu0 }
 0x33f   :  { %v17437_v25 = vadd.f32 %v7452_v54, %v17220_v19  ;;  %v7849_v34 = vadd.f32 %v17426_v16, %v7848_v22 }
 0x340   :  { %20283 = vst [vmem:[#allocation26_spill] sm:$0xff] %v17434_v10 }
 0x341   :  { %20284 = vst [vmem:[#allocation27_spill] sm:$0xff] %v17437_v25  ;;  %v7850_v27 = vadd.f32 %v17437_v25, %v7849_v34  ;;  %v14548_v3 = vpop.f32.mrb[46].mxu0 }
 0x342   :  { %v17442_v39 = vadd.f32 %v14548_v3, %v17222_v36  ;;  %v7462_v45 = vpop.f32.mrb[47].mxu0 }
 0x343   :  { %v17445_v61 = vadd.f32 %v7462_v45, %v17224_v47  ;;  %v7851_v55 = vadd.f32 %v17434_v10, %v7850_v27 }
 0x344   :  { %20285 = vst [vmem:[#allocation28_spill] sm:$0xff] %v17442_v39 }
 0x345   :  { %20286 = vst [vmem:[#allocation29_spill] sm:$0xff] %v17445_v61  ;;  %v7852_v40 = vadd.f32 %v17445_v61, %v7851_v55  ;;  %v14551_v14 = vpop.f32.mrb[48].mxu0 }
 0x346   :  { %v17450_v19 = vadd.f32 %v14551_v14, %v17226_v49  ;;  %v7472_v54 = vpop.f32.mrb[49].mxu0 }
 0x347   :  { %v17453_v22 = vadd.f32 %v7472_v54, %v17228_v58  ;;  %v7853_v34 = vadd.f32 %v17442_v39, %v7852_v40  ;;  %v20292_v40 = vld [vmem:[#allocation11_spill] sm:$0xff] }
 0x348   :  { %20287 = vst [vmem:[#allocation30_spill] sm:$0xff] %v17450_v19 }
 0x349   :  { %20288 = vst [vmem:[#allocation31_spill] sm:$0xff] %v17453_v22  ;;  %v7854_v36 = vadd.f32 %v17453_v22, %v7853_v34  ;;  %v14554_v3 = vpop.f32.mrb[50].mxu0  ;;  %v20294_v22 = vld [vmem:[#allocation12_spill] sm:$0xff] }
 0x34a   :  { %v17458_v47 = vadd.f32 %v14554_v3, %v17230_v62  ;;  %v7482_v45 = vpop.f32.mrb[51].mxu0 }
 0x34b   :  { %v17461_v27 = vadd.f32 %v7482_v45, %v17232_v4  ;;  %v7855_v55 = vadd.f32 %v17450_v19, %v7854_v36  ;;  %v20296_v36 = vld [vmem:[#allocation7_spill] sm:$0xff] }
 0x34c   :  { %20289 = vst [vmem:[#allocation32_spill] sm:$0xff] %v17458_v47 }
 0x34d   :  { %20290 = vst [vmem:[#allocation33_spill] sm:$0xff] %v17461_v27  ;;  %v7856_v49 = vadd.f32 %v17461_v27, %v7855_v55  ;;  %v14557_v14 = vpop.f32.mrb[52].mxu0  ;;  %v20298_v27 = vld [vmem:[#allocation8_spill] sm:$0xff] }
 0x34e   :  { %v17466_v58 = vadd.f32 %v14557_v14, %v17234_v9  ;;  %v7492_v54 = vpop.f32.mrb[53].mxu0 }
 0x34f   :  { %v17469_v39 = vadd.f32 %v7492_v54, %v20292_v40  ;;  %v7857_v34 = vadd.f32 %v17458_v47, %v7856_v49  ;;  %v20300_v49 = vld [vmem:[#allocation9_spill] sm:$0xff] }
 0x350   :  { %20291 = vst [vmem:[#allocation34_spill] sm:$0xff] %v17466_v58 }
 0x351   :  { %20293 = vst [vmem:[#allocation11_spill] sm:$0xff] %v17469_v39  ;;  %v7858_v62 = vadd.f32 %v17469_v39, %v7857_v34  ;;  %v14560_v3 = vpop.f32.mrb[54].mxu0  ;;  %v20302_v39 = vld [vmem:[#allocation13_spill] sm:$0xff] }
 0x352   :  { %v17474_v4 = vadd.f32 %v14560_v3, %v20294_v22  ;;  %v7502_v45 = vpop.f32.mrb[55].mxu0 }
 0x353   :  { %v17477_v19 = vadd.f32 %v7502_v45, %v20296_v36  ;;  %v7859_v55 = vadd.f32 %v17466_v58, %v7858_v62  ;;  %v20304_v62 = vld [vmem:[#allocation14_spill] sm:$0xff] }
 0x354   :  { %20295 = vst [vmem:[#allocation12_spill] sm:$0xff] %v17474_v4 }
 0x355   :  { %20297 = vst [vmem:[#allocation7_spill] sm:$0xff] %v17477_v19  ;;  %v7860_v9 = vadd.f32 %v17477_v19, %v7859_v55  ;;  %v14563_v14 = vpop.f32.mrb[56].mxu0  ;;  %v20306_v19 = vld [vmem:[#allocation10_spill] sm:$0xff] }
 0x356   :  { %v17482_v54 = vadd.f32 %v14563_v14, %v20298_v27  ;;  %v7512_v40 = vpop.f32.mrb[57].mxu0 }
 0x357   :  { %v17485_v47 = vadd.f32 %v7512_v40, %v20300_v49  ;;  %v7861_v34 = vadd.f32 %v17474_v4, %v7860_v9  ;;  %v20308_v9 = vld [vmem:[#allocation15_spill] sm:$0xff] }
 0x358   :  { %20299 = vst [vmem:[#allocation8_spill] sm:$0xff] %v17482_v54 }
 0x359   :  { %20301 = vst [vmem:[#allocation9_spill] sm:$0xff] %v17485_v47  ;;  %v7862_v22 = vadd.f32 %v17485_v47, %v7861_v34  ;;  %v14566_v3 = vpop.f32.mrb[58].mxu0 }
 0x35a   :  { %v17490_v45 = vadd.f32 %v14566_v3, %v20302_v39  ;;  %v7522_v36 = vpop.f32.mrb[59].mxu0  ;;  %v20310_v3 = vld [vmem:[#allocation16_spill] sm:$0xff] }
 0x35b   :  { %v17493_v58 = vadd.f32 %v7522_v36, %v20304_v62  ;;  %v7863_v55 = vadd.f32 %v17482_v54, %v7862_v22  ;;  %v20311_v22 = vld [vmem:[#allocation17_spill] sm:$0xff] }
 0x35c   :  { %20303 = vst [vmem:[#allocation13_spill] sm:$0xff] %v17490_v45 }
 0x35d   :  { %20305 = vst [vmem:[#allocation14_spill] sm:$0xff] %v17493_v58  ;;  %v7864_v27 = vadd.f32 %v17493_v58, %v7863_v55  ;;  %v14569_v14 = vpop.f32.mrb[60].mxu0 }
 0x35e   :  { %v17498_v40 = vadd.f32 %v14569_v14, %v20306_v19  ;;  %v7532_v49 = vpop.f32.mrb[61].mxu0 }
 0x35f   :  { %v17501_v4 = vadd.f32 %v7532_v49, %v20308_v9  ;;  %v7865_v34 = vadd.f32 %v17490_v45, %v7864_v27 }
 0x360   :  { %20307 = vst [vmem:[#allocation10_spill] sm:$0xff] %v17498_v40 }
 0x361   :  { %20309 = vst [vmem:[#allocation15_spill] sm:$0xff] %v17501_v4  ;;  %v14572_v39 = vpop.f32.mrb[62].mxu0  ;;  %v7866_v62 = vadd.f32 %v17501_v4, %v7865_v34 }
 0x362   :  { %v17505_v47 = vadd.f32 %v14572_v39, %v20310_v3  ;;  %v7542_v36 = vpop.f32.mrb[63].mxu0  ;;  %v20312_v3 = vld [vmem:[#allocation18_spill] sm:$0xff] }
 0x363   :  { %v17509_v54 = vadd.f32 %v7542_v36, %v20311_v22  ;;  %v7867_v55 = vadd.f32 %v17498_v40, %v7866_v62 }
 0x365   :  { %v7868_v19 = vadd.f32 %v17509_v54, %v7867_v55 }
 0x367   :  { %v7869_v14 = vadd.f32 %v17505_v47, %v7868_v19 }
 0x369   :  { %v7870_v49 = vrot.slane %v7869_v14, 4 }
 0x36b   :  { %v7871_v9 = vadd.f32 %v7870_v49, %v7869_v14 }
 0x36d   :  { %v7872_v58 = vrot.slane %v7871_v9, 2 }
 0x36f   :  { %v7873_v27 = vadd.f32 %v7872_v58, %v7871_v9 }
 0x371   :  { %v7874_v45 = vrot.slane %v7873_v27, 1 }
 0x373   :  { %v7875_v61 = vadd.f32 %v7874_v45, %v7873_v27 }
 0x375   :  { %v17514_v39 = vmul.f32 0.001953125, %v7875_v61 }
 0x377   :  { %v7877_v34 = vsub.f32 %v17262_v15, %v17514_v39  ;;  %v7878_v36 = vsub.f32 %v20312_v3, %v17514_v39  ;;  %v7879_v62 = vsub.f32 %v17270_v56, %v17514_v39  ;;  %v7880_v19 = vsub.f32 %v17265_v32, %v17514_v39 }
 0x378   :  { %v7881_v58 = vsub.f32 %v17278_v46, %v17514_v39  ;;  %v7882_v14 = vsub.f32 %v17274_v26, %v17514_v39  ;;  %v7883_v27 = vsub.f32 %v17285_v21, %v17514_v39  ;;  %v7885_v46 = vsub.f32 %v17293_v48, %v17514_v39 }
 0x379   :  { %v7941_v22 = vmul.f32 %v7877_v34, %v7877_v34  ;;  %v7942_v55 = vmul.f32 %v7878_v36, %v7878_v36  ;;  %v7943_v45 = vmul.f32 %v7879_v62, %v7879_v62  ;;  %v7944_v49 = vmul.f32 %v7880_v19, %v7880_v19 }
 0x37a   :  { %v7945_v3 = vmul.f32 %v7881_v58, %v7881_v58  ;;  %v7884_v34 = vsub.f32 %v17282_v23, %v17514_v39  ;;  %v7946_v36 = vmul.f32 %v7882_v14, %v7882_v14  ;;  %v7947_v62 = vmul.f32 %v7883_v27, %v7883_v27 }
 0x37b   :  { %v8005_v61 = vadd.f32 %v7942_v55, %v7941_v22  ;;  %v7886_v55 = vsub.f32 %v17290_v30, %v17514_v39  ;;  %v7949_v58 = vmul.f32 %v7885_v46, %v7885_v46 }
 0x37c   :  { %v7948_v19 = vmul.f32 %v7884_v34, %v7884_v34 }
 0x37d   :  { %v8006_v9 = vadd.f32 %v8005_v61, %v7943_v45  ;;  %v7887_v61 = vsub.f32 %v17301_v51, %v17514_v39  ;;  %v7950_v14 = vmul.f32 %v7886_v55, %v7886_v55 }
 0x37f   :  { %v8007_v56 = vadd.f32 %v8006_v9, %v7944_v49  ;;  %v7888_v9 = vsub.f32 %v17298_v2, %v17514_v39  ;;  %v7951_v27 = vmul.f32 %v7887_v61, %v7887_v61 }
 0x381   :  { %v8008_v32 = vadd.f32 %v8007_v56, %v7945_v3  ;;  %v7889_v3 = vsub.f32 %v17309_v52, %v17514_v39  ;;  %v7952_v34 = vmul.f32 %v7888_v9, %v7888_v9 }
 0x383   :  { %v8009_v22 = vadd.f32 %v8008_v32, %v7946_v36  ;;  %v7890_v36 = vsub.f32 %v17306_v17, %v17514_v39  ;;  %v7953_v46 = vmul.f32 %v7889_v3, %v7889_v3 }
 0x385   :  { %v8010_v45 = vadd.f32 %v8009_v22, %v7947_v62  ;;  %v7891_v22 = vsub.f32 %v17317_v0, %v17514_v39  ;;  %v7954_v55 = vmul.f32 %v7890_v36, %v7890_v36 }
 0x387   :  { %v8011_v49 = vadd.f32 %v8010_v45, %v7948_v19  ;;  %v7892_v45 = vsub.f32 %v17314_v28, %v17514_v39  ;;  %v7955_v61 = vmul.f32 %v7891_v22, %v7891_v22 }
 0x389   :  { %v8012_v56 = vadd.f32 %v8011_v49, %v7949_v58  ;;  %v7893_v49 = vsub.f32 %v17325_v13, %v17514_v39  ;;  %v7956_v9 = vmul.f32 %v7892_v45, %v7892_v45 }
 0x38b   :  { %v8013_v32 = vadd.f32 %v8012_v56, %v7950_v14  ;;  %v7894_v56 = vsub.f32 %v17322_v59, %v17514_v39  ;;  %v7957_v3 = vmul.f32 %v7893_v49, %v7893_v49 }
 0x38d   :  { %v8014_v62 = vadd.f32 %v8013_v32, %v7951_v27  ;;  %v7895_v32 = vsub.f32 %v17333_v1, %v17514_v39  ;;  %v7958_v36 = vmul.f32 %v7894_v56, %v7894_v56 }
 0x38f   :  { %v8015_v19 = vadd.f32 %v8014_v62, %v7952_v34  ;;  %v7896_v62 = vsub.f32 %v17330_v18, %v17514_v39  ;;  %v7959_v22 = vmul.f32 %v7895_v32, %v7895_v32 }
 0x391   :  { %v8016_v58 = vadd.f32 %v8015_v19, %v7953_v46  ;;  %v7897_v19 = vsub.f32 %v17341_v11, %v17514_v39  ;;  %v7960_v45 = vmul.f32 %v7896_v62, %v7896_v62 }
 0x393   :  { %v8017_v14 = vadd.f32 %v8016_v58, %v7954_v55  ;;  %v7898_v58 = vsub.f32 %v17338_v42, %v17514_v39  ;;  %v7961_v49 = vmul.f32 %v7897_v19, %v7897_v19 }
 0x395   :  { %v8018_v27 = vadd.f32 %v8017_v14, %v7955_v61  ;;  %v7899_v14 = vsub.f32 %v17349_v24, %v17514_v39  ;;  %v7962_v56 = vmul.f32 %v7898_v58, %v7898_v58 }
 0x397   :  { %v8019_v34 = vadd.f32 %v8018_v27, %v7956_v9  ;;  %v7900_v27 = vsub.f32 %v17346_v63, %v17514_v39  ;;  %v7963_v32 = vmul.f32 %v7899_v14, %v7899_v14 }
 0x399   :  { %v8020_v46 = vadd.f32 %v8019_v34, %v7957_v3  ;;  %v7901_v34 = vsub.f32 %v17357_v37, %v17514_v39  ;;  %v7964_v62 = vmul.f32 %v7900_v27, %v7900_v27 }
 0x39b   :  { %v8021_v55 = vadd.f32 %v8020_v46, %v7958_v36  ;;  %v7902_v46 = vsub.f32 %v17354_v43, %v17514_v39  ;;  %v7965_v19 = vmul.f32 %v7901_v34, %v7901_v34 }
 0x39d   :  { %v8022_v61 = vadd.f32 %v8021_v55, %v7959_v22  ;;  %v7903_v55 = vsub.f32 %v17365_v35, %v17514_v39  ;;  %v7966_v58 = vmul.f32 %v7902_v46, %v7902_v46 }
 0x39f   :  { %v8023_v9 = vadd.f32 %v8022_v61, %v7960_v45  ;;  %v7904_v61 = vsub.f32 %v17362_v7, %v17514_v39  ;;  %v7967_v14 = vmul.f32 %v7903_v55, %v7903_v55 }
 0x3a1   :  { %v8024_v3 = vadd.f32 %v8023_v9, %v7961_v49  ;;  %v7905_v9 = vsub.f32 %v17373_v31, %v17514_v39  ;;  %v7968_v27 = vmul.f32 %v7904_v61, %v7904_v61 }
 0x3a3   :  { %v8025_v36 = vadd.f32 %v8024_v3, %v7962_v56  ;;  %v7906_v3 = vsub.f32 %v17370_v60, %v17514_v39  ;;  %v7969_v34 = vmul.f32 %v7905_v9, %v7905_v9 }
 0x3a5   :  { %v8026_v22 = vadd.f32 %v8025_v36, %v7963_v32  ;;  %v7907_v36 = vsub.f32 %v17381_v53, %v17514_v39  ;;  %v7970_v46 = vmul.f32 %v7906_v3, %v7906_v3 }
 0x3a7   :  { %v8027_v45 = vadd.f32 %v8026_v22, %v7964_v62  ;;  %v7908_v22 = vsub.f32 %v17378_v6, %v17514_v39  ;;  %v7971_v55 = vmul.f32 %v7907_v36, %v7907_v36 }
 0x3a9   :  { %v8028_v49 = vadd.f32 %v8027_v45, %v7965_v19  ;;  %v7909_v45 = vsub.f32 %v17389_v20, %v17514_v39  ;;  %v7972_v61 = vmul.f32 %v7908_v22, %v7908_v22 }
 0x3ab   :  { %v8029_v56 = vadd.f32 %v8028_v49, %v7966_v58  ;;  %v7910_v49 = vsub.f32 %v17386_v5, %v17514_v39  ;;  %v7973_v9 = vmul.f32 %v7909_v45, %v7909_v45  ;;  %v11421_v45 = vld [vmem:[%s20134_s5] sm:$0xff] }
 0x3ad   :  { %v8030_v32 = vadd.f32 %v8029_v56, %v7967_v14  ;;  %v7911_v56 = vsub.f32 %v17397_v38, %v17514_v39  ;;  %v7974_v3 = vmul.f32 %v7910_v49, %v7910_v49  ;;  %v7915_v49 = vsub.f32 %v17413_v8, %v17514_v39 }
 0x3af   :  { %v8031_v62 = vadd.f32 %v8030_v32, %v7968_v27  ;;  %v7912_v32 = vsub.f32 %v17394_v12, %v17514_v39  ;;  %v7975_v36 = vmul.f32 %v7911_v56, %v7911_v56 }
 0x3b1   :  { %v8032_v19 = vadd.f32 %v8031_v62, %v7969_v34  ;;  %v7913_v62 = vsub.f32 %v17405_v41, %v17514_v39  ;;  %v7976_v22 = vmul.f32 %v7912_v32, %v7912_v32 }
 0x3b3   :  { %v8033_v58 = vadd.f32 %v8032_v19, %v7970_v46  ;;  %v7914_v19 = vsub.f32 %v17402_v44, %v17514_v39 }
 0x3b5   :  { %v8034_v14 = vadd.f32 %v8033_v58, %v7971_v55  ;;  %v11422_v58 = vld [vmem:[%s20134_s5 + $0x8] sm:$0xff] }
 0x3b6   :  { %v14701_v56 = vpack.c.bf16 %v11422_v58, %v11421_v45  ;;  %v11425_v58 = vld [vmem:[%s20134_s5 + $0x20] sm:$0xff] }
 0x3b7   :  { %v8035_v27 = vadd.f32 %v8034_v14, %v7972_v61  ;;  %v7977_v61 = vmul.f32 %v7913_v62, %v7913_v62  ;;  %v7917_v62 = vsub.f32 %v17421_v57, %v17514_v39 }
 0x3b8   :  { %14702 = vmatprep.subr.bf16.mxu1 %v14701_v56 }
 0x3b9   :  { %v8036_v34 = vadd.f32 %v8035_v27, %v7973_v9  ;;  %v7916_v9 = vsub.f32 %v17410_v29, %v17514_v39  ;;  %v7978_v27 = vmul.f32 %v7914_v19, %v7914_v19  ;;  %14704 = vmatpush3.bf16.msra.mxu1 %v14701_v56  ;;  %v7918_v19 = vsub.f32 %v17418_v33, %v17514_v39  ;;  %v20319_v33 = vld [vmem:[#allocation11_spill] sm:$0xff] }
 0x3ba   :  { %v7929_v57 = vsub.f32 %v20319_v33, %v17514_v39 }
 0x3bb   :  { %v8037_v46 = vadd.f32 %v8036_v34, %v7974_v3  ;;  %v11423_v3 = vld [vmem:[%s20134_s5 + $0x10] sm:$0xff]  ;;  %v11424_v34 = vld [vmem:[%s20134_s5 + $0x18] sm:$0xff] }
 0x3bd   :  { %v8038_v55 = vadd.f32 %v8037_v46, %v7975_v36  ;;  %v7979_v36 = vmul.f32 %v7915_v49, %v7915_v49  ;;  %v7919_v49 = vsub.f32 %v17429_v50, %v17514_v39 }
 0x3bf   :  { %v8039_v14 = vadd.f32 %v8038_v55, %v7976_v22  ;;  %v14705_v22 = vpack.c.bf16 %v11424_v34, %v11423_v3  ;;  %v7980_v55 = vmul.f32 %v7916_v9, %v7916_v9  ;;  %v7920_v9 = vsub.f32 %v17426_v16, %v17514_v39  ;;  %v11427_v34 = vld [vmem:[%s20134_s5 + $0x30] sm:$0xff] }
 0x3c1   :  { %v8040_v32 = vadd.f32 %v8039_v14, %v7977_v61  ;;  %14706 = vmatprep.subr.bf16.mxu1 %v14705_v22  ;;  %v11426_v61 = vld [vmem:[%s20134_s5 + $0x28] sm:$0xff]  ;;  %v7981_v14 = vmul.f32 %v7917_v62, %v7917_v62  ;;  %v11429_v62 = vld [vmem:[%s20134_s5 + $0x40] sm:$0xff] }
 0x3c2   :  { %14708 = vmatpush3.bf16.msra.mxu1 %v14705_v22  ;;  %v7983_v22 = vmul.f32 %v7919_v49, %v7919_v49 }
 0x3c3   :  { %v8041_v46 = vadd.f32 %v8040_v32, %v7978_v27  ;;  %v14709_v27 = vpack.c.bf16 %v11426_v61, %v11425_v58  ;;  %v7982_v32 = vmul.f32 %v7918_v19, %v7918_v19  ;;  %v11431_v61 = vld [vmem:[%s20134_s5 + $0x50] sm:$0xff] }
 0x3c5   :  { %v8042_v45 = vadd.f32 %v8041_v46, %v7979_v36  ;;  %14710 = vmatprep.subr.bf16.mxu1 %v14709_v27  ;;  %v11428_v36 = vld [vmem:[%s20134_s5 + $0x38] sm:$0xff]  ;;  %v7921_v46 = vsub.f32 %v17437_v25, %v17514_v39  ;;  %v11434_v25 = vld [vmem:[%s20134_s5 + $0x68] sm:$0xff] }
 0x3c6   :  { %14712 = vmatpush3.bf16.msra.mxu1 %v14709_v27  ;;  %v7984_v27 = vmul.f32 %v7920_v9, %v7920_v9  ;;  %v20314_v9 = vld [vmem:[#allocation28_spill] sm:$0xff] }
 0x3c7   :  { %v8043_v56 = vadd.f32 %v8042_v45, %v7980_v55  ;;  %v14713_v55 = vpack.c.bf16 %v11428_v36, %v11427_v34  ;;  %v11430_v45 = vld [vmem:[%s20134_s5 + $0x48] sm:$0xff]  ;;  %v7985_v34 = vmul.f32 %v7921_v46, %v7921_v46 }
 0x3c8   :  { %v14717_v58 = vpack.c.bf16 %v11430_v45, %v11429_v62  ;;  %v11433_v45 = vld [vmem:[%s20134_s5 + $0x60] sm:$0xff] }
 0x3c9   :  { %v8044_v3 = vadd.f32 %v8043_v56, %v7981_v14  ;;  %v11432_v14 = vld [vmem:[%s20134_s5 + $0x58] sm:$0xff]  ;;  %v7922_v56 = vsub.f32 %v17434_v10, %v17514_v39  ;;  %14714 = vmatprep.subr.bf16.mxu1 %v14713_v55 }
 0x3ca   :  { %14716 = vmatpush3.bf16.msra.mxu1 %v14713_v55  ;;  %v14721_v62 = vpack.c.bf16 %v11432_v14, %v11431_v61  ;;  %v14725_v61 = vpack.c.bf16 %v11434_v25, %v11433_v45  ;;  %v11435_v14 = vld [vmem:[%s20134_s5 + $0x70] sm:$0xff]  ;;  %v11436_v10 = vld [vmem:[%s20134_s5 + $0x78] sm:$0xff]  ;;  %v20318_v45 = vld [vmem:[#allocation32_spill] sm:$0xff] }
 0x3cb   :  { %v8045_v19 = vadd.f32 %v8044_v3, %v7982_v32  ;;  %v20313_v32 = vld [vmem:[#allocation29_spill] sm:$0xff]  ;;  %14718 = vmatprep.subr.bf16.mxu1 %v14717_v58  ;;  %v14729_v25 = vpack.c.bf16 %v11436_v10, %v11435_v14  ;;  %v20321_v10 = vld [vmem:[#allocation7_spill] sm:$0xff] }
 0x3cc   :  { %v7923_v3 = vsub.f32 %v20313_v32, %v17514_v39  ;;  %v20315_v32 = vld [vmem:[#allocation31_spill] sm:$0xff]  ;;  %v7931_v14 = vsub.f32 %v20321_v10, %v17514_v39 }
 0x3cd   :  { %v8046_v49 = vadd.f32 %v8045_v19, %v7983_v22  ;;  %v7924_v22 = vsub.f32 %v20314_v9, %v17514_v39  ;;  %v7986_v19 = vmul.f32 %v7922_v56, %v7922_v56  ;;  %v7925_v46 = vsub.f32 %v20315_v32, %v17514_v39  ;;  %v20316_v9 = vld [vmem:[#allocation30_spill] sm:$0xff] }
 0x3ce   :  { %14720 = vmatpush3.bf16.msra.mxu1 %v14717_v58  ;;  %v7926_v56 = vsub.f32 %v20316_v9, %v17514_v39  ;;  %v7928_v32 = vsub.f32 %v20318_v45, %v17514_v39 }
 0x3cf   :  { %v8047_v36 = vadd.f32 %v8046_v49, %v7984_v27  ;;  %v7987_v27 = vmul.f32 %v7923_v3, %v7923_v3  ;;  %14722 = vmatprep.subr.bf16.mxu1 %v14721_v62 }
 0x3d0   :  { %v7990_v16 = vmul.f32 %v7926_v56, %v7926_v56  ;;  %v20322_v56 = vld [vmem:[#allocation12_spill] sm:$0xff] }
 0x3d1   :  { %v8048_v55 = vadd.f32 %v8047_v36, %v7985_v34  ;;  %v7988_v34 = vmul.f32 %v7924_v22, %v7924_v22  ;;  %v20317_v36 = vld [vmem:[#allocation33_spill] sm:$0xff] }
 0x3d2   :  { %14724 = vmatpush3.bf16.msra.mxu1 %v14721_v62  ;;  %v7927_v3 = vsub.f32 %v20317_v36, %v17514_v39  ;;  %v20320_v62 = vld [vmem:[#allocation34_spill] sm:$0xff] }
 0x3d3   :  { %v8049_v49 = vadd.f32 %v8048_v55, %v7986_v19  ;;  %v7989_v19 = vmul.f32 %v7925_v46, %v7925_v46  ;;  %14726 = vmatprep.subr.bf16.mxu1 %v14725_v61 }
 0x3d4   :  { %v7991_v9 = vmul.f32 %v7927_v3, %v7927_v3  ;;  %v20323_v3 = vld [vmem:[#allocation9_spill] sm:$0xff] }
 0x3d5   :  { %v8050_v58 = vadd.f32 %v8049_v49, %v7987_v27  ;;  %v7930_v27 = vsub.f32 %v20320_v62, %v17514_v39  ;;  %v7992_v49 = vmul.f32 %v7928_v32, %v7928_v32  ;;  %v20324_v62 = vld [vmem:[#allocation8_spill] sm:$0xff] }
 0x3d6   :  { %14728 = vmatpush3.bf16.msra.mxu1 %v14725_v61  ;;  %v7932_v61 = vsub.f32 %v20322_v56, %v17514_v39  ;;  %v7934_v32 = vsub.f32 %v20324_v62, %v17514_v39 }
 0x3d7   :  { %v8051_v55 = vadd.f32 %v8050_v58, %v7988_v34  ;;  %14730 = vmatprep.subr.bf16.mxu1 %v14729_v25  ;;  %v7993_v34 = vmul.f32 %v7929_v57, %v7929_v57 }
 0x3d9   :  { %v8052_v50 = vadd.f32 %v8051_v55, %v7989_v19  ;;  %v7994_v19 = vmul.f32 %v7930_v27, %v7930_v27  ;;  %v7998_v27 = vmul.f32 %v7934_v32, %v7934_v32 }
 0x3da   :  { %14732 = vmatpush3.bf16.msra.mxu1 %v14729_v25 }
 0x3db   :  { %v8053_v22 = vadd.f32 %v8052_v50, %v7990_v16  ;;  %v7933_v16 = vsub.f32 %v20323_v3, %v17514_v39  ;;  %v7995_v50 = vmul.f32 %v7931_v14, %v7931_v14 }
 0x3dd   :  { %v8054_v46 = vadd.f32 %v8053_v22, %v7991_v9  ;;  %v7996_v9 = vmul.f32 %v7932_v61, %v7932_v61  ;;  %v20325_v22 = vld [vmem:[#allocation14_spill] sm:$0xff]  ;;  %v7997_v57 = vmul.f32 %v7933_v16, %v7933_v16 }
 0x3de   :  { %v7935_v10 = vsub.f32 %v20325_v22, %v17514_v39 }
 0x3df   :  { %v8055_v58 = vadd.f32 %v8054_v46, %v7992_v49  ;;  %v20326_v46 = vld [vmem:[#allocation13_spill] sm:$0xff] }
 0x3e0   :  { %v7936_v56 = vsub.f32 %v20326_v46, %v17514_v39  ;;  %v7999_v14 = vmul.f32 %v7935_v10, %v7935_v10 }
 0x3e1   :  { %v8056_v55 = vadd.f32 %v8055_v58, %v7993_v34  ;;  %v7937_v58 = vsub.f32 %v17501_v4, %v17514_v39 }
 0x3e2   :  { %v8000_v61 = vmul.f32 %v7936_v56, %v7936_v56 }
 0x3e3   :  { %v8057_v33 = vadd.f32 %v8056_v55, %v7994_v19  ;;  %v7938_v55 = vsub.f32 %v17498_v40, %v17514_v39  ;;  %v8001_v16 = vmul.f32 %v7937_v58, %v7937_v58  ;;  %v8291_v58 = vlaneseq }
 0x3e5   :  { %v8058_v25 = vadd.f32 %v8057_v33, %v7995_v50  ;;  %v7939_v50 = vsub.f32 %v17509_v54, %v17514_v39  ;;  %v8002_v32 = vmul.f32 %v7938_v55, %v7938_v55  ;;  %v17695_v55 = vld [vmem:[%s20135_s4] ss:$0 sm:$0xff] }
 0x3e6   :  { %20327 = vst [vmem:[#allocation16_spill] sm:$0xff] %v17695_v55 }
 0x3e7   :  { %v8059_v49 = vadd.f32 %v8058_v25, %v7996_v9  ;;  %v7940_v25 = vsub.f32 %v17505_v47, %v17514_v39 }
 0x3e9   :  { %v8060_v34 = vadd.f32 %v8059_v49, %v7997_v57  ;;  %v8003_v49 = vmul.f32 %v7939_v50, %v7939_v50  ;;  %v8004_v4 = vmul.f32 %v7940_v25, %v7940_v25  ;;  %v8560_v50 = vld [vmem:[#allocation4 + $0xf] sm:$0xff] }
 0x3eb   :  { %v8061_v19 = vadd.f32 %v8060_v34, %v7998_v27 }
 0x3ed   :  { %v8062_v33 = vadd.f32 %v8061_v19, %v7999_v14 }
 0x3ef   :  { %v8063_v9 = vadd.f32 %v8062_v33, %v8000_v61  ;;  %v8559_v61 = vld [vmem:[#allocation4 + $0x7] sm:$0xff]  ;;  %v8292_v33 = vshrl.u32 %v8291_v58, 7 }
 0x3f1   :  { %v8064_v57 = vadd.f32 %v8063_v9, %v8001_v16  ;;  %v8075_v16 = vld [vmem:[%s20136_s2] sm:$0x1]  ;;  %v17712_v9 = vsub.s32 0, %v8292_v33 }
 0x3f3   :  { %v8065_v46 = vadd.f32 %v8064_v57, %v8002_v32  ;;  %20330 = vst [vmem:[#allocation32_spill] sm:$0xff] %v17712_v9 }
 0x3f5   :  { %v8066_v10 = vadd.f32 %v8065_v46, %v8003_v49  ;;  %v8629_v49 = vmul.f32 %v17695_v55, %v8560_v50  ;;  %v20335_v50 = vld [vmem:[#allocation20_spill] sm:$0xff] }
 0x3f7   :  { %v8067_v27 = vadd.f32 %v8066_v10, %v8004_v4  ;;  %v17700_v4 = vld [vmem:[%s20135_s4 + $0x1] ss:$0 sm:$0xff] }
 0x3f8   :  { %20328 = vst [vmem:[#allocation17_spill] sm:$0xff] %v17700_v4 }
 0x3f9   :  { %v8068_v34 = vrot.slane %v8067_v27, 4 }
 0x3fb   :  { %v8069_v22 = vadd.f32 %v8068_v34, %v8067_v27  ;;  %v9082_v27 = vld [vmem:[#allocation4 + $0x11] sm:$0xff]  ;;  %v8079_v34 = vld [vmem:[%s20137_s3] sm:$0x1] }
 0x3fd   :  { %v8070_v40 = vrot.slane %v8069_v22, 2 }
 0x3ff   :  { %v8071_v56 = vadd.f32 %v8070_v40, %v8069_v22  ;;  %v8628_v40 = vmul.f32 %v17695_v55, %v8559_v61  ;;  %v15250_v22 = vld [vmem:[#allocation4] sm:$0xff] }
 0x400   :  { %v8825_v46 = vmul.f32 %v15250_v22, %v17700_v4  ;;  %v20347_v4 = vld [vmem:[#allocation30_spill] sm:$0xff]  ;;  %v20350_v55 = vld [vmem:[#allocation11_spill] sm:$0xff] }
 0x401   :  { %v8072_v14 = vrot.slane %v8071_v56, 1 }
 0x402   :  { %v8953_v32 = vadd.f32 %v8825_v46, %v8628_v40  ;;  %v17725_v58 = vadd.f32 %v8825_v46, %v8629_v49  ;;  %v20336_v46 = vld [vmem:[#allocation19_spill] sm:$0xff] }
 0x403   :  { %v8073_v19 = vadd.f32 %v8072_v14, %v8071_v56 }
 0x404   :  { %20332 = vst [vmem:[#allocation36_spill] sm:$0xff] %v17725_v58  ;;  %v20356_v58 = vld [vmem:[#allocation12_spill] sm:$0xff] }
 0x405   :  { %v8074_v62 = vmul.f32 0.001953125, %v8073_v19 }
 0x407   :  { %v8076_v3 = vadd.f32 1e-05, %v8074_v62  ;;  %v9081_v62 = vld [vmem:[#allocation4 + $0x9] sm:$0xff] }
 0x409   :  { %15246 = vrsqrt.f32 %v8076_v3  ;;  %v17707_v3 = vld [vmem:[%s20135_s4 + $0x2] ss:$0 sm:$0xff] }
 0x40a   :  { %20329 = vst [vmem:[#allocation33_spill] sm:$0xff] %v17707_v3  ;;  %v9150_v57 = vmul.f32 %v17707_v3, %v9081_v62  ;;  %v17728_v61 = vmul.f32 %v17707_v3, %v9082_v27  ;;  %v20346_v3 = vld [vmem:[#allocation31_spill] sm:$0xff] }
 0x40c   :  { %v17723_v19 = vadd.f32 %v9150_v57, %v8953_v32  ;;  %20333 = vst [vmem:[#allocation37_spill] sm:$0xff] %v17728_v61  ;;  %v20337_v32 = vld [vmem:[#allocation21_spill] sm:$0xff]  ;;  %v20354_v61 = vld [vmem:[#allocation7_spill] sm:$0xff] }
 0x40e   :  { %20331 = vst [vmem:[#allocation35_spill] sm:$0xff] %v17723_v19  ;;  %v20352_v19 = vld [vmem:[#allocation34_spill] sm:$0xff] }
 0x413   :  { %v15247_v25 = vpop.eup %15246 }
 0x414   :  { %v8078_v10 = vmul.f32 %v15247_v25, %v8075_v16 }
 0x416   :  { %v8080_v56 = vmul.f32 %v8078_v10, %v17514_v39  ;;  %v17721_v14 = vrot.slane %v8078_v10, %v17712_v9  ;;  %v20334_v39 = vld [vmem:[#allocation18_spill] sm:$0xff] }
 0x418   :  { %v8081_v33 = vsub.f32 %v8079_v34, %v8080_v56  ;;  %v8358_v40 = vmul.f32 %v17509_v54, %v17721_v14  ;;  %v17734_v22 = vmul.f32 %v17262_v15, %v17721_v14  ;;  %v17738_v62 = vmul.f32 %v20334_v39, %v17721_v14  ;;  %v20339_v39 = vld [vmem:[#allocation22_spill] sm:$0xff] }
 0x419   :  { %v17742_v16 = vmul.f32 %v20335_v50, %v17721_v14  ;;  %v17746_v25 = vmul.f32 %v20336_v46, %v17721_v14  ;;  %v17750_v57 = vmul.f32 %v20337_v32, %v17721_v14  ;;  %v17754_v15 = vmul.f32 %v17274_v26, %v17721_v14  ;;  %v20340_v50 = vld [vmem:[#allocation25_spill] sm:$0xff]  ;;  %v20341_v46 = vld [vmem:[#allocation24_spill] sm:$0xff]  ;;  %v20342_v32 = vld [vmem:[#allocation27_spill] sm:$0xff] }
 0x41a   :  { %v17757_v54 = vrot.slane %v8081_v33, %v17712_v9  ;;  %v17761_v49 = vmul.f32 %v17285_v21, %v17721_v14  ;;  %v17765_v10 = vmul.f32 %v17282_v23, %v17721_v14  ;;  %v17769_v27 = vmul.f32 %v17293_v48, %v17721_v14  ;;  %v20345_v9 = vld [vmem:[#allocation28_spill] sm:$0xff] }
 0x41b   :  { %v17773_v34 = vmul.f32 %v17290_v30, %v17721_v14  ;;  %v17777_v26 = vmul.f32 %v17301_v51, %v17721_v14  ;;  %v17781_v21 = vmul.f32 %v17298_v2, %v17721_v14  ;;  %v17785_v23 = vmul.f32 %v17309_v52, %v17721_v14 }
 0x41c   :  { %v8428_v56 = vadd.f32 %v17757_v54, %v8358_v40  ;;  %v17790_v48 = vmul.f32 %v17306_v17, %v17721_v14  ;;  %v17794_v30 = vmul.f32 %v17317_v0, %v17721_v14  ;;  %v17798_v51 = vmul.f32 %v17314_v28, %v17721_v14  ;;  %v20338_v40 = vld [vmem:[#allocation23_spill] sm:$0xff] }
 0x41d   :  { %v17802_v2 = vmul.f32 %v17325_v13, %v17721_v14  ;;  %v17806_v52 = vmul.f32 %v17322_v59, %v17721_v14  ;;  %v17810_v17 = vmul.f32 %v17333_v1, %v17721_v14  ;;  %v17814_v0 = vmul.f32 %v17330_v18, %v17721_v14 }
 0x41e   :  { %v8492_v33 = vmax.f32 %v8428_v56, 0.0  ;;  %v17818_v28 = vmul.f32 %v17341_v11, %v17721_v14  ;;  %v17822_v13 = vmul.f32 %v17338_v42, %v17721_v14  ;;  %v17826_v59 = vmul.f32 %v17349_v24, %v17721_v14  ;;  %v20343_v56 = vld [vmem:[#allocation26_spill] sm:$0xff] }
 0x41f   :  { %v17830_v1 = vmul.f32 %v17346_v63, %v17721_v14  ;;  %v17834_v18 = vmul.f32 %v17357_v37, %v17721_v14  ;;  %v17838_v11 = vmul.f32 %v17354_v43, %v17721_v14  ;;  %v17842_v42 = vmul.f32 %v17365_v35, %v17721_v14 }
 0x420   :  { %8557 = vst [vmem:[#allocation4 + $0x448] sm:$0xff] %v8492_v33  ;;  %v17846_v24 = vmul.f32 %v17362_v7, %v17721_v14  ;;  %v17850_v63 = vmul.f32 %v17373_v31, %v17721_v14  ;;  %v17854_v37 = vmul.f32 %v17370_v60, %v17721_v14  ;;  %v17858_v43 = vmul.f32 %v17381_v53, %v17721_v14 }
 0x421   :  { %v17862_v35 = vmul.f32 %v17378_v6, %v17721_v14  ;;  %v17866_v7 = vmul.f32 %v17389_v20, %v17721_v14  ;;  %v17870_v31 = vmul.f32 %v17386_v5, %v17721_v14  ;;  %v17874_v60 = vmul.f32 %v17397_v38, %v17721_v14 }
 0x422   :  { %v17878_v53 = vmul.f32 %v17394_v12, %v17721_v14  ;;  %v17882_v6 = vmul.f32 %v17405_v41, %v17721_v14  ;;  %v17886_v20 = vmul.f32 %v17402_v44, %v17721_v14  ;;  %v17890_v5 = vmul.f32 %v17413_v8, %v17721_v14 }
 0x423   :  { %v17894_v38 = vmul.f32 %v17410_v29, %v17721_v14  ;;  %v17898_v12 = vmul.f32 %v20338_v40, %v17721_v14  ;;  %v17902_v41 = vmul.f32 %v20339_v39, %v17721_v14  ;;  %v17906_v44 = vmul.f32 %v20340_v50, %v17721_v14  ;;  %v20344_v40 = vld [vmem:[#allocation29_spill] sm:$0xff] }
 0x424   :  { %v17910_v8 = vmul.f32 %v20341_v46, %v17721_v14  ;;  %v17914_v29 = vmul.f32 %v20342_v32, %v17721_v14  ;;  %v17918_v33 = vmul.f32 %v20343_v56, %v17721_v14  ;;  %v17922_v39 = vmul.f32 %v20344_v40, %v17721_v14 }
 0x425   :  { %v17926_v50 = vmul.f32 %v20345_v9, %v17721_v14  ;;  %v17930_v46 = vmul.f32 %v20346_v3, %v17721_v14  ;;  %v17934_v32 = vmul.f32 %v20347_v4, %v17721_v14  ;;  %v17938_v56 = vmul.f32 %v20317_v36, %v17721_v14 }
 0x426   :  { %v17942_v40 = vmul.f32 %v20318_v45, %v17721_v14  ;;  %v17946_v9 = vmul.f32 %v20350_v55, %v17721_v14  ;;  %v17950_v3 = vmul.f32 %v20352_v19, %v17721_v14  ;;  %v17954_v4 = vmul.f32 %v20354_v61, %v17721_v14 }
 0x427   :  { %20348 = vst [vmem:[#allocation18_spill] sm:$0xff] %v17938_v56  ;;  %v17958_v36 = vmul.f32 %v20356_v58, %v17721_v14  ;;  %v20358_v56 = vld [vmem:[#allocation9_spill] sm:$0xff] }
 0x428   :  { %20349 = vst [vmem:[#allocation20_spill] sm:$0xff] %v17942_v40  ;;  %20351 = vst [vmem:[#allocation19_spill] sm:$0xff] %v17946_v9  ;;  %v17962_v45 = vmul.f32 %v20358_v56, %v17721_v14  ;;  %v20359_v40 = vld [vmem:[#allocation8_spill] sm:$0xff]  ;;  %v20360_v9 = vld [vmem:[#allocation14_spill] sm:$0xff] }
 0x429   :  { %20353 = vst [vmem:[#allocation21_spill] sm:$0xff] %v17950_v3  ;;  %20355 = vst [vmem:[#allocation23_spill] sm:$0xff] %v17954_v4  ;;  %v17966_v55 = vmul.f32 %v20359_v40, %v17721_v14  ;;  %v17970_v19 = vmul.f32 %v20360_v9, %v17721_v14  ;;  %v20361_v3 = vld [vmem:[#allocation13_spill] sm:$0xff]  ;;  %v20363_v4 = vld [vmem:[#allocation15_spill] sm:$0xff]  ;;  %v17986_v40 = vmul.f32 %v17505_v47, %v17721_v14 }
 0x42a   :  { %20357 = vst [vmem:[#allocation22_spill] sm:$0xff] %v17958_v36  ;;  %v17974_v61 = vmul.f32 %v20361_v3, %v17721_v14  ;;  %v17978_v58 = vmul.f32 %v20363_v4, %v17721_v14  ;;  %v20364_v36 = vld [vmem:[#allocation10_spill] sm:$0xff]  ;;  %v17990_v9 = vadd.f32 %v17757_v54, %v17734_v22  ;;  %v8367_v3 = vadd.f32 %v17757_v54, %v17738_v62 }
 0x42b   :  { %v17982_v56 = vmul.f32 %v20364_v36, %v17721_v14  ;;  %v8369_v4 = vadd.f32 %v17757_v54, %v17746_v25  ;;  %v8370_v36 = vadd.f32 %v17757_v54, %v17750_v57  ;;  %v8371_v47 = vadd.f32 %v17757_v54, %v17754_v15 }
 0x42c   :  { %20362 = vst [vmem:[#allocation25_spill] sm:$0xff] %v17974_v61  ;;  %v8368_v61 = vadd.f32 %v17757_v54, %v17742_v16  ;;  %v8372_v14 = vadd.f32 %v17757_v54, %v17761_v49  ;;  %v8373_v22 = vadd.f32 %v17757_v54, %v17765_v10  ;;  %v8374_v62 = vadd.f32 %v17757_v54, %v17769_v27 }
 0x42d   :  { %v18010_v16 = vadd.f32 %v17757_v54, %v17773_v34  ;;  %v18014_v25 = vadd.f32 %v17757_v54, %v17777_v26  ;;  %v18018_v57 = vadd.f32 %v17757_v54, %v17781_v21  ;;  %v18022_v15 = vadd.f32 %v17757_v54, %v17785_v23 }
 0x42e   :  { %v18026_v49 = vadd.f32 %v17757_v54, %v17790_v48  ;;  %v18030_v10 = vadd.f32 %v17757_v54, %v17794_v30  ;;  %v18034_v27 = vadd.f32 %v17757_v54, %v17798_v51  ;;  %v18038_v34 = vadd.f32 %v17757_v54, %v17802_v2 }
 0x42f   :  { %v18042_v26 = vadd.f32 %v17757_v54, %v17806_v52  ;;  %v18046_v21 = vadd.f32 %v17757_v54, %v17810_v17  ;;  %v18050_v23 = vadd.f32 %v17757_v54, %v17814_v0  ;;  %v18054_v48 = vadd.f32 %v17757_v54, %v17818_v28 }
 0x430   :  { %v18058_v30 = vadd.f32 %v17757_v54, %v17822_v13  ;;  %v18062_v51 = vadd.f32 %v17757_v54, %v17826_v59  ;;  %v18066_v2 = vadd.f32 %v17757_v54, %v17830_v1  ;;  %v18070_v52 = vadd.f32 %v17757_v54, %v17834_v18 }
 0x431   :  { %v18074_v17 = vadd.f32 %v17757_v54, %v17838_v11  ;;  %v18078_v0 = vadd.f32 %v17757_v54, %v17842_v42  ;;  %v18082_v28 = vadd.f32 %v17757_v54, %v17846_v24  ;;  %v18086_v13 = vadd.f32 %v17757_v54, %v17850_v63 }
 0x432   :  { %v18090_v59 = vadd.f32 %v17757_v54, %v17854_v37  ;;  %v18094_v1 = vadd.f32 %v17757_v54, %v17858_v43  ;;  %v18098_v18 = vadd.f32 %v17757_v54, %v17862_v35  ;;  %v18102_v11 = vadd.f32 %v17757_v54, %v17866_v7 }
 0x433   :  { %v18106_v42 = vadd.f32 %v17757_v54, %v17870_v31  ;;  %v18110_v24 = vadd.f32 %v17757_v54, %v17874_v60  ;;  %v18114_v63 = vadd.f32 %v17757_v54, %v17878_v53  ;;  %v18118_v37 = vadd.f32 %v17757_v54, %v17882_v6 }
 0x434   :  { %v18122_v43 = vadd.f32 %v17757_v54, %v17886_v20  ;;  %v18126_v35 = vadd.f32 %v17757_v54, %v17890_v5  ;;  %v18130_v7 = vadd.f32 %v17757_v54, %v17894_v38  ;;  %v18134_v31 = vadd.f32 %v17757_v54, %v17898_v12 }
 0x435   :  { %v18138_v60 = vadd.f32 %v17757_v54, %v17902_v41  ;;  %v18142_v53 = vadd.f32 %v17757_v54, %v17906_v44  ;;  %v18146_v6 = vadd.f32 %v17757_v54, %v17910_v8  ;;  %v18150_v20 = vadd.f32 %v17757_v54, %v17914_v29  ;;  %v20369_v8 = vld [vmem:[#allocation18_spill] sm:$0xff] }
 0x436   :  { %v18154_v5 = vadd.f32 %v17757_v54, %v17918_v33  ;;  %v18158_v38 = vadd.f32 %v17757_v54, %v17922_v39  ;;  %v18162_v12 = vadd.f32 %v17757_v54, %v17926_v50  ;;  %v18166_v41 = vadd.f32 %v17757_v54, %v17930_v46  ;;  %v20370_v33 = vld [vmem:[#allocation20_spill] sm:$0xff] }
 0x437   :  { %v18170_v44 = vadd.f32 %v17757_v54, %v17934_v32  ;;  %v18174_v29 = vadd.f32 %v17757_v54, %v20369_v8  ;;  %v18178_v39 = vadd.f32 %v17757_v54, %v20370_v33  ;;  %v18198_v33 = vadd.f32 %v17757_v54, %v17962_v45 }
 0x438   :  { %20365 = vst [vmem:[#allocation24_spill] sm:$0xff] %v18158_v38  ;;  %20366 = vst [vmem:[#allocation27_spill] sm:$0xff] %v18162_v12  ;;  %v20371_v38 = vld [vmem:[#allocation19_spill] sm:$0xff]  ;;  %v20372_v12 = vld [vmem:[#allocation21_spill] sm:$0xff]  ;;  %v18218_v45 = vadd.f32 %v17757_v54, %v17982_v56  ;;  %v18239_v56 = vmax.f32 %v8373_v22, 0.0  ;;  %v8448_v22 = vmax.f32 %v18046_v21, 0.0 }
 0x439   :  { %20367 = vst [vmem:[#allocation26_spill] sm:$0xff] %v18166_v41  ;;  %20368 = vst [vmem:[#allocation29_spill] sm:$0xff] %v18170_v44  ;;  %v18182_v50 = vadd.f32 %v17757_v54, %v20371_v38  ;;  %v18186_v46 = vadd.f32 %v17757_v54, %v20372_v12  ;;  %v20374_v41 = vld [vmem:[#allocation23_spill] sm:$0xff]  ;;  %v20375_v44 = vld [vmem:[#allocation22_spill] sm:$0xff]  ;;  %v18202_v38 = vadd.f32 %v17757_v54, %v17966_v55  ;;  %v8457_v21 = vmax.f32 %v18082_v28, 0.0 }
 0x43a   :  { %v18190_v32 = vadd.f32 %v17757_v54, %v20374_v41  ;;  %v18194_v8 = vadd.f32 %v17757_v54, %v20375_v44  ;;  %v18206_v12 = vadd.f32 %v17757_v54, %v17970_v19  ;;  %v18214_v44 = vadd.f32 %v17757_v54, %v17978_v58  ;;  %20381 = vst [vmem:[#allocation7_spill] sm:$0xff] %v18218_v45 }
 0x43b   :  { %20373 = vst [vmem:[#allocation28_spill] sm:$0xff] %v18186_v46  ;;  %20376 = vst [vmem:[#allocation31_spill] sm:$0xff] %v18202_v38  ;;  %v20378_v46 = vld [vmem:[#allocation25_spill] sm:$0xff]  ;;  %v18222_v55 = vadd.f32 %v17757_v54, %v17986_v40  ;;  %v18225_v38 = vmax.f32 %v17990_v9, 0.0  ;;  %v18227_v19 = vmax.f32 %v8367_v3, 0.0  ;;  %v18235_v58 = vmax.f32 %v8371_v47, 0.0 }
 0x43c   :  { %20377 = vst [vmem:[#allocation30_spill] sm:$0xff] %v18206_v12  ;;  %v18210_v41 = vadd.f32 %v17757_v54, %v20378_v46  ;;  %20380 = vst [vmem:[#allocation34_spill] sm:$0xff] %v18214_v44  ;;  %v18229_v12 = vmax.f32 %v8368_v61, 0.0  ;;  %v18231_v46 = vmax.f32 %v8369_v4, 0.0  ;;  %v18237_v44 = vmax.f32 %v8372_v14, 0.0 }
 0x43d   :  { %v18241_v45 = vmax.f32 %v8374_v62, 0.0  ;;  %8495 = vst [vmem:[#allocation4 + $0x28] sm:$0xff] %v18225_v38  ;;  %v18245_v54 = vmax.f32 %v18010_v16, 0.0  ;;  %v18248_v61 = vmax.f32 %v18014_v25, 0.0  ;;  %v18251_v40 = vmax.f32 %v18018_v57, 0.0  ;;  %8496 = vst [vmem:[#allocation4 + $0x30] sm:$0xff] %v18227_v19 }
 0x43e   :  { %20379 = vst [vmem:[#allocation11_spill] sm:$0xff] %v18210_v41  ;;  %v18233_v41 = vmax.f32 %v8370_v36, 0.0  ;;  %v18254_v9 = vmax.f32 %v18022_v15, 0.0  ;;  %8497 = vst [vmem:[#allocation4 + $0x48] sm:$0xff] %v18229_v12  ;;  %v18261_v3 = vmax.f32 %v18026_v49, 0.0  ;;  %v18264_v4 = vmax.f32 %v18030_v10, 0.0 }
 0x43f   :  { %8498 = vst [vmem:[#allocation4 + $0x50] sm:$0xff] %v18231_v46  ;;  %v8445_v36 = vmax.f32 %v18034_v27, 0.0  ;;  %v8446_v47 = vmax.f32 %v18038_v34, 0.0  ;;  %8500 = vst [vmem:[#allocation4 + $0x70] sm:$0xff] %v18235_v58  ;;  %v8447_v14 = vmax.f32 %v18042_v26, 0.0  ;;  %v8449_v62 = vmax.f32 %v18050_v23, 0.0 }
 0x440   :  { %8499 = vst [vmem:[#allocation4 + $0x68] sm:$0xff] %v18233_v41  ;;  %8501 = vst [vmem:[#allocation4 + $0x88] sm:$0xff] %v18237_v44  ;;  %v8450_v16 = vmax.f32 %v18054_v48, 0.0  ;;  %v8451_v25 = vmax.f32 %v18058_v30, 0.0  ;;  %v8452_v57 = vmax.f32 %v18062_v51, 0.0  ;;  %v8453_v15 = vmax.f32 %v18066_v2, 0.0 }
 0x441   :  { %8502 = vst [vmem:[#allocation4 + $0x90] sm:$0xff] %v18239_v56  ;;  %8503 = vst [vmem:[#allocation4 + $0xa8] sm:$0xff] %v18241_v45  ;;  %v8454_v49 = vmax.f32 %v18070_v52, 0.0  ;;  %v8455_v10 = vmax.f32 %v18074_v17, 0.0  ;;  %v8456_v26 = vmax.f32 %v18078_v0, 0.0  ;;  %v8458_v23 = vmax.f32 %v18086_v13, 0.0 }
 0x442   :  { %8504 = vst [vmem:[#allocation4 + $0xb0] sm:$0xff] %v18245_v54  ;;  %8505 = vst [vmem:[#allocation4 + $0xc8] sm:$0xff] %v18248_v61  ;;  %v8459_v48 = vmax.f32 %v18090_v59, 0.0  ;;  %v8460_v30 = vmax.f32 %v18094_v1, 0.0  ;;  %v8461_v51 = vmax.f32 %v18098_v18, 0.0  ;;  %v8462_v2 = vmax.f32 %v18102_v11, 0.0 }
 0x443   :  { %8506 = vst [vmem:[#allocation4 + $0xd0] sm:$0xff] %v18251_v40  ;;  %8507 = vst [vmem:[#allocation4 + $0xe8] sm:$0xff] %v18254_v9  ;;  %v8463_v52 = vmax.f32 %v18106_v42, 0.0  ;;  %v8464_v17 = vmax.f32 %v18110_v24, 0.0  ;;  %v8465_v0 = vmax.f32 %v18114_v63, 0.0  ;;  %v8466_v28 = vmax.f32 %v18118_v37, 0.0 }
 0x444   :  { %8508 = vst [vmem:[#allocation4 + $0xf0] sm:$0xff] %v18261_v3  ;;  %8509 = vst [vmem:[#allocation4 + $0x108] sm:$0xff] %v18264_v4  ;;  %v8467_v13 = vmax.f32 %v18122_v43, 0.0  ;;  %v8468_v59 = vmax.f32 %v18126_v35, 0.0  ;;  %v8469_v1 = vmax.f32 %v18130_v7, 0.0  ;;  %v8470_v18 = vmax.f32 %v18134_v31, 0.0 }
 0x445   :  { %8510 = vst [vmem:[#allocation4 + $0x110] sm:$0xff] %v8445_v36  ;;  %8511 = vst [vmem:[#allocation4 + $0x128] sm:$0xff] %v8446_v47  ;;  %v8471_v11 = vmax.f32 %v18138_v60, 0.0  ;;  %v8472_v42 = vmax.f32 %v18142_v53, 0.0  ;;  %v8473_v24 = vmax.f32 %v18146_v6, 0.0  ;;  %v8474_v63 = vmax.f32 %v18150_v20, 0.0 }
 0x446   :  { %8512 = vst [vmem:[#allocation4 + $0x130] sm:$0xff] %v8447_v14  ;;  %8513 = vst [vmem:[#allocation4 + $0x148] sm:$0xff] %v8448_v22  ;;  %v8475_v37 = vmax.f32 %v18154_v5, 0.0  ;;  %v20382_v43 = vld [vmem:[#allocation24_spill] sm:$0xff]  ;;  %v20383_v7 = vld [vmem:[#allocation27_spill] sm:$0xff]  ;;  %v8480_v20 = vmax.f32 %v18174_v29, 0.0 }
 0x447   :  { %8514 = vst [vmem:[#allocation4 + $0x150] sm:$0xff] %v8449_v62  ;;  %8515 = vst [vmem:[#allocation4 + $0x168] sm:$0xff] %v8450_v16  ;;  %v8476_v35 = vmax.f32 %v20382_v43, 0.0  ;;  %v8477_v31 = vmax.f32 %v20383_v7, 0.0  ;;  %v20384_v14 = vld [vmem:[#allocation26_spill] sm:$0xff]  ;;  %v20385_v53 = vld [vmem:[#allocation29_spill] sm:$0xff] }
 0x448   :  { %8516 = vst [vmem:[#allocation4 + $0x170] sm:$0xff] %v8451_v25  ;;  %8517 = vst [vmem:[#allocation4 + $0x188] sm:$0xff] %v8452_v57  ;;  %v8478_v22 = vmax.f32 %v20384_v14, 0.0  ;;  %v18317_v60 = vld [vmem:[%s20135_s4 + $0x3] ss:$0 sm:$0xff]  ;;  %v8479_v6 = vmax.f32 %v20385_v53, 0.0 }
 0x449   :  { %8518 = vst [vmem:[#allocation4 + $0x190] sm:$0xff] %v8453_v15  ;;  %8519 = vst [vmem:[#allocation4 + $0x1a8] sm:$0xff] %v8454_v49  ;;  %v8481_v5 = vmax.f32 %v18178_v39, 0.0  ;;  %v8482_v62 = vmax.f32 %v18182_v50, 0.0  ;;  %v9406_v16 = vld [vmem:[#allocation4 + $0x27] sm:$0xff]  ;;  %v8484_v49 = vmax.f32 %v18190_v32, 0.0 }
 0x44a   :  { %8520 = vst [vmem:[#allocation4 + $0x1b0] sm:$0xff] %v8455_v10  ;;  %8521 = vst [vmem:[#allocation4 + $0x1c8] sm:$0xff] %v8456_v26  ;;  %v18326_v25 = vld [vmem:[%s20135_s4 + $0x4] ss:$0 sm:$0xff]  ;;  %v20386_v57 = vld [vmem:[#allocation28_spill] sm:$0xff]  ;;  %v8485_v29 = vmax.f32 %v18194_v8, 0.0 }
 0x44b   :  { %8522 = vst [vmem:[#allocation4 + $0x1d0] sm:$0xff] %v8457_v21  ;;  %8523 = vst [vmem:[#allocation4 + $0x1e8] sm:$0xff] %v8458_v23  ;;  %v8483_v15 = vmax.f32 %v20386_v57, 0.0  ;;  %v8486_v39 = vmax.f32 %v18198_v33, 0.0  ;;  %v18335_v50 = vld [vmem:[%s20135_s4 + $0x5] ss:$0 sm:$0xff] }
 0x44c   :  { %8524 = vst [vmem:[#allocation4 + $0x1f0] sm:$0xff] %v8459_v48  ;;  %8525 = vst [vmem:[#allocation4 + $0x208] sm:$0xff] %v8460_v30  ;;  %v20387_v10 = vld [vmem:[#allocation31_spill] sm:$0xff]  ;;  %v20388_v21 = vld [vmem:[#allocation30_spill] sm:$0xff] }
 0x44d   :  { %8526 = vst [vmem:[#allocation4 + $0x210] sm:$0xff] %v8461_v51  ;;  %8527 = vst [vmem:[#allocation4 + $0x268] sm:$0xff] %v8462_v2  ;;  %v8487_v26 = vmax.f32 %v20387_v10, 0.0  ;;  %v8488_v23 = vmax.f32 %v20388_v21, 0.0  ;;  %v20389_v48 = vld [vmem:[#allocation11_spill] sm:$0xff]  ;;  %v20390_v32 = vld [vmem:[#allocation34_spill] sm:$0xff] }
 0x44e   :  { %8528 = vst [vmem:[#allocation4 + $0x270] sm:$0xff] %v8463_v52  ;;  %8529 = vst [vmem:[#allocation4 + $0x288] sm:$0xff] %v8464_v17  ;;  %v8489_v30 = vmax.f32 %v20389_v48, 0.0  ;;  %v8490_v51 = vmax.f32 %v20390_v32, 0.0  ;;  %v9407_v8 = vld [vmem:[#allocation4 + $0x2f] sm:$0xff]  ;;  %v20391_v33 = vld [vmem:[#allocation7_spill] sm:$0xff]  ;;  %v9475_v17 = vmul.f32 %v18317_v60, %v9406_v16 }
 0x44f   :  { %8530 = vst [vmem:[#allocation4 + $0x290] sm:$0xff] %v8465_v0  ;;  %8531 = vst [vmem:[#allocation4 + $0x2a8] sm:$0xff] %v8466_v28  ;;  %v8491_v2 = vmax.f32 %v20391_v33, 0.0  ;;  %v8493_v52 = vmax.f32 %v18222_v55, 0.0  ;;  %v10056_v0 = vld [vmem:[#allocation4 + $0x29] sm:$0xff]  ;;  %v9476_v43 = vmul.f32 %v18317_v60, %v9407_v8 }
 0x450   :  { %8532 = vst [vmem:[#allocation4 + $0x2b0] sm:$0xff] %v8467_v13  ;;  %8533 = vst [vmem:[#allocation4 + $0x2c8] sm:$0xff] %v8468_v59  ;;  %v10382_v28 = vld [vmem:[#allocation4 + $0x47] sm:$0xff]  ;;  %v18347_v13 = vld [vmem:[%s20135_s4 + $0x6] ss:$0 sm:$0xff] }
 0x451   :  { %8534 = vst [vmem:[#allocation4 + $0x2d0] sm:$0xff] %v8469_v1  ;;  %8535 = vst [vmem:[#allocation4 + $0x2e8] sm:$0xff] %v8470_v18  ;;  %v20392_v59 = vld [vmem:[#allocation36_spill] sm:$0xff]  ;;  %v20393_v1 = vld [vmem:[#allocation37_spill] sm:$0xff]  ;;  %v10451_v14 = vmul.f32 %v18347_v13, %v10382_v28 }
 0x452   :  { %8536 = vst [vmem:[#allocation4 + $0x2f0] sm:$0xff] %v8471_v11  ;;  %8537 = vst [vmem:[#allocation4 + $0x308] sm:$0xff] %v8472_v42  ;;  %v9279_v18 = vadd.f32 %v20393_v1, %v20392_v59  ;;  %v18354_v55 = vld [vmem:[%s20135_s4 + $0x7] ss:$0 sm:$0xff]  ;;  %v18359_v11 = vld [vmem:[%s20135_s4 + $0x8] ss:$0 sm:$0xff]  ;;  %v9477_v59 = vmul.f32 %v18317_v60, %v10382_v28 }
 0x453   :  { %8538 = vst [vmem:[#allocation4 + $0x310] sm:$0xff] %v8473_v24  ;;  %8539 = vst [vmem:[#allocation4 + $0x328] sm:$0xff] %v8474_v63  ;;  %v20394_v42 = vld [vmem:[#allocation35_spill] sm:$0xff]  ;;  %v9800_v63 = vmul.f32 %v18326_v25, %v18225_v38  ;;  %v10383_v7 = vld [vmem:[#allocation4 + $0x4f] sm:$0xff] }
 0x454   :  { %8540 = vst [vmem:[#allocation4 + $0x330] sm:$0xff] %v8475_v37  ;;  %8541 = vst [vmem:[#allocation4 + $0x348] sm:$0xff] %v8476_v35  ;;  %v9603_v24 = vadd.f32 %v9475_v17, %v20394_v42  ;;  %v11032_v37 = vld [vmem:[#allocation4 + $0x49] sm:$0xff]  ;;  %v10057_v35 = vld [vmem:[#allocation4 + $0x31] sm:$0xff]  ;;  %v10452_v10 = vmul.f32 %v18347_v13, %v10383_v7 }
 0x455   :  { %8542 = vst [vmem:[#allocation4 + $0x350] sm:$0xff] %v8477_v31  ;;  %8543 = vst [vmem:[#allocation4 + $0x368] sm:$0xff] %v8478_v22  ;;  %v10125_v31 = vmul.f32 %v18335_v50, %v10056_v0  ;;  %v20395_v22 = vld [vmem:[#allocation16_spill] sm:$0xff]  ;;  %v20396_v57 = vld [vmem:[#allocation17_spill] sm:$0xff]  ;;  %v10127_v1 = vmul.f32 %v18335_v50, %v11032_v37 }
 0x456   :  { %8544 = vst [vmem:[#allocation4 + $0x370] sm:$0xff] %v8479_v6  ;;  %8545 = vst [vmem:[#allocation4 + $0x388] sm:$0xff] %v8480_v20  ;;  %v8630_v53 = vmul.f32 %v20395_v22, %v9406_v16  ;;  %v9928_v6 = vadd.f32 %v9800_v63, %v9603_v24  ;;  %v9604_v20 = vadd.f32 %v9476_v43, %v9279_v18  ;;  %v10384_v32 = vld [vmem:[#allocation4 + $0x67] sm:$0xff] }
 0x457   :  { %8546 = vst [vmem:[#allocation4 + $0x390] sm:$0xff] %v8481_v5  ;;  %8547 = vst [vmem:[#allocation4 + $0x3a8] sm:$0xff] %v8482_v62  ;;  %v9801_v5 = vmul.f32 %v18326_v25, %v18227_v19  ;;  %v18370_v62 = vld [vmem:[#allocation4 + $0x51] sm:$0xff]  ;;  %v8828_v33 = vmul.f32 %v20396_v57, %v18227_v19  ;;  %v8772_v27 = vld [vmem:[#allocation4 + $0x108] sm:$0xff] }
 0x458   :  { %8548 = vst [vmem:[#allocation4 + $0x3b0] sm:$0xff] %v8483_v15  ;;  %8549 = vst [vmem:[#allocation4 + $0x3c8] sm:$0xff] %v8484_v49  ;;  %v8827_v15 = vmul.f32 %v20396_v57, %v18225_v38  ;;  %v10776_v49 = vmul.f32 %v18354_v55, %v18229_v12  ;;  %v10253_v16 = vadd.f32 %v10125_v31, %v9928_v6  ;;  %v11034_v31 = vld [vmem:[#allocation4 + $0x69] sm:$0xff] }
 0x459   :  { %8550 = vst [vmem:[#allocation4 + $0x3d0] sm:$0xff] %v8485_v29  ;;  %8551 = vst [vmem:[#allocation4 + $0x3e8] sm:$0xff] %v8486_v39  ;;  %v11101_v29 = vmul.f32 %v18359_v11, %v11032_v37  ;;  %v10126_v39 = vmul.f32 %v18335_v50, %v10057_v35  ;;  %v11102_v38 = vmul.f32 %v18359_v11, %v18370_v62 }
 0x45a   :  { %8552 = vst [vmem:[#allocation4 + $0x3f0] sm:$0xff] %v8487_v26  ;;  %8553 = vst [vmem:[#allocation4 + $0x408] sm:$0xff] %v8488_v23  ;;  %v9929_v26 = vadd.f32 %v9801_v5, %v9604_v20  ;;  %v8955_v21 = vadd.f32 %v8827_v15, %v8630_v53  ;;  %v20397_v23 = vld [vmem:[#allocation33_spill] sm:$0xff]  ;;  %v8632_v53 = vmul.f32 %v20395_v22, %v10382_v28 }
 0x45b   :  { %8554 = vst [vmem:[#allocation4 + $0x410] sm:$0xff] %v8489_v30  ;;  %8555 = vst [vmem:[#allocation4 + $0x428] sm:$0xff] %v8490_v51  ;;  %v9152_v48 = vmul.f32 %v20397_v23, %v10056_v0  ;;  %v10777_v30 = vmul.f32 %v18354_v55, %v18231_v46  ;;  %v8631_v51 = vmul.f32 %v20395_v22, %v9407_v8 }
 0x45c   :  { %8556 = vst [vmem:[#allocation4 + $0x430] sm:$0xff] %v8491_v2  ;;  %8558 = vst [vmem:[#allocation4 + $0x450] sm:$0xff] %v8493_v52  ;;  %v10579_v2 = vadd.f32 %v10451_v14, %v10253_v16  ;;  %v10254_v52 = vadd.f32 %v10126_v39, %v9929_v26  ;;  %v9802_v0 = vmul.f32 %v18326_v25, %v18229_v12 }
 0x45d   :  { %v9280_v17 = vadd.f32 %v9152_v48, %v8955_v21  ;;  %v8956_v18 = vadd.f32 %v8828_v33, %v8631_v51  ;;  %v9153_v42 = vmul.f32 %v20397_v23, %v10057_v35  ;;  %v10453_v8 = vmul.f32 %v18347_v13, %v10384_v32 }
 0x45e   :  { %v10904_v24 = vadd.f32 %v10776_v49, %v10579_v2  ;;  %v10580_v63 = vadd.f32 %v10452_v10, %v10254_v52  ;;  %v9478_v14 = vmul.f32 %v18317_v60, %v10383_v7  ;;  %v8829_v6 = vmul.f32 %v20396_v57, %v18229_v12  ;;  %v10385_v49 = vld [vmem:[#allocation4 + $0x6f] sm:$0xff] }
 0x45f   :  { %v9605_v43 = vadd.f32 %v9477_v59, %v9280_v17  ;;  %v9281_v19 = vadd.f32 %v9153_v42, %v8956_v18  ;;  %v10778_v35 = vmul.f32 %v18354_v55, %v18233_v41  ;;  %v9803_v10 = vmul.f32 %v18326_v25, %v18231_v46  ;;  %v10386_v17 = vld [vmem:[#allocation4 + $0x87] sm:$0xff] }
 0x460   :  { %v11229_v20 = vadd.f32 %v11101_v29, %v10904_v24  ;;  %v10905_v5 = vadd.f32 %v10777_v30, %v10580_v63  ;;  %v8957_v16 = vadd.f32 %v8829_v6, %v8632_v53  ;;  %v9154_v26 = vmul.f32 %v20397_v23, %v11032_v37  ;;  %v11035_v29 = vld [vmem:[#allocation4 + $0x71] sm:$0xff] }
 0x461   :  { %v9930_v15 = vadd.f32 %v9802_v0, %v9605_v43  ;;  %v9606_v39 = vadd.f32 %v9478_v14, %v9281_v19  ;;  %v11103_v48 = vmul.f32 %v18359_v11, %v11034_v31  ;;  %v10128_v12 = vmul.f32 %v18335_v50, %v18370_v62  ;;  %v18416_v43 = vld [vmem:[#allocation4 + $0x89] sm:$0xff] }
 0x462   :  { %14605 = vmatprep.mubr.f32.mxu1 %v11229_v20  ;;  %v11230_v21 = vadd.f32 %v11102_v38, %v10905_v5  ;;  %v10454_v51 = vmul.f32 %v18347_v13, %v10385_v49  ;;  %v9282_v33 = vadd.f32 %v9154_v26, %v8957_v16  ;;  %v9479_v2 = vmul.f32 %v18317_v60, %v10384_v32  ;;  %v10387_v5 = vld [vmem:[#allocation4 + $0x8f] sm:$0xff] }
 0x463   :  { %v10255_v28 = vadd.f32 %v10127_v1, %v9930_v15  ;;  %v9931_v30 = vadd.f32 %v9803_v10, %v9606_v39  ;;  %v10779_v37 = vmul.f32 %v18354_v55, %v18235_v58  ;;  %v8633_v38 = vmul.f32 %v20395_v22, %v10383_v7 }
 0x464   :  { %14606 = vmatmul.mubr.f32.vlgmr.msra.gmra.mrb[64].mxu1 %v11230_v21  ;;  %v8830_v59 = vmul.f32 %v20396_v57, %v18231_v46  ;;  %v11104_v1 = vmul.f32 %v18359_v11, %v11035_v29  ;;  %v9607_v18 = vadd.f32 %v9479_v2, %v9282_v33  ;;  %v9804_v42 = vmul.f32 %v18326_v25, %v18233_v41 }
 0x465   :  { %v10581_v52 = vadd.f32 %v10453_v8, %v10255_v28  ;;  %v10256_v0 = vadd.f32 %v10128_v12, %v9931_v30  ;;  %v10129_v63 = vmul.f32 %v18335_v50, %v11034_v31  ;;  %v9155_v19 = vmul.f32 %v20397_v23, %v18370_v62  ;;  %v18431_v28 = vld [vmem:[#allocation4 + $0x91] sm:$0xff] }
 0x466   :  { %v8958_v8 = vadd.f32 %v8830_v59, %v8633_v38  ;;  %v9932_v14 = vadd.f32 %v9804_v42, %v9607_v18  ;;  %v10455_v46 = vmul.f32 %v18347_v13, %v10386_v17  ;;  %v9480_v53 = vmul.f32 %v18317_v60, %v10385_v49 }
 0x467   :  { %v10906_v24 = vadd.f32 %v10778_v35, %v10581_v52  ;;  %v10582_v7 = vadd.f32 %v10454_v51, %v10256_v0  ;;  %v8634_v15 = vmul.f32 %v20395_v22, %v10384_v32  ;;  %v8831_v35 = vmul.f32 %v20396_v57, %v18233_v41 }
 0x468   :  { %v9283_v20 = vadd.f32 %v9155_v19, %v8958_v8  ;;  %v10257_v10 = vadd.f32 %v10129_v63, %v9932_v14  ;;  %v10780_v16 = vmul.f32 %v18354_v55, %v18237_v44  ;;  %v11105_v62 = vmul.f32 %v18359_v11, %v18416_v43 }
 0x469   :  { %v11231_v6 = vadd.f32 %v11103_v48, %v10906_v24  ;;  %v10907_v39 = vadd.f32 %v10779_v37, %v10582_v7  ;;  %v9805_v21 = vmul.f32 %v18326_v25, %v18235_v58  ;;  %v8959_v48 = vadd.f32 %v8831_v35, %v8634_v15  ;;  %v10388_v37 = vld [vmem:[#allocation4 + $0xa7] sm:$0xff] }
 0x46a   :  { %v9608_v26 = vadd.f32 %v9480_v53, %v9283_v20  ;;  %v9156_v32 = vmul.f32 %v20397_v23, %v11034_v31  ;;  %v10583_v41 = vadd.f32 %v10455_v46, %v10257_v10  ;;  %v10130_v30 = vmul.f32 %v18335_v50, %v11035_v29 }
 0x46b   :  { %14608 = vmatprep.mubr.f32.mxu1 %v11231_v6  ;;  %v11232_v12 = vadd.f32 %v11104_v1, %v10907_v39  ;;  %v10456_v51 = vmul.f32 %v18347_v13, %v10387_v5  ;;  %v9481_v52 = vmul.f32 %v18317_v60, %v10386_v17  ;;  %v8635_v38 = vmul.f32 %v20395_v22, %v10385_v49  ;;  %v11038_v49 = vld [vmem:[#allocation4 + $0xa9] sm:$0xff] }
 0x46c   :  { %v9933_v33 = vadd.f32 %v9805_v21, %v9608_v26  ;;  %v9284_v2 = vadd.f32 %v9156_v32, %v8959_v48  ;;  %v10908_v59 = vadd.f32 %v10780_v16, %v10583_v41  ;;  %v10781_v0 = vmul.f32 %v18354_v55, %v18239_v56  ;;  %v10389_v6 = vld [vmem:[#allocation4 + $0xaf] sm:$0xff] }
 0x46d   :  { %14609 = vmatmul.mubr.f32.gmra.mrb[66].mxu1 %v11232_v12  ;;  %v11106_v31 = vmul.f32 %v18359_v11, %v18431_v28  ;;  %v8832_v1 = vmul.f32 %v20396_v57, %v18235_v58  ;;  %v9806_v24 = vmul.f32 %v18326_v25, %v18237_v44  ;;  %v10131_v63 = vmul.f32 %v18335_v50, %v18416_v43  ;;  %v18462_v48 = vld [vmem:[#allocation4 + $0xb1] sm:$0xff] }
 0x46e   :  { %v10258_v18 = vadd.f32 %v10130_v30, %v9933_v33  ;;  %v9609_v42 = vadd.f32 %v9481_v52, %v9284_v2  ;;  %v11233_v8 = vadd.f32 %v11105_v62, %v10908_v59  ;;  %v10457_v19 = vmul.f32 %v18347_v13, %v10388_v37 }
 0x46f   :  { %v8960_v7 = vadd.f32 %v8832_v1, %v8635_v38  ;;  %v9157_v14 = vmul.f32 %v20397_v23, %v11035_v29  ;;  %v10782_v58 = vmul.f32 %v18354_v55, %v18241_v45  ;;  %v8636_v20 = vmul.f32 %v20395_v22, %v10386_v17  ;;  %v10390_v38 = vld [vmem:[#allocation4 + $0xc7] sm:$0xff] }
 0x470   :  { %v10584_v46 = vadd.f32 %v10456_v51, %v10258_v18  ;;  %v9934_v53 = vadd.f32 %v9806_v24, %v9609_v42  ;;  %14611 = vmatprep.mubr.f32.mxu1 %v11233_v8  ;;  %v11107_v15 = vmul.f32 %v18359_v11, %v11038_v49  ;;  %v9482_v39 = vmul.f32 %v18317_v60, %v10387_v5  ;;  %v18477_v42 = vld [vmem:[#allocation4 + $0xc9] sm:$0xff] }
 0x471   :  { %v9285_v35 = vadd.f32 %v9157_v14, %v8960_v7  ;;  %v8833_v10 = vmul.f32 %v20396_v57, %v18237_v44  ;;  %v9807_v29 = vmul.f32 %v18326_v25, %v18239_v56  ;;  %v10132_v26 = vmul.f32 %v18335_v50, %v18431_v28 }
 0x472   :  { %v10909_v16 = vadd.f32 %v10781_v0, %v10584_v46  ;;  %v10259_v62 = vadd.f32 %v10131_v63, %v9934_v53  ;;  %v10458_v17 = vmul.f32 %v18347_v13, %v10389_v6  ;;  %v9158_v12 = vmul.f32 %v20397_v23, %v18416_v43 }
 0x473   :  { %v9610_v21 = vadd.f32 %v9482_v39, %v9285_v35  ;;  %v8961_v32 = vadd.f32 %v8833_v10, %v8636_v20  ;;  %v10783_v44 = vmul.f32 %v18354_v55, %v18245_v54  ;;  %v8637_v51 = vmul.f32 %v20395_v22, %v10387_v5 }
 0x474   :  { %v11234_v41 = vadd.f32 %v11106_v31, %v10909_v16  ;;  %v10585_v30 = vadd.f32 %v10457_v19, %v10259_v62  ;;  %v9483_v52 = vmul.f32 %v18317_v60, %v10388_v37  ;;  %v8834_v59 = vmul.f32 %v20396_v57, %v18239_v56  ;;  %v18493_v62 = vld [vmem:[#allocation4 + $0xd1] sm:$0xff] }
 0x475   :  { %v9935_v33 = vadd.f32 %v9807_v29, %v9610_v21  ;;  %v9286_v2 = vadd.f32 %v9158_v12, %v8961_v32  ;;  %v11108_v43 = vmul.f32 %v18359_v11, %v18462_v48  ;;  %v9808_v31 = vmul.f32 %v18326_v25, %v18241_v45 }
 0x476   :  { %14612 = vmatmul.mubr.f32.gmra.mrb[68].mxu1 %v11234_v41  ;;  %v10910_v0 = vadd.f32 %v10782_v58, %v10585_v30  ;;  %v10133_v1 = vmul.f32 %v18335_v50, %v11038_v49  ;;  %v8962_v24 = vadd.f32 %v8834_v59, %v8637_v51  ;;  %v9159_v63 = vmul.f32 %v20397_v23, %v18431_v28  ;;  %v10391_v58 = vld [vmem:[#allocation4 + $0xcf] sm:$0xff] }
 0x477   :  { %v10260_v18 = vadd.f32 %v10132_v26, %v9935_v33  ;;  %v9611_v5 = vadd.f32 %v9483_v52, %v9286_v2  ;;  %v10459_v56 = vmul.f32 %v18347_v13, %v10390_v38  ;;  %v9484_v19 = vmul.f32 %v18317_v60, %v10389_v6 }
 0x478   :  { %v11235_v8 = vadd.f32 %v11107_v15, %v10910_v0  ;;  %v8638_v7 = vmul.f32 %v20395_v22, %v10388_v37  ;;  %v9287_v53 = vadd.f32 %v9159_v63, %v8962_v24  ;;  %v8835_v20 = vmul.f32 %v20396_v57, %v18241_v45 }
 0x479   :  { %v10586_v14 = vadd.f32 %v10458_v17, %v10260_v18  ;;  %v9936_v46 = vadd.f32 %v9808_v31, %v9611_v5  ;;  %v10784_v35 = vmul.f32 %v18354_v55, %v18248_v61  ;;  %v11109_v28 = vmul.f32 %v18359_v11, %v18477_v42 }
 0x47a   :  { %14614 = vmatprep.mubr.f32.mxu1 %v11235_v8  ;;  %v9809_v15 = vmul.f32 %v18326_v25, %v18245_v54  ;;  %v9160_v39 = vmul.f32 %v20397_v23, %v11038_v49  ;;  %v9612_v16 = vadd.f32 %v9484_v19, %v9287_v53  ;;  %v8963_v29 = vadd.f32 %v8835_v20, %v8638_v7  ;;  %v10392_v49 = vld [vmem:[#allocation4 + $0xe7] sm:$0xff]  ;;  %v10393_v8 = vld [vmem:[#allocation4 + $0xef] sm:$0xff] }
 0x47b   :  { %v10911_v37 = vadd.f32 %v10783_v44, %v10586_v14  ;;  %v10261_v10 = vadd.f32 %v10133_v1, %v9936_v46  ;;  %v10134_v45 = vmul.f32 %v18335_v50, %v18462_v48  ;;  %v10460_v26 = vmul.f32 %v18347_v13, %v10391_v58 }
 0x47c   :  { %v9485_v21 = vmul.f32 %v18317_v60, %v10390_v38  ;;  %v8639_v17 = vmul.f32 %v20395_v22, %v10389_v6  ;;  %v9937_v41 = vadd.f32 %v9809_v15, %v9612_v16  ;;  %v9288_v30 = vadd.f32 %v9160_v39, %v8963_v29 }
 0x47d   :  { %v11236_v32 = vadd.f32 %v11108_v43, %v10911_v37  ;;  %v10587_v12 = vadd.f32 %v10459_v56, %v10261_v10  ;;  %v10785_v44 = vmul.f32 %v18354_v55, %v18251_v40  ;;  %v11110_v51 = vmul.f32 %v18359_v11, %v18493_v62  ;;  %v11042_v43 = vld [vmem:[#allocation4 + $0xe9] sm:$0xff]  ;;  %v18534_v10 = vld [vmem:[%s20135_s4] ss:$0 sm:$0xff] }
 0x47e   :  { %v9810_v33 = vmul.f32 %v18326_v25, %v18248_v61  ;;  %v8836_v2 = vmul.f32 %v20396_v57, %v18245_v54  ;;  %v10262_v6 = vadd.f32 %v10134_v45, %v9937_v41  ;;  %v9613_v59 = vadd.f32 %v9485_v21, %v9288_v30  ;;  %v10394_v21 = vld [vmem:[#allocation4 + $0x107] sm:$0xff] }
 0x47f   :  { %14615 = vmatmul.mubr.f32.gmra.mrb[70].mxu1 %v11236_v32  ;;  %v10912_v52 = vadd.f32 %v10784_v35, %v10587_v12  ;;  %v10135_v0 = vmul.f32 %v18335_v50, %v18477_v42  ;;  %v10461_v31 = vmul.f32 %v18347_v13, %v10392_v49  ;;  %v10786_v1 = vmul.f32 %v18354_v55, %v18254_v9 }
 0x480   :  { %v8964_v18 = vadd.f32 %v8836_v2, %v8639_v17  ;;  %v9161_v5 = vmul.f32 %v20397_v23, %v18462_v48  ;;  %v10588_v63 = vadd.f32 %v10460_v26, %v10262_v6  ;;  %v9938_v54 = vadd.f32 %v9810_v33, %v9613_v59  ;;  %v18555_v33 = vld [vmem:[%s20135_s4 + $0x2] ss:$0 sm:$0xff] }
 0x481   :  { %v11237_v24 = vadd.f32 %v11109_v28, %v10912_v52  ;;  %v8640_v56 = vmul.f32 %v20395_v22, %v10390_v38  ;;  %v11111_v19 = vmul.f32 %v18359_v11, %v11042_v43  ;;  %v9486_v14 = vmul.f32 %v18317_v60, %v10391_v58  ;;  %v18525_v38 = vld [vmem:[#allocation4 + $0xf1] sm:$0xff] }
 0x482   :  { %v9289_v7 = vadd.f32 %v9161_v5, %v8964_v18  ;;  %v8837_v46 = vmul.f32 %v20396_v57, %v18248_v61  ;;  %v10913_v53 = vadd.f32 %v10785_v44, %v10588_v63  ;;  %v10263_v20 = vadd.f32 %v10135_v0, %v9938_v54  ;;  %v18550_v44 = vld [vmem:[#allocation4 + $0x109] sm:$0xff] }
 0x483   :  { %14617 = vmatprep.mubr.f32.mxu1 %v11237_v24  ;;  %v9811_v48 = vmul.f32 %v18326_v25, %v18251_v40  ;;  %v10136_v35 = vmul.f32 %v18335_v50, %v18493_v62  ;;  %v10462_v22 = vmul.f32 %v18347_v13, %v10393_v8  ;;  %v9162_v39 = vmul.f32 %v20397_v23, %v18477_v42  ;;  %v18541_v23 = vld [vmem:[%s20135_s4 + $0x1] ss:$0 sm:$0xff]  ;;  %v10395_v18 = vld [vmem:[#allocation4 + $0x10f] sm:$0xff] }
 0x484   :  { %v9614_v28 = vadd.f32 %v9486_v14, %v9289_v7  ;;  %v8965_v15 = vadd.f32 %v8837_v46, %v8640_v56  ;;  %v11238_v37 = vadd.f32 %v11110_v51, %v10913_v53  ;;  %v10589_v61 = vadd.f32 %v10461_v31, %v10263_v20  ;;  %v18571_v7 = vld [vmem:[#allocation4 + $0x111] sm:$0xff] }
 0x485   :  { %v10787_v57 = vmul.f32 %v18354_v55, %v18261_v3  ;;  %v8641_v16 = vmul.f32 %v18534_v10, %v10391_v58  ;;  %v9487_v26 = vmul.f32 %v18317_v60, %v10392_v49  ;;  %v8838_v42 = vmul.f32 %v18541_v23, %v18251_v40 }
 0x486   :  { %v9939_v29 = vadd.f32 %v9811_v48, %v9614_v28  ;;  %v9290_v45 = vadd.f32 %v9162_v39, %v8965_v15  ;;  %14618 = vmatmul.mubr.f32.gmra.mrb[72].mxu1 %v11238_v37  ;;  %v10914_v17 = vadd.f32 %v10786_v1, %v10589_v61  ;;  %v11112_v32 = vmul.f32 %v18359_v11, %v18525_v38 }
 0x487   :  { %v9812_v58 = vmul.f32 %v18326_v25, %v18254_v9  ;;  %v10137_v12 = vmul.f32 %v18335_v50, %v11042_v43  ;;  %v8966_v51 = vadd.f32 %v8838_v42, %v8641_v16  ;;  %v9163_v40 = vmul.f32 %v18555_v33, %v18493_v62 }
 0x488   :  { %v10264_v41 = vadd.f32 %v10136_v35, %v9939_v29  ;;  %v9615_v30 = vadd.f32 %v9487_v26, %v9290_v45  ;;  %v11239_v2 = vadd.f32 %v11111_v19, %v10914_v17  ;;  %v10463_v52 = vmul.f32 %v18347_v13, %v10394_v21  ;;  %v11046_v45 = vld [vmem:[#allocation4 + $0x129] sm:$0xff] }
 0x489   :  { %v9488_v6 = vmul.f32 %v18317_v60, %v10393_v8  ;;  %v8642_v59 = vmul.f32 %v18534_v10, %v10392_v49  ;;  %v9291_v1 = vadd.f32 %v9163_v40, %v8966_v51  ;;  %v8839_v5 = vmul.f32 %v18541_v23, %v18254_v9 }
 0x48a   :  { %v10590_v0 = vadd.f32 %v10462_v22, %v10264_v41  ;;  %v9940_v31 = vadd.f32 %v9812_v58, %v9615_v30  ;;  %14620 = vmatprep.mubr.f32.mxu1 %v11239_v2  ;;  %v10788_v24 = vmul.f32 %v18354_v55, %v18264_v4  ;;  %v11113_v62 = vmul.f32 %v18359_v11, %v18550_v44  ;;  %v18598_v2 = vld [vmem:[#allocation4 + $0x130] sm:$0xff] }
 0x48b   :  { %v9813_v63 = vmul.f32 %v18326_v25, %v18261_v3  ;;  %v9164_v54 = vmul.f32 %v18555_v33, %v11042_v43  ;;  %v9616_v19 = vadd.f32 %v9488_v6, %v9291_v1  ;;  %v8967_v14 = vadd.f32 %v8839_v5, %v8642_v59  ;;  %v10396_v43 = vld [vmem:[#allocation4 + $0x127] sm:$0xff] }
 0x48c   :  { %v10915_v49 = vadd.f32 %v10787_v57, %v10590_v0  ;;  %v10265_v56 = vadd.f32 %v10137_v12, %v9940_v31  ;;  %v10138_v9 = vmul.f32 %v18335_v50, %v18525_v38  ;;  %v10464_v46 = vmul.f32 %v18347_v13, %v10395_v18  ;;  %v10397_v12 = vld [vmem:[#allocation4 + $0x12f] sm:$0xff] }
 0x48d   :  { %v9489_v53 = vmul.f32 %v18317_v60, %v10394_v21  ;;  %v8643_v20 = vmul.f32 %v18534_v10, %v10393_v8  ;;  %v9941_v28 = vadd.f32 %v9813_v63, %v9616_v19  ;;  %v9292_v22 = vadd.f32 %v9164_v54, %v8967_v14  ;;  %v18605_v0 = vld [vmem:[#allocation4 + $0x131] sm:$0xff]  ;;  %v9747_v5 = vld [vmem:[#allocation4 + $0x128] sm:$0xff] }
 0x48e   :  { %v11240_v48 = vadd.f32 %v11112_v32, %v10915_v49  ;;  %v10591_v35 = vadd.f32 %v10463_v52, %v10265_v56  ;;  %v10789_v15 = vmul.f32 %v18354_v55, %v8445_v36  ;;  %v11114_v39 = vmul.f32 %v18359_v11, %v18571_v7  ;;  %v10398_v14 = vld [vmem:[#allocation4 + $0x147] sm:$0xff] }
 0x48f   :  { %v9814_v37 = vmul.f32 %v18326_v25, %v18264_v4  ;;  %v8840_v61 = vmul.f32 %v18541_v23, %v18261_v3  ;;  %v10266_v57 = vadd.f32 %v10138_v9, %v9941_v28  ;;  %v9617_v16 = vadd.f32 %v9489_v53, %v9292_v22  ;;  %v9746_v3 = vld [vmem:[#allocation4 + $0x110] sm:$0xff]  ;;  %v10723_v28 = vld [vmem:[#allocation4 + $0x148] sm:$0xff] }
 0x490   :  { %14621 = vmatmul.mubr.f32.gmra.mrb[74].mxu1 %v11240_v48  ;;  %v10916_v8 = vadd.f32 %v10788_v24, %v10591_v35  ;;  %v10139_v29 = vmul.f32 %v18335_v50, %v18550_v44  ;;  %v10465_v36 = vmul.f32 %v18347_v13, %v10396_v43  ;;  %v10790_v26 = vmul.f32 %v18354_v55, %v8446_v47 }
 0x491   :  { %v8968_v42 = vadd.f32 %v8840_v61, %v8643_v20  ;;  %v9165_v4 = vmul.f32 %v18555_v33, %v18525_v38  ;;  %v10592_v32 = vadd.f32 %v10464_v46, %v10266_v57  ;;  %v9942_v58 = vadd.f32 %v9814_v37, %v9617_v16 }
 0x492   :  { %v11241_v17 = vadd.f32 %v11113_v62, %v10916_v8  ;;  %v8644_v41 = vmul.f32 %v18534_v10, %v10394_v21  ;;  %v11115_v30 = vmul.f32 %v18359_v11, %v11046_v45  ;;  %v9490_v40 = vmul.f32 %v18317_v60, %v10395_v18 }
 0x493   :  { %v9293_v51 = vadd.f32 %v9165_v4, %v8968_v42  ;;  %v8841_v34 = vmul.f32 %v18541_v23, %v8772_v27  ;;  %v10917_v47 = vadd.f32 %v10789_v15, %v10592_v32  ;;  %v10267_v52 = vadd.f32 %v10139_v29, %v9942_v58  ;;  %v10399_v27 = vld [vmem:[#allocation4 + $0x14f] sm:$0xff] }
 0x494   :  { %14623 = vmatprep.mubr.f32.mxu1 %v11241_v17  ;;  %v9815_v38 = vmul.f32 %v18326_v25, %v9746_v3  ;;  %v10140_v6 = vmul.f32 %v18335_v50, %v18571_v7  ;;  %v10466_v21 = vmul.f32 %v18347_v13, %v10397_v12  ;;  %v9166_v1 = vmul.f32 %v18555_v33, %v18550_v44  ;;  %v10724_v32 = vld [vmem:[#allocation4 + $0x150] sm:$0xff] }
 0x495   :  { %v9618_v59 = vadd.f32 %v9490_v40, %v9293_v51  ;;  %v8969_v31 = vadd.f32 %v8841_v34, %v8644_v41  ;;  %v11242_v24 = vadd.f32 %v11114_v39, %v10917_v47  ;;  %v10593_v62 = vadd.f32 %v10465_v36, %v10267_v52  ;;  %v18632_v58 = vld [vmem:[#allocation4 + $0x151] sm:$0xff] }
 0x496   :  { %v10791_v63 = vmul.f32 %v18354_v55, %v18598_v2  ;;  %v8645_v54 = vmul.f32 %v18534_v10, %v10395_v18  ;;  %v9491_v19 = vmul.f32 %v18317_v60, %v10396_v43  ;;  %v8842_v9 = vmul.f32 %v18541_v23, %v9746_v3  ;;  %v18618_v18 = vld [vmem:[#allocation4 + $0x149] sm:$0xff] }
 0x497   :  { %v9943_v49 = vadd.f32 %v9815_v38, %v9618_v59  ;;  %v9294_v56 = vadd.f32 %v9166_v1, %v8969_v31  ;;  %14624 = vmatmul.mubr.f32.gmra.mrb[76].mxu1 %v11242_v24  ;;  %v10918_v46 = vadd.f32 %v10790_v26, %v10593_v62  ;;  %v11116_v44 = vmul.f32 %v18359_v11, %v18605_v0  ;;  %v18639_v59 = vld [vmem:[#allocation4 + $0x168] sm:$0xff] }
 0x498   :  { %v9816_v53 = vmul.f32 %v18326_v25, %v9747_v5  ;;  %v10141_v20 = vmul.f32 %v18335_v50, %v11046_v45  ;;  %v8970_v22 = vadd.f32 %v8842_v9, %v8645_v54  ;;  %v9167_v15 = vmul.f32 %v18555_v33, %v18571_v7  ;;  %v11050_v54 = vld [vmem:[#allocation4 + $0x169] sm:$0xff] }
 0x499   :  { %v10268_v48 = vadd.f32 %v10140_v6, %v9943_v49  ;;  %v9619_v35 = vadd.f32 %v9491_v19, %v9294_v56  ;;  %v11243_v39 = vadd.f32 %v11115_v30, %v10918_v46  ;;  %v10467_v37 = vmul.f32 %v18347_v13, %v10398_v14  ;;  %v10400_v6 = vld [vmem:[#allocation4 + $0x167] sm:$0xff] }
 0x49a   :  { %v9492_v61 = vmul.f32 %v18317_v60, %v10397_v12  ;;  %v8646_v8 = vmul.f32 %v18534_v10, %v10396_v43  ;;  %v9295_v29 = vadd.f32 %v9167_v15, %v8970_v22  ;;  %v8843_v36 = vmul.f32 %v18541_v23, %v9747_v5  ;;  %v18657_v15 = vld [vmem:[#allocation4 + $0x170] sm:$0xff] }
 0x49b   :  { %v10594_v57 = vadd.f32 %v10466_v21, %v10268_v48  ;;  %v9944_v16 = vadd.f32 %v9816_v53, %v9619_v35  ;;  %14626 = vmatprep.mubr.f32.mxu1 %v11243_v39  ;;  %v10792_v26 = vmul.f32 %v18354_v55, %v10723_v28  ;;  %v11117_v42 = vmul.f32 %v18359_v11, %v18618_v18  ;;  %v10401_v53 = vld [vmem:[#allocation4 + $0x16f] sm:$0xff] }
 0x49c   :  { %v9817_v7 = vmul.f32 %v18326_v25, %v18598_v2  ;;  %v9168_v4 = vmul.f32 %v18555_v33, %v11046_v45  ;;  %v9620_v43 = vadd.f32 %v9492_v61, %v9295_v29  ;;  %v8971_v41 = vadd.f32 %v8843_v36, %v8646_v8 }
 0x49d   :  { %v10919_v3 = vadd.f32 %v10791_v63, %v10594_v57  ;;  %v10269_v17 = vadd.f32 %v10141_v20, %v9944_v16  ;;  %v10142_v30 = vmul.f32 %v18335_v50, %v18605_v0  ;;  %v10468_v51 = vmul.f32 %v18347_v13, %v10399_v27  ;;  %v18664_v16 = vld [vmem:[#allocation4 + $0x171] sm:$0xff] }
 0x49e   :  { %v9493_v40 = vmul.f32 %v18317_v60, %v10398_v14  ;;  %v8647_v34 = vmul.f32 %v18534_v10, %v10397_v12  ;;  %v9945_v38 = vadd.f32 %v9817_v7, %v9620_v43  ;;  %v9296_v45 = vadd.f32 %v9168_v4, %v8971_v41  ;;  %v10402_v43 = vld [vmem:[#allocation4 + $0x187] sm:$0xff] }
 0x49f   :  { %v11244_v47 = vadd.f32 %v11116_v44, %v10919_v3  ;;  %v10595_v52 = vadd.f32 %v10467_v37, %v10269_v17  ;;  %v10793_v21 = vmul.f32 %v18354_v55, %v10724_v32  ;;  %v11118_v31 = vmul.f32 %v18359_v11, %v18632_v58 }
 0x4a0   :  { %v9818_v1 = vmul.f32 %v18326_v25, %v10723_v28  ;;  %v8844_v5 = vmul.f32 %v18541_v23, %v18598_v2  ;;  %v10270_v12 = vadd.f32 %v10142_v30, %v9945_v38  ;;  %v9621_v62 = vadd.f32 %v9493_v40, %v9296_v45 }
 0x4a1   :  { %14627 = vmatmul.mubr.f32.gmra.mrb[78].mxu1 %v11244_v47  ;;  %v10920_v24 = vadd.f32 %v10792_v26, %v10595_v52  ;;  %v10143_v63 = vmul.f32 %v18335_v50, %v18618_v18  ;;  %v10469_v49 = vmul.f32 %v18347_v13, %v10400_v6  ;;  %v10794_v56 = vmul.f32 %v18354_v55, %v18639_v59  ;;  %v18678_v52 = vld [vmem:[#allocation4 + $0x189] sm:$0xff] }
 0x4a2   :  { %v8972_v19 = vadd.f32 %v8844_v5, %v8647_v34  ;;  %v9169_v9 = vmul.f32 %v18555_v33, %v18605_v0  ;;  %v10596_v44 = vadd.f32 %v10468_v51, %v10270_v12  ;;  %v9946_v2 = vadd.f32 %v9818_v1, %v9621_v62  ;;  %v10403_v62 = vld [vmem:[#allocation4 + $0x18f] sm:$0xff] }
 0x4a3   :  { %v11245_v46 = vadd.f32 %v11117_v42, %v10920_v24  ;;  %v8648_v20 = vmul.f32 %v18534_v10, %v10398_v14  ;;  %v11119_v48 = vmul.f32 %v18359_v11, %v11050_v54  ;;  %v9494_v22 = vmul.f32 %v18317_v60, %v10399_v27 }
 0x4a4   :  { %v9297_v35 = vadd.f32 %v9169_v9, %v8972_v19  ;;  %v8845_v39 = vmul.f32 %v18541_v23, %v10723_v28  ;;  %v10921_v37 = vadd.f32 %v10793_v21, %v10596_v44  ;;  %v10271_v61 = vadd.f32 %v10143_v63, %v9946_v2  ;;  %v10728_v44 = vld [vmem:[#allocation4 + $0x190] sm:$0xff] }
 0x4a5   :  { %14629 = vmatprep.mubr.f32.mxu1 %v11245_v46  ;;  %v9819_v0 = vmul.f32 %v18326_v25, %v10724_v32  ;;  %v10144_v8 = vmul.f32 %v18335_v50, %v18632_v58  ;;  %v10470_v14 = vmul.f32 %v18347_v13, %v10401_v53  ;;  %v9170_v36 = vmul.f32 %v18555_v33, %v18618_v18  ;;  %v18693_v2 = vld [vmem:[#allocation4 + $0x191] sm:$0xff] }
 0x4a6   :  { %v9622_v57 = vadd.f32 %v9494_v22, %v9297_v35  ;;  %v8973_v29 = vadd.f32 %v8845_v39, %v8648_v20  ;;  %v11246_v26 = vadd.f32 %v11118_v31, %v10921_v37  ;;  %v10597_v42 = vadd.f32 %v10469_v49, %v10271_v61 }
 0x4a7   :  { %v10795_v28 = vmul.f32 %v18354_v55, %v18657_v15  ;;  %v8649_v7 = vmul.f32 %v18534_v10, %v10399_v27  ;;  %v9495_v17 = vmul.f32 %v18317_v60, %v10400_v6  ;;  %v8846_v41 = vmul.f32 %v18541_v23, %v10724_v32  ;;  %v10727_v27 = vld [vmem:[#allocation4 + $0x188] sm:$0xff] }
 0x4a8   :  { %v9947_v4 = vadd.f32 %v9819_v0, %v9622_v57  ;;  %v9298_v3 = vadd.f32 %v9170_v36, %v8973_v29  ;;  %14630 = vmatmul.mubr.f32.gmra.mrb[80].mxu1 %v11246_v26  ;;  %v10922_v30 = vadd.f32 %v10794_v56, %v10597_v42  ;;  %v11120_v51 = vmul.f32 %v18359_v11, %v18664_v16  ;;  %v10404_v0 = vld [vmem:[#allocation4 + $0x1a7] sm:$0xff] }
 0x4a9   :  { %v9820_v18 = vmul.f32 %v18326_v25, %v18639_v59  ;;  %v10145_v40 = vmul.f32 %v18335_v50, %v11050_v54  ;;  %v8974_v38 = vadd.f32 %v8846_v41, %v8649_v7  ;;  %v9171_v45 = vmul.f32 %v18555_v33, %v18632_v58  ;;  %v11054_v7 = vld [vmem:[#allocation4 + $0x1a9] sm:$0xff] }
 0x4aa   :  { %v10272_v34 = vadd.f32 %v10144_v8, %v9947_v4  ;;  %v9623_v47 = vadd.f32 %v9495_v17, %v9298_v3  ;;  %v11247_v32 = vadd.f32 %v11119_v48, %v10922_v30  ;;  %v10471_v21 = vmul.f32 %v18347_v13, %v10402_v43  ;;  %v18700_v8 = vld [vmem:[#allocation4 + $0x1a8] sm:$0xff] }
 0x4ab   :  { %v9496_v31 = vmul.f32 %v18317_v60, %v10401_v53  ;;  %v8650_v1 = vmul.f32 %v18534_v10, %v10400_v6  ;;  %v9299_v12 = vadd.f32 %v9171_v45, %v8974_v38  ;;  %v8847_v63 = vmul.f32 %v18541_v23, %v18639_v59  ;;  %v18720_v45 = vld [vmem:[#allocation4 + $0x1b0] sm:$0xff] }
 0x4ac   :  { %v10598_v5 = vadd.f32 %v10470_v14, %v10272_v34  ;;  %v9948_v24 = vadd.f32 %v9820_v18, %v9623_v47  ;;  %14632 = vmatprep.mubr.f32.mxu1 %v11247_v32  ;;  %v10796_v49 = vmul.f32 %v18354_v55, %v10727_v27  ;;  %v11121_v58 = vmul.f32 %v18359_v11, %v18678_v52  ;;  %v18715_v18 = vld [vmem:[#allocation4 + $0x1af] sm:$0xff] }
 0x4ad   :  { %v9821_v56 = vmul.f32 %v18326_v25, %v18657_v15  ;;  %v9172_v19 = vmul.f32 %v18555_v33, %v11050_v54  ;;  %v9624_v46 = vadd.f32 %v9496_v31, %v9299_v12  ;;  %v8975_v20 = vadd.f32 %v8847_v63, %v8650_v1 }
 0x4ae   :  { %v10923_v9 = vadd.f32 %v10795_v28, %v10598_v5  ;;  %v10273_v6 = vadd.f32 %v10145_v40, %v9948_v24  ;;  %v10146_v59 = vmul.f32 %v18335_v50, %v18664_v16  ;;  %v10472_v48 = vmul.f32 %v18347_v13, %v10403_v62  ;;  %v18728_v24 = vld [vmem:[#allocation4 + $0x1b1] sm:$0xff] }
 0x4af   :  { %v9497_v35 = vmul.f32 %v18317_v60, %v10402_v43  ;;  %v8651_v22 = vmul.f32 %v18534_v10, %v10401_v53  ;;  %v9949_v61 = vadd.f32 %v9821_v56, %v9624_v46  ;;  %v9300_v54 = vadd.f32 %v9172_v19, %v8975_v20 }
 0x4b0   :  { %v11248_v39 = vadd.f32 %v11120_v51, %v10923_v9  ;;  %v10599_v37 = vadd.f32 %v10471_v21, %v10273_v6  ;;  %v10797_v57 = vmul.f32 %v18354_v55, %v10728_v44  ;;  %v11122_v14 = vmul.f32 %v18359_v11, %v18693_v2  ;;  %v18741_v9 = vld [vmem:[#allocation4 + $0x1c7] sm:$0xff] }
 0x4b1   :  { %v9822_v29 = vmul.f32 %v18326_v25, %v10727_v27  ;;  %v8848_v36 = vmul.f32 %v18541_v23, %v18657_v15  ;;  %v10274_v53 = vadd.f32 %v10146_v59, %v9949_v61  ;;  %v9625_v42 = vadd.f32 %v9497_v35, %v9300_v54  ;;  %v18756_v59 = vld [vmem:[%s20135_s4 + $0x5] ss:$0 sm:$0xff] }
 0x4b2   :  { %14633 = vmatmul.mubr.f32.gmra.mrb[82].mxu1 %v11248_v39  ;;  %v10924_v26 = vadd.f32 %v10796_v49, %v10599_v37  ;;  %v10147_v28 = vmul.f32 %v18335_v50, %v18678_v52  ;;  %v10473_v4 = vmul.f32 %v18347_v13, %v10404_v0  ;;  %v10798_v3 = vmul.f32 %v18354_v55, %v18700_v8  ;;  %v18759_v39 = vld [vmem:[#allocation4 + $0x1c9] sm:$0xff] }
 0x4b3   :  { %v8976_v17 = vadd.f32 %v8848_v36, %v8651_v22  ;;  %v9173_v41 = vmul.f32 %v18555_v33, %v18664_v16  ;;  %v10600_v51 = vadd.f32 %v10472_v48, %v10274_v53  ;;  %v9950_v15 = vadd.f32 %v9822_v29, %v9625_v42  ;;  %v10731_v22 = vld [vmem:[#allocation4 + $0x1c8] sm:$0xff] }
 0x4b4   :  { %v11249_v30 = vadd.f32 %v11121_v58, %v10924_v26  ;;  %v8652_v40 = vmul.f32 %v18534_v10, %v10402_v43  ;;  %v11123_v34 = vmul.f32 %v18359_v11, %v11054_v7  ;;  %v9498_v38 = vmul.f32 %v18317_v60, %v10403_v62  ;;  %v18768_v42 = vld [vmem:[#allocation4 + $0x1cf] sm:$0xff] }
 0x4b5   :  { %v9301_v47 = vadd.f32 %v9173_v41, %v8976_v17  ;;  %v8849_v32 = vmul.f32 %v18541_v23, %v10727_v27  ;;  %v10925_v21 = vadd.f32 %v10797_v57, %v10600_v51  ;;  %v10275_v31 = vadd.f32 %v10147_v28, %v9950_v15  ;;  %v18778_v51 = vld [vmem:[#allocation4 + $0x1d1] sm:$0xff] }
 0x4b6   :  { %14635 = vmatprep.mubr.f32.mxu1 %v11249_v30  ;;  %v9823_v16 = vmul.f32 %v18326_v25, %v10728_v44  ;;  %v10148_v1 = vmul.f32 %v18335_v50, %v18693_v2  ;;  %v10474_v43 = vmul.f32 %v18347_v13, %v18715_v18  ;;  %v9174_v60 = vmul.f32 %v18555_v33, %v18678_v52  ;;  %v18738_v50 = vld [vmem:[%s20135_s4 + $0x3] ss:$0 sm:$0xff]  ;;  %v10732_v30 = vld [vmem:[#allocation4 + $0x1d0] sm:$0xff] }
 0x4b7   :  { %v9626_v5 = vadd.f32 %v9498_v38, %v9301_v47  ;;  %v8977_v12 = vadd.f32 %v8849_v32, %v8652_v40  ;;  %v11250_v63 = vadd.f32 %v11122_v14, %v10925_v21  ;;  %v10601_v27 = vadd.f32 %v10473_v4, %v10275_v31  ;;  %v10408_v21 = vld [vmem:[#allocation4 + $0x1e7] sm:$0xff] }
 0x4b8   :  { %v10799_v49 = vmul.f32 %v18354_v55, %v18720_v45  ;;  %v8653_v25 = vmul.f32 %v18534_v10, %v10403_v62  ;;  %v9499_v19 = vmul.f32 %v18738_v50, %v10404_v0  ;;  %v8850_v52 = vmul.f32 %v18541_v23, %v10728_v44  ;;  %v18749_v62 = vld [vmem:[%s20135_s4 + $0x4] ss:$0 sm:$0xff]  ;;  %v18793_v31 = vld [vmem:[#allocation4 + $0x1e8] sm:$0xff] }
 0x4b9   :  { %v9951_v58 = vadd.f32 %v9823_v16, %v9626_v5  ;;  %v9302_v56 = vadd.f32 %v9174_v60, %v8977_v12  ;;  %14636 = vmatmul.mubr.f32.gmra.mrb[84].mxu1 %v11250_v63  ;;  %v10926_v6 = vadd.f32 %v10798_v3, %v10601_v27  ;;  %v11124_v46 = vmul.f32 %v18359_v11, %v18728_v24  ;;  %v18798_v16 = vld [vmem:[%s20135_s4 + $0x7] ss:$0 sm:$0xff]  ;;  %v18804_v5 = vld [vmem:[%s20135_s4 + $0x8] ss:$0 sm:$0xff] }
 0x4ba   :  { %v9824_v20 = vmul.f32 %v18749_v62, %v18700_v8  ;;  %v10149_v44 = vmul.f32 %v18756_v59, %v11054_v7  ;;  %v8978_v37 = vadd.f32 %v8850_v52, %v8653_v25  ;;  %v9175_v61 = vmul.f32 %v18555_v33, %v18693_v2  ;;  %v11058_v25 = vld [vmem:[#allocation4 + $0x1e9] sm:$0xff] }
 0x4bb   :  { %v10276_v48 = vadd.f32 %v10148_v1, %v9951_v58  ;;  %v9627_v35 = vadd.f32 %v9499_v19, %v9302_v56  ;;  %v11251_v54 = vadd.f32 %v11123_v34, %v10926_v6  ;;  %v10475_v57 = vmul.f32 %v18347_v13, %v18741_v9 }
 0x4bc   :  { %v9500_v14 = vmul.f32 %v18738_v50, %v18715_v18  ;;  %v8654_v29 = vmul.f32 %v18534_v10, %v10404_v0  ;;  %v9303_v53 = vadd.f32 %v9175_v61, %v8978_v37  ;;  %v8851_v28 = vmul.f32 %v18541_v23, %v18700_v8  ;;  %v18823_v61 = vld [vmem:[#allocation4 + $0x1f0] sm:$0xff] }
 0x4bd   :  { %v10602_v36 = vadd.f32 %v10474_v43, %v10276_v48  ;;  %v9952_v26 = vadd.f32 %v9824_v20, %v9627_v35  ;;  %14638 = vmatprep.mubr.f32.mxu1 %v11251_v54  ;;  %v10800_v2 = vmul.f32 %v18354_v55, %v10731_v22  ;;  %v11125_v4 = vmul.f32 %v18359_v11, %v18759_v39  ;;  %v18785_v55 = vld [vmem:[%s20135_s4 + $0x6] ss:$0 sm:$0xff]  ;;  %v10409_v20 = vld [vmem:[#allocation4 + $0x1ef] sm:$0xff] }
 0x4be   :  { %v9825_v13 = vmul.f32 %v18749_v62, %v18720_v45  ;;  %v9176_v3 = vmul.f32 %v18555_v33, %v11054_v7  ;;  %v9628_v41 = vadd.f32 %v9500_v14, %v9303_v53  ;;  %v8979_v15 = vadd.f32 %v8851_v28, %v8654_v29 }
 0x4bf   :  { %v10927_v0 = vadd.f32 %v10799_v49, %v10602_v36  ;;  %v10277_v17 = vadd.f32 %v10149_v44, %v9952_v26  ;;  %v10150_v8 = vmul.f32 %v18756_v59, %v18728_v24  ;;  %v10476_v11 = vmul.f32 %v18785_v55, %v18768_v42  ;;  %v18830_v26 = vld [vmem:[#allocation4 + $0x1f1] sm:$0xff] }
 0x4c0   :  { %v9501_v7 = vmul.f32 %v18738_v50, %v18741_v9  ;;  %v8655_v40 = vmul.f32 %v18534_v10, %v18715_v18  ;;  %v9953_v38 = vadd.f32 %v9825_v13, %v9628_v41  ;;  %v9304_v32 = vadd.f32 %v9176_v3, %v8979_v15  ;;  %v10410_v41 = vld [vmem:[#allocation4 + $0x207] sm:$0xff] }
 0x4c1   :  { %v11252_v34 = vadd.f32 %v11124_v46, %v10927_v0  ;;  %v10603_v47 = vadd.f32 %v10475_v57, %v10277_v17  ;;  %v10801_v1 = vmul.f32 %v18798_v16, %v10732_v30  ;;  %v11126_v18 = vmul.f32 %v18804_v5, %v18778_v51 }
 0x4c2   :  { %v9826_v43 = vmul.f32 %v18749_v62, %v10731_v22  ;;  %v8852_v12 = vmul.f32 %v18541_v23, %v18720_v45  ;;  %v10278_v63 = vadd.f32 %v10150_v8, %v9953_v38  ;;  %v9629_v27 = vadd.f32 %v9501_v7, %v9304_v32 }
 0x4c3   :  { %14639 = vmatmul.mubr.f32.gmra.mrb[86].mxu1 %v11252_v34  ;;  %v10928_v60 = vadd.f32 %v10800_v2, %v10603_v47  ;;  %v10151_v49 = vmul.f32 %v18756_v59, %v18759_v39  ;;  %v10477_v58 = vmul.f32 %v18785_v55, %v10408_v21  ;;  %v10802_v56 = vmul.f32 %v18798_v16, %v18793_v31  ;;  %v11060_v47 = vld [vmem:[#allocation4 + $0x209] sm:$0xff] }
 0x4c4   :  { %v8980_v19 = vadd.f32 %v8852_v12, %v8655_v40  ;;  %v9177_v52 = vmul.f32 %v18555_v33, %v18728_v24  ;;  %v10604_v46 = vadd.f32 %v10476_v11, %v10278_v63  ;;  %v9954_v45 = vadd.f32 %v9826_v43, %v9629_v27  ;;  %v10411_v27 = vld [vmem:[#allocation4 + $0x20f] sm:$0xff] }
 0x4c5   :  { %v11253_v6 = vadd.f32 %v11125_v4, %v10928_v60  ;;  %v8656_v44 = vmul.f32 %v18534_v10, %v18741_v9  ;;  %v11127_v48 = vmul.f32 %v18804_v5, %v11058_v25  ;;  %v9502_v37 = vmul.f32 %v18738_v50, %v18768_v42 }
 0x4c6   :  { %v9305_v35 = vadd.f32 %v9177_v52, %v8980_v19  ;;  %v8853_v54 = vmul.f32 %v18541_v23, %v10731_v22  ;;  %v10929_v57 = vadd.f32 %v10801_v1, %v10604_v46  ;;  %v10279_v24 = vadd.f32 %v10151_v49, %v9954_v45  ;;  %v10736_v46 = vld [vmem:[#allocation4 + $0x210] sm:$0xff] }
 0x4c7   :  { %14641 = vmatprep.mubr.f32.mxu1 %v11253_v6  ;;  %v9827_v14 = vmul.f32 %v18749_v62, %v10732_v30  ;;  %v10152_v29 = vmul.f32 %v18756_v59, %v18778_v51  ;;  %v10478_v9 = vmul.f32 %v18785_v55, %v10409_v20  ;;  %v9178_v28 = vmul.f32 %v18555_v33, %v18759_v39  ;;  %v11061_v45 = vld [vmem:[#allocation4 + $0x211] sm:$0xff] }
 0x4c8   :  { %v9630_v36 = vadd.f32 %v9502_v37, %v9305_v35  ;;  %v8981_v53 = vadd.f32 %v8853_v54, %v8656_v44  ;;  %v11254_v2 = vadd.f32 %v11126_v18, %v10929_v57  ;;  %v10605_v4 = vadd.f32 %v10477_v58, %v10279_v24 }
 0x4c9   :  { %v10803_v22 = vmul.f32 %v18798_v16, %v18823_v61  ;;  %v8657_v13 = vmul.f32 %v18534_v10, %v18768_v42  ;;  %v9503_v17 = vmul.f32 %v18738_v50, %v10408_v21  ;;  %v8854_v15 = vmul.f32 %v18541_v23, %v10732_v30  ;;  %v10735_v42 = vld [vmem:[#allocation4 + $0x208] sm:$0xff] }
 0x4ca   :  { %v9955_v3 = vadd.f32 %v9827_v14, %v9630_v36  ;;  %v9306_v0 = vadd.f32 %v9178_v28, %v8981_v53  ;;  %14642 = vmatmul.mubr.f32.gmra.mrb[88].mxu1 %v11254_v2  ;;  %v10930_v8 = vadd.f32 %v10802_v56, %v10605_v4  ;;  %v11128_v39 = vmul.f32 %v18804_v5, %v18830_v26 }
 0x4cb   :  { %v9828_v11 = vmul.f32 %v18749_v62, %v18793_v31  ;;  %v10153_v7 = vmul.f32 %v18756_v59, %v11058_v25  ;;  %v8982_v38 = vadd.f32 %v8854_v15, %v8657_v13  ;;  %v9179_v32 = vmul.f32 %v18555_v33, %v18778_v51  ;;  %v9113_v13 = vld [vmem:[#allocation4 + $0x249] sm:$0xff] }
 0x4cc   :  { %v10280_v40 = vadd.f32 %v10152_v29, %v9955_v3  ;;  %v9631_v34 = vadd.f32 %v9503_v17, %v9306_v0  ;;  %v11255_v1 = vadd.f32 %v11127_v48, %v10930_v8  ;;  %v10479_v30 = vmul.f32 %v18785_v55, %v10410_v41  ;;  %v8591_v29 = vld [vmem:[#allocation4 + $0x247] sm:$0xff] }
 0x4cd   :  { %v9504_v18 = vmul.f32 %v18738_v50, %v10409_v20  ;;  %v8658_v43 = vmul.f32 %v18534_v10, %v10408_v21  ;;  %v9307_v63 = vadd.f32 %v9179_v32, %v8982_v38  ;;  %v8855_v49 = vmul.f32 %v18541_v23, %v18793_v31  ;;  %v9438_v15 = vld [vmem:[#allocation4 + $0x267] sm:$0xff]  ;;  %v8592_v32 = vld [vmem:[#allocation4 + $0x24f] sm:$0xff] }
 0x4ce   :  { %v10606_v12 = vadd.f32 %v10478_v9, %v10280_v40  ;;  %v9956_v60 = vadd.f32 %v9828_v11, %v9631_v34  ;;  %14644 = vmatprep.mubr.f32.mxu1 %v11255_v1  ;;  %v10804_v58 = vmul.f32 %v18798_v16, %v10735_v42  ;;  %v11129_v56 = vmul.f32 %v18804_v5, %v11060_v47 }
 0x4cf   :  { %v9829_v51 = vmul.f32 %v18749_v62, %v18823_v61  ;;  %v9180_v19 = vmul.f32 %v18555_v33, %v11058_v25  ;;  %v9632_v21 = vadd.f32 %v9504_v18, %v9307_v63  ;;  %v8983_v44 = vadd.f32 %v8855_v49, %v8658_v43  ;;  %v10412_v25 = vld [vmem:[#allocation4 + $0x227] sm:$0xff] }
 0x4d0   :  { %v10931_v52 = vadd.f32 %v10803_v22, %v10606_v12  ;;  %v10281_v6 = vadd.f32 %v10153_v7, %v9956_v60  ;;  %v10154_v48 = vmul.f32 %v18756_v59, %v18830_v26  ;;  %v10480_v31 = vmul.f32 %v18785_v55, %v10411_v27  ;;  %v15260_v7 = vld [vmem:[#allocation4] sm:$0xff]  ;;  %v9763_v12 = vld [vmem:[#allocation4 + $0x268] sm:$0xff]  ;;  %v9114_v60 = vld [vmem:[#allocation4 + $0x251] sm:$0xff] }
 0x4d1   :  { %v9505_v35 = vmul.f32 %v18738_v50, %v10410_v41  ;;  %v8659_v37 = vmul.f32 %v18534_v10, %v10409_v20  ;;  %v9957_v24 = vadd.f32 %v9829_v51, %v9632_v21  ;;  %v9308_v14 = vadd.f32 %v9180_v19, %v8983_v44 }
 0x4d2   :  { %v11256_v54 = vadd.f32 %v11128_v39, %v10931_v52  ;;  %v10607_v57 = vadd.f32 %v10479_v30, %v10281_v6  ;;  %v10805_v36 = vmul.f32 %v18798_v16, %v10736_v46  ;;  %v11130_v9 = vmul.f32 %v18804_v5, %v11061_v45  ;;  %v10413_v30 = vld [vmem:[#allocation4 + $0x22f] sm:$0xff] }
 0x4d3   :  { %v9830_v53 = vmul.f32 %v18749_v62, %v10735_v42  ;;  %v8856_v28 = vmul.f32 %v18541_v23, %v18823_v61  ;;  %v10282_v4 = vadd.f32 %v10154_v48, %v9957_v24  ;;  %v9633_v22 = vadd.f32 %v9505_v35, %v9308_v14  ;;  %v11062_v61 = vld [vmem:[#allocation4 + $0x229] sm:$0xff] }
 0x4d4   :  { %14645 = vmatmul.mubr.f32.gmra.mrb[90].mxu1 %v11256_v54  ;;  %v10932_v2 = vadd.f32 %v10804_v58, %v10607_v57  ;;  %v10155_v20 = vmul.f32 %v18756_v59, %v11060_v47  ;;  %v10481_v3 = vmul.f32 %v18785_v55, %v10412_v25  ;;  %v9181_v17 = vmul.f32 %v18555_v33, %v18830_v26  ;;  %v10088_v6 = vld [vmem:[#allocation4 + $0x269] sm:$0xff]  ;;  %v11063_v54 = vld [vmem:[#allocation4 + $0x231] sm:$0xff] }
 0x4d5   :  { %v8984_v0 = vadd.f32 %v8856_v28, %v8659_v37  ;;  %v8660_v41 = vmul.f32 %v18534_v10, %v8591_v29  ;;  %v10608_v39 = vadd.f32 %v10480_v31, %v10282_v4  ;;  %v9958_v11 = vadd.f32 %v9830_v53, %v9633_v22  ;;  %v10414_v57 = vld [vmem:[#allocation4 + $0x287] sm:$0xff] }
 0x4d6   :  { %v11257_v8 = vadd.f32 %v11129_v56, %v10932_v2  ;;  %v8857_v40 = vmul.f32 %v15260_v7, %v18541_v23  ;;  %v10806_v34 = vmul.f32 %v15260_v7, %v18798_v16  ;;  %v9506_v47 = vmul.f32 %v18738_v50, %v10411_v27  ;;  %v9439_v27 = vld [vmem:[#allocation4 + $0x26f] sm:$0xff] }
 0x4d7   :  { %v9309_v42 = vadd.f32 %v9181_v17, %v8984_v0  ;;  %v9182_v38 = vmul.f32 %v18555_v33, %v9113_v13  ;;  %v10933_v26 = vadd.f32 %v10805_v36, %v10608_v39  ;;  %v10283_v1 = vadd.f32 %v10155_v20, %v9958_v11  ;;  %v10739_v29 = vld [vmem:[#allocation4 + $0x288] sm:$0xff]  ;;  %v9764_v36 = vld [vmem:[#allocation4 + $0x270] sm:$0xff] }
 0x4d8   :  { %14647 = vmatprep.mubr.f32.mxu1 %v11257_v8  ;;  %v8985_v18 = vadd.f32 %v8857_v40, %v8660_v41  ;;  %v9507_v43 = vmul.f32 %v18738_v50, %v9438_v15  ;;  %v11131_v63 = vmul.f32 %v18804_v5, %v11062_v61  ;;  %v9831_v58 = vmul.f32 %v18749_v62, %v10736_v46  ;;  %v11064_v28 = vld [vmem:[#allocation4 + $0x289] sm:$0xff] }
 0x4d9   :  { %v9634_v49 = vadd.f32 %v9506_v47, %v9309_v42  ;;  %v10156_v56 = vmul.f32 %v18756_v59, %v11061_v45  ;;  %v11258_v51 = vadd.f32 %v11130_v9, %v10933_v26  ;;  %v10609_v19 = vadd.f32 %v10481_v3, %v10283_v1  ;;  %v10089_v3 = vld [vmem:[#allocation4 + $0x271] sm:$0xff] }
 0x4da   :  { %v9310_v52 = vadd.f32 %v9182_v38, %v8985_v18  ;;  %v8661_v21 = vmul.f32 %v18534_v10, %v8592_v32  ;;  %v10482_v48 = vmul.f32 %v18785_v55, %v10413_v30  ;;  %v9832_v31 = vmul.f32 %v18749_v62, %v9763_v12  ;;  %v10415_v7 = vld [vmem:[#allocation4 + $0x28f] sm:$0xff] }
 0x4db   :  { %v9959_v44 = vadd.f32 %v9831_v58, %v9634_v49  ;;  %v9183_v35 = vmul.f32 %v18555_v33, %v9114_v60  ;;  %14648 = vmatmul.mubr.f32.gmra.mrb[92].mxu1 %v11258_v51  ;;  %v10934_v37 = vadd.f32 %v10806_v34, %v10609_v19  ;;  %v9508_v24 = vmul.f32 %v18738_v50, %v9439_v27  ;;  %v11065_v49 = vld [vmem:[#allocation4 + $0x291] sm:$0xff]  ;;  %v10416_v51 = vld [vmem:[#allocation4 + $0x2a7] sm:$0xff] }
 0x4dc   :  { %v9635_v46 = vadd.f32 %v9507_v43, %v9310_v52  ;;  %v8986_v45 = vadd.f32 %v8857_v40, %v8661_v21  ;;  %v10157_v25 = vmul.f32 %v18756_v59, %v10088_v6  ;;  %v8662_v4 = vmul.f32 %v18534_v10, %v9438_v15  ;;  %v10740_v15 = vld [vmem:[#allocation4 + $0x290] sm:$0xff] }
 0x4dd   :  { %v10284_v14 = vadd.f32 %v10156_v56, %v9959_v44  ;;  %v11259_v9 = vadd.f32 %v11131_v63, %v10934_v37  ;;  %v11132_v20 = vmul.f32 %v18804_v5, %v11063_v54  ;;  %v10483_v13 = vmul.f32 %v18785_v55, %v10414_v57 }
 0x4de   :  { %v9960_v53 = vadd.f32 %v9832_v31, %v9635_v46  ;;  %v9311_v2 = vadd.f32 %v9183_v35, %v8986_v45  ;;  %v8859_v0 = vmul.f32 %v18541_v23, %v9763_v12  ;;  %v10808_v41 = vmul.f32 %v18798_v16, %v10739_v29  ;;  %v10741_v31 = vld [vmem:[#allocation4 + $0x2a8] sm:$0xff] }
 0x4df   :  { %v10610_v22 = vadd.f32 %v10482_v48, %v10284_v14  ;;  %14650 = vmatprep.mubr.f32.mxu1 %v11259_v9  ;;  %v9833_v39 = vmul.f32 %v18749_v62, %v9764_v36  ;;  %v11133_v61 = vmul.f32 %v18804_v5, %v11064_v28  ;;  %v9184_v42 = vmul.f32 %v18555_v33, %v10088_v6 }
 0x4e0   :  { %v10285_v17 = vadd.f32 %v10157_v25, %v9960_v53  ;;  %v9636_v8 = vadd.f32 %v9508_v24, %v9311_v2  ;;  %v8987_v40 = vadd.f32 %v8859_v0, %v8662_v4  ;;  %v10158_v32 = vmul.f32 %v18756_v59, %v10089_v3  ;;  %v10417_v53 = vld [vmem:[#allocation4 + $0x2af] sm:$0xff] }
 0x4e1   :  { %v10935_v11 = vadd.f32 %v10806_v34, %v10610_v22  ;;  %v8663_v26 = vmul.f32 %v18534_v10, %v9439_v27  ;;  %v9509_v18 = vmul.f32 %v18738_v50, %v10414_v57  ;;  %v8860_v43 = vmul.f32 %v18541_v23, %v9764_v36  ;;  %v11066_v36 = vld [vmem:[#allocation4 + $0x2a9] sm:$0xff] }
 0x4e2   :  { %v10611_v47 = vadd.f32 %v10483_v13, %v10285_v17  ;;  %v9961_v38 = vadd.f32 %v9833_v39, %v9636_v8  ;;  %v9312_v30 = vadd.f32 %v9184_v42, %v8987_v40  ;;  %v10484_v60 = vmul.f32 %v18785_v55, %v10415_v7  ;;  %v10742_v2 = vld [vmem:[#allocation4 + $0x2b0] sm:$0xff] }
 0x4e3   :  { %v11260_v1 = vadd.f32 %v11132_v20, %v10935_v11  ;;  %v10809_v63 = vmul.f32 %v18798_v16, %v10740_v15  ;;  %v9834_v56 = vmul.f32 %v18749_v62, %v10739_v29  ;;  %v8988_v19 = vadd.f32 %v8860_v43, %v8663_v26  ;;  %v11067_v17 = vld [vmem:[#allocation4 + $0x2b1] sm:$0xff] }
 0x4e4   :  { %v10936_v34 = vadd.f32 %v10808_v41, %v10611_v47  ;;  %v10286_v12 = vadd.f32 %v10158_v32, %v9961_v38  ;;  %v9637_v58 = vadd.f32 %v9509_v18, %v9312_v30  ;;  %v9185_v27 = vmul.f32 %v18555_v33, %v10089_v3  ;;  %v10418_v32 = vld [vmem:[#allocation4 + $0x2c7] sm:$0xff] }
 0x4e5   :  { %14651 = vmatmul.mubr.f32.gmra.mrb[94].mxu1 %v11260_v1  ;;  %v10159_v21 = vmul.f32 %v18756_v59, %v11064_v28  ;;  %v9510_v44 = vmul.f32 %v18738_v50, %v10415_v7  ;;  %v8664_v37 = vmul.f32 %v18534_v10, %v10414_v57  ;;  %v8861_v54 = vmul.f32 %v18541_v23, %v10739_v29 }
 0x4e6   :  { %v11261_v52 = vadd.f32 %v11133_v61, %v10936_v34  ;;  %v10612_v6 = vadd.f32 %v10484_v60, %v10286_v12  ;;  %v9962_v48 = vadd.f32 %v9834_v56, %v9637_v58  ;;  %v9313_v35 = vadd.f32 %v9185_v27, %v8988_v19  ;;  %v18933_v56 = vld [vmem:[%s20135_s4 + $0x1] ss:$0 sm:$0xff] }
 0x4e7   :  { %v11134_v45 = vmul.f32 %v18804_v5, %v11065_v49  ;;  %v10485_v24 = vmul.f32 %v18785_v55, %v10416_v51  ;;  %v9835_v14 = vmul.f32 %v18749_v62, %v10740_v15  ;;  %v8989_v4 = vadd.f32 %v8861_v54, %v8664_v37 }
 0x4e8   :  { %14653 = vmatprep.mubr.f32.mxu1 %v11261_v52  ;;  %v10937_v46 = vadd.f32 %v10809_v63, %v10612_v6  ;;  %v10287_v25 = vadd.f32 %v10159_v21, %v9962_v48  ;;  %v9638_v9 = vadd.f32 %v9510_v44, %v9313_v35  ;;  %v9186_v22 = vmul.f32 %v18555_v33, %v11064_v28  ;;  %v10419_v21 = vld [vmem:[#allocation4 + $0x2cf] sm:$0xff]  ;;  %v18942_v35 = vld [vmem:[%s20135_s4 + $0x2] ss:$0 sm:$0xff] }
 0x4e9   :  { %v10810_v57 = vmul.f32 %v18798_v16, %v10741_v31  ;;  %v10160_v29 = vmul.f32 %v18756_v59, %v11065_v49  ;;  %v9511_v13 = vmul.f32 %v18738_v50, %v10416_v51  ;;  %v8665_v8 = vmul.f32 %v18534_v10, %v10415_v7  ;;  %v10743_v10 = vld [vmem:[#allocation4 + $0x2c8] sm:$0xff]  ;;  %v10744_v44 = vld [vmem:[#allocation4 + $0x2d0] sm:$0xff] }
 0x4ea   :  { %v11262_v20 = vadd.f32 %v11134_v45, %v10937_v46  ;;  %v10613_v3 = vadd.f32 %v10485_v24, %v10287_v25  ;;  %v9963_v0 = vadd.f32 %v9835_v14, %v9638_v9  ;;  %v9314_v41 = vadd.f32 %v9186_v22, %v8989_v4  ;;  %v11068_v7 = vld [vmem:[#allocation4 + $0x2c9] sm:$0xff] }
 0x4eb   :  { %v11135_v39 = vmul.f32 %v18804_v5, %v11066_v36  ;;  %v10486_v11 = vmul.f32 %v18785_v55, %v10417_v53  ;;  %v10811_v28 = vmul.f32 %v18798_v16, %v10742_v2  ;;  %v8862_v61 = vmul.f32 %v18541_v23, %v10740_v15  ;;  %v18925_v23 = vld [vmem:[%s20135_s4] ss:$0 sm:$0xff] }
 0x4ec   :  { %14654 = vmatmul.mubr.f32.gmra.mrb[96].mxu1 %v11262_v20  ;;  %v10938_v40 = vadd.f32 %v10810_v57, %v10613_v3  ;;  %v10288_v42 = vadd.f32 %v10160_v29, %v9963_v0  ;;  %v9639_v47 = vadd.f32 %v9511_v13, %v9314_v41  ;;  %v9836_v38 = vmul.f32 %v18749_v62, %v10741_v31  ;;  %v11069_v29 = vld [vmem:[#allocation4 + $0x2d1] sm:$0xff]  ;;  %v10420_v3 = vld [vmem:[#allocation4 + $0x2e7] sm:$0xff] }
 0x4ed   :  { %v11136_v26 = vmul.f32 %v18804_v5, %v11067_v17  ;;  %v10161_v1 = vmul.f32 %v18756_v59, %v11066_v36  ;;  %v8990_v30 = vadd.f32 %v8862_v61, %v8665_v8  ;;  %v9187_v18 = vmul.f32 %v18555_v33, %v11065_v49  ;;  %v10745_v61 = vld [vmem:[#allocation4 + $0x2e8] sm:$0xff] }
 0x4ee   :  { %v11263_v43 = vadd.f32 %v11135_v39, %v10938_v40  ;;  %v10614_v34 = vadd.f32 %v10486_v11, %v10288_v42  ;;  %v9964_v12 = vadd.f32 %v9836_v38, %v9639_v47  ;;  %v8666_v15 = vmul.f32 %v18925_v23, %v10416_v51 }
 0x4ef   :  { %v10487_v60 = vmul.f32 %v18785_v55, %v10418_v32  ;;  %v9315_v63 = vadd.f32 %v9187_v18, %v8990_v30  ;;  %v9512_v58 = vmul.f32 %v18738_v50, %v10417_v53  ;;  %v8863_v33 = vmul.f32 %v18933_v56, %v10741_v31  ;;  %v11070_v18 = vld [vmem:[#allocation4 + $0x2e9] sm:$0xff] }
 0x4f0   :  { %14656 = vmatprep.mubr.f32.mxu1 %v11263_v43  ;;  %v10939_v49 = vadd.f32 %v10811_v28, %v10614_v34  ;;  %v10289_v19 = vadd.f32 %v10161_v1, %v9964_v12  ;;  %v10812_v27 = vmul.f32 %v18798_v16, %v10743_v10  ;;  %v11137_v52 = vmul.f32 %v18804_v5, %v11068_v7  ;;  %v10746_v34 = vld [vmem:[#allocation4 + $0x2f0] sm:$0xff] }
 0x4f1   :  { %v9640_v51 = vadd.f32 %v9512_v58, %v9315_v63  ;;  %v9837_v6 = vmul.f32 %v18749_v62, %v10742_v2  ;;  %v8991_v48 = vadd.f32 %v8863_v33, %v8666_v15  ;;  %v9188_v31 = vmul.f32 %v18942_v35, %v11066_v36 }
 0x4f2   :  { %v11264_v37 = vadd.f32 %v11136_v26, %v10939_v49  ;;  %v10615_v54 = vadd.f32 %v10487_v60, %v10289_v19  ;;  %v10162_v46 = vmul.f32 %v18756_v59, %v11067_v17  ;;  %v8667_v45 = vmul.f32 %v18925_v23, %v10417_v53  ;;  %v11071_v19 = vld [vmem:[#allocation4 + $0x2f1] sm:$0xff] }
 0x4f3   :  { %v9965_v24 = vadd.f32 %v9837_v6, %v9640_v51  ;;  %v9316_v14 = vadd.f32 %v9188_v31, %v8991_v48  ;;  %v9513_v25 = vmul.f32 %v18738_v50, %v10418_v32  ;;  %v8864_v9 = vmul.f32 %v18933_v56, %v10742_v2 }
 0x4f4   :  { %14657 = vmatmul.mubr.f32.gmra.mrb[98].mxu1 %v11264_v37  ;;  %v10940_v4 = vadd.f32 %v10812_v27, %v10615_v54  ;;  %v10488_v22 = vmul.f32 %v18785_v55, %v10419_v21  ;;  %v10813_v20 = vmul.f32 %v18798_v16, %v10744_v44  ;;  %v9838_v36 = vmul.f32 %v18749_v62, %v10743_v10 }
 0x4f5   :  { %v10290_v57 = vadd.f32 %v10162_v46, %v9965_v24  ;;  %v9641_v13 = vadd.f32 %v9513_v25, %v9316_v14  ;;  %v8992_v0 = vadd.f32 %v8864_v9, %v8667_v45  ;;  %v9189_v53 = vmul.f32 %v18942_v35, %v11067_v17  ;;  %v10747_v24 = vld [vmem:[#allocation4 + $0x308] sm:$0xff] }
 0x4f6   :  { %v11265_v41 = vadd.f32 %v11137_v52, %v10940_v4  ;;  %v10163_v8 = vmul.f32 %v18756_v59, %v11068_v7  ;;  %v9514_v2 = vmul.f32 %v18738_v50, %v10419_v21  ;;  %v8668_v39 = vmul.f32 %v18925_v23, %v10418_v32  ;;  %v10421_v32 = vld [vmem:[#allocation4 + $0x2ef] sm:$0xff] }
 0x4f7   :  { %v10616_v11 = vadd.f32 %v10488_v22, %v10290_v57  ;;  %v9966_v28 = vadd.f32 %v9838_v36, %v9641_v13  ;;  %v9317_v40 = vadd.f32 %v9189_v53, %v8992_v0  ;;  %v8865_v42 = vmul.f32 %v18933_v56, %v10743_v10  ;;  %v11072_v14 = vld [vmem:[#allocation4 + $0x309] sm:$0xff] }
 0x4f8   :  { %14659 = vmatprep.mubr.f32.mxu1 %v11265_v41  ;;  %v11138_v47 = vmul.f32 %v18804_v5, %v11069_v29  ;;  %v10489_v38 = vmul.f32 %v18785_v55, %v10420_v3  ;;  %v9839_v17 = vmul.f32 %v18749_v62, %v10744_v44  ;;  %v9190_v26 = vmul.f32 %v18942_v35, %v11068_v7 }
 0x4f9   :  { %v10941_v1 = vadd.f32 %v10813_v20, %v10616_v11  ;;  %v10291_v30 = vadd.f32 %v10163_v8, %v9966_v28  ;;  %v9642_v43 = vadd.f32 %v9514_v2, %v9317_v40  ;;  %v8993_v12 = vadd.f32 %v8865_v42, %v8668_v39  ;;  %v10423_v11 = vld [vmem:[#allocation4 + $0x30f] sm:$0xff] }
 0x4fa   :  { %v10814_v15 = vmul.f32 %v18798_v16, %v10745_v61  ;;  %v10164_v10 = vmul.f32 %v18756_v59, %v11069_v29  ;;  %v9515_v60 = vmul.f32 %v18738_v50, %v10420_v3  ;;  %v8669_v63 = vmul.f32 %v18925_v23, %v10419_v21  ;;  %v10422_v21 = vld [vmem:[#allocation4 + $0x307] sm:$0xff]  ;;  %v10748_v28 = vld [vmem:[#allocation4 + $0x310] sm:$0xff] }
 0x4fb   :  { %v11266_v58 = vadd.f32 %v11138_v47, %v10941_v1  ;;  %v10617_v33 = vadd.f32 %v10489_v38, %v10291_v30  ;;  %v9967_v49 = vadd.f32 %v9839_v17, %v9642_v43  ;;  %v9318_v7 = vadd.f32 %v9190_v26, %v8993_v12 }
 0x4fc   :  { %v11139_v27 = vmul.f32 %v18804_v5, %v11070_v18  ;;  %v10490_v52 = vmul.f32 %v18785_v55, %v10421_v32  ;;  %v10815_v51 = vmul.f32 %v18798_v16, %v10746_v34  ;;  %v8866_v6 = vmul.f32 %v18933_v56, %v10744_v44 }
 0x4fd   :  { %14660 = vmatmul.mubr.f32.gmra.mrb[100].mxu1 %v11266_v58  ;;  %v10942_v48 = vadd.f32 %v10814_v15, %v10617_v33  ;;  %v10292_v31 = vadd.f32 %v10164_v10, %v9967_v49  ;;  %v9643_v37 = vadd.f32 %v9515_v60, %v9318_v7  ;;  %v9840_v54 = vmul.f32 %v18749_v62, %v10745_v61  ;;  %v11073_v60 = vld [vmem:[#allocation4 + $0x311] sm:$0xff]  ;;  %v10424_v58 = vld [vmem:[#allocation4 + $0x327] sm:$0xff] }
 0x4fe   :  { %v11140_v46 = vmul.f32 %v18804_v5, %v11071_v19  ;;  %v10165_v45 = vmul.f32 %v18756_v59, %v11070_v18  ;;  %v8994_v25 = vadd.f32 %v8866_v6, %v8669_v63  ;;  %v9191_v9 = vmul.f32 %v18942_v35, %v11069_v29  ;;  %v10749_v6 = vld [vmem:[#allocation4 + $0x328] sm:$0xff] }
 0x4ff   :  { %v11267_v4 = vadd.f32 %v11139_v27, %v10942_v48  ;;  %v10618_v22 = vadd.f32 %v10490_v52, %v10292_v31  ;;  %v9968_v20 = vadd.f32 %v9840_v54, %v9643_v37  ;;  %v8670_v44 = vmul.f32 %v18925_v23, %v10420_v3 }
 0x500   :  { %v10491_v36 = vmul.f32 %v18785_v55, %v10422_v21  ;;  %v9319_v57 = vadd.f32 %v9191_v9, %v8994_v25  ;;  %v9516_v13 = vmul.f32 %v18738_v50, %v10421_v32  ;;  %v8867_v0 = vmul.f32 %v18933_v56, %v10745_v61  ;;  %v11074_v9 = vld [vmem:[#allocation4 + $0x329] sm:$0xff] }
 0x501   :  { %14662 = vmatprep.mubr.f32.mxu1 %v11267_v4  ;;  %v10943_v53 = vadd.f32 %v10815_v51, %v10618_v22  ;;  %v10293_v41 = vadd.f32 %v10165_v45, %v9968_v20  ;;  %v10816_v8 = vmul.f32 %v18798_v16, %v10747_v24  ;;  %v11141_v2 = vmul.f32 %v18804_v5, %v11072_v14  ;;  %v10750_v22 = vld [vmem:[#allocation4 + $0x330] sm:$0xff] }
 0x502   :  { %v9644_v29 = vadd.f32 %v9516_v13, %v9319_v57  ;;  %v9841_v39 = vmul.f32 %v18749_v62, %v10746_v34  ;;  %v8995_v3 = vadd.f32 %v8867_v0, %v8670_v44  ;;  %v9192_v40 = vmul.f32 %v18942_v35, %v11070_v18 }
 0x503   :  { %v11268_v42 = vadd.f32 %v11140_v46, %v10943_v53  ;;  %v10619_v47 = vadd.f32 %v10491_v36, %v10293_v41  ;;  %v10166_v38 = vmul.f32 %v18756_v59, %v11071_v19  ;;  %v8671_v61 = vmul.f32 %v18925_v23, %v10421_v32  ;;  %v11075_v41 = vld [vmem:[#allocation4 + $0x331] sm:$0xff] }
 0x504   :  { %v9969_v17 = vadd.f32 %v9841_v39, %v9644_v29  ;;  %v9320_v26 = vadd.f32 %v9192_v40, %v8995_v3  ;;  %v9517_v1 = vmul.f32 %v18738_v50, %v10422_v21  ;;  %v8868_v30 = vmul.f32 %v18933_v56, %v10746_v34 }
 0x505   :  { %14663 = vmatmul.mubr.f32.gmra.mrb[102].mxu1 %v11268_v42  ;;  %v10944_v43 = vadd.f32 %v10816_v8, %v10619_v47  ;;  %v10492_v12 = vmul.f32 %v18785_v55, %v10423_v11  ;;  %v10817_v15 = vmul.f32 %v18798_v16, %v10748_v28  ;;  %v9842_v18 = vmul.f32 %v18749_v62, %v10747_v24 }
 0x506   :  { %v10294_v10 = vadd.f32 %v10166_v38, %v9969_v17  ;;  %v9645_v63 = vadd.f32 %v9517_v1, %v9320_v26  ;;  %v8996_v33 = vadd.f32 %v8868_v30, %v8671_v61  ;;  %v9193_v32 = vmul.f32 %v18942_v35, %v11071_v19  ;;  %v10751_v17 = vld [vmem:[#allocation4 + $0x348] sm:$0xff] }
 0x507   :  { %v11269_v49 = vadd.f32 %v11141_v2, %v10944_v43  ;;  %v10167_v7 = vmul.f32 %v18756_v59, %v11072_v14  ;;  %v9518_v34 = vmul.f32 %v18738_v50, %v10423_v11  ;;  %v8672_v27 = vmul.f32 %v18925_v23, %v10422_v21  ;;  %v10425_v21 = vld [vmem:[#allocation4 + $0x32f] sm:$0xff] }
 0x508   :  { %v10620_v52 = vadd.f32 %v10492_v12, %v10294_v10  ;;  %v9970_v51 = vadd.f32 %v9842_v18, %v9645_v63  ;;  %v9321_v48 = vadd.f32 %v9193_v32, %v8996_v33  ;;  %v8869_v31 = vmul.f32 %v18933_v56, %v10747_v24  ;;  %v11076_v26 = vld [vmem:[#allocation4 + $0x349] sm:$0xff] }
 0x509   :  { %14665 = vmatprep.mubr.f32.mxu1 %v11269_v49  ;;  %v11142_v37 = vmul.f32 %v18804_v5, %v11073_v60  ;;  %v10493_v54 = vmul.f32 %v18785_v55, %v10424_v58  ;;  %v9843_v19 = vmul.f32 %v18749_v62, %v10748_v28  ;;  %v9194_v46 = vmul.f32 %v18942_v35, %v11072_v14 }
 0x50a   :  { %v10945_v45 = vadd.f32 %v10817_v15, %v10620_v52  ;;  %v10295_v25 = vadd.f32 %v10167_v7, %v9970_v51  ;;  %v9646_v4 = vadd.f32 %v9518_v34, %v9321_v48  ;;  %v8997_v20 = vadd.f32 %v8869_v31, %v8672_v27  ;;  %v10427_v52 = vld [vmem:[#allocation4 + $0x34f] sm:$0xff] }
 0x50b   :  { %v10818_v44 = vmul.f32 %v18798_v16, %v10749_v6  ;;  %v10168_v24 = vmul.f32 %v18756_v59, %v11073_v60  ;;  %v9519_v36 = vmul.f32 %v18738_v50, %v10424_v58  ;;  %v8673_v57 = vmul.f32 %v18925_v23, %v10423_v11  ;;  %v10426_v11 = vld [vmem:[#allocation4 + $0x347] sm:$0xff]  ;;  %v10752_v51 = vld [vmem:[#allocation4 + $0x350] sm:$0xff] }
 0x50c   :  { %v11270_v13 = vadd.f32 %v11142_v37, %v10945_v45  ;;  %v10621_v0 = vadd.f32 %v10493_v54, %v10295_v25  ;;  %v9971_v53 = vadd.f32 %v9843_v19, %v9646_v4  ;;  %v9322_v14 = vadd.f32 %v9194_v46, %v8997_v20 }
 0x50d   :  { %v11143_v8 = vmul.f32 %v18804_v5, %v11074_v9  ;;  %v10494_v2 = vmul.f32 %v18785_v55, %v10425_v21  ;;  %v10819_v29 = vmul.f32 %v18798_v16, %v10750_v22  ;;  %v8870_v39 = vmul.f32 %v18933_v56, %v10748_v28 }
 0x50e   :  { %14666 = vmatmul.mubr.f32.gmra.mrb[104].mxu1 %v11270_v13  ;;  %v10946_v3 = vadd.f32 %v10818_v44, %v10621_v0  ;;  %v10296_v40 = vadd.f32 %v10168_v24, %v9971_v53  ;;  %v9647_v42 = vadd.f32 %v9519_v36, %v9322_v14  ;;  %v9844_v47 = vmul.f32 %v18749_v62, %v10749_v6  ;;  %v11077_v36 = vld [vmem:[#allocation4 + $0x351] sm:$0xff]  ;;  %v10428_v13 = vld [vmem:[#allocation4 + $0x367] sm:$0xff] }
 0x50f   :  { %v11144_v38 = vmul.f32 %v18804_v5, %v11075_v41  ;;  %v10169_v61 = vmul.f32 %v18756_v59, %v11074_v9  ;;  %v8998_v1 = vadd.f32 %v8870_v39, %v8673_v57  ;;  %v9195_v30 = vmul.f32 %v18942_v35, %v11073_v60  ;;  %v10753_v39 = vld [vmem:[#allocation4 + $0x368] sm:$0xff] }
 0x510   :  { %v11271_v43 = vadd.f32 %v11143_v8, %v10946_v3  ;;  %v10622_v12 = vadd.f32 %v10494_v2, %v10296_v40  ;;  %v9972_v15 = vadd.f32 %v9844_v47, %v9647_v42  ;;  %v8674_v28 = vmul.f32 %v18925_v23, %v10424_v58 }
 0x511   :  { %v10495_v18 = vmul.f32 %v18785_v55, %v10426_v11  ;;  %v9323_v10 = vadd.f32 %v9195_v30, %v8998_v1  ;;  %v9520_v63 = vmul.f32 %v18738_v50, %v10425_v21  ;;  %v8871_v33 = vmul.f32 %v18933_v56, %v10749_v6  ;;  %v11078_v30 = vld [vmem:[#allocation4 + $0x369] sm:$0xff] }
 0x512   :  { %14668 = vmatprep.mubr.f32.mxu1 %v11271_v43  ;;  %v10947_v32 = vadd.f32 %v10819_v29, %v10622_v12  ;;  %v10297_v49 = vadd.f32 %v10169_v61, %v9972_v15  ;;  %v10820_v7 = vmul.f32 %v18798_v16, %v10751_v17  ;;  %v11145_v34 = vmul.f32 %v18804_v5, %v11076_v26  ;;  %v10754_v12 = vld [vmem:[#allocation4 + $0x370] sm:$0xff] }
 0x513   :  { %v9648_v60 = vadd.f32 %v9520_v63, %v9323_v10  ;;  %v9845_v27 = vmul.f32 %v18749_v62, %v10750_v22  ;;  %v8999_v58 = vadd.f32 %v8871_v33, %v8674_v28  ;;  %v9196_v48 = vmul.f32 %v18942_v35, %v11074_v9 }
 0x514   :  { %v11272_v31 = vadd.f32 %v11144_v38, %v10947_v32  ;;  %v10623_v37 = vadd.f32 %v10495_v18, %v10297_v49  ;;  %v10170_v54 = vmul.f32 %v18756_v59, %v11075_v41  ;;  %v8675_v6 = vmul.f32 %v18925_v23, %v10425_v21  ;;  %v11079_v49 = vld [vmem:[#allocation4 + $0x371] sm:$0xff] }
 0x515   :  { %v9973_v19 = vadd.f32 %v9845_v27, %v9648_v60  ;;  %v9324_v46 = vadd.f32 %v9196_v48, %v8999_v58  ;;  %v9521_v45 = vmul.f32 %v18738_v50, %v10426_v11  ;;  %v8872_v25 = vmul.f32 %v18933_v56, %v10750_v22 }
 0x516   :  { %14669 = vmatmul.mubr.f32.gmra.mrb[106].mxu1 %v11272_v31  ;;  %v10948_v4 = vadd.f32 %v10820_v7, %v10623_v37  ;;  %v10496_v20 = vmul.f32 %v18785_v55, %v10427_v52  ;;  %v10821_v44 = vmul.f32 %v18798_v16, %v10752_v51  ;;  %v9846_v9 = vmul.f32 %v18749_v62, %v10751_v17  ;;  %v19046_v37 = vld [vmem:[%s20135_s4 + $0x5] ss:$0 sm:$0xff] }
 0x517   :  { %v10298_v24 = vadd.f32 %v10170_v54, %v9973_v19  ;;  %v9649_v57 = vadd.f32 %v9521_v45, %v9324_v46  ;;  %v9000_v0 = vadd.f32 %v8872_v25, %v8675_v6  ;;  %v9197_v21 = vmul.f32 %v18942_v35, %v11075_v41  ;;  %v10755_v6 = vld [vmem:[#allocation4 + $0x388] sm:$0xff] }
 0x518   :  { %v11273_v53 = vadd.f32 %v11145_v34, %v10948_v4  ;;  %v10171_v14 = vmul.f32 %v18756_v59, %v11076_v26  ;;  %v9522_v22 = vmul.f32 %v18738_v50, %v10427_v52  ;;  %v8676_v8 = vmul.f32 %v18925_v23, %v10426_v11  ;;  %v10429_v11 = vld [vmem:[#allocation4 + $0x36f] sm:$0xff] }
 0x519   :  { %v10624_v2 = vadd.f32 %v10496_v20, %v10298_v24  ;;  %v9974_v29 = vadd.f32 %v9846_v9, %v9649_v57  ;;  %v9325_v3 = vadd.f32 %v9197_v21, %v9000_v0  ;;  %v8873_v40 = vmul.f32 %v18933_v56, %v10751_v17  ;;  %v11080_v19 = vld [vmem:[#allocation4 + $0x389] sm:$0xff]  ;;  %v19055_v9 = vld [vmem:[%s20135_s4 + $0x3] ss:$0 sm:$0xff] }
 0x51a   :  { %14671 = vmatprep.mubr.f32.mxu1 %v11273_v53  ;;  %v11146_v42 = vmul.f32 %v18804_v5, %v11077_v36  ;;  %v10497_v47 = vmul.f32 %v18785_v55, %v10428_v13  ;;  %v9847_v41 = vmul.f32 %v18749_v62, %v10752_v51  ;;  %v9198_v38 = vmul.f32 %v18942_v35, %v11076_v26 }
 0x51b   :  { %v10949_v61 = vadd.f32 %v10821_v44, %v10624_v2  ;;  %v10299_v1 = vadd.f32 %v10171_v14, %v9974_v29  ;;  %v9650_v43 = vadd.f32 %v9522_v22, %v9325_v3  ;;  %v9001_v15 = vadd.f32 %v8873_v40, %v8676_v8  ;;  %v10431_v22 = vld [vmem:[#allocation4 + $0x38f] sm:$0xff] }
 0x51c   :  { %v10822_v28 = vmul.f32 %v18798_v16, %v10753_v39  ;;  %v10172_v17 = vmul.f32 %v18756_v59, %v11077_v36  ;;  %v9523_v18 = vmul.f32 %v18738_v50, %v10428_v13  ;;  %v8677_v10 = vmul.f32 %v18925_v23, %v10427_v52  ;;  %v10430_v52 = vld [vmem:[#allocation4 + $0x387] sm:$0xff]  ;;  %v10756_v8 = vld [vmem:[#allocation4 + $0x390] sm:$0xff] }
 0x51d   :  { %v11274_v63 = vadd.f32 %v11146_v42, %v10949_v61  ;;  %v10625_v33 = vadd.f32 %v10497_v47, %v10299_v1  ;;  %v9975_v32 = vadd.f32 %v9847_v41, %v9650_v43  ;;  %v9326_v26 = vadd.f32 %v9198_v38, %v9001_v15  ;;  %v19075_v1 = vld [vmem:[%s20135_s4 + $0x6] ss:$0 sm:$0xff] }
 0x51e   :  { %v11147_v7 = vmul.f32 %v18804_v5, %v11078_v30  ;;  %v10498_v34 = vmul.f32 %v18785_v55, %v10429_v11  ;;  %v10823_v60 = vmul.f32 %v18798_v16, %v10754_v12  ;;  %v8874_v27 = vmul.f32 %v18933_v56, %v10752_v51 }
 0x51f   :  { %14672 = vmatmul.mubr.f32.gmra.mrb[108].mxu1 %v11274_v63  ;;  %v10950_v58 = vadd.f32 %v10822_v28, %v10625_v33  ;;  %v10300_v59 = vadd.f32 %v10172_v17, %v9975_v32  ;;  %v9651_v48 = vadd.f32 %v9523_v18, %v9326_v26  ;;  %v9848_v50 = vmul.f32 %v18749_v62, %v10753_v39  ;;  %v11081_v28 = vld [vmem:[#allocation4 + $0x391] sm:$0xff]  ;;  %v10432_v18 = vld [vmem:[#allocation4 + $0x3a7] sm:$0xff] }
 0x520   :  { %v11148_v31 = vmul.f32 %v18804_v5, %v11079_v49  ;;  %v10173_v54 = vmul.f32 %v19046_v37, %v11078_v30  ;;  %v9002_v46 = vadd.f32 %v8874_v27, %v8677_v10  ;;  %v9199_v51 = vmul.f32 %v18942_v35, %v11077_v36 }
 0x521   :  { %v11275_v45 = vadd.f32 %v11147_v7, %v10950_v58  ;;  %v10626_v25 = vadd.f32 %v10498_v34, %v10300_v59  ;;  %v9976_v4 = vadd.f32 %v9848_v50, %v9651_v48  ;;  %v8678_v62 = vmul.f32 %v18925_v23, %v10428_v13  ;;  %v19088_v58 = vld [vmem:[%s20135_s4 + $0x8] ss:$0 sm:$0xff] }
 0x522   :  { %v10499_v20 = vmul.f32 %v18785_v55, %v10430_v52  ;;  %v9327_v44 = vadd.f32 %v9199_v51, %v9002_v46  ;;  %v9524_v24 = vmul.f32 %v19055_v9, %v10429_v11  ;;  %v8875_v57 = vmul.f32 %v18933_v56, %v10753_v39  ;;  %v19064_v55 = vld [vmem:[%s20135_s4 + $0x4] ss:$0 sm:$0xff]  ;;  %v10433_v51 = vld [vmem:[#allocation4 + $0x3af] sm:$0xff] }
 0x523   :  { %14674 = vmatprep.mubr.f32.mxu1 %v11275_v45  ;;  %v10951_v0 = vadd.f32 %v10823_v60, %v10626_v25  ;;  %v10301_v36 = vadd.f32 %v10173_v54, %v9976_v4  ;;  %v10824_v21 = vmul.f32 %v18798_v16, %v10755_v6  ;;  %v11149_v53 = vmul.f32 %v18804_v5, %v11080_v19  ;;  %v10757_v60 = vld [vmem:[#allocation4 + $0x3a8] sm:$0xff]  ;;  %v19097_v25 = vld [vmem:[%s20135_s4 + $0x7] ss:$0 sm:$0xff] }
 0x524   :  { %v9652_v13 = vadd.f32 %v9524_v24, %v9327_v44  ;;  %v9849_v14 = vmul.f32 %v19064_v55, %v10754_v12  ;;  %v9003_v2 = vadd.f32 %v8875_v57, %v8678_v62  ;;  %v9200_v29 = vmul.f32 %v18942_v35, %v11078_v30  ;;  %v11082_v54 = vld [vmem:[#allocation4 + $0x3a9] sm:$0xff] }
 0x525   :  { %v11276_v39 = vadd.f32 %v11148_v31, %v10951_v0  ;;  %v10627_v3 = vadd.f32 %v10499_v20, %v10301_v36  ;;  %v10174_v40 = vmul.f32 %v19046_v37, %v11079_v49  ;;  %v8679_v42 = vmul.f32 %v18925_v23, %v10429_v11  ;;  %v11083_v0 = vld [vmem:[#allocation4 + $0x3b1] sm:$0xff] }
 0x526   :  { %v9977_v5 = vadd.f32 %v9849_v14, %v9652_v13  ;;  %v9328_v47 = vadd.f32 %v9200_v29, %v9003_v2  ;;  %v9525_v41 = vmul.f32 %v19055_v9, %v10430_v52  ;;  %v8876_v38 = vmul.f32 %v18933_v56, %v10754_v12 }
 0x527   :  { %14675 = vmatmul.mubr.f32.gmra.mrb[110].mxu1 %v11276_v39  ;;  %v10952_v61 = vadd.f32 %v10824_v21, %v10627_v3  ;;  %v10500_v30 = vmul.f32 %v19075_v1, %v10431_v22  ;;  %v10825_v43 = vmul.f32 %v18798_v16, %v10756_v8  ;;  %v9850_v15 = vmul.f32 %v19064_v55, %v10755_v6 }
 0x528   :  { %v10302_v11 = vadd.f32 %v10174_v40, %v9977_v5  ;;  %v9653_v17 = vadd.f32 %v9525_v41, %v9328_v47  ;;  %v9004_v10 = vadd.f32 %v8876_v38, %v8679_v42  ;;  %v9201_v12 = vmul.f32 %v18942_v35, %v11079_v49  ;;  %v10759_v5 = vld [vmem:[#allocation4 + $0x3c8] sm:$0xff] }
 0x529   :  { %v11277_v63 = vadd.f32 %v11149_v53, %v10952_v61  ;;  %v10175_v33 = vmul.f32 %v19046_v37, %v11080_v19  ;;  %v9526_v32 = vmul.f32 %v19055_v9, %v10431_v22  ;;  %v8680_v26 = vmul.f32 %v18925_v23, %v10430_v52  ;;  %v11084_v47 = vld [vmem:[#allocation4 + $0x3c9] sm:$0xff] }
 0x52a   :  { %v10628_v7 = vadd.f32 %v10500_v30, %v10302_v11  ;;  %v9978_v34 = vadd.f32 %v9850_v15, %v9653_v17  ;;  %v9329_v16 = vadd.f32 %v9201_v12, %v9004_v10  ;;  %v8877_v27 = vmul.f32 %v18933_v56, %v10755_v6  ;;  %v10758_v6 = vld [vmem:[#allocation4 + $0x3b0] sm:$0xff] }
 0x52b   :  { %14677 = vmatprep.mubr.f32.mxu1 %v11277_v63  ;;  %v11150_v49 = vmul.f32 %v19088_v58, %v11081_v28  ;;  %v10501_v59 = vmul.f32 %v19075_v1, %v10432_v18  ;;  %v9851_v48 = vmul.f32 %v19064_v55, %v10756_v8  ;;  %v9202_v50 = vmul.f32 %v18942_v35, %v11080_v19 }
 0x52c   :  { %v10953_v52 = vadd.f32 %v10825_v43, %v10628_v7  ;;  %v10303_v31 = vadd.f32 %v10175_v33, %v9978_v34  ;;  %v9654_v46 = vadd.f32 %v9526_v32, %v9329_v16  ;;  %v9005_v45 = vadd.f32 %v8877_v27, %v8680_v26  ;;  %v10435_v7 = vld [vmem:[#allocation4 + $0x3cf] sm:$0xff] }
 0x52d   :  { %v10826_v4 = vmul.f32 %v19097_v25, %v10757_v60  ;;  %v10176_v62 = vmul.f32 %v19046_v37, %v11081_v28  ;;  %v9527_v20 = vmul.f32 %v19055_v9, %v10432_v18  ;;  %v8681_v19 = vmul.f32 %v18925_v23, %v10431_v22  ;;  %v10434_v22 = vld [vmem:[#allocation4 + $0x3c7] sm:$0xff]  ;;  %v10760_v34 = vld [vmem:[#allocation4 + $0x3d0] sm:$0xff] }
 0x52e   :  { %v11278_v44 = vadd.f32 %v11150_v49, %v10953_v52  ;;  %v10629_v24 = vadd.f32 %v10501_v59, %v10303_v31  ;;  %v9979_v57 = vadd.f32 %v9851_v48, %v9654_v46  ;;  %v9330_v36 = vadd.f32 %v9202_v50, %v9005_v45 }
 0x52f   :  { %v11151_v21 = vmul.f32 %v19088_v58, %v11082_v54  ;;  %v10502_v53 = vmul.f32 %v19075_v1, %v10433_v51  ;;  %v10827_v13 = vmul.f32 %v19097_v25, %v10758_v6  ;;  %v8878_v14 = vmul.f32 %v18933_v56, %v10756_v8 }
 0x530   :  { %14678 = vmatmul.mubr.f32.gmra.mrb[112].mxu1 %v11278_v44  ;;  %v10954_v2 = vadd.f32 %v10826_v4, %v10629_v24  ;;  %v10304_v29 = vadd.f32 %v10176_v62, %v9979_v57  ;;  %v9655_v39 = vadd.f32 %v9527_v20, %v9330_v36  ;;  %v9852_v3 = vmul.f32 %v19064_v55, %v10757_v60  ;;  %v10436_v24 = vld [vmem:[#allocation4 + $0x3e7] sm:$0xff] }
 0x531   :  { %v11152_v40 = vmul.f32 %v19088_v58, %v11083_v0  ;;  %v10177_v42 = vmul.f32 %v19046_v37, %v11082_v54  ;;  %v9006_v41 = vadd.f32 %v8878_v14, %v8681_v19  ;;  %v9203_v38 = vmul.f32 %v18942_v35, %v11081_v28 }
 0x532   :  { %v11279_v61 = vadd.f32 %v11151_v21, %v10954_v2  ;;  %v10630_v30 = vadd.f32 %v10502_v53, %v10304_v29  ;;  %v9980_v43 = vadd.f32 %v9852_v3, %v9655_v39  ;;  %v8682_v8 = vmul.f32 %v18925_v23, %v10432_v18  ;;  %v10761_v29 = vld [vmem:[#allocation4 + $0x3e8] sm:$0xff] }
 0x533   :  { %v10503_v15 = vmul.f32 %v19075_v1, %v10434_v22  ;;  %v9331_v11 = vadd.f32 %v9203_v38, %v9006_v41  ;;  %v9528_v17 = vmul.f32 %v19055_v9, %v10433_v51  ;;  %v8879_v10 = vmul.f32 %v18933_v56, %v10757_v60 }
 0x534   :  { %14680 = vmatprep.mubr.f32.mxu1 %v11279_v61  ;;  %v10955_v12 = vadd.f32 %v10827_v13, %v10630_v30  ;;  %v10305_v63 = vadd.f32 %v10177_v42, %v9980_v43  ;;  %v10828_v33 = vmul.f32 %v19097_v25, %v10759_v5  ;;  %v11153_v32 = vmul.f32 %v19088_v58, %v11084_v47  ;;  %v11086_v30 = vld [vmem:[#allocation4 + $0x3e9] sm:$0xff] }
 0x535   :  { %v9656_v28 = vadd.f32 %v9528_v17, %v9331_v11  ;;  %v9853_v26 = vmul.f32 %v19064_v55, %v10758_v6  ;;  %v9007_v18 = vadd.f32 %v8879_v10, %v8682_v8  ;;  %v9204_v16 = vmul.f32 %v18942_v35, %v11082_v54  ;;  %v10762_v8 = vld [vmem:[#allocation4 + $0x3f0] sm:$0xff] }
 0x536   :  { %v11280_v27 = vadd.f32 %v11152_v40, %v10955_v12  ;;  %v10631_v49 = vadd.f32 %v10503_v15, %v10305_v63  ;;  %v10178_v59 = vmul.f32 %v19046_v37, %v11083_v0  ;;  %v8683_v60 = vmul.f32 %v18925_v23, %v10433_v51  ;;  %v11085_v51 = vld [vmem:[#allocation4 + $0x3d1] sm:$0xff] }
 0x537   :  { %v19121_v48 = vpop.f32.mrb[64].mxu1  ;;  %v9981_v50 = vadd.f32 %v9853_v26, %v9656_v28  ;;  %v9332_v52 = vadd.f32 %v9204_v16, %v9007_v18  ;;  %v9529_v31 = vmul.f32 %v19055_v9, %v10434_v22  ;;  %v8880_v46 = vmul.f32 %v18933_v56, %v10758_v6 }
 0x538   :  { %20398 = vst [vmem:[#allocation12_spill] sm:$0xff] %v19121_v48  ;;  %v19125_v45 = vpop.f32.mrb[65].mxu1  ;;  %14681 = vmatmul.mubr.f32.gmra.mrb[114].mxu1 %v11280_v27  ;;  %v10956_v4 = vadd.f32 %v10828_v33, %v10631_v49  ;;  %v10504_v54 = vmul.f32 %v19075_v1, %v10435_v7  ;;  %v10829_v62 = vmul.f32 %v19097_v25, %v10760_v34 }
 0x539   :  { %v9854_v20 = vmul.f32 %v19064_v55, %v10759_v5  ;;  %v10306_v19 = vadd.f32 %v10178_v59, %v9981_v50  ;;  %v9657_v44 = vadd.f32 %v9529_v31, %v9332_v52  ;;  %v9008_v57 = vadd.f32 %v8880_v46, %v8683_v60  ;;  %v10438_v52 = vld [vmem:[#allocation4 + $0x407] sm:$0xff] }
 0x53a   :  { %v9205_v36 = vmul.f32 %v18942_v35, %v11083_v0  ;;  %v11281_v21 = vadd.f32 %v11153_v32, %v10956_v4  ;;  %v10179_v6 = vmul.f32 %v19046_v37, %v11084_v47  ;;  %v9530_v53 = vmul.f32 %v19055_v9, %v10435_v7  ;;  %v11087_v32 = vld [vmem:[#allocation4 + $0x3f1] sm:$0xff]  ;;  %v10763_v4 = vld [vmem:[#allocation4 + $0x408] sm:$0xff] }
 0x53b   :  { %v8684_v13 = vmul.f32 %v18925_v23, %v10434_v22  ;;  %v10632_v14 = vadd.f32 %v10504_v54, %v10306_v19  ;;  %v9982_v2 = vadd.f32 %v9854_v20, %v9657_v44  ;;  %v8881_v3 = vmul.f32 %v18933_v56, %v10759_v5  ;;  %v10437_v22 = vld [vmem:[#allocation4 + $0x3ef] sm:$0xff] }
 0x53c   :  { %v9333_v39 = vadd.f32 %v9205_v36, %v9008_v57  ;;  %14683 = vmatprep.mubr.f32.mxu1 %v11281_v21  ;;  %v11154_v40 = vmul.f32 %v19088_v58, %v11085_v51  ;;  %v10505_v42 = vmul.f32 %v19075_v1, %v10436_v24  ;;  %v9855_v0 = vmul.f32 %v19064_v55, %v10760_v34  ;;  %v11088_v54 = vld [vmem:[#allocation4 + $0x409] sm:$0xff] }
 0x53d   :  { %v9206_v41 = vmul.f32 %v18942_v35, %v11084_v47  ;;  %v10957_v38 = vadd.f32 %v10829_v62, %v10632_v14  ;;  %v10307_v61 = vadd.f32 %v10179_v6, %v9982_v2  ;;  %v9009_v15 = vadd.f32 %v8881_v3, %v8684_v13 }
 0x53e   :  { %v9658_v43 = vadd.f32 %v9530_v53, %v9333_v39  ;;  %v10830_v11 = vmul.f32 %v19097_v25, %v10761_v29  ;;  %v10180_v5 = vmul.f32 %v19046_v37, %v11085_v51  ;;  %v9531_v17 = vmul.f32 %v19055_v9, %v10436_v24 }
 0x53f   :  { %v8685_v10 = vmul.f32 %v18925_v23, %v10435_v7  ;;  %v11282_v12 = vadd.f32 %v11154_v40, %v10957_v38  ;;  %v10633_v63 = vadd.f32 %v10505_v42, %v10307_v61  ;;  %v9334_v47 = vadd.f32 %v9206_v41, %v9009_v15  ;;  %v10439_v40 = vld [vmem:[#allocation4 + $0x40f] sm:$0xff] }
 0x540   :  { %v9983_v33 = vadd.f32 %v9855_v0, %v9658_v43  ;;  %v19143_v28 = vpop.f32.mrb[66].mxu1  ;;  %v11155_v26 = vmul.f32 %v19088_v58, %v11086_v30  ;;  %v10506_v18 = vmul.f32 %v19075_v1, %v10437_v22  ;;  %v10831_v16 = vmul.f32 %v19097_v25, %v10762_v8  ;;  %v10764_v42 = vld [vmem:[#allocation4 + $0x410] sm:$0xff] }
 0x541   :  { %20399 = vst [vmem:[#allocation9_spill] sm:$0xff] %v19143_v28  ;;  %v8882_v27 = vmul.f32 %v18933_v56, %v10760_v34  ;;  %v19149_v49 = vpop.f32.mrb[67].mxu1  ;;  %14684 = vmatmul.mubr.f32.gmra.mrb[116].mxu1 %v11282_v12  ;;  %v10958_v59 = vadd.f32 %v10830_v11, %v10633_v63  ;;  %v9659_v60 = vadd.f32 %v9531_v17, %v9334_v47 }
 0x542   :  { %20400 = vst [vmem:[#allocation8_spill] sm:$0xff] %v19149_v49  ;;  %v10308_v7 = vadd.f32 %v10180_v5, %v9983_v33  ;;  %v9856_v50 = vmul.f32 %v19064_v55, %v10761_v29  ;;  %v11156_v31 = vmul.f32 %v19088_v58, %v11087_v32  ;;  %v10181_v46 = vmul.f32 %v19046_v37, %v11086_v30 }
 0x543   :  { %v9010_v62 = vadd.f32 %v8882_v27, %v8685_v10  ;;  %v9207_v20 = vmul.f32 %v18942_v35, %v11085_v51  ;;  %v11283_v19 = vadd.f32 %v11155_v26, %v10958_v59  ;;  %v8686_v57 = vmul.f32 %v18925_v23, %v10436_v24 }
 0x544   :  { %v10634_v34 = vadd.f32 %v10506_v18, %v10308_v7  ;;  %v9984_v44 = vadd.f32 %v9856_v50, %v9659_v60  ;;  %v10507_v36 = vmul.f32 %v19075_v1, %v10438_v52  ;;  %v9532_v6 = vmul.f32 %v19055_v9, %v10437_v22  ;;  %v10440_v18 = vld [vmem:[#allocation4 + $0x427] sm:$0xff] }
 0x545   :  { %v9335_v21 = vadd.f32 %v9207_v20, %v9010_v62  ;;  %v8883_v53 = vmul.f32 %v18933_v56, %v10761_v29  ;;  %14686 = vmatprep.mubr.f32.mxu1 %v11283_v19  ;;  %v10832_v2 = vmul.f32 %v19097_v25, %v10763_v4  ;;  %v11157_v39 = vmul.f32 %v19088_v58, %v11088_v54 }
 0x546   :  { %v10959_v13 = vadd.f32 %v10831_v16, %v10634_v34  ;;  %v10309_v14 = vadd.f32 %v10181_v46, %v9984_v44  ;;  %v9857_v3 = vmul.f32 %v19064_v55, %v10762_v8  ;;  %v9208_v0 = vmul.f32 %v18942_v35, %v11086_v30  ;;  %v10765_v46 = vld [vmem:[#allocation4 + $0x428] sm:$0xff] }
 0x547   :  { %v9660_v51 = vadd.f32 %v9532_v6, %v9335_v21  ;;  %v9011_v24 = vadd.f32 %v8883_v53, %v8686_v57  ;;  %v10182_v61 = vmul.f32 %v19046_v37, %v11087_v32  ;;  %v8687_v29 = vmul.f32 %v18925_v23, %v10437_v22  ;;  %v11089_v22 = vld [vmem:[#allocation4 + $0x411] sm:$0xff]  ;;  %v11090_v21 = vld [vmem:[#allocation4 + $0x429] sm:$0xff] }
 0x548   :  { %v11284_v41 = vadd.f32 %v11156_v31, %v10959_v13  ;;  %v10635_v38 = vadd.f32 %v10507_v36, %v10309_v14  ;;  %v9533_v11 = vmul.f32 %v19055_v9, %v10438_v52  ;;  %v8884_v5 = vmul.f32 %v18933_v56, %v10762_v8  ;;  %v10766_v53 = vld [vmem:[#allocation4 + $0x430] sm:$0xff] }
 0x549   :  { %v9985_v43 = vadd.f32 %v9857_v3, %v9660_v51  ;;  %v9336_v15 = vadd.f32 %v9208_v0, %v9011_v24  ;;  %v19167_v17 = vpop.f32.mrb[68].mxu1  ;;  %v10508_v12 = vmul.f32 %v19075_v1, %v10439_v40  ;;  %v10833_v30 = vmul.f32 %v19097_v25, %v10764_v42  ;;  %v11091_v0 = vld [vmem:[#allocation4 + $0x431] sm:$0xff] }
 0x54a   :  { %14687 = vmatmul.mubr.f32.gmra.mrb[118].mxu1 %v11284_v41  ;;  %v10960_v10 = vadd.f32 %v10832_v2, %v10635_v38  ;;  %v9858_v63 = vmul.f32 %v19064_v55, %v10763_v4  ;;  %v19172_v33 = vpop.f32.mrb[69].mxu1  ;;  %v9012_v16 = vadd.f32 %v8884_v5, %v8687_v29  ;;  %v9209_v27 = vmul.f32 %v18942_v35, %v11087_v32 }
 0x54b   :  { %20401 = vst [vmem:[#allocation14_spill] sm:$0xff] %v19172_v33  ;;  %v10310_v47 = vadd.f32 %v10182_v61, %v9985_v43  ;;  %v9661_v26 = vadd.f32 %v9533_v11, %v9336_v15  ;;  %v10183_v59 = vmul.f32 %v19046_v37, %v11088_v54  ;;  %v9534_v7 = vmul.f32 %v19055_v9, %v10439_v40 }
 0x54c   :  { %v11285_v8 = vadd.f32 %v11157_v39, %v10960_v10  ;;  %v8688_v60 = vmul.f32 %v18925_v23, %v10438_v52  ;;  %v9337_v62 = vadd.f32 %v9209_v27, %v9012_v16  ;;  %v8885_v20 = vmul.f32 %v18933_v56, %v10763_v4  ;;  %v10441_v52 = vld [vmem:[#allocation4 + $0x42f] sm:$0xff] }
 0x54d   :  { %v10636_v50 = vadd.f32 %v10508_v12, %v10310_v47  ;;  %v9986_v31 = vadd.f32 %v9858_v63, %v9661_v26  ;;  %v11158_v19 = vmul.f32 %v19088_v58, %v11089_v22  ;;  %v10509_v34 = vmul.f32 %v19075_v1, %v10440_v18  ;;  %v10767_v63 = vld [vmem:[#allocation4 + $0x448] sm:$0xff] }
 0x54e   :  { %14689 = vmatprep.mubr.f32.mxu1 %v11285_v8  ;;  %v9859_v32 = vmul.f32 %v19064_v55, %v10764_v42  ;;  %v9210_v44 = vmul.f32 %v18942_v35, %v11088_v54  ;;  %v9662_v6 = vadd.f32 %v9534_v7, %v9337_v62  ;;  %v9013_v13 = vadd.f32 %v8885_v20, %v8688_v60  ;;  %v11092_v47 = vld [vmem:[#allocation4 + $0x449] sm:$0xff]  ;;  %v15270_v8 = vld [vmem:[%s20135_s4] ss:$0 sm:$0xff] }
 0x54f   :  { %v10961_v57 = vadd.f32 %v10833_v30, %v10636_v50  ;;  %v10311_v36 = vadd.f32 %v10183_v59, %v9986_v31  ;;  %v10834_v14 = vmul.f32 %v19097_v25, %v10765_v46  ;;  %v10184_v4 = vmul.f32 %v19046_v37, %v11089_v22  ;;  %v15271_v31 = vld [vmem:[%s20135_s4 + $0x1] ss:$0 sm:$0xff] }
 0x550   :  { %v9535_v2 = vmul.f32 %v19055_v9, %v10440_v18  ;;  %v8689_v39 = vmul.f32 %v18925_v23, %v10439_v40  ;;  %v9987_v24 = vadd.f32 %v9859_v32, %v9662_v6  ;;  %v9338_v54 = vadd.f32 %v9210_v44, %v9013_v13  ;;  %v10442_v40 = vld [vmem:[#allocation4 + $0x447] sm:$0xff]  ;;  %v10443_v32 = vld [vmem:[#allocation4 + $0x44f] sm:$0xff] }
 0x551   :  { %v11286_v51 = vadd.f32 %v11158_v19, %v10961_v57  ;;  %v10637_v3 = vadd.f32 %v10509_v34, %v10311_v36  ;;  %v11159_v41 = vmul.f32 %v19088_v58, %v11090_v21  ;;  %v10510_v38 = vmul.f32 %v19075_v1, %v10441_v52  ;;  %v10768_v44 = vld [vmem:[#allocation4 + $0x450] sm:$0xff]  ;;  %v15272_v36 = vld [vmem:[%s20135_s4 + $0x2] ss:$0 sm:$0xff] }
 0x552   :  { %v10835_v61 = vmul.f32 %v19097_v25, %v10766_v53  ;;  %v8886_v29 = vmul.f32 %v18933_v56, %v10764_v42  ;;  %v19191_v43 = vpop.f32.mrb[70].mxu1  ;;  %v10312_v11 = vadd.f32 %v10184_v4, %v9987_v24  ;;  %v9663_v5 = vadd.f32 %v9535_v2, %v9338_v54 }
 0x553   :  { %14690 = vmatmul.mubr.f32.gmra.mrb[120].mxu1 %v11286_v51  ;;  %v10962_v15 = vadd.f32 %v10834_v14, %v10637_v3  ;;  %v9860_v23 = vmul.f32 %v19064_v55, %v10765_v46  ;;  %v19194_v10 = vpop.f32.mrb[71].mxu1  ;;  %v11160_v12 = vmul.f32 %v19088_v58, %v11091_v0  ;;  %v10185_v30 = vmul.f32 %v19046_v37, %v11090_v21  ;;  %v10444_v3 = vld [vmem:[#allocation4 + $0x467] sm:$0xff] }
 0x554   :  { %v9014_v26 = vadd.f32 %v8886_v29, %v8689_v39  ;;  %v9211_v56 = vmul.f32 %v18942_v35, %v11089_v22  ;;  %v10638_v16 = vadd.f32 %v10510_v38, %v10312_v11  ;;  %v8690_v59 = vmul.f32 %v15270_v8, %v10440_v18 }
 0x555   :  { %v11287_v42 = vadd.f32 %v11159_v41, %v10962_v15  ;;  %v9988_v27 = vadd.f32 %v9860_v23, %v9663_v5  ;;  %v10511_v7 = vmul.f32 %v19075_v1, %v10442_v40  ;;  %v9536_v50 = vmul.f32 %v19055_v9, %v10441_v52 }
 0x556   :  { %v9339_v60 = vadd.f32 %v9211_v56, %v9014_v26  ;;  %v8887_v62 = vmul.f32 %v15271_v31, %v10765_v46  ;;  %v10963_v35 = vadd.f32 %v10835_v61, %v10638_v16  ;;  %v10836_v20 = vmul.f32 %v19097_v25, %v10767_v63 }
 0x557   :  { %14692 = vmatprep.mubr.f32.mxu1 %v11287_v42  ;;  %v10313_v22 = vadd.f32 %v10185_v30, %v9988_v27  ;;  %v11161_v19 = vmul.f32 %v19088_v58, %v11092_v47  ;;  %v9861_v18 = vmul.f32 %v19064_v55, %v10766_v53  ;;  %v9212_v6 = vmul.f32 %v15272_v36, %v11090_v21  ;;  %v11094_v42 = vld [vmem:[#allocation4 + $0x469] sm:$0xff] }
 0x558   :  { %v9664_v34 = vadd.f32 %v9536_v50, %v9339_v60  ;;  %v9015_v57 = vadd.f32 %v8887_v62, %v8690_v59  ;;  %v11288_v13 = vadd.f32 %v11160_v12, %v10963_v35  ;;  %v10186_v14 = vmul.f32 %v19046_v37, %v11091_v0  ;;  %v10445_v59 = vld [vmem:[#allocation4 + $0x46f] sm:$0xff] }
 0x559   :  { %v10639_v46 = vadd.f32 %v10511_v7, %v10313_v22  ;;  %v8691_v4 = vmul.f32 %v15270_v8, %v10441_v52  ;;  %v9537_v51 = vmul.f32 %v19055_v9, %v10442_v40  ;;  %v8888_v24 = vmul.f32 %v15271_v31, %v10766_v53  ;;  %v19215_v54 = vpop.f32.mrb[72].mxu1  ;;  %v11093_v52 = vld [vmem:[#allocation4 + $0x451] sm:$0xff]  ;;  %v15273_v8 = vld [vmem:[#allocation4] sm:$0xff] }
 0x55a   :  { %v9989_v2 = vadd.f32 %v9861_v18, %v9664_v34  ;;  %v9340_v39 = vadd.f32 %v9212_v6, %v9015_v57  ;;  %14693 = vmatmul.mubr.f32.gmra.mrb[122].mxu1 %v11288_v13  ;;  %v10512_v38 = vmul.f32 %v19075_v1, %v10443_v32  ;;  %v10837_v61 = vmul.f32 %v19097_v25, %v10768_v44  ;;  %v19220_v29 = vpop.f32.mrb[73].mxu1 }
 0x55b   :  { %v10964_v41 = vadd.f32 %v10836_v20, %v10639_v46  ;;  %v9862_v21 = vmul.f32 %v19064_v55, %v10767_v63  ;;  %v9016_v5 = vadd.f32 %v8888_v24, %v8691_v4  ;;  %v9213_v23 = vmul.f32 %v15272_v36, %v11091_v0 }
 0x55c   :  { %v10314_v15 = vadd.f32 %v10186_v14, %v9989_v2  ;;  %v9665_v11 = vadd.f32 %v9537_v51, %v9340_v39  ;;  %v10187_v53 = vmul.f32 %v19046_v37, %v11092_v47  ;;  %v10513_v12 = vmul.f32 %v19075_v1, %v10444_v3 }
 0x55d   :  { %v11289_v40 = vadd.f32 %v11161_v19, %v10964_v41  ;;  %v11950_v30 = vadd.f32 %v19121_v48, %v19125_v45  ;;  %v9341_v16 = vadd.f32 %v9213_v23, %v9016_v5  ;;  %v9538_v63 = vmul.f32 %v19055_v9, %v10443_v32 }
 0x55e   :  { %v10640_v26 = vadd.f32 %v10512_v38, %v10314_v15  ;;  %v9990_v56 = vadd.f32 %v9862_v21, %v9665_v11  ;;  %v11162_v27 = vmul.f32 %v19088_v58, %v11093_v52  ;;  %v10838_v0 = vmul.f32 %v15273_v8, %v19097_v25  ;;  %v11095_v25 = vld [vmem:[#allocation4 + $0x471] sm:$0xff] }
 0x55f   :  { %14695 = vmatprep.mubr.f32.mxu1 %v11289_v40  ;;  %v11951_v47 = vadd.f32 %v11950_v30, %v19149_v49  ;;  %v9666_v50 = vadd.f32 %v9538_v63, %v9341_v16  ;;  %v9863_v31 = vmul.f32 %v19064_v55, %v10768_v44  ;;  %v11163_v62 = vmul.f32 %v19088_v58, %v11094_v42 }
 0x560   :  { %v10965_v7 = vadd.f32 %v10837_v61, %v10640_v26  ;;  %v10315_v60 = vadd.f32 %v10187_v53, %v9990_v56  ;;  %v10188_v35 = vmul.f32 %v19046_v37, %v11093_v52  ;;  %v10514_v34 = vmul.f32 %v19075_v1, %v10445_v59 }
 0x561   :  { %v11952_v9 = vadd.f32 %v19143_v28, %v11951_v47  ;;  %v9991_v19 = vadd.f32 %v9863_v31, %v9666_v50  ;;  %v11164_v13 = vmul.f32 %v19088_v58, %v11095_v25 }
 0x562   :  { %v11290_v22 = vadd.f32 %v11162_v27, %v10965_v7  ;;  %v10641_v20 = vadd.f32 %v10513_v12, %v10315_v60 }
 0x563   :  { %v11953_v18 = vadd.f32 %v11952_v9, %v19172_v33  ;;  %v19236_v32 = vpop.f32.mrb[74].mxu1  ;;  %v10316_v36 = vadd.f32 %v10188_v35, %v9991_v19 }
 0x564   :  { %14696 = vmatmul.mubr.f32.gmra.mrb[124].mxu1 %v11290_v22  ;;  %v10966_v57 = vadd.f32 %v10838_v0, %v10641_v20  ;;  %v19238_v55 = vpop.f32.mrb[75].mxu1 }
 0x565   :  { %v11954_v44 = vadd.f32 %v19167_v17, %v11953_v18  ;;  %v10642_v6 = vadd.f32 %v10514_v34, %v10316_v36 }
 0x566   :  { %v11291_v37 = vadd.f32 %v11163_v62, %v10966_v57 }
 0x567   :  { %v11955_v46 = vadd.f32 %v11954_v44, %v19194_v10  ;;  %v10967_v1 = vadd.f32 %v10838_v0, %v10642_v6 }
 0x568   :  { %14698 = vmatprep.mubr.f32.mxu1 %v11291_v37 }
 0x569   :  { %v11956_v14 = vadd.f32 %v19191_v43, %v11955_v46  ;;  %v11292_v4 = vadd.f32 %v11164_v13, %v10967_v1 }
 0x56a   :  { %v19245_v39 = vpop.f32.mrb[76].mxu1 }
 0x56b   :  { %v11957_v2 = vadd.f32 %v11956_v14, %v19220_v29  ;;  %14699 = vmatmul.mubr.f32.gmra.mrb[126].mxu1 %v11292_v4  ;;  %v19247_v51 = vpop.f32.mrb[77].mxu1 }
 0x56d   :  { %v11958_v3 = vadd.f32 %v19215_v54, %v11957_v2 }
 0x56f   :  { %v11959_v24 = vadd.f32 %v11958_v3, %v19238_v55 }
 0x571   :  { %v11960_v58 = vadd.f32 %v19236_v32, %v11959_v24 }
 0x573   :  { %v11961_v41 = vadd.f32 %v11960_v58, %v19247_v51 }
 0x574   :  { %v19253_v38 = vpop.f32.mrb[78].mxu1 }
 0x575   :  { %v19255_v61 = vpop.f32.mrb[79].mxu1  ;;  %v11962_v21 = vadd.f32 %v19245_v39, %v11961_v41 }
 0x577   :  { %v11963_v15 = vadd.f32 %v11962_v21, %v19255_v61 }
 0x579   :  { %v11964_v52 = vadd.f32 %v19253_v38, %v11963_v15 }
 0x57b   :  { %v19260_v11 = vpop.f32.mrb[80].mxu1 }
 0x57c   :  { %v19262_v5 = vpop.f32.mrb[81].mxu1 }
 0x57d   :  { %v11965_v23 = vadd.f32 %v11964_v52, %v19262_v5 }
 0x57f   :  { %v11966_v40 = vadd.f32 %v19260_v11, %v11965_v23 }
 0x585   :  { %v19266_v53 = vpop.f32.mrb[82].mxu1 }
 0x586   :  { %v19268_v12 = vpop.f32.mrb[83].mxu1 }
 0x587   :  { %v11967_v30 = vadd.f32 %v11966_v40, %v19268_v12 }
 0x589   :  { %v11968_v26 = vadd.f32 %v19266_v53, %v11967_v30 }
 0x58c   :  { %v19272_v56 = vpop.f32.mrb[84].mxu1 }
 0x58d   :  { %v19274_v42 = vpop.f32.mrb[85].mxu1 }
 0x58e   :  { %v11969_v16 = vadd.f32 %v11968_v26, %v19274_v42 }
 0x590   :  { %v11970_v63 = vadd.f32 %v19272_v56, %v11969_v16 }
 0x596   :  { %v19278_v27 = vpop.f32.mrb[86].mxu1 }
 0x597   :  { %v19280_v8 = vpop.f32.mrb[87].mxu1 }
 0x598   :  { %v11971_v0 = vadd.f32 %v11970_v63, %v19280_v8 }
 0x59a   :  { %v11972_v59 = vadd.f32 %v19278_v27, %v11971_v0 }
 0x59d   :  { %v19284_v47 = vpop.f32.mrb[88].mxu1 }
 0x59e   :  { %v19286_v7 = vpop.f32.mrb[89].mxu1 }
 0x59f   :  { %v11973_v60 = vadd.f32 %v11972_v59, %v19286_v7 }
 0x5a1   :  { %v11974_v50 = vadd.f32 %v19284_v47, %v11973_v60 }
 0x5a7   :  { %v19290_v31 = vpop.f32.mrb[90].mxu1 }
 0x5a8   :  { %v19292_v62 = vpop.f32.mrb[91].mxu1 }
 0x5a9   :  { %v11975_v35 = vadd.f32 %v11974_v50, %v19292_v62 }
 0x5ab   :  { %v11976_v9 = vadd.f32 %v19290_v31, %v11975_v35 }
 0x5ae   :  { %v19296_v22 = vpop.f32.mrb[92].mxu1 }
 0x5af   :  { %v19298_v20 = vpop.f32.mrb[93].mxu1 }
 0x5b0   :  { %v11977_v19 = vadd.f32 %v11976_v9, %v19298_v20 }
 0x5b2   :  { %v11978_v34 = vadd.f32 %v19296_v22, %v11977_v19 }
 0x5b8   :  { %v19302_v25 = vpop.f32.mrb[94].mxu1 }
 0x5b9   :  { %v19304_v18 = vpop.f32.mrb[95].mxu1 }
 0x5ba   :  { %v11979_v57 = vadd.f32 %v11978_v34, %v19304_v18 }
 0x5bc   :  { %v11980_v36 = vadd.f32 %v19302_v25, %v11979_v57 }
 0x5bf   :  { %v19308_v44 = vpop.f32.mrb[96].mxu1 }
 0x5c0   :  { %v19310_v37 = vpop.f32.mrb[97].mxu1 }
 0x5c1   :  { %v11981_v6 = vadd.f32 %v11980_v36, %v19310_v37 }
 0x5c3   :  { %v11982_v13 = vadd.f32 %v19308_v44, %v11981_v6 }
 0x5c7   :  { %v19314_v46 = vpop.f32.mrb[98].mxu1 }
 0x5c8   :  { %v19316_v1 = vpop.f32.mrb[99].mxu1 }
 0x5c9   :  { %v11983_v14 = vadd.f32 %v11982_v13, %v19316_v1 }
 0x5cb   :  { %v11984_v4 = vadd.f32 %v19314_v46, %v11983_v14 }
 0x5d0   :  { %v19320_v2 = vpop.f32.mrb[100].mxu1 }
 0x5d1   :  { %v19322_v3 = vpop.f32.mrb[101].mxu1 }
 0x5d2   :  { %v11985_v24 = vadd.f32 %v11984_v4, %v19322_v3 }
 0x5d4   :  { %v11986_v58 = vadd.f32 %v19320_v2, %v11985_v24 }
 0x5d8   :  { %v19326_v41 = vpop.f32.mrb[102].mxu1 }
 0x5d9   :  { %v19328_v21 = vpop.f32.mrb[103].mxu1 }
 0x5da   :  { %v11987_v15 = vadd.f32 %v11986_v58, %v19328_v21 }
 0x5dc   :  { %v11988_v52 = vadd.f32 %v19326_v41, %v11987_v15 }
 0x5e1   :  { %v19332_v23 = vpop.f32.mrb[104].mxu1 }
 0x5e2   :  { %v19334_v40 = vpop.f32.mrb[105].mxu1 }
 0x5e3   :  { %v11989_v30 = vadd.f32 %v11988_v52, %v19334_v40 }
 0x5e5   :  { %v11990_v26 = vadd.f32 %v19332_v23, %v11989_v30 }
 0x5e9   :  { %v19338_v16 = vpop.f32.mrb[106].mxu1 }
 0x5ea   :  { %20402 = vst [vmem:[#allocation13_spill] sm:$0xff] %v19338_v16  ;;  %v19340_v63 = vpop.f32.mrb[107].mxu1 }
 0x5eb   :  { %v11991_v0 = vadd.f32 %v11990_v26, %v19340_v63 }
 0x5ed   :  { %v11992_v59 = vadd.f32 %v19338_v16, %v11991_v0 }
 0x5f2   :  { %v19344_v60 = vpop.f32.mrb[108].mxu1 }
 0x5f3   :  { %20403 = vst [vmem:[#allocation15_spill] sm:$0xff] %v19344_v60  ;;  %v19346_v50 = vpop.f32.mrb[109].mxu1 }
 0x5f4   :  { %20404 = vst [vmem:[#allocation10_spill] sm:$0xff] %v19346_v50  ;;  %v11993_v35 = vadd.f32 %v11992_v59, %v19346_v50 }
 0x5f6   :  { %v11994_v9 = vadd.f32 %v19344_v60, %v11993_v35 }
 0x5fa   :  { %v19350_v19 = vpop.f32.mrb[110].mxu1 }
 0x5fb   :  { %20405 = vst [vmem:[#allocation18_spill] sm:$0xff] %v19350_v19  ;;  %v19352_v34 = vpop.f32.mrb[111].mxu1 }
 0x5fc   :  { %20406 = vst [vmem:[#allocation20_spill] sm:$0xff] %v19352_v34  ;;  %v11995_v57 = vadd.f32 %v11994_v9, %v19352_v34 }
 0x5fe   :  { %v11996_v36 = vadd.f32 %v19350_v19, %v11995_v57 }
 0x603   :  { %v19356_v6 = vpop.f32.mrb[112].mxu1 }
 0x604   :  { %20407 = vst [vmem:[#allocation19_spill] sm:$0xff] %v19356_v6  ;;  %v19358_v13 = vpop.f32.mrb[113].mxu1 }
 0x605   :  { %20408 = vst [vmem:[#allocation21_spill] sm:$0xff] %v19358_v13  ;;  %v11997_v14 = vadd.f32 %v11996_v36, %v19358_v13 }
 0x607   :  { %v11998_v4 = vadd.f32 %v19356_v6, %v11997_v14 }
 0x60b   :  { %v19362_v24 = vpop.f32.mrb[114].mxu1 }
 0x60c   :  { %20409 = vst [vmem:[#allocation23_spill] sm:$0xff] %v19362_v24  ;;  %v19364_v58 = vpop.f32.mrb[115].mxu1 }
 0x60d   :  { %20410 = vst [vmem:[#allocation22_spill] sm:$0xff] %v19364_v58  ;;  %v11999_v15 = vadd.f32 %v11998_v4, %v19364_v58 }
 0x60f   :  { %v12000_v52 = vadd.f32 %v19362_v24, %v11999_v15 }
 0x614   :  { %v19368_v30 = vpop.f32.mrb[116].mxu1 }
 0x615   :  { %20411 = vst [vmem:[#allocation25_spill] sm:$0xff] %v19368_v30  ;;  %v19370_v26 = vpop.f32.mrb[117].mxu1 }
 0x616   :  { %20412 = vst [vmem:[#allocation24_spill] sm:$0xff] %v19370_v26  ;;  %v12001_v0 = vadd.f32 %v12000_v52, %v19370_v26 }
 0x618   :  { %v12002_v59 = vadd.f32 %v19368_v30, %v12001_v0 }
 0x61d   :  { %v19374_v35 = vpop.f32.mrb[118].mxu1 }
 0x61e   :  { %20413 = vst [vmem:[#allocation27_spill] sm:$0xff] %v19374_v35  ;;  %v19376_v9 = vpop.f32.mrb[119].mxu1 }
 0x61f   :  { %20414 = vst [vmem:[#allocation26_spill] sm:$0xff] %v19376_v9  ;;  %v12003_v57 = vadd.f32 %v12002_v59, %v19376_v9 }
 0x621   :  { %v12004_v36 = vadd.f32 %v19374_v35, %v12003_v57 }
 0x626   :  { %v19380_v14 = vpop.f32.mrb[120].mxu1 }
 0x627   :  { %20415 = vst [vmem:[#allocation29_spill] sm:$0xff] %v19380_v14  ;;  %v19382_v4 = vpop.f32.mrb[121].mxu1 }
 0x628   :  { %20416 = vst [vmem:[#allocation28_spill] sm:$0xff] %v19382_v4  ;;  %v12005_v15 = vadd.f32 %v12004_v36, %v19382_v4 }
 0x62a   :  { %v12006_v24 = vadd.f32 %v19380_v14, %v12005_v15 }
 0x62d   :  { %v19386_v58 = vpop.f32.mrb[122].mxu1 }
 0x62e   :  { %20417 = vst [vmem:[#allocation31_spill] sm:$0xff] %v19386_v58  ;;  %v19388_v52 = vpop.f32.mrb[123].mxu1 }
 0x62f   :  { %20418 = vst [vmem:[#allocation30_spill] sm:$0xff] %v19388_v52  ;;  %v12007_v0 = vadd.f32 %v12006_v24, %v19388_v52 }
 0x631   :  { %v12008_v30 = vadd.f32 %v19386_v58, %v12007_v0 }
 0x637   :  { %v19392_v26 = vpop.f32.mrb[124].mxu1 }
 0x638   :  { %20419 = vst [vmem:[#allocation11_spill] sm:$0xff] %v19392_v26  ;;  %v19394_v59 = vpop.f32.mrb[125].mxu1 }
 0x639   :  { %20420 = vst [vmem:[#allocation34_spill] sm:$0xff] %v19394_v59  ;;  %v12009_v57 = vadd.f32 %v12008_v30, %v19394_v59 }
 0x63b   :  { %v12010_v35 = vadd.f32 %v19392_v26, %v12009_v57 }
 0x63e   :  { %v19398_v9 = vpop.f32.mrb[126].mxu1 }
 0x63f   :  { %v19400_v36 = vpop.f32.mrb[127].mxu1 }
 0x640   :  { %20421 = vst [vmem:[#allocation7_spill] sm:$0xff] %v19400_v36  ;;  %v12011_v15 = vadd.f32 %v12010_v35, %v19400_v36 }
 0x642   :  { %v12012_v14 = vadd.f32 %v19398_v9, %v12011_v15 }
 0x644   :  { %v12013_v4 = vrot.slane %v12012_v14, 4 }
 0x646   :  { %v12014_v24 = vadd.f32 %v12013_v4, %v12012_v14 }
 0x648   :  { %v12015_v52 = vrot.slane %v12014_v24, 2 }
 0x64a   :  { %v12016_v0 = vadd.f32 %v12015_v52, %v12014_v24 }
 0x64c   :  { %v12017_v58 = vrot.slane %v12016_v0, 1 }
 0x64e   :  { %v12018_v6 = vadd.f32 %v12017_v58, %v12016_v0 }
 0x650   :  { %v19404_v13 = vmul.f32 0.001953125, %v12018_v6 }
 0x652   :  { %v12020_v30 = vsub.f32 %v19125_v45, %v19404_v13  ;;  %v12021_v57 = vsub.f32 %v19121_v48, %v19404_v13  ;;  %v12022_v26 = vsub.f32 %v19149_v49, %v19404_v13  ;;  %v12023_v14 = vsub.f32 %v19143_v28, %v19404_v13 }
 0x653   :  { %v12024_v4 = vsub.f32 %v19172_v33, %v19404_v13  ;;  %v12025_v52 = vsub.f32 %v19167_v17, %v19404_v13  ;;  %v12026_v0 = vsub.f32 %v19194_v10, %v19404_v13  ;;  %v12028_v33 = vsub.f32 %v19220_v29, %v19404_v13 }
 0x654   :  { %v12084_v35 = vmul.f32 %v12020_v30, %v12020_v30  ;;  %v12085_v36 = vmul.f32 %v12021_v57, %v12021_v57  ;;  %v12086_v58 = vmul.f32 %v12022_v26, %v12022_v26  ;;  %v12087_v15 = vmul.f32 %v12023_v14, %v12023_v14 }
 0x655   :  { %v12088_v48 = vmul.f32 %v12024_v4, %v12024_v4  ;;  %v12027_v30 = vsub.f32 %v19191_v43, %v19404_v13  ;;  %v12089_v57 = vmul.f32 %v12025_v52, %v12025_v52  ;;  %v12090_v26 = vmul.f32 %v12026_v0, %v12026_v0 }
 0x656   :  { %v12148_v6 = vadd.f32 %v12085_v36, %v12084_v35  ;;  %v12029_v35 = vsub.f32 %v19215_v54, %v19404_v13  ;;  %v12092_v4 = vmul.f32 %v12028_v33, %v12028_v33 }
 0x657   :  { %v12091_v14 = vmul.f32 %v12027_v30, %v12027_v30 }
 0x658   :  { %v12149_v24 = vadd.f32 %v12148_v6, %v12086_v58  ;;  %v12030_v6 = vsub.f32 %v19238_v55, %v19404_v13  ;;  %v12093_v52 = vmul.f32 %v12029_v35, %v12029_v35 }
 0x65a   :  { %v12150_v49 = vadd.f32 %v12149_v24, %v12087_v15  ;;  %v12031_v24 = vsub.f32 %v19236_v32, %v19404_v13  ;;  %v12094_v0 = vmul.f32 %v12030_v6, %v12030_v6 }
 0x65c   :  { %v12151_v28 = vadd.f32 %v12150_v49, %v12088_v48  ;;  %v12032_v49 = vsub.f32 %v19247_v51, %v19404_v13  ;;  %v12095_v30 = vmul.f32 %v12031_v24, %v12031_v24 }
 0x65e   :  { %v12152_v36 = vadd.f32 %v12151_v28, %v12089_v57  ;;  %v12033_v57 = vsub.f32 %v19245_v39, %v19404_v13  ;;  %v12096_v33 = vmul.f32 %v12032_v49, %v12032_v49 }
 0x660   :  { %v12153_v58 = vadd.f32 %v12152_v36, %v12090_v26  ;;  %v12034_v36 = vsub.f32 %v19255_v61, %v19404_v13  ;;  %v12097_v35 = vmul.f32 %v12033_v57, %v12033_v57 }
 0x662   :  { %v12154_v15 = vadd.f32 %v12153_v58, %v12091_v14  ;;  %v12035_v58 = vsub.f32 %v19253_v38, %v19404_v13  ;;  %v12098_v6 = vmul.f32 %v12034_v36, %v12034_v36 }
 0x664   :  { %v12155_v48 = vadd.f32 %v12154_v15, %v12092_v4  ;;  %v12036_v15 = vsub.f32 %v19262_v5, %v19404_v13  ;;  %v12099_v24 = vmul.f32 %v12035_v58, %v12035_v58 }
 0x666   :  { %v12156_v28 = vadd.f32 %v12155_v48, %v12093_v52  ;;  %v12037_v48 = vsub.f32 %v19260_v11, %v19404_v13  ;;  %v12100_v49 = vmul.f32 %v12036_v15, %v12036_v15 }
 0x668   :  { %v12157_v26 = vadd.f32 %v12156_v28, %v12094_v0  ;;  %v12038_v28 = vsub.f32 %v19268_v12, %v19404_v13  ;;  %v12101_v57 = vmul.f32 %v12037_v48, %v12037_v48 }
 0x66a   :  { %v12158_v14 = vadd.f32 %v12157_v26, %v12095_v30  ;;  %v12039_v26 = vsub.f32 %v19266_v53, %v19404_v13  ;;  %v12102_v36 = vmul.f32 %v12038_v28, %v12038_v28 }
 0x66c   :  { %v12159_v4 = vadd.f32 %v12158_v14, %v12096_v33  ;;  %v12040_v14 = vsub.f32 %v19274_v42, %v19404_v13  ;;  %v12103_v58 = vmul.f32 %v12039_v26, %v12039_v26 }
 0x66e   :  { %v12160_v52 = vadd.f32 %v12159_v4, %v12097_v35  ;;  %v12041_v4 = vsub.f32 %v19272_v56, %v19404_v13  ;;  %v12104_v15 = vmul.f32 %v12040_v14, %v12040_v14 }
 0x670   :  { %v12161_v0 = vadd.f32 %v12160_v52, %v12098_v6  ;;  %v12042_v52 = vsub.f32 %v19280_v8, %v19404_v13  ;;  %v12105_v48 = vmul.f32 %v12041_v4, %v12041_v4 }
 0x672   :  { %v12162_v30 = vadd.f32 %v12161_v0, %v12099_v24  ;;  %v12043_v0 = vsub.f32 %v19278_v27, %v19404_v13  ;;  %v12106_v28 = vmul.f32 %v12042_v52, %v12042_v52 }
 0x674   :  { %v12163_v33 = vadd.f32 %v12162_v30, %v12100_v49  ;;  %v12044_v30 = vsub.f32 %v19286_v7, %v19404_v13  ;;  %v12107_v26 = vmul.f32 %v12043_v0, %v12043_v0 }
 0x676   :  { %v12164_v35 = vadd.f32 %v12163_v33, %v12101_v57  ;;  %v12045_v33 = vsub.f32 %v19284_v47, %v19404_v13  ;;  %v12108_v14 = vmul.f32 %v12044_v30, %v12044_v30 }
 0x678   :  { %v12165_v6 = vadd.f32 %v12164_v35, %v12102_v36  ;;  %v12046_v35 = vsub.f32 %v19292_v62, %v19404_v13  ;;  %v12109_v4 = vmul.f32 %v12045_v33, %v12045_v33 }
 0x67a   :  { %v12166_v24 = vadd.f32 %v12165_v6, %v12103_v58  ;;  %v12047_v6 = vsub.f32 %v19290_v31, %v19404_v13  ;;  %v12110_v52 = vmul.f32 %v12046_v35, %v12046_v35 }
 0x67c   :  { %v12167_v49 = vadd.f32 %v12166_v24, %v12104_v15  ;;  %v12048_v24 = vsub.f32 %v19298_v20, %v19404_v13  ;;  %v12111_v0 = vmul.f32 %v12047_v6, %v12047_v6 }
 0x67e   :  { %v12168_v57 = vadd.f32 %v12167_v49, %v12105_v48  ;;  %v12049_v49 = vsub.f32 %v19296_v22, %v19404_v13  ;;  %v12112_v30 = vmul.f32 %v12048_v24, %v12048_v24 }
 0x680   :  { %v12169_v36 = vadd.f32 %v12168_v57, %v12106_v28  ;;  %v12050_v57 = vsub.f32 %v19304_v18, %v19404_v13  ;;  %v12113_v33 = vmul.f32 %v12049_v49, %v12049_v49 }
 0x682   :  { %v12170_v58 = vadd.f32 %v12169_v36, %v12107_v26  ;;  %v12051_v36 = vsub.f32 %v19302_v25, %v19404_v13  ;;  %v12114_v35 = vmul.f32 %v12050_v57, %v12050_v57 }
 0x684   :  { %v12171_v15 = vadd.f32 %v12170_v58, %v12108_v14  ;;  %v12052_v58 = vsub.f32 %v19310_v37, %v19404_v13  ;;  %v12115_v6 = vmul.f32 %v12051_v36, %v12051_v36 }
 0x686   :  { %v12172_v48 = vadd.f32 %v12171_v15, %v12109_v4  ;;  %v12053_v15 = vsub.f32 %v19308_v44, %v19404_v13  ;;  %v12116_v24 = vmul.f32 %v12052_v58, %v12052_v58 }
 0x688   :  { %v12173_v28 = vadd.f32 %v12172_v48, %v12110_v52  ;;  %v12054_v48 = vsub.f32 %v19316_v1, %v19404_v13  ;;  %v12117_v49 = vmul.f32 %v12053_v15, %v12053_v15 }
 0x68a   :  { %v12174_v26 = vadd.f32 %v12173_v28, %v12111_v0  ;;  %v12055_v28 = vsub.f32 %v19314_v46, %v19404_v13  ;;  %v12118_v57 = vmul.f32 %v12054_v48, %v12054_v48 }
 0x68c   :  { %v12175_v14 = vadd.f32 %v12174_v26, %v12112_v30  ;;  %v12056_v26 = vsub.f32 %v19322_v3, %v19404_v13  ;;  %v12119_v36 = vmul.f32 %v12055_v28, %v12055_v28 }
 0x68e   :  { %v12176_v4 = vadd.f32 %v12175_v14, %v12113_v33  ;;  %v12057_v14 = vsub.f32 %v19320_v2, %v19404_v13  ;;  %v12120_v58 = vmul.f32 %v12056_v26, %v12056_v26 }
 0x690   :  { %v12177_v52 = vadd.f32 %v12176_v4, %v12114_v35  ;;  %v12058_v4 = vsub.f32 %v19328_v21, %v19404_v13  ;;  %v12121_v15 = vmul.f32 %v12057_v14, %v12057_v14 }
 0x692   :  { %v12178_v0 = vadd.f32 %v12177_v52, %v12115_v6  ;;  %v12059_v52 = vsub.f32 %v19326_v41, %v19404_v13  ;;  %v12122_v48 = vmul.f32 %v12058_v4, %v12058_v4 }
 0x694   :  { %v12179_v30 = vadd.f32 %v12178_v0, %v12116_v24  ;;  %v12060_v0 = vsub.f32 %v19334_v40, %v19404_v13  ;;  %v12123_v28 = vmul.f32 %v12059_v52, %v12059_v52 }
 0x696   :  { %v12180_v33 = vadd.f32 %v12179_v30, %v12117_v49  ;;  %v12061_v30 = vsub.f32 %v19332_v23, %v19404_v13  ;;  %v12124_v26 = vmul.f32 %v12060_v0, %v12060_v0 }
 0x698   :  { %v12181_v35 = vadd.f32 %v12180_v33, %v12118_v57  ;;  %v12062_v33 = vsub.f32 %v19340_v63, %v19404_v13  ;;  %v12125_v14 = vmul.f32 %v12061_v30, %v12061_v30 }
 0x69a   :  { %v12182_v6 = vadd.f32 %v12181_v35, %v12119_v36  ;;  %v12063_v35 = vsub.f32 %v19338_v16, %v19404_v13  ;;  %v12126_v4 = vmul.f32 %v12062_v33, %v12062_v33 }
 0x69c   :  { %v12183_v24 = vadd.f32 %v12182_v6, %v12120_v58  ;;  %v12064_v6 = vsub.f32 %v19346_v50, %v19404_v13  ;;  %v12127_v52 = vmul.f32 %v12063_v35, %v12063_v35 }
 0x69e   :  { %v12184_v49 = vadd.f32 %v12183_v24, %v12121_v15  ;;  %v12065_v24 = vsub.f32 %v19344_v60, %v19404_v13  ;;  %v12128_v0 = vmul.f32 %v12064_v6, %v12064_v6 }
 0x6a0   :  { %v12185_v57 = vadd.f32 %v12184_v49, %v12122_v48  ;;  %v12066_v49 = vsub.f32 %v19352_v34, %v19404_v13  ;;  %v12129_v30 = vmul.f32 %v12065_v24, %v12065_v24 }
 0x6a2   :  { %v12186_v36 = vadd.f32 %v12185_v57, %v12123_v28  ;;  %v12067_v57 = vsub.f32 %v19350_v19, %v19404_v13  ;;  %v12130_v33 = vmul.f32 %v12066_v49, %v12066_v49 }
 0x6a4   :  { %v12187_v58 = vadd.f32 %v12186_v36, %v12124_v26  ;;  %v20422_v36 = vld [vmem:[#allocation21_spill] sm:$0xff]  ;;  %v12131_v35 = vmul.f32 %v12067_v57, %v12067_v57 }
 0x6a5   :  { %v12068_v50 = vsub.f32 %v20422_v36, %v19404_v13 }
 0x6a6   :  { %v12188_v15 = vadd.f32 %v12187_v58, %v12125_v14  ;;  %v20423_v58 = vld [vmem:[#allocation19_spill] sm:$0xff] }
 0x6a7   :  { %v12069_v60 = vsub.f32 %v20423_v58, %v19404_v13  ;;  %v12132_v6 = vmul.f32 %v12068_v50, %v12068_v50 }
 0x6a8   :  { %v12189_v48 = vadd.f32 %v12188_v15, %v12126_v4  ;;  %v20424_v15 = vld [vmem:[#allocation22_spill] sm:$0xff] }
 0x6a9   :  { %v12070_v34 = vsub.f32 %v20424_v15, %v19404_v13  ;;  %v12133_v24 = vmul.f32 %v12069_v60, %v12069_v60 }
 0x6aa   :  { %v12190_v28 = vadd.f32 %v12189_v48, %v12127_v52  ;;  %v20425_v48 = vld [vmem:[#allocation23_spill] sm:$0xff] }
 0x6ab   :  { %v12071_v19 = vsub.f32 %v20425_v48, %v19404_v13  ;;  %v12134_v49 = vmul.f32 %v12070_v34, %v12070_v34 }
 0x6ac   :  { %v12191_v26 = vadd.f32 %v12190_v28, %v12128_v0  ;;  %v20426_v28 = vld [vmem:[#allocation24_spill] sm:$0xff] }
 0x6ad   :  { %v12072_v36 = vsub.f32 %v20426_v28, %v19404_v13  ;;  %v12135_v57 = vmul.f32 %v12071_v19, %v12071_v19 }
 0x6ae   :  { %v12192_v14 = vadd.f32 %v12191_v26, %v12129_v30  ;;  %v20427_v26 = vld [vmem:[#allocation25_spill] sm:$0xff] }
 0x6af   :  { %v12073_v58 = vsub.f32 %v20427_v26, %v19404_v13  ;;  %v12136_v50 = vmul.f32 %v12072_v36, %v12072_v36 }
 0x6b0   :  { %v12193_v4 = vadd.f32 %v12192_v14, %v12130_v33  ;;  %v20428_v14 = vld [vmem:[#allocation26_spill] sm:$0xff] }
 0x6b1   :  { %v12074_v15 = vsub.f32 %v20428_v14, %v19404_v13  ;;  %v12137_v60 = vmul.f32 %v12073_v58, %v12073_v58 }
 0x6b2   :  { %v12194_v52 = vadd.f32 %v12193_v4, %v12131_v35  ;;  %v20429_v4 = vld [vmem:[#allocation27_spill] sm:$0xff] }
 0x6b3   :  { %v12075_v48 = vsub.f32 %v20429_v4, %v19404_v13  ;;  %v12138_v34 = vmul.f32 %v12074_v15, %v12074_v15 }
 0x6b4   :  { %v12195_v0 = vadd.f32 %v12194_v52, %v12132_v6  ;;  %v20430_v52 = vld [vmem:[#allocation28_spill] sm:$0xff] }
 0x6b5   :  { %v12076_v28 = vsub.f32 %v20430_v52, %v19404_v13  ;;  %v12139_v19 = vmul.f32 %v12075_v48, %v12075_v48 }
 0x6b6   :  { %v12196_v30 = vadd.f32 %v12195_v0, %v12133_v24  ;;  %v20431_v0 = vld [vmem:[#allocation29_spill] sm:$0xff] }
 0x6b7   :  { %v12077_v26 = vsub.f32 %v20431_v0, %v19404_v13  ;;  %v12140_v36 = vmul.f32 %v12076_v28, %v12076_v28 }
 0x6b8   :  { %v12197_v33 = vadd.f32 %v12196_v30, %v12134_v49  ;;  %v20432_v30 = vld [vmem:[#allocation30_spill] sm:$0xff] }
 0x6b9   :  { %v12078_v14 = vsub.f32 %v20432_v30, %v19404_v13  ;;  %v12141_v58 = vmul.f32 %v12077_v26, %v12077_v26 }
 0x6ba   :  { %v12198_v35 = vadd.f32 %v12197_v33, %v12135_v57  ;;  %v20433_v33 = vld [vmem:[#allocation31_spill] sm:$0xff] }
 0x6bb   :  { %v12079_v4 = vsub.f32 %v20433_v33, %v19404_v13  ;;  %v12142_v15 = vmul.f32 %v12078_v14, %v12078_v14 }
 0x6bc   :  { %v12199_v6 = vadd.f32 %v12198_v35, %v12136_v50  ;;  %v12080_v35 = vsub.f32 %v19394_v59, %v19404_v13 }
 0x6bd   :  { %v12143_v48 = vmul.f32 %v12079_v4, %v12079_v4 }
 0x6be   :  { %v12200_v24 = vadd.f32 %v12199_v6, %v12137_v60  ;;  %v20434_v6 = vld [vmem:[#allocation11_spill] sm:$0xff]  ;;  %v12144_v28 = vmul.f32 %v12080_v35, %v12080_v35 }
 0x6bf   :  { %v12081_v0 = vsub.f32 %v20434_v6, %v19404_v13  ;;  %v12218_v35 = vld [vmem:[%s20138_s6] sm:$0x1] }
 0x6c0   :  { %v12201_v49 = vadd.f32 %v12200_v24, %v12138_v34  ;;  %v20435_v24 = vld [vmem:[#allocation7_spill] sm:$0xff] }
 0x6c1   :  { %v12082_v30 = vsub.f32 %v20435_v24, %v19404_v13  ;;  %v12145_v26 = vmul.f32 %v12081_v0, %v12081_v0 }
 0x6c2   :  { %v12202_v57 = vadd.f32 %v12201_v49, %v12139_v19  ;;  %v12083_v49 = vsub.f32 %v19398_v9, %v19404_v13 }
 0x6c4   :  { %v12203_v50 = vadd.f32 %v12202_v57, %v12140_v36  ;;  %v12146_v57 = vmul.f32 %v12082_v30, %v12082_v30  ;;  %v12147_v59 = vmul.f32 %v12083_v49, %v12083_v49  ;;  %v19540_v30 = vld [vmem:[%s20139_s7] sm:$0x1] }
 0x6c6   :  { %v12204_v60 = vadd.f32 %v12203_v50, %v12141_v58 }
 0x6c8   :  { %v12205_v34 = vadd.f32 %v12204_v60, %v12142_v15 }
 0x6ca   :  { %v12206_v19 = vadd.f32 %v12205_v34, %v12143_v48  ;;  %v20437_v34 = vld [vmem:[#allocation12_spill] sm:$0xff] }
 0x6cc   :  { %v12207_v36 = vadd.f32 %v12206_v19, %v12144_v28  ;;  %v20438_v28 = vld [vmem:[#allocation8_spill] sm:$0xff] }
 0x6ce   :  { %v12208_v33 = vadd.f32 %v12207_v36, %v12145_v26  ;;  %v20440_v26 = vld [vmem:[#allocation14_spill] sm:$0xff] }
 0x6d0   :  { %v12209_v14 = vadd.f32 %v12208_v33, %v12146_v57 }
 0x6d2   :  { %v12210_v58 = vadd.f32 %v12209_v14, %v12147_v59 }
 0x6d4   :  { %v12211_v50 = vrot.slane %v12210_v58, 4 }
 0x6d6   :  { %v12212_v52 = vadd.f32 %v12211_v50, %v12210_v58 }
 0x6d8   :  { %v12213_v6 = vrot.slane %v12212_v52, 2 }
 0x6da   :  { %v12214_v4 = vadd.f32 %v12213_v6, %v12212_v52  ;;  %v20436_v52 = vld [vmem:[#allocation32_spill] sm:$0xff] }
 0x6dc   :  { %v12215_v15 = vrot.slane %v12214_v4, 1 }
 0x6de   :  { %v12216_v60 = vadd.f32 %v12215_v15, %v12214_v4  ;;  %v20441_v4 = vld [vmem:[#allocation13_spill] sm:$0xff]  ;;  %v20442_v15 = vld [vmem:[#allocation10_spill] sm:$0xff] }
 0x6e0   :  { %v12217_v16 = vmul.f32 0.001953125, %v12216_v60  ;;  %v20443_v60 = vld [vmem:[#allocation15_spill] sm:$0xff] }
 0x6e2   :  { %v12219_v24 = vadd.f32 1e-05, %v12217_v16  ;;  %v20456_v16 = vld [vmem:[#allocation25_spill] sm:$0xff] }
 0x6e4   :  { %15248 = vrsqrt.f32 %v12219_v24 }
 0x6ee   :  { %v15249_v0 = vpop.eup %15248 }
 0x6ef   :  { %v12221_v48 = vmul.f32 %v15249_v0, %v12218_v35  ;;  %v20444_v35 = vld [vmem:[#allocation20_spill] sm:$0xff]  ;;  %v20445_v0 = vld [vmem:[#allocation18_spill] sm:$0xff] }
 0x6f1   :  { %v19543_v59 = vmul.f32 %v12221_v48, %v19404_v13  ;;  %v19546_v33 = vrot.slane %v12221_v48, %v20436_v52  ;;  %v20439_v13 = vld [vmem:[#allocation9_spill] sm:$0xff] }
 0x6f2   :  { %v20446_v48 = vld [vmem:[#allocation21_spill] sm:$0xff] }
 0x6f3   :  { %v19552_v6 = vmul.f32 %v19546_v33, %v19125_v45  ;;  %v19556_v24 = vmul.f32 %v20437_v34, %v19546_v33  ;;  %v19560_v19 = vmul.f32 %v19546_v33, %v20438_v28  ;;  %v19564_v49 = vmul.f32 %v20439_v13, %v19546_v33  ;;  %v20448_v28 = vld [vmem:[#allocation19_spill] sm:$0xff] }
 0x6f4   :  { %v19568_v36 = vmul.f32 %v19546_v33, %v20440_v26  ;;  %v19572_v45 = vmul.f32 %v19167_v17, %v19546_v33  ;;  %v19576_v57 = vmul.f32 %v19546_v33, %v19194_v10  ;;  %v19580_v14 = vmul.f32 %v19191_v43, %v19546_v33  ;;  %v20450_v26 = vld [vmem:[#allocation22_spill] sm:$0xff] }
 0x6f5   :  { %v19584_v58 = vmul.f32 %v19546_v33, %v19220_v29  ;;  %v19588_v50 = vmul.f32 %v19215_v54, %v19546_v33  ;;  %v19592_v17 = vmul.f32 %v19546_v33, %v19238_v55  ;;  %v19596_v10 = vmul.f32 %v19236_v32, %v19546_v33 }
 0x6f6   :  { %v19600_v43 = vmul.f32 %v19546_v33, %v19247_v51  ;;  %v19604_v29 = vmul.f32 %v19245_v39, %v19546_v33  ;;  %v19608_v54 = vmul.f32 %v19546_v33, %v19255_v61  ;;  %v19612_v55 = vmul.f32 %v19253_v38, %v19546_v33 }
 0x6f7   :  { %v19616_v32 = vmul.f32 %v19546_v33, %v19262_v5  ;;  %v19620_v51 = vmul.f32 %v19260_v11, %v19546_v33  ;;  %v19624_v39 = vmul.f32 %v19546_v33, %v19268_v12  ;;  %v19628_v61 = vmul.f32 %v19266_v53, %v19546_v33 }
 0x6f8   :  { %v19632_v38 = vmul.f32 %v19546_v33, %v19274_v42  ;;  %v19636_v5 = vmul.f32 %v19272_v56, %v19546_v33  ;;  %v19640_v11 = vmul.f32 %v19546_v33, %v19280_v8  ;;  %v19644_v12 = vmul.f32 %v19278_v27, %v19546_v33 }
 0x6f9   :  { %v19648_v53 = vmul.f32 %v19546_v33, %v19286_v7  ;;  %v19652_v42 = vmul.f32 %v19284_v47, %v19546_v33  ;;  %v19656_v56 = vmul.f32 %v19546_v33, %v19292_v62  ;;  %v19660_v8 = vmul.f32 %v19290_v31, %v19546_v33 }
 0x6fa   :  { %v19664_v27 = vmul.f32 %v19546_v33, %v19298_v20  ;;  %v19668_v7 = vmul.f32 %v19296_v22, %v19546_v33  ;;  %v19672_v47 = vmul.f32 %v19546_v33, %v19304_v18  ;;  %v19676_v62 = vmul.f32 %v19302_v25, %v19546_v33 }
 0x6fb   :  { %v19680_v31 = vmul.f32 %v19546_v33, %v19310_v37  ;;  %v19684_v20 = vmul.f32 %v19308_v44, %v19546_v33  ;;  %v19688_v22 = vmul.f32 %v19546_v33, %v19316_v1  ;;  %v19692_v18 = vmul.f32 %v19314_v46, %v19546_v33 }
 0x6fc   :  { %v19696_v25 = vmul.f32 %v19546_v33, %v19322_v3  ;;  %v19700_v37 = vmul.f32 %v19320_v2, %v19546_v33  ;;  %v19704_v44 = vmul.f32 %v19546_v33, %v19328_v21  ;;  %v19708_v1 = vmul.f32 %v19326_v41, %v19546_v33 }
 0x6fd   :  { %v19712_v46 = vmul.f32 %v19546_v33, %v19334_v40  ;;  %v19716_v3 = vmul.f32 %v19332_v23, %v19546_v33  ;;  %v19720_v2 = vmul.f32 %v19546_v33, %v19340_v63  ;;  %v19724_v21 = vmul.f32 %v20441_v4, %v19546_v33 }
 0x6fe   :  { %v19728_v41 = vmul.f32 %v19546_v33, %v20442_v15  ;;  %v19732_v40 = vmul.f32 %v20443_v60, %v19546_v33  ;;  %v19736_v23 = vmul.f32 %v19546_v33, %v20444_v35  ;;  %v19740_v63 = vmul.f32 %v20445_v0, %v19546_v33  ;;  %v20452_v15 = vld [vmem:[#allocation23_spill] sm:$0xff]  ;;  %v20454_v35 = vld [vmem:[#allocation24_spill] sm:$0xff] }
 0x6ff   :  { %v19744_v34 = vmul.f32 %v19546_v33, %v20446_v48  ;;  %v19748_v13 = vmul.f32 %v20448_v28, %v19546_v33  ;;  %v19752_v4 = vmul.f32 %v19546_v33, %v20450_v26  ;;  %v19756_v60 = vmul.f32 %v20452_v15, %v19546_v33 }
 0x700   :  { %v19760_v0 = vmul.f32 %v19546_v33, %v20454_v35  ;;  %v19764_v48 = vmul.f32 %v20456_v16, %v19546_v33 }
 0x701   :  { %20447 = vst [vmem:[#allocation36_spill] sm:$0xff] %v19744_v34  ;;  %20449 = vst [vmem:[#allocation37_spill] sm:$0xff] %v19748_v13  ;;  %v20458_v34 = vld [vmem:[#allocation26_spill] sm:$0xff]  ;;  %v20460_v13 = vld [vmem:[#allocation27_spill] sm:$0xff] }
 0x702   :  { %20451 = vst [vmem:[#allocation35_spill] sm:$0xff] %v19752_v4  ;;  %20453 = vst [vmem:[#allocation16_spill] sm:$0xff] %v19756_v60  ;;  %v19768_v28 = vmul.f32 %v19546_v33, %v20458_v34  ;;  %v19772_v26 = vmul.f32 %v20460_v13, %v19546_v33  ;;  %v20462_v4 = vld [vmem:[#allocation28_spill] sm:$0xff]  ;;  %v20464_v60 = vld [vmem:[#allocation29_spill] sm:$0xff] }
 0x703   :  { %20455 = vst [vmem:[#allocation17_spill] sm:$0xff] %v19760_v0  ;;  %20457 = vst [vmem:[#allocation33_spill] sm:$0xff] %v19764_v48  ;;  %v19776_v15 = vmul.f32 %v19546_v33, %v20462_v4  ;;  %v19780_v35 = vmul.f32 %v20464_v60, %v19546_v33  ;;  %v20465_v0 = vld [vmem:[#allocation30_spill] sm:$0xff]  ;;  %v20466_v48 = vld [vmem:[#allocation31_spill] sm:$0xff] }
 0x704   :  { %20459 = vst [vmem:[#allocation32_spill] sm:$0xff] %v19768_v28  ;;  %20461 = vst [vmem:[#allocation12_spill] sm:$0xff] %v19772_v26  ;;  %v19784_v16 = vmul.f32 %v19546_v33, %v20465_v0  ;;  %v19788_v34 = vmul.f32 %v20466_v48, %v19546_v33  ;;  %v20468_v28 = vld [vmem:[#allocation34_spill] sm:$0xff]  ;;  %v20469_v26 = vld [vmem:[#allocation11_spill] sm:$0xff]  ;;  %v19804_v0 = vmul.f32 %v19398_v9, %v19546_v33 }
 0x705   :  { %20463 = vst [vmem:[#allocation8_spill] sm:$0xff] %v19776_v15  ;;  %v19792_v13 = vmul.f32 %v19546_v33, %v20468_v28  ;;  %v19796_v4 = vmul.f32 %v20469_v26, %v19546_v33  ;;  %v20470_v15 = vld [vmem:[#allocation7_spill] sm:$0xff]  ;;  %v20472_v48 = vsub.f32 %v19540_v30, %v19543_v59 }
 0x706   :  { %20467 = vst [vmem:[#allocation9_spill] sm:$0xff] %v19788_v34  ;;  %v19800_v60 = vmul.f32 %v19546_v33, %v20470_v15 }
 0x707   :  { %v19810_v34 = vrot.slane %v20472_v48, %v20436_v52 }
 0x708   :  { %20471 = vst [vmem:[#allocation14_spill] sm:$0xff] %v19800_v60 }
 0x709   :  { %v12301_v28 = vadd.f32 %v19810_v34, %v19552_v6  ;;  %v12302_v26 = vadd.f32 %v19810_v34, %v19556_v24  ;;  %v12303_v15 = vadd.f32 %v19810_v34, %v19560_v19  ;;  %v12304_v60 = vadd.f32 %v19810_v34, %v19564_v49 }
 0x70a   :  { %v12305_v9 = vadd.f32 %v19810_v34, %v19568_v36  ;;  %v12306_v30 = vadd.f32 %v19810_v34, %v19572_v45  ;;  %v12307_v59 = vadd.f32 %v19810_v34, %v19576_v57  ;;  %v12308_v52 = vadd.f32 %v19810_v34, %v19580_v14  ;;  %v20478_v48 = vld [vmem:[#allocation33_spill] sm:$0xff] }
 0x70b   :  { %v12309_v33 = vadd.f32 %v19810_v34, %v19584_v58  ;;  %v12310_v6 = vadd.f32 %v19810_v34, %v19588_v50  ;;  %v12311_v24 = vadd.f32 %v19810_v34, %v19592_v17  ;;  %v12312_v19 = vadd.f32 %v19810_v34, %v19596_v10  ;;  %12365 = vst [vmem:[%s20140_s8] sm:$0xff] %v12301_v28 }
 0x70c   :  { %12366 = vst [vmem:[%s20140_s8 + $0x8] sm:$0xff] %v12302_v26  ;;  %12367 = vst [vmem:[%s20140_s8 + $0x10] sm:$0xff] %v12303_v15  ;;  %v12313_v49 = vadd.f32 %v19810_v34, %v19600_v43  ;;  %v12314_v36 = vadd.f32 %v19810_v34, %v19604_v29  ;;  %v12315_v45 = vadd.f32 %v19810_v34, %v19608_v54  ;;  %v20479_v26 = vld [vmem:[#allocation32_spill] sm:$0xff] }
 0x70d   :  { %12368 = vst [vmem:[%s20140_s8 + $0x18] sm:$0xff] %v12304_v60  ;;  %v12316_v57 = vadd.f32 %v19810_v34, %v19612_v55  ;;  %12369 = vst [vmem:[%s20140_s8 + $0x20] sm:$0xff] %v12305_v9  ;;  %v12317_v14 = vadd.f32 %v19810_v34, %v19616_v32  ;;  %v12318_v58 = vadd.f32 %v19810_v34, %v19620_v51  ;;  %v20480_v9 = vld [vmem:[#allocation12_spill] sm:$0xff] }
 0x70e   :  { %12370 = vst [vmem:[%s20140_s8 + $0x28] sm:$0xff] %v12306_v30  ;;  %12371 = vst [vmem:[%s20140_s8 + $0x30] sm:$0xff] %v12307_v59  ;;  %v12319_v50 = vadd.f32 %v19810_v34, %v19624_v39  ;;  %v12320_v17 = vadd.f32 %v19810_v34, %v19628_v61  ;;  %v12321_v10 = vadd.f32 %v19810_v34, %v19632_v38  ;;  %v20481_v59 = vld [vmem:[#allocation8_spill] sm:$0xff] }
 0x70f   :  { %12372 = vst [vmem:[%s20140_s8 + $0x38] sm:$0xff] %v12308_v52  ;;  %12373 = vst [vmem:[%s20140_s8 + $0x40] sm:$0xff] %v12309_v33  ;;  %v12322_v43 = vadd.f32 %v19810_v34, %v19636_v5  ;;  %v12323_v29 = vadd.f32 %v19810_v34, %v19640_v11  ;;  %v12324_v54 = vadd.f32 %v19810_v34, %v19644_v12 }
 0x710   :  { %12374 = vst [vmem:[%s20140_s8 + $0x48] sm:$0xff] %v12310_v6  ;;  %12375 = vst [vmem:[%s20140_s8 + $0x50] sm:$0xff] %v12311_v24  ;;  %v12325_v55 = vadd.f32 %v19810_v34, %v19648_v53  ;;  %v12326_v32 = vadd.f32 %v19810_v34, %v19652_v42  ;;  %v12327_v51 = vadd.f32 %v19810_v34, %v19656_v56  ;;  %v20482_v24 = vld [vmem:[#allocation9_spill] sm:$0xff] }
 0x711   :  { %12376 = vst [vmem:[%s20140_s8 + $0x58] sm:$0xff] %v12312_v19  ;;  %12377 = vst [vmem:[%s20140_s8 + $0x60] sm:$0xff] %v12313_v49  ;;  %v12328_v39 = vadd.f32 %v19810_v34, %v19660_v8  ;;  %v12329_v61 = vadd.f32 %v19810_v34, %v19664_v27  ;;  %v12330_v38 = vadd.f32 %v19810_v34, %v19668_v7  ;;  %v20483_v49 = vld [vmem:[#allocation14_spill] sm:$0xff] }
 0x712   :  { %12378 = vst [vmem:[%s20140_s8 + $0x68] sm:$0xff] %v12314_v36  ;;  %12379 = vst [vmem:[%s20140_s8 + $0x70] sm:$0xff] %v12315_v45  ;;  %v12331_v5 = vadd.f32 %v19810_v34, %v19672_v47  ;;  %v12332_v11 = vadd.f32 %v19810_v34, %v19676_v62  ;;  %v12333_v12 = vadd.f32 %v19810_v34, %v19680_v31 }
 0x713   :  { %12380 = vst [vmem:[%s20140_s8 + $0x78] sm:$0xff] %v12316_v57  ;;  %12381 = vst [vmem:[%s20140_s8 + $0x80] sm:$0xff] %v12317_v14  ;;  %v12334_v53 = vadd.f32 %v19810_v34, %v19684_v20  ;;  %v12335_v42 = vadd.f32 %v19810_v34, %v19688_v22  ;;  %v12336_v56 = vadd.f32 %v19810_v34, %v19692_v18 }
 0x714   :  { %12382 = vst [vmem:[%s20140_s8 + $0x88] sm:$0xff] %v12318_v58  ;;  %12383 = vst [vmem:[%s20140_s8 + $0x90] sm:$0xff] %v12319_v50  ;;  %v12337_v8 = vadd.f32 %v19810_v34, %v19696_v25  ;;  %v12338_v27 = vadd.f32 %v19810_v34, %v19700_v37  ;;  %v12339_v7 = vadd.f32 %v19810_v34, %v19704_v44 }
 0x715   :  { %12384 = vst [vmem:[%s20140_s8 + $0x98] sm:$0xff] %v12320_v17  ;;  %12385 = vst [vmem:[%s20140_s8 + $0xa0] sm:$0xff] %v12321_v10  ;;  %v12340_v47 = vadd.f32 %v19810_v34, %v19708_v1  ;;  %v12341_v62 = vadd.f32 %v19810_v34, %v19712_v46  ;;  %v12342_v31 = vadd.f32 %v19810_v34, %v19716_v3  ;;  %v20473_v1 = vld [vmem:[#allocation36_spill] sm:$0xff]  ;;  %v20474_v3 = vld [vmem:[#allocation37_spill] sm:$0xff] }
 0x716   :  { %12386 = vst [vmem:[%s20140_s8 + $0xa8] sm:$0xff] %v12322_v43  ;;  %12387 = vst [vmem:[%s20140_s8 + $0xb0] sm:$0xff] %v12323_v29  ;;  %v12343_v20 = vadd.f32 %v19810_v34, %v19720_v2  ;;  %v12344_v22 = vadd.f32 %v19810_v34, %v19724_v21  ;;  %v12345_v18 = vadd.f32 %v19810_v34, %v19728_v41  ;;  %v20475_v21 = vld [vmem:[#allocation35_spill] sm:$0xff] }
 0x717   :  { %12388 = vst [vmem:[%s20140_s8 + $0xb8] sm:$0xff] %v12324_v54  ;;  %12389 = vst [vmem:[%s20140_s8 + $0xc0] sm:$0xff] %v12325_v55  ;;  %v12346_v25 = vadd.f32 %v19810_v34, %v19732_v40  ;;  %v12347_v37 = vadd.f32 %v19810_v34, %v19736_v23  ;;  %v12348_v44 = vadd.f32 %v19810_v34, %v19740_v63  ;;  %v20476_v40 = vld [vmem:[#allocation16_spill] sm:$0xff]  ;;  %v20477_v63 = vld [vmem:[#allocation17_spill] sm:$0xff] }
 0x718   :  { %12390 = vst [vmem:[%s20140_s8 + $0xc8] sm:$0xff] %v12326_v32  ;;  %12391 = vst [vmem:[%s20140_s8 + $0xd0] sm:$0xff] %v12327_v51  ;;  %v12349_v46 = vadd.f32 %v19810_v34, %v20473_v1  ;;  %v12350_v2 = vadd.f32 %v19810_v34, %v20474_v3  ;;  %v12351_v41 = vadd.f32 %v19810_v34, %v20475_v21 }
 0x719   :  { %12392 = vst [vmem:[%s20140_s8 + $0xd8] sm:$0xff] %v12328_v39  ;;  %12393 = vst [vmem:[%s20140_s8 + $0xe0] sm:$0xff] %v12329_v61  ;;  %v12352_v23 = vadd.f32 %v19810_v34, %v20476_v40  ;;  %v12353_v60 = vadd.f32 %v19810_v34, %v20477_v63  ;;  %v12354_v28 = vadd.f32 %v19810_v34, %v20478_v48 }
 0x71a   :  { %12394 = vst [vmem:[%s20140_s8 + $0xe8] sm:$0xff] %v12330_v38  ;;  %12395 = vst [vmem:[%s20140_s8 + $0xf0] sm:$0xff] %v12331_v5  ;;  %v12355_v15 = vadd.f32 %v19810_v34, %v20479_v26  ;;  %v12356_v30 = vadd.f32 %v19810_v34, %v20480_v9  ;;  %v12357_v52 = vadd.f32 %v19810_v34, %v20481_v59 }
 0x71b   :  { %12396 = vst [vmem:[%s20140_s8 + $0xf8] sm:$0xff] %v12332_v11  ;;  %12397 = vst [vmem:[%s20140_s8 + $0x100] sm:$0xff] %v12333_v12  ;;  %v12358_v33 = vadd.f32 %v19810_v34, %v19780_v35  ;;  %v12359_v6 = vadd.f32 %v19810_v34, %v19784_v16  ;;  %v12360_v19 = vadd.f32 %v19810_v34, %v20482_v24 }
 0x71c   :  { %12398 = vst [vmem:[%s20140_s8 + $0x108] sm:$0xff] %v12334_v53  ;;  %12399 = vst [vmem:[%s20140_s8 + $0x110] sm:$0xff] %v12335_v42  ;;  %v12361_v35 = vadd.f32 %v19810_v34, %v19792_v13  ;;  %v12362_v16 = vadd.f32 %v19810_v34, %v19796_v4  ;;  %v12363_v36 = vadd.f32 %v19810_v34, %v20483_v49 }
 0x71d   :  { %12400 = vst [vmem:[%s20140_s8 + $0x118] sm:$0xff] %v12336_v56  ;;  %12401 = vst [vmem:[%s20140_s8 + $0x120] sm:$0xff] %v12337_v8  ;;  %v12364_v45 = vadd.f32 %v19810_v34, %v19804_v0 }
 0x71e   :  { %12402 = vst [vmem:[%s20140_s8 + $0x128] sm:$0xff] %v12338_v27  ;;  %12403 = vst [vmem:[%s20140_s8 + $0x130] sm:$0xff] %v12339_v7 }
 0x71f   :  { %12404 = vst [vmem:[%s20140_s8 + $0x138] sm:$0xff] %v12340_v47  ;;  %12405 = vst [vmem:[%s20140_s8 + $0x140] sm:$0xff] %v12341_v62 }
 0x720   :  { %12406 = vst [vmem:[%s20140_s8 + $0x148] sm:$0xff] %v12342_v31  ;;  %12407 = vst [vmem:[%s20140_s8 + $0x150] sm:$0xff] %v12343_v20 }
 0x721   :  { %12408 = vst [vmem:[%s20140_s8 + $0x158] sm:$0xff] %v12344_v22  ;;  %12409 = vst [vmem:[%s20140_s8 + $0x160] sm:$0xff] %v12345_v18 }
 0x722   :  { %12410 = vst [vmem:[%s20140_s8 + $0x168] sm:$0xff] %v12346_v25  ;;  %12411 = vst [vmem:[%s20140_s8 + $0x170] sm:$0xff] %v12347_v37 }
 0x723   :  { %12412 = vst [vmem:[%s20140_s8 + $0x178] sm:$0xff] %v12348_v44  ;;  %12413 = vst [vmem:[%s20140_s8 + $0x180] sm:$0xff] %v12349_v46 }
 0x724   :  { %12414 = vst [vmem:[%s20140_s8 + $0x188] sm:$0xff] %v12350_v2  ;;  %12415 = vst [vmem:[%s20140_s8 + $0x190] sm:$0xff] %v12351_v41 }
 0x725   :  { %12416 = vst [vmem:[%s20140_s8 + $0x198] sm:$0xff] %v12352_v23  ;;  %12417 = vst [vmem:[%s20140_s8 + $0x1a0] sm:$0xff] %v12353_v60 }
 0x726   :  { %12418 = vst [vmem:[%s20140_s8 + $0x1a8] sm:$0xff] %v12354_v28  ;;  %12419 = vst [vmem:[%s20140_s8 + $0x1b0] sm:$0xff] %v12355_v15 }
 0x727   :  { %12420 = vst [vmem:[%s20140_s8 + $0x1b8] sm:$0xff] %v12356_v30  ;;  %12421 = vst [vmem:[%s20140_s8 + $0x1c0] sm:$0xff] %v12357_v52 }
 0x728   :  { %12422 = vst [vmem:[%s20140_s8 + $0x1c8] sm:$0xff] %v12358_v33  ;;  %12423 = vst [vmem:[%s20140_s8 + $0x1d0] sm:$0xff] %v12359_v6 }
 0x729   :  { %12424 = vst [vmem:[%s20140_s8 + $0x1d8] sm:$0xff] %v12360_v19  ;;  %12425 = vst [vmem:[%s20140_s8 + $0x1e0] sm:$0xff] %v12361_v35 }
 0x72a   :  { %12426 = vst [vmem:[%s20140_s8 + $0x1e8] sm:$0xff] %v12362_v16  ;;  %12427 = vst [vmem:[%s20140_s8 + $0x1f0] sm:$0xff] %v12363_v36 }
 0x72b   :  { %12428 = vst [vmem:[%s20140_s8 + $0x1f8] sm:$0xff] %v12364_v45 }

</bundles_post_ra>
